<compile_context>
chip_gen: v6e
topology: v6e:2x2x1
jax: 0.10.0
libtpu: 0.0.40
codegen_flags: <defaults>
</compile_context>

<pallas_src>
import jax
import jax.numpy as jnp
from jax.experimental import pallas as pl
from jax.experimental.pallas import tpu as pltpu  # noqa: F401  (imported for completeness)

HIDDEN_SIZE = 128
INPUT_SIZE = 1
NUM_LAYERS = 3
OUTPUT_SIZE = 1
BATCH_PAD = 16  # multiple of both f32 (8) and bf16 (16) sublane tiles


# ------------------------------ fused kernel ------------------------------
def fused_lstm_kernel(x_ref, wih0_ref, whh0_ref, b0_ref,
                      wih1_ref, whh1_ref, b1_ref,
                      wih2_ref, whh2_ref, b2_ref,
                      fcw_ref, fcb_ref, y_ref):
    """Whole forward pass: 3 stacked LSTM layers (wavefront-scheduled) + Linear head.

    x_ref:    (T, Bp, 1)   time-major input (batch padded)
    wih0:     (1, 4H) f32  layer-0 input weights (row vector; input_size == 1)
    whh0:     (H, 4H) bf16 layer-0 recurrent weights (transposed)
    wih1/2:   (H, 4H) bf16 layers 1/2 input weights (transposed)
    whh1/2:   (H, 4H) bf16 layers 1/2 recurrent weights (transposed)
    b*:       (1, 4H) f32  b_ih + b_hh per layer
    fcw:      (1, H) f32,  fcb: (1, 1) f32
    y_ref:    (Bp, 1) f32
    """
    T, Bp, _ = x_ref.shape
    H = whh0_ref.shape[0]

    def sigmoid(v):  # one EUP op (tanh) + cheap VPU, instead of exp + reciprocal
        return 0.5 * jnp.tanh(0.5 * v) + 0.5

    def cell(gates, c):
        i_g = sigmoid(gates[:, 0 * H:1 * H])
        f_g = sigmoid(gates[:, 1 * H:2 * H])
        g_g = jnp.tanh(gates[:, 2 * H:3 * H])
        o_g = sigmoid(gates[:, 3 * H:4 * H])
        c_new = f_g * c + i_g * g_g
        h_new = o_g * jnp.tanh(c_new)
        return h_new, c_new

    def rdot(act_f32, w_ref):  # f32 activations cast to bf16 at the dot, f32 accumulate
        return jnp.dot(act_f32.astype(w_ref.dtype), w_ref[...],
                       preferred_element_type=jnp.float32)

    # Layer-0 input projection: input_size == 1 -> VPU broadcast multiply.
    # Fully hoisted off the recurrent chain (depends only on x); bias folded in.
    x_all = x_ref[...]                                       # (T, Bp, 1)
    wih0 = wih0_ref[...]                                     # (1, 4H)
    b0 = b0_ref[...]                                         # (1, 4H)
    x_proj = [x_all[t] * wih0 + b0 for t in range(T)]        # T x (Bp, 4H)

    zeros = jnp.zeros((Bp, H), jnp.float32)
    h = [zeros, zeros, zeros]
    c = [zeros, zeros, zeros]

    # Wavefront schedule: diagonal d -> layer l works on timestep t = d - l.
    # All cells in one diagonal read only previous-diagonal carries, so their
    # matmul -> EUP chains are independent and can overlap in the MXU/EUP pipes.
    for d in range(T + NUM_LAYERS - 1):
        nh, nc = list(h), list(c)

        if d < T:                                            # layer 0, t = d
            g0 = x_proj[d] + rdot(h[0], whh0_ref)
            nh[0], nc[0] = cell(g0, c[0])

        if 1 <= d <= T:                                      # layer 1, t = d - 1
            g1 = rdot(h[0], wih1_ref) + rdot(h[1], whh1_ref) + b1_ref[...]
            nh[1], nc[1] = cell(g1, c[1])

        if 2 <= d <= T + 1:                                  # layer 2, t = d - 2
            g2 = rdot(h[1], wih2_ref) + rdot(h[2], whh2_ref) + b2_ref[...]
            nh[2], nc[2] = cell(g2, c[2])

        h, c = nh, nc

    # TODO(synk): dropout(p=0.2) is identity in eval mode; training-mode masking omitted.

    # FC head (K=H, N=1): VPU multiply + lane reduction instead of an MXU dot.
    y_ref[...] = (jnp.sum(h[2] * fcw_ref[...], axis=-1, keepdims=True)
                  + fcb_ref[...])


# ------------------------------ parameter setup ------------------------------
def init_params(key, input_size, hidden_size, output_size, num_layers):
    """PyTorch-style shapes and U(-1/sqrt(H), 1/sqrt(H)) init."""
    k = 1.0 / jnp.sqrt(hidden_size)
    params = {"lstm": []}
    for layer in range(num_layers):
        in_l = input_size if layer == 0 else hidden_size
        key, k1, k2, k3, k4 = jax.random.split(key, 5)
        w_ih = jax.random.uniform(k1, (4 * hidden_size, in_l), jnp.float32, -k, k)
        w_hh = jax.random.uniform(k2, (4 * hidden_size, hidden_size), jnp.float32, -k, k)
        b_ih = jax.random.uniform(k3, (4 * hidden_size,), jnp.float32, -k, k)
        b_hh = jax.random.uniform(k4, (4 * hidden_size,), jnp.float32, -k, k)
        params["lstm"].append((w_ih, w_hh, b_ih, b_hh))
    key, k5, k6 = jax.random.split(key, 3)
    params["fc_w"] = jax.random.uniform(k5, (output_size, hidden_size), jnp.float32, -k, k)
    params["fc_b"] = jax.random.uniform(k6, (output_size,), jnp.float32, -k, k)
    return params


def prepare_params(params):
    """One-time weight prep (transpose / bias fold / bf16 cast) — hoisted out of the forward."""
    w_ih0, w_hh0, b_ih0, b_hh0 = params["lstm"][0]
    assert w_ih0.shape[1] == 1, "layer-0 VPU broadcast projection requires input_size == 1"
    prep = {
        "wih0_row": jnp.transpose(w_ih0),                              # (1, 4H) f32 (VPU)
        "whh0_t": jnp.transpose(w_hh0).astype(jnp.bfloat16),           # (H, 4H) bf16 (MXU)
        "b0": (b_ih0 + b_hh0)[None, :],                                # (1, 4H) f32
    }
    for layer in (1, 2):
        w_ih, w_hh, b_ih, b_hh = params["lstm"][layer]
        prep[f"wih{layer}_t"] = jnp.transpose(w_ih).astype(jnp.bfloat16)   # (H, 4H) bf16
        prep[f"whh{layer}_t"] = jnp.transpose(w_hh).astype(jnp.bfloat16)   # (H, 4H) bf16
        prep[f"b{layer}"] = (b_ih + b_hh)[None, :]                         # (1, 4H) f32
    prep["fc_w_row"] = params["fc_w"]                                  # (1, H) f32 (VPU reduce)
    prep["fc_b"] = params["fc_b"][None, :]                             # (1, 1) f32
    return prep


# -------------------------------- full forward --------------------------------
@jax.jit
def simple_lstm_forward(x, prep):
    """x: (B, T, input_size) float32 — batch_first like the PyTorch module."""
    B, T, in_size = x.shape
    assert in_size == 1, "layer-0 broadcast projection requires input_size == 1"
    Bp = ((B + BATCH_PAD - 1) // BATCH_PAD) * BATCH_PAD      # pad batch (f32 & bf16 sublane tiles)

    x_tm = jnp.transpose(x, (1, 0, 2))                       # (T, B, 1) time-major
    x_tm = jnp.pad(x_tm, ((0, 0), (0, Bp - B), (0, 0)))      # (T, Bp, 1)

    # Single fused no-grid pallas_call; every operand is a whole-array VMEM block
    # (~0.7 MB of weights + ~1 KB input), so no tiling / double-buffering needed.
    y = pl.pallas_call(
        fused_lstm_kernel,
        out_shape=jax.ShapeDtypeStruct((Bp, OUTPUT_SIZE), jnp.float32),
    )(x_tm,
      prep["wih0_row"], prep["whh0_t"], prep["b0"],
      prep["wih1_t"], prep["whh1_t"], prep["b1"],
      prep["wih2_t"], prep["whh2_t"], prep["b2"],
      prep["fc_w_row"], prep["fc_b"])

    return y[:B]                                             # (B, output_size)


if __name__ == "__main__":
    B, T = 2, 8
    key = jax.random.PRNGKey(0)
    key_x, key_p = jax.random.split(key)

    x = jax.random.normal(key_x, (B, T, INPUT_SIZE), dtype=jnp.float32)
    params = init_params(key_p, INPUT_SIZE, HIDDEN_SIZE, OUTPUT_SIZE, NUM_LAYERS)
    prep = prepare_params(params)                            # one-time weight prep

    y = simple_lstm_forward(x, prep)
    jax.block_until_ready(y)
    assert y.shape == (B, OUTPUT_SIZE), y.shape
    print("KERNEL_OK")
</pallas_src>

<mosaic_0001>
module attributes {stable_mosaic.version = 11 : i64} {
  func.func @fused_lstm_kernel(%arg0: memref<8x16x1xf32, #tpu.memory_space<vmem>>, %arg1: memref<1x512xf32, #tpu.memory_space<vmem>>, %arg2: memref<128x512xbf16, #tpu.memory_space<vmem>>, %arg3: memref<1x512xf32, #tpu.memory_space<vmem>>, %arg4: memref<128x512xbf16, #tpu.memory_space<vmem>>, %arg5: memref<128x512xbf16, #tpu.memory_space<vmem>>, %arg6: memref<1x512xf32, #tpu.memory_space<vmem>>, %arg7: memref<128x512xbf16, #tpu.memory_space<vmem>>, %arg8: memref<128x512xbf16, #tpu.memory_space<vmem>>, %arg9: memref<1x512xf32, #tpu.memory_space<vmem>>, %arg10: memref<1x128xf32, #tpu.memory_space<vmem>>, %arg11: memref<1x1xf32, #tpu.memory_space<vmem>>, %arg12: memref<16x1xf32, #tpu.memory_space<vmem>>) attributes {dimension_semantics = [], scalar_prefetch = 0 : i64, scratch_operands = 0 : i64, tpu.core_type = #tpu.core_type<tc>} {
    %c0 = arith.constant 0 : index
    %c0_0 = arith.constant 0 : index
    %c0_1 = arith.constant 0 : index
    %0 = vector.load %arg0[%c0, %c0_0, %c0_1] : memref<8x16x1xf32, #tpu.memory_space<vmem>>, vector<8x16x1xf32>
    %c0_2 = arith.constant 0 : index
    %c0_3 = arith.constant 0 : index
    %1 = vector.load %arg1[%c0_2, %c0_3] : memref<1x512xf32, #tpu.memory_space<vmem>>, vector<1x512xf32>
    %c0_4 = arith.constant 0 : index
    %c0_5 = arith.constant 0 : index
    %2 = vector.load %arg3[%c0_4, %c0_5] : memref<1x512xf32, #tpu.memory_space<vmem>>, vector<1x512xf32>
    %3 = vector.extract_strided_slice %0 {offsets = [0, 0, 0], sizes = [1, 16, 1], strides = [1, 1, 1]} : vector<8x16x1xf32> to vector<1x16x1xf32>
    %4 = vector.shape_cast %3 : vector<1x16x1xf32> to vector<16x1xf32>
    %5 = vector.broadcast %4 : vector<16x1xf32> to vector<16x512xf32>
    %6 = vector.broadcast %1 : vector<1x512xf32> to vector<16x512xf32>
    %7 = arith.mulf %5, %6 : vector<16x512xf32>
    %8 = vector.broadcast %2 : vector<1x512xf32> to vector<16x512xf32>
    %9 = arith.addf %7, %8 : vector<16x512xf32>
    %10 = vector.extract_strided_slice %0 {offsets = [1, 0, 0], sizes = [1, 16, 1], strides = [1, 1, 1]} : vector<8x16x1xf32> to vector<1x16x1xf32>
    %11 = vector.shape_cast %10 : vector<1x16x1xf32> to vector<16x1xf32>
    %12 = vector.broadcast %11 : vector<16x1xf32> to vector<16x512xf32>
    %13 = vector.broadcast %1 : vector<1x512xf32> to vector<16x512xf32>
    %14 = arith.mulf %12, %13 : vector<16x512xf32>
    %15 = vector.broadcast %2 : vector<1x512xf32> to vector<16x512xf32>
    %16 = arith.addf %14, %15 : vector<16x512xf32>
    %17 = vector.extract_strided_slice %0 {offsets = [2, 0, 0], sizes = [1, 16, 1], strides = [1, 1, 1]} : vector<8x16x1xf32> to vector<1x16x1xf32>
    %18 = vector.shape_cast %17 : vector<1x16x1xf32> to vector<16x1xf32>
    %19 = vector.broadcast %18 : vector<16x1xf32> to vector<16x512xf32>
    %20 = vector.broadcast %1 : vector<1x512xf32> to vector<16x512xf32>
    %21 = arith.mulf %19, %20 : vector<16x512xf32>
    %22 = vector.broadcast %2 : vector<1x512xf32> to vector<16x512xf32>
    %23 = arith.addf %21, %22 : vector<16x512xf32>
    %24 = vector.extract_strided_slice %0 {offsets = [3, 0, 0], sizes = [1, 16, 1], strides = [1, 1, 1]} : vector<8x16x1xf32> to vector<1x16x1xf32>
    %25 = vector.shape_cast %24 : vector<1x16x1xf32> to vector<16x1xf32>
    %26 = vector.broadcast %25 : vector<16x1xf32> to vector<16x512xf32>
    %27 = vector.broadcast %1 : vector<1x512xf32> to vector<16x512xf32>
    %28 = arith.mulf %26, %27 : vector<16x512xf32>
    %29 = vector.broadcast %2 : vector<1x512xf32> to vector<16x512xf32>
    %30 = arith.addf %28, %29 : vector<16x512xf32>
    %31 = vector.extract_strided_slice %0 {offsets = [4, 0, 0], sizes = [1, 16, 1], strides = [1, 1, 1]} : vector<8x16x1xf32> to vector<1x16x1xf32>
    %32 = vector.shape_cast %31 : vector<1x16x1xf32> to vector<16x1xf32>
    %33 = vector.broadcast %32 : vector<16x1xf32> to vector<16x512xf32>
    %34 = vector.broadcast %1 : vector<1x512xf32> to vector<16x512xf32>
    %35 = arith.mulf %33, %34 : vector<16x512xf32>
    %36 = vector.broadcast %2 : vector<1x512xf32> to vector<16x512xf32>
    %37 = arith.addf %35, %36 : vector<16x512xf32>
    %38 = vector.extract_strided_slice %0 {offsets = [5, 0, 0], sizes = [1, 16, 1], strides = [1, 1, 1]} : vector<8x16x1xf32> to vector<1x16x1xf32>
    %39 = vector.shape_cast %38 : vector<1x16x1xf32> to vector<16x1xf32>
    %40 = vector.broadcast %39 : vector<16x1xf32> to vector<16x512xf32>
    %41 = vector.broadcast %1 : vector<1x512xf32> to vector<16x512xf32>
    %42 = arith.mulf %40, %41 : vector<16x512xf32>
    %43 = vector.broadcast %2 : vector<1x512xf32> to vector<16x512xf32>
    %44 = arith.addf %42, %43 : vector<16x512xf32>
    %45 = vector.extract_strided_slice %0 {offsets = [6, 0, 0], sizes = [1, 16, 1], strides = [1, 1, 1]} : vector<8x16x1xf32> to vector<1x16x1xf32>
    %46 = vector.shape_cast %45 : vector<1x16x1xf32> to vector<16x1xf32>
    %47 = vector.broadcast %46 : vector<16x1xf32> to vector<16x512xf32>
    %48 = vector.broadcast %1 : vector<1x512xf32> to vector<16x512xf32>
    %49 = arith.mulf %47, %48 : vector<16x512xf32>
    %50 = vector.broadcast %2 : vector<1x512xf32> to vector<16x512xf32>
    %51 = arith.addf %49, %50 : vector<16x512xf32>
    %52 = vector.extract_strided_slice %0 {offsets = [7, 0, 0], sizes = [1, 16, 1], strides = [1, 1, 1]} : vector<8x16x1xf32> to vector<1x16x1xf32>
    %53 = vector.shape_cast %52 : vector<1x16x1xf32> to vector<16x1xf32>
    %54 = vector.broadcast %53 : vector<16x1xf32> to vector<16x512xf32>
    %55 = vector.broadcast %1 : vector<1x512xf32> to vector<16x512xf32>
    %56 = arith.mulf %54, %55 : vector<16x512xf32>
    %57 = vector.broadcast %2 : vector<1x512xf32> to vector<16x512xf32>
    %58 = arith.addf %56, %57 : vector<16x512xf32>
    %cst = arith.constant 0.000000e+00 : f32
    %59 = vector.broadcast %cst : f32 to vector<16x128xf32>
    %60 = arith.truncf %59 : vector<16x128xf32> to vector<16x128xbf16>
    %c0_6 = arith.constant 0 : index
    %c0_7 = arith.constant 0 : index
    %61 = vector.load %arg2[%c0_6, %c0_7] : memref<128x512xbf16, #tpu.memory_space<vmem>>, vector<128x512xbf16>
    %cst_8 = arith.constant dense<0.000000e+00> : vector<16x512xf32>
    %62 = tpu.matmul %60, %61, %cst_8 {dimension_numbers = #tpu.dot_dimension_numbers<[1], [0], [0], [1], [0, 0, 1, 1], [], []>} : vector<16x128xbf16>, vector<128x512xbf16>, vector<16x512xf32> -> vector<16x512xf32>
    %63 = arith.addf %9, %62 : vector<16x512xf32>
    %64 = vector.extract_strided_slice %63 {offsets = [0, 0], sizes = [16, 128], strides = [1, 1]} : vector<16x512xf32> to vector<16x128xf32>
    %cst_9 = arith.constant 5.000000e-01 : f32
    %65 = vector.broadcast %cst_9 : f32 to vector<16x128xf32>
    %66 = arith.mulf %65, %64 : vector<16x128xf32>
    %67 = math.tanh %66 : vector<16x128xf32>
    %cst_10 = arith.constant 5.000000e-01 : f32
    %68 = vector.broadcast %cst_10 : f32 to vector<16x128xf32>
    %69 = arith.mulf %68, %67 : vector<16x128xf32>
    %cst_11 = arith.constant 5.000000e-01 : f32
    %70 = vector.broadcast %cst_11 : f32 to vector<16x128xf32>
    %71 = arith.addf %69, %70 : vector<16x128xf32>
    %72 = vector.extract_strided_slice %63 {offsets = [0, 128], sizes = [16, 128], strides = [1, 1]} : vector<16x512xf32> to vector<16x128xf32>
    %cst_12 = arith.constant 5.000000e-01 : f32
    %73 = vector.broadcast %cst_12 : f32 to vector<16x128xf32>
    %74 = arith.mulf %73, %72 : vector<16x128xf32>
    %75 = math.tanh %74 : vector<16x128xf32>
    %cst_13 = arith.constant 5.000000e-01 : f32
    %76 = vector.broadcast %cst_13 : f32 to vector<16x128xf32>
    %77 = arith.mulf %76, %75 : vector<16x128xf32>
    %cst_14 = arith.constant 5.000000e-01 : f32
    %78 = vector.broadcast %cst_14 : f32 to vector<16x128xf32>
    %79 = arith.addf %77, %78 : vector<16x128xf32>
    %80 = vector.extract_strided_slice %63 {offsets = [0, 256], sizes = [16, 128], strides = [1, 1]} : vector<16x512xf32> to vector<16x128xf32>
    %81 = math.tanh %80 : vector<16x128xf32>
    %82 = vector.extract_strided_slice %63 {offsets = [0, 384], sizes = [16, 128], strides = [1, 1]} : vector<16x512xf32> to vector<16x128xf32>
    %cst_15 = arith.constant 5.000000e-01 : f32
    %83 = vector.broadcast %cst_15 : f32 to vector<16x128xf32>
    %84 = arith.mulf %83, %82 : vector<16x128xf32>
    %85 = math.tanh %84 : vector<16x128xf32>
    %cst_16 = arith.constant 5.000000e-01 : f32
    %86 = vector.broadcast %cst_16 : f32 to vector<16x128xf32>
    %87 = arith.mulf %86, %85 : vector<16x128xf32>
    %cst_17 = arith.constant 5.000000e-01 : f32
    %88 = vector.broadcast %cst_17 : f32 to vector<16x128xf32>
    %89 = arith.addf %87, %88 : vector<16x128xf32>
    %90 = arith.mulf %79, %59 : vector<16x128xf32>
    %91 = arith.mulf %71, %81 : vector<16x128xf32>
    %92 = arith.addf %90, %91 : vector<16x128xf32>
    %93 = math.tanh %92 : vector<16x128xf32>
    %94 = arith.mulf %89, %93 : vector<16x128xf32>
    %95 = arith.truncf %94 : vector<16x128xf32> to vector<16x128xbf16>
    %c0_18 = arith.constant 0 : index
    %c0_19 = arith.constant 0 : index
    %96 = vector.load %arg2[%c0_18, %c0_19] : memref<128x512xbf16, #tpu.memory_space<vmem>>, vector<128x512xbf16>
    %cst_20 = arith.constant dense<0.000000e+00> : vector<16x512xf32>
    %97 = tpu.matmul %95, %96, %cst_20 {dimension_numbers = #tpu.dot_dimension_numbers<[1], [0], [0], [1], [0, 0, 1, 1], [], []>} : vector<16x128xbf16>, vector<128x512xbf16>, vector<16x512xf32> -> vector<16x512xf32>
    %98 = arith.addf %16, %97 : vector<16x512xf32>
    %99 = vector.extract_strided_slice %98 {offsets = [0, 0], sizes = [16, 128], strides = [1, 1]} : vector<16x512xf32> to vector<16x128xf32>
    %cst_21 = arith.constant 5.000000e-01 : f32
    %100 = vector.broadcast %cst_21 : f32 to vector<16x128xf32>
    %101 = arith.mulf %100, %99 : vector<16x128xf32>
    %102 = math.tanh %101 : vector<16x128xf32>
    %cst_22 = arith.constant 5.000000e-01 : f32
    %103 = vector.broadcast %cst_22 : f32 to vector<16x128xf32>
    %104 = arith.mulf %103, %102 : vector<16x128xf32>
    %cst_23 = arith.constant 5.000000e-01 : f32
    %105 = vector.broadcast %cst_23 : f32 to vector<16x128xf32>
    %106 = arith.addf %104, %105 : vector<16x128xf32>
    %107 = vector.extract_strided_slice %98 {offsets = [0, 128], sizes = [16, 128], strides = [1, 1]} : vector<16x512xf32> to vector<16x128xf32>
    %cst_24 = arith.constant 5.000000e-01 : f32
    %108 = vector.broadcast %cst_24 : f32 to vector<16x128xf32>
    %109 = arith.mulf %108, %107 : vector<16x128xf32>
    %110 = math.tanh %109 : vector<16x128xf32>
    %cst_25 = arith.constant 5.000000e-01 : f32
    %111 = vector.broadcast %cst_25 : f32 to vector<16x128xf32>
    %112 = arith.mulf %111, %110 : vector<16x128xf32>
    %cst_26 = arith.constant 5.000000e-01 : f32
    %113 = vector.broadcast %cst_26 : f32 to vector<16x128xf32>
    %114 = arith.addf %112, %113 : vector<16x128xf32>
    %115 = vector.extract_strided_slice %98 {offsets = [0, 256], sizes = [16, 128], strides = [1, 1]} : vector<16x512xf32> to vector<16x128xf32>
    %116 = math.tanh %115 : vector<16x128xf32>
    %117 = vector.extract_strided_slice %98 {offsets = [0, 384], sizes = [16, 128], strides = [1, 1]} : vector<16x512xf32> to vector<16x128xf32>
    %cst_27 = arith.constant 5.000000e-01 : f32
    %118 = vector.broadcast %cst_27 : f32 to vector<16x128xf32>
    %119 = arith.mulf %118, %117 : vector<16x128xf32>
    %120 = math.tanh %119 : vector<16x128xf32>
    %cst_28 = arith.constant 5.000000e-01 : f32
    %121 = vector.broadcast %cst_28 : f32 to vector<16x128xf32>
    %122 = arith.mulf %121, %120 : vector<16x128xf32>
    %cst_29 = arith.constant 5.000000e-01 : f32
    %123 = vector.broadcast %cst_29 : f32 to vector<16x128xf32>
    %124 = arith.addf %122, %123 : vector<16x128xf32>
    %125 = arith.mulf %114, %92 : vector<16x128xf32>
    %126 = arith.mulf %106, %116 : vector<16x128xf32>
    %127 = arith.addf %125, %126 : vector<16x128xf32>
    %128 = math.tanh %127 : vector<16x128xf32>
    %129 = arith.mulf %124, %128 : vector<16x128xf32>
    %130 = arith.truncf %94 : vector<16x128xf32> to vector<16x128xbf16>
    %c0_30 = arith.constant 0 : index
    %c0_31 = arith.constant 0 : index
    %131 = vector.load %arg4[%c0_30, %c0_31] : memref<128x512xbf16, #tpu.memory_space<vmem>>, vector<128x512xbf16>
    %cst_32 = arith.constant dense<0.000000e+00> : vector<16x512xf32>
    %132 = tpu.matmul %130, %131, %cst_32 {dimension_numbers = #tpu.dot_dimension_numbers<[1], [0], [0], [1], [0, 0, 1, 1], [], []>} : vector<16x128xbf16>, vector<128x512xbf16>, vector<16x512xf32> -> vector<16x512xf32>
    %133 = arith.truncf %59 : vector<16x128xf32> to vector<16x128xbf16>
    %c0_33 = arith.constant 0 : index
    %c0_34 = arith.constant 0 : index
    %134 = vector.load %arg5[%c0_33, %c0_34] : memref<128x512xbf16, #tpu.memory_space<vmem>>, vector<128x512xbf16>
    %cst_35 = arith.constant dense<0.000000e+00> : vector<16x512xf32>
    %135 = tpu.matmul %133, %134, %cst_35 {dimension_numbers = #tpu.dot_dimension_numbers<[1], [0], [0], [1], [0, 0, 1, 1], [], []>} : vector<16x128xbf16>, vector<128x512xbf16>, vector<16x512xf32> -> vector<16x512xf32>
    %136 = arith.addf %132, %135 : vector<16x512xf32>
    %c0_36 = arith.constant 0 : index
    %c0_37 = arith.constant 0 : index
    %137 = vector.load %arg6[%c0_36, %c0_37] : memref<1x512xf32, #tpu.memory_space<vmem>>, vector<1x512xf32>
    %138 = vector.broadcast %137 : vector<1x512xf32> to vector<16x512xf32>
    %139 = arith.addf %136, %138 : vector<16x512xf32>
    %140 = vector.extract_strided_slice %139 {offsets = [0, 0], sizes = [16, 128], strides = [1, 1]} : vector<16x512xf32> to vector<16x128xf32>
    %cst_38 = arith.constant 5.000000e-01 : f32
    %141 = vector.broadcast %cst_38 : f32 to vector<16x128xf32>
    %142 = arith.mulf %141, %140 : vector<16x128xf32>
    %143 = math.tanh %142 : vector<16x128xf32>
    %cst_39 = arith.constant 5.000000e-01 : f32
    %144 = vector.broadcast %cst_39 : f32 to vector<16x128xf32>
    %145 = arith.mulf %144, %143 : vector<16x128xf32>
    %cst_40 = arith.constant 5.000000e-01 : f32
    %146 = vector.broadcast %cst_40 : f32 to vector<16x128xf32>
    %147 = arith.addf %145, %146 : vector<16x128xf32>
    %148 = vector.extract_strided_slice %139 {offsets = [0, 128], sizes = [16, 128], strides = [1, 1]} : vector<16x512xf32> to vector<16x128xf32>
    %cst_41 = arith.constant 5.000000e-01 : f32
    %149 = vector.broadcast %cst_41 : f32 to vector<16x128xf32>
    %150 = arith.mulf %149, %148 : vector<16x128xf32>
    %151 = math.tanh %150 : vector<16x128xf32>
    %cst_42 = arith.constant 5.000000e-01 : f32
    %152 = vector.broadcast %cst_42 : f32 to vector<16x128xf32>
    %153 = arith.mulf %152, %151 : vector<16x128xf32>
    %cst_43 = arith.constant 5.000000e-01 : f32
    %154 = vector.broadcast %cst_43 : f32 to vector<16x128xf32>
    %155 = arith.addf %153, %154 : vector<16x128xf32>
    %156 = vector.extract_strided_slice %139 {offsets = [0, 256], sizes = [16, 128], strides = [1, 1]} : vector<16x512xf32> to vector<16x128xf32>
    %157 = math.tanh %156 : vector<16x128xf32>
    %158 = vector.extract_strided_slice %139 {offsets = [0, 384], sizes = [16, 128], strides = [1, 1]} : vector<16x512xf32> to vector<16x128xf32>
    %cst_44 = arith.constant 5.000000e-01 : f32
    %159 = vector.broadcast %cst_44 : f32 to vector<16x128xf32>
    %160 = arith.mulf %159, %158 : vector<16x128xf32>
    %161 = math.tanh %160 : vector<16x128xf32>
    %cst_45 = arith.constant 5.000000e-01 : f32
    %162 = vector.broadcast %cst_45 : f32 to vector<16x128xf32>
    %163 = arith.mulf %162, %161 : vector<16x128xf32>
    %cst_46 = arith.constant 5.000000e-01 : f32
    %164 = vector.broadcast %cst_46 : f32 to vector<16x128xf32>
    %165 = arith.addf %163, %164 : vector<16x128xf32>
    %166 = arith.mulf %155, %59 : vector<16x128xf32>
    %167 = arith.mulf %147, %157 : vector<16x128xf32>
    %168 = arith.addf %166, %167 : vector<16x128xf32>
    %169 = math.tanh %168 : vector<16x128xf32>
    %170 = arith.mulf %165, %169 : vector<16x128xf32>
    %171 = arith.truncf %129 : vector<16x128xf32> to vector<16x128xbf16>
    %c0_47 = arith.constant 0 : index
    %c0_48 = arith.constant 0 : index
    %172 = vector.load %arg2[%c0_47, %c0_48] : memref<128x512xbf16, #tpu.memory_space<vmem>>, vector<128x512xbf16>
    %cst_49 = arith.constant dense<0.000000e+00> : vector<16x512xf32>
    %173 = tpu.matmul %171, %172, %cst_49 {dimension_numbers = #tpu.dot_dimension_numbers<[1], [0], [0], [1], [0, 0, 1, 1], [], []>} : vector<16x128xbf16>, vector<128x512xbf16>, vector<16x512xf32> -> vector<16x512xf32>
    %174 = arith.addf %23, %173 : vector<16x512xf32>
    %175 = vector.extract_strided_slice %174 {offsets = [0, 0], sizes = [16, 128], strides = [1, 1]} : vector<16x512xf32> to vector<16x128xf32>
    %cst_50 = arith.constant 5.000000e-01 : f32
    %176 = vector.broadcast %cst_50 : f32 to vector<16x128xf32>
    %177 = arith.mulf %176, %175 : vector<16x128xf32>
    %178 = math.tanh %177 : vector<16x128xf32>
    %cst_51 = arith.constant 5.000000e-01 : f32
    %179 = vector.broadcast %cst_51 : f32 to vector<16x128xf32>
    %180 = arith.mulf %179, %178 : vector<16x128xf32>
    %cst_52 = arith.constant 5.000000e-01 : f32
    %181 = vector.broadcast %cst_52 : f32 to vector<16x128xf32>
    %182 = arith.addf %180, %181 : vector<16x128xf32>
    %183 = vector.extract_strided_slice %174 {offsets = [0, 128], sizes = [16, 128], strides = [1, 1]} : vector<16x512xf32> to vector<16x128xf32>
    %cst_53 = arith.constant 5.000000e-01 : f32
    %184 = vector.broadcast %cst_53 : f32 to vector<16x128xf32>
    %185 = arith.mulf %184, %183 : vector<16x128xf32>
    %186 = math.tanh %185 : vector<16x128xf32>
    %cst_54 = arith.constant 5.000000e-01 : f32
    %187 = vector.broadcast %cst_54 : f32 to vector<16x128xf32>
    %188 = arith.mulf %187, %186 : vector<16x128xf32>
    %cst_55 = arith.constant 5.000000e-01 : f32
    %189 = vector.broadcast %cst_55 : f32 to vector<16x128xf32>
    %190 = arith.addf %188, %189 : vector<16x128xf32>
    %191 = vector.extract_strided_slice %174 {offsets = [0, 256], sizes = [16, 128], strides = [1, 1]} : vector<16x512xf32> to vector<16x128xf32>
    %192 = math.tanh %191 : vector<16x128xf32>
    %193 = vector.extract_strided_slice %174 {offsets = [0, 384], sizes = [16, 128], strides = [1, 1]} : vector<16x512xf32> to vector<16x128xf32>
    %cst_56 = arith.constant 5.000000e-01 : f32
    %194 = vector.broadcast %cst_56 : f32 to vector<16x128xf32>
    %195 = arith.mulf %194, %193 : vector<16x128xf32>
    %196 = math.tanh %195 : vector<16x128xf32>
    %cst_57 = arith.constant 5.000000e-01 : f32
    %197 = vector.broadcast %cst_57 : f32 to vector<16x128xf32>
    %198 = arith.mulf %197, %196 : vector<16x128xf32>
    %cst_58 = arith.constant 5.000000e-01 : f32
    %199 = vector.broadcast %cst_58 : f32 to vector<16x128xf32>
    %200 = arith.addf %198, %199 : vector<16x128xf32>
    %201 = arith.mulf %190, %127 : vector<16x128xf32>
    %202 = arith.mulf %182, %192 : vector<16x128xf32>
    %203 = arith.addf %201, %202 : vector<16x128xf32>
    %204 = math.tanh %203 : vector<16x128xf32>
    %205 = arith.mulf %200, %204 : vector<16x128xf32>
    %206 = arith.truncf %129 : vector<16x128xf32> to vector<16x128xbf16>
    %c0_59 = arith.constant 0 : index
    %c0_60 = arith.constant 0 : index
    %207 = vector.load %arg4[%c0_59, %c0_60] : memref<128x512xbf16, #tpu.memory_space<vmem>>, vector<128x512xbf16>
    %cst_61 = arith.constant dense<0.000000e+00> : vector<16x512xf32>
    %208 = tpu.matmul %206, %207, %cst_61 {dimension_numbers = #tpu.dot_dimension_numbers<[1], [0], [0], [1], [0, 0, 1, 1], [], []>} : vector<16x128xbf16>, vector<128x512xbf16>, vector<16x512xf32> -> vector<16x512xf32>
    %209 = arith.truncf %170 : vector<16x128xf32> to vector<16x128xbf16>
    %c0_62 = arith.constant 0 : index
    %c0_63 = arith.constant 0 : index
    %210 = vector.load %arg5[%c0_62, %c0_63] : memref<128x512xbf16, #tpu.memory_space<vmem>>, vector<128x512xbf16>
    %cst_64 = arith.constant dense<0.000000e+00> : vector<16x512xf32>
    %211 = tpu.matmul %209, %210, %cst_64 {dimension_numbers = #tpu.dot_dimension_numbers<[1], [0], [0], [1], [0, 0, 1, 1], [], []>} : vector<16x128xbf16>, vector<128x512xbf16>, vector<16x512xf32> -> vector<16x512xf32>
    %212 = arith.addf %208, %211 : vector<16x512xf32>
    %c0_65 = arith.constant 0 : index
    %c0_66 = arith.constant 0 : index
    %213 = vector.load %arg6[%c0_65, %c0_66] : memref<1x512xf32, #tpu.memory_space<vmem>>, vector<1x512xf32>
    %214 = vector.broadcast %213 : vector<1x512xf32> to vector<16x512xf32>
    %215 = arith.addf %212, %214 : vector<16x512xf32>
    %216 = vector.extract_strided_slice %215 {offsets = [0, 0], sizes = [16, 128], strides = [1, 1]} : vector<16x512xf32> to vector<16x128xf32>
    %cst_67 = arith.constant 5.000000e-01 : f32
    %217 = vector.broadcast %cst_67 : f32 to vector<16x128xf32>
    %218 = arith.mulf %217, %216 : vector<16x128xf32>
    %219 = math.tanh %218 : vector<16x128xf32>
    %cst_68 = arith.constant 5.000000e-01 : f32
    %220 = vector.broadcast %cst_68 : f32 to vector<16x128xf32>
    %221 = arith.mulf %220, %219 : vector<16x128xf32>
    %cst_69 = arith.constant 5.000000e-01 : f32
    %222 = vector.broadcast %cst_69 : f32 to vector<16x128xf32>
    %223 = arith.addf %221, %222 : vector<16x128xf32>
    %224 = vector.extract_strided_slice %215 {offsets = [0, 128], sizes = [16, 128], strides = [1, 1]} : vector<16x512xf32> to vector<16x128xf32>
    %cst_70 = arith.constant 5.000000e-01 : f32
    %225 = vector.broadcast %cst_70 : f32 to vector<16x128xf32>
    %226 = arith.mulf %225, %224 : vector<16x128xf32>
    %227 = math.tanh %226 : vector<16x128xf32>
    %cst_71 = arith.constant 5.000000e-01 : f32
    %228 = vector.broadcast %cst_71 : f32 to vector<16x128xf32>
    %229 = arith.mulf %228, %227 : vector<16x128xf32>
    %cst_72 = arith.constant 5.000000e-01 : f32
    %230 = vector.broadcast %cst_72 : f32 to vector<16x128xf32>
    %231 = arith.addf %229, %230 : vector<16x128xf32>
    %232 = vector.extract_strided_slice %215 {offsets = [0, 256], sizes = [16, 128], strides = [1, 1]} : vector<16x512xf32> to vector<16x128xf32>
    %233 = math.tanh %232 : vector<16x128xf32>
    %234 = vector.extract_strided_slice %215 {offsets = [0, 384], sizes = [16, 128], strides = [1, 1]} : vector<16x512xf32> to vector<16x128xf32>
    %cst_73 = arith.constant 5.000000e-01 : f32
    %235 = vector.broadcast %cst_73 : f32 to vector<16x128xf32>
    %236 = arith.mulf %235, %234 : vector<16x128xf32>
    %237 = math.tanh %236 : vector<16x128xf32>
    %cst_74 = arith.constant 5.000000e-01 : f32
    %238 = vector.broadcast %cst_74 : f32 to vector<16x128xf32>
    %239 = arith.mulf %238, %237 : vector<16x128xf32>
    %cst_75 = arith.constant 5.000000e-01 : f32
    %240 = vector.broadcast %cst_75 : f32 to vector<16x128xf32>
    %241 = arith.addf %239, %240 : vector<16x128xf32>
    %242 = arith.mulf %231, %168 : vector<16x128xf32>
    %243 = arith.mulf %223, %233 : vector<16x128xf32>
    %244 = arith.addf %242, %243 : vector<16x128xf32>
    %245 = math.tanh %244 : vector<16x128xf32>
    %246 = arith.mulf %241, %245 : vector<16x128xf32>
    %247 = arith.truncf %170 : vector<16x128xf32> to vector<16x128xbf16>
    %c0_76 = arith.constant 0 : index
    %c0_77 = arith.constant 0 : index
    %248 = vector.load %arg7[%c0_76, %c0_77] : memref<128x512xbf16, #tpu.memory_space<vmem>>, vector<128x512xbf16>
    %cst_78 = arith.constant dense<0.000000e+00> : vector<16x512xf32>
    %249 = tpu.matmul %247, %248, %cst_78 {dimension_numbers = #tpu.dot_dimension_numbers<[1], [0], [0], [1], [0, 0, 1, 1], [], []>} : vector<16x128xbf16>, vector<128x512xbf16>, vector<16x512xf32> -> vector<16x512xf32>
    %250 = arith.truncf %59 : vector<16x128xf32> to vector<16x128xbf16>
    %c0_79 = arith.constant 0 : index
    %c0_80 = arith.constant 0 : index
    %251 = vector.load %arg8[%c0_79, %c0_80] : memref<128x512xbf16, #tpu.memory_space<vmem>>, vector<128x512xbf16>
    %cst_81 = arith.constant dense<0.000000e+00> : vector<16x512xf32>
    %252 = tpu.matmul %250, %251, %cst_81 {dimension_numbers = #tpu.dot_dimension_numbers<[1], [0], [0], [1], [0, 0, 1, 1], [], []>} : vector<16x128xbf16>, vector<128x512xbf16>, vector<16x512xf32> -> vector<16x512xf32>
    %253 = arith.addf %249, %252 : vector<16x512xf32>
    %c0_82 = arith.constant 0 : index
    %c0_83 = arith.constant 0 : index
    %254 = vector.load %arg9[%c0_82, %c0_83] : memref<1x512xf32, #tpu.memory_space<vmem>>, vector<1x512xf32>
    %255 = vector.broadcast %254 : vector<1x512xf32> to vector<16x512xf32>
    %256 = arith.addf %253, %255 : vector<16x512xf32>
    %257 = vector.extract_strided_slice %256 {offsets = [0, 0], sizes = [16, 128], strides = [1, 1]} : vector<16x512xf32> to vector<16x128xf32>
    %cst_84 = arith.constant 5.000000e-01 : f32
    %258 = vector.broadcast %cst_84 : f32 to vector<16x128xf32>
    %259 = arith.mulf %258, %257 : vector<16x128xf32>
    %260 = math.tanh %259 : vector<16x128xf32>
    %cst_85 = arith.constant 5.000000e-01 : f32
    %261 = vector.broadcast %cst_85 : f32 to vector<16x128xf32>
    %262 = arith.mulf %261, %260 : vector<16x128xf32>
    %cst_86 = arith.constant 5.000000e-01 : f32
    %263 = vector.broadcast %cst_86 : f32 to vector<16x128xf32>
    %264 = arith.addf %262, %263 : vector<16x128xf32>
    %265 = vector.extract_strided_slice %256 {offsets = [0, 128], sizes = [16, 128], strides = [1, 1]} : vector<16x512xf32> to vector<16x128xf32>
    %cst_87 = arith.constant 5.000000e-01 : f32
    %266 = vector.broadcast %cst_87 : f32 to vector<16x128xf32>
    %267 = arith.mulf %266, %265 : vector<16x128xf32>
    %268 = math.tanh %267 : vector<16x128xf32>
    %cst_88 = arith.constant 5.000000e-01 : f32
    %269 = vector.broadcast %cst_88 : f32 to vector<16x128xf32>
    %270 = arith.mulf %269, %268 : vector<16x128xf32>
    %cst_89 = arith.constant 5.000000e-01 : f32
    %271 = vector.broadcast %cst_89 : f32 to vector<16x128xf32>
    %272 = arith.addf %270, %271 : vector<16x128xf32>
    %273 = vector.extract_strided_slice %256 {offsets = [0, 256], sizes = [16, 128], strides = [1, 1]} : vector<16x512xf32> to vector<16x128xf32>
    %274 = math.tanh %273 : vector<16x128xf32>
    %275 = vector.extract_strided_slice %256 {offsets = [0, 384], sizes = [16, 128], strides = [1, 1]} : vector<16x512xf32> to vector<16x128xf32>
    %cst_90 = arith.constant 5.000000e-01 : f32
    %276 = vector.broadcast %cst_90 : f32 to vector<16x128xf32>
    %277 = arith.mulf %276, %275 : vector<16x128xf32>
    %278 = math.tanh %277 : vector<16x128xf32>
    %cst_91 = arith.constant 5.000000e-01 : f32
    %279 = vector.broadcast %cst_91 : f32 to vector<16x128xf32>
    %280 = arith.mulf %279, %278 : vector<16x128xf32>
    %cst_92 = arith.constant 5.000000e-01 : f32
    %281 = vector.broadcast %cst_92 : f32 to vector<16x128xf32>
    %282 = arith.addf %280, %281 : vector<16x128xf32>
    %283 = arith.mulf %272, %59 : vector<16x128xf32>
    %284 = arith.mulf %264, %274 : vector<16x128xf32>
    %285 = arith.addf %283, %284 : vector<16x128xf32>
    %286 = math.tanh %285 : vector<16x128xf32>
    %287 = arith.mulf %282, %286 : vector<16x128xf32>
    %288 = arith.truncf %205 : vector<16x128xf32> to vector<16x128xbf16>
    %c0_93 = arith.constant 0 : index
    %c0_94 = arith.constant 0 : index
    %289 = vector.load %arg2[%c0_93, %c0_94] : memref<128x512xbf16, #tpu.memory_space<vmem>>, vector<128x512xbf16>
    %cst_95 = arith.constant dense<0.000000e+00> : vector<16x512xf32>
    %290 = tpu.matmul %288, %289, %cst_95 {dimension_numbers = #tpu.dot_dimension_numbers<[1], [0], [0], [1], [0, 0, 1, 1], [], []>} : vector<16x128xbf16>, vector<128x512xbf16>, vector<16x512xf32> -> vector<16x512xf32>
    %291 = arith.addf %30, %290 : vector<16x512xf32>
    %292 = vector.extract_strided_slice %291 {offsets = [0, 0], sizes = [16, 128], strides = [1, 1]} : vector<16x512xf32> to vector<16x128xf32>
    %cst_96 = arith.constant 5.000000e-01 : f32
    %293 = vector.broadcast %cst_96 : f32 to vector<16x128xf32>
    %294 = arith.mulf %293, %292 : vector<16x128xf32>
    %295 = math.tanh %294 : vector<16x128xf32>
    %cst_97 = arith.constant 5.000000e-01 : f32
    %296 = vector.broadcast %cst_97 : f32 to vector<16x128xf32>
    %297 = arith.mulf %296, %295 : vector<16x128xf32>
    %cst_98 = arith.constant 5.000000e-01 : f32
    %298 = vector.broadcast %cst_98 : f32 to vector<16x128xf32>
    %299 = arith.addf %297, %298 : vector<16x128xf32>
    %300 = vector.extract_strided_slice %291 {offsets = [0, 128], sizes = [16, 128], strides = [1, 1]} : vector<16x512xf32> to vector<16x128xf32>
    %cst_99 = arith.constant 5.000000e-01 : f32
    %301 = vector.broadcast %cst_99 : f32 to vector<16x128xf32>
    %302 = arith.mulf %301, %300 : vector<16x128xf32>
    %303 = math.tanh %302 : vector<16x128xf32>
    %cst_100 = arith.constant 5.000000e-01 : f32
    %304 = vector.broadcast %cst_100 : f32 to vector<16x128xf32>
    %305 = arith.mulf %304, %303 : vector<16x128xf32>
    %cst_101 = arith.constant 5.000000e-01 : f32
    %306 = vector.broadcast %cst_101 : f32 to vector<16x128xf32>
    %307 = arith.addf %305, %306 : vector<16x128xf32>
    %308 = vector.extract_strided_slice %291 {offsets = [0, 256], sizes = [16, 128], strides = [1, 1]} : vector<16x512xf32> to vector<16x128xf32>
    %309 = math.tanh %308 : vector<16x128xf32>
    %310 = vector.extract_strided_slice %291 {offsets = [0, 384], sizes = [16, 128], strides = [1, 1]} : vector<16x512xf32> to vector<16x128xf32>
    %cst_102 = arith.constant 5.000000e-01 : f32
    %311 = vector.broadcast %cst_102 : f32 to vector<16x128xf32>
    %312 = arith.mulf %311, %310 : vector<16x128xf32>
    %313 = math.tanh %312 : vector<16x128xf32>
    %cst_103 = arith.constant 5.000000e-01 : f32
    %314 = vector.broadcast %cst_103 : f32 to vector<16x128xf32>
    %315 = arith.mulf %314, %313 : vector<16x128xf32>
    %cst_104 = arith.constant 5.000000e-01 : f32
    %316 = vector.broadcast %cst_104 : f32 to vector<16x128xf32>
    %317 = arith.addf %315, %316 : vector<16x128xf32>
    %318 = arith.mulf %307, %203 : vector<16x128xf32>
    %319 = arith.mulf %299, %309 : vector<16x128xf32>
    %320 = arith.addf %318, %319 : vector<16x128xf32>
    %321 = math.tanh %320 : vector<16x128xf32>
    %322 = arith.mulf %317, %321 : vector<16x128xf32>
    %323 = arith.truncf %205 : vector<16x128xf32> to vector<16x128xbf16>
    %c0_105 = arith.constant 0 : index
    %c0_106 = arith.constant 0 : index
    %324 = vector.load %arg4[%c0_105, %c0_106] : memref<128x512xbf16, #tpu.memory_space<vmem>>, vector<128x512xbf16>
    %cst_107 = arith.constant dense<0.000000e+00> : vector<16x512xf32>
    %325 = tpu.matmul %323, %324, %cst_107 {dimension_numbers = #tpu.dot_dimension_numbers<[1], [0], [0], [1], [0, 0, 1, 1], [], []>} : vector<16x128xbf16>, vector<128x512xbf16>, vector<16x512xf32> -> vector<16x512xf32>
    %326 = arith.truncf %246 : vector<16x128xf32> to vector<16x128xbf16>
    %c0_108 = arith.constant 0 : index
    %c0_109 = arith.constant 0 : index
    %327 = vector.load %arg5[%c0_108, %c0_109] : memref<128x512xbf16, #tpu.memory_space<vmem>>, vector<128x512xbf16>
    %cst_110 = arith.constant dense<0.000000e+00> : vector<16x512xf32>
    %328 = tpu.matmul %326, %327, %cst_110 {dimension_numbers = #tpu.dot_dimension_numbers<[1], [0], [0], [1], [0, 0, 1, 1], [], []>} : vector<16x128xbf16>, vector<128x512xbf16>, vector<16x512xf32> -> vector<16x512xf32>
    %329 = arith.addf %325, %328 : vector<16x512xf32>
    %c0_111 = arith.constant 0 : index
    %c0_112 = arith.constant 0 : index
    %330 = vector.load %arg6[%c0_111, %c0_112] : memref<1x512xf32, #tpu.memory_space<vmem>>, vector<1x512xf32>
    %331 = vector.broadcast %330 : vector<1x512xf32> to vector<16x512xf32>
    %332 = arith.addf %329, %331 : vector<16x512xf32>
    %333 = vector.extract_strided_slice %332 {offsets = [0, 0], sizes = [16, 128], strides = [1, 1]} : vector<16x512xf32> to vector<16x128xf32>
    %cst_113 = arith.constant 5.000000e-01 : f32
    %334 = vector.broadcast %cst_113 : f32 to vector<16x128xf32>
    %335 = arith.mulf %334, %333 : vector<16x128xf32>
    %336 = math.tanh %335 : vector<16x128xf32>
    %cst_114 = arith.constant 5.000000e-01 : f32
    %337 = vector.broadcast %cst_114 : f32 to vector<16x128xf32>
    %338 = arith.mulf %337, %336 : vector<16x128xf32>
    %cst_115 = arith.constant 5.000000e-01 : f32
    %339 = vector.broadcast %cst_115 : f32 to vector<16x128xf32>
    %340 = arith.addf %338, %339 : vector<16x128xf32>
    %341 = vector.extract_strided_slice %332 {offsets = [0, 128], sizes = [16, 128], strides = [1, 1]} : vector<16x512xf32> to vector<16x128xf32>
    %cst_116 = arith.constant 5.000000e-01 : f32
    %342 = vector.broadcast %cst_116 : f32 to vector<16x128xf32>
    %343 = arith.mulf %342, %341 : vector<16x128xf32>
    %344 = math.tanh %343 : vector<16x128xf32>
    %cst_117 = arith.constant 5.000000e-01 : f32
    %345 = vector.broadcast %cst_117 : f32 to vector<16x128xf32>
    %346 = arith.mulf %345, %344 : vector<16x128xf32>
    %cst_118 = arith.constant 5.000000e-01 : f32
    %347 = vector.broadcast %cst_118 : f32 to vector<16x128xf32>
    %348 = arith.addf %346, %347 : vector<16x128xf32>
    %349 = vector.extract_strided_slice %332 {offsets = [0, 256], sizes = [16, 128], strides = [1, 1]} : vector<16x512xf32> to vector<16x128xf32>
    %350 = math.tanh %349 : vector<16x128xf32>
    %351 = vector.extract_strided_slice %332 {offsets = [0, 384], sizes = [16, 128], strides = [1, 1]} : vector<16x512xf32> to vector<16x128xf32>
    %cst_119 = arith.constant 5.000000e-01 : f32
    %352 = vector.broadcast %cst_119 : f32 to vector<16x128xf32>
    %353 = arith.mulf %352, %351 : vector<16x128xf32>
    %354 = math.tanh %353 : vector<16x128xf32>
    %cst_120 = arith.constant 5.000000e-01 : f32
    %355 = vector.broadcast %cst_120 : f32 to vector<16x128xf32>
    %356 = arith.mulf %355, %354 : vector<16x128xf32>
    %cst_121 = arith.constant 5.000000e-01 : f32
    %357 = vector.broadcast %cst_121 : f32 to vector<16x128xf32>
    %358 = arith.addf %356, %357 : vector<16x128xf32>
    %359 = arith.mulf %348, %244 : vector<16x128xf32>
    %360 = arith.mulf %340, %350 : vector<16x128xf32>
    %361 = arith.addf %359, %360 : vector<16x128xf32>
    %362 = math.tanh %361 : vector<16x128xf32>
    %363 = arith.mulf %358, %362 : vector<16x128xf32>
    %364 = arith.truncf %246 : vector<16x128xf32> to vector<16x128xbf16>
    %c0_122 = arith.constant 0 : index
    %c0_123 = arith.constant 0 : index
    %365 = vector.load %arg7[%c0_122, %c0_123] : memref<128x512xbf16, #tpu.memory_space<vmem>>, vector<128x512xbf16>
    %cst_124 = arith.constant dense<0.000000e+00> : vector<16x512xf32>
    %366 = tpu.matmul %364, %365, %cst_124 {dimension_numbers = #tpu.dot_dimension_numbers<[1], [0], [0], [1], [0, 0, 1, 1], [], []>} : vector<16x128xbf16>, vector<128x512xbf16>, vector<16x512xf32> -> vector<16x512xf32>
    %367 = arith.truncf %287 : vector<16x128xf32> to vector<16x128xbf16>
    %c0_125 = arith.constant 0 : index
    %c0_126 = arith.constant 0 : index
    %368 = vector.load %arg8[%c0_125, %c0_126] : memref<128x512xbf16, #tpu.memory_space<vmem>>, vector<128x512xbf16>
    %cst_127 = arith.constant dense<0.000000e+00> : vector<16x512xf32>
    %369 = tpu.matmul %367, %368, %cst_127 {dimension_numbers = #tpu.dot_dimension_numbers<[1], [0], [0], [1], [0, 0, 1, 1], [], []>} : vector<16x128xbf16>, vector<128x512xbf16>, vector<16x512xf32> -> vector<16x512xf32>
    %370 = arith.addf %366, %369 : vector<16x512xf32>
    %c0_128 = arith.constant 0 : index
    %c0_129 = arith.constant 0 : index
    %371 = vector.load %arg9[%c0_128, %c0_129] : memref<1x512xf32, #tpu.memory_space<vmem>>, vector<1x512xf32>
    %372 = vector.broadcast %371 : vector<1x512xf32> to vector<16x512xf32>
    %373 = arith.addf %370, %372 : vector<16x512xf32>
    %374 = vector.extract_strided_slice %373 {offsets = [0, 0], sizes = [16, 128], strides = [1, 1]} : vector<16x512xf32> to vector<16x128xf32>
    %cst_130 = arith.constant 5.000000e-01 : f32
    %375 = vector.broadcast %cst_130 : f32 to vector<16x128xf32>
    %376 = arith.mulf %375, %374 : vector<16x128xf32>
    %377 = math.tanh %376 : vector<16x128xf32>
    %cst_131 = arith.constant 5.000000e-01 : f32
    %378 = vector.broadcast %cst_131 : f32 to vector<16x128xf32>
    %379 = arith.mulf %378, %377 : vector<16x128xf32>
    %cst_132 = arith.constant 5.000000e-01 : f32
    %380 = vector.broadcast %cst_132 : f32 to vector<16x128xf32>
    %381 = arith.addf %379, %380 : vector<16x128xf32>
    %382 = vector.extract_strided_slice %373 {offsets = [0, 128], sizes = [16, 128], strides = [1, 1]} : vector<16x512xf32> to vector<16x128xf32>
    %cst_133 = arith.constant 5.000000e-01 : f32
    %383 = vector.broadcast %cst_133 : f32 to vector<16x128xf32>
    %384 = arith.mulf %383, %382 : vector<16x128xf32>
    %385 = math.tanh %384 : vector<16x128xf32>
    %cst_134 = arith.constant 5.000000e-01 : f32
    %386 = vector.broadcast %cst_134 : f32 to vector<16x128xf32>
    %387 = arith.mulf %386, %385 : vector<16x128xf32>
    %cst_135 = arith.constant 5.000000e-01 : f32
    %388 = vector.broadcast %cst_135 : f32 to vector<16x128xf32>
    %389 = arith.addf %387, %388 : vector<16x128xf32>
    %390 = vector.extract_strided_slice %373 {offsets = [0, 256], sizes = [16, 128], strides = [1, 1]} : vector<16x512xf32> to vector<16x128xf32>
    %391 = math.tanh %390 : vector<16x128xf32>
    %392 = vector.extract_strided_slice %373 {offsets = [0, 384], sizes = [16, 128], strides = [1, 1]} : vector<16x512xf32> to vector<16x128xf32>
    %cst_136 = arith.constant 5.000000e-01 : f32
    %393 = vector.broadcast %cst_136 : f32 to vector<16x128xf32>
    %394 = arith.mulf %393, %392 : vector<16x128xf32>
    %395 = math.tanh %394 : vector<16x128xf32>
    %cst_137 = arith.constant 5.000000e-01 : f32
    %396 = vector.broadcast %cst_137 : f32 to vector<16x128xf32>
    %397 = arith.mulf %396, %395 : vector<16x128xf32>
    %cst_138 = arith.constant 5.000000e-01 : f32
    %398 = vector.broadcast %cst_138 : f32 to vector<16x128xf32>
    %399 = arith.addf %397, %398 : vector<16x128xf32>
    %400 = arith.mulf %389, %285 : vector<16x128xf32>
    %401 = arith.mulf %381, %391 : vector<16x128xf32>
    %402 = arith.addf %400, %401 : vector<16x128xf32>
    %403 = math.tanh %402 : vector<16x128xf32>
    %404 = arith.mulf %399, %403 : vector<16x128xf32>
    %405 = arith.truncf %322 : vector<16x128xf32> to vector<16x128xbf16>
    %c0_139 = arith.constant 0 : index
    %c0_140 = arith.constant 0 : index
    %406 = vector.load %arg2[%c0_139, %c0_140] : memref<128x512xbf16, #tpu.memory_space<vmem>>, vector<128x512xbf16>
    %cst_141 = arith.constant dense<0.000000e+00> : vector<16x512xf32>
    %407 = tpu.matmul %405, %406, %cst_141 {dimension_numbers = #tpu.dot_dimension_numbers<[1], [0], [0], [1], [0, 0, 1, 1], [], []>} : vector<16x128xbf16>, vector<128x512xbf16>, vector<16x512xf32> -> vector<16x512xf32>
    %408 = arith.addf %37, %407 : vector<16x512xf32>
    %409 = vector.extract_strided_slice %408 {offsets = [0, 0], sizes = [16, 128], strides = [1, 1]} : vector<16x512xf32> to vector<16x128xf32>
    %cst_142 = arith.constant 5.000000e-01 : f32
    %410 = vector.broadcast %cst_142 : f32 to vector<16x128xf32>
    %411 = arith.mulf %410, %409 : vector<16x128xf32>
    %412 = math.tanh %411 : vector<16x128xf32>
    %cst_143 = arith.constant 5.000000e-01 : f32
    %413 = vector.broadcast %cst_143 : f32 to vector<16x128xf32>
    %414 = arith.mulf %413, %412 : vector<16x128xf32>
    %cst_144 = arith.constant 5.000000e-01 : f32
    %415 = vector.broadcast %cst_144 : f32 to vector<16x128xf32>
    %416 = arith.addf %414, %415 : vector<16x128xf32>
    %417 = vector.extract_strided_slice %408 {offsets = [0, 128], sizes = [16, 128], strides = [1, 1]} : vector<16x512xf32> to vector<16x128xf32>
    %cst_145 = arith.constant 5.000000e-01 : f32
    %418 = vector.broadcast %cst_145 : f32 to vector<16x128xf32>
    %419 = arith.mulf %418, %417 : vector<16x128xf32>
    %420 = math.tanh %419 : vector<16x128xf32>
    %cst_146 = arith.constant 5.000000e-01 : f32
    %421 = vector.broadcast %cst_146 : f32 to vector<16x128xf32>
    %422 = arith.mulf %421, %420 : vector<16x128xf32>
    %cst_147 = arith.constant 5.000000e-01 : f32
    %423 = vector.broadcast %cst_147 : f32 to vector<16x128xf32>
    %424 = arith.addf %422, %423 : vector<16x128xf32>
    %425 = vector.extract_strided_slice %408 {offsets = [0, 256], sizes = [16, 128], strides = [1, 1]} : vector<16x512xf32> to vector<16x128xf32>
    %426 = math.tanh %425 : vector<16x128xf32>
    %427 = vector.extract_strided_slice %408 {offsets = [0, 384], sizes = [16, 128], strides = [1, 1]} : vector<16x512xf32> to vector<16x128xf32>
    %cst_148 = arith.constant 5.000000e-01 : f32
    %428 = vector.broadcast %cst_148 : f32 to vector<16x128xf32>
    %429 = arith.mulf %428, %427 : vector<16x128xf32>
    %430 = math.tanh %429 : vector<16x128xf32>
    %cst_149 = arith.constant 5.000000e-01 : f32
    %431 = vector.broadcast %cst_149 : f32 to vector<16x128xf32>
    %432 = arith.mulf %431, %430 : vector<16x128xf32>
    %cst_150 = arith.constant 5.000000e-01 : f32
    %433 = vector.broadcast %cst_150 : f32 to vector<16x128xf32>
    %434 = arith.addf %432, %433 : vector<16x128xf32>
    %435 = arith.mulf %424, %320 : vector<16x128xf32>
    %436 = arith.mulf %416, %426 : vector<16x128xf32>
    %437 = arith.addf %435, %436 : vector<16x128xf32>
    %438 = math.tanh %437 : vector<16x128xf32>
    %439 = arith.mulf %434, %438 : vector<16x128xf32>
    %440 = arith.truncf %322 : vector<16x128xf32> to vector<16x128xbf16>
    %c0_151 = arith.constant 0 : index
    %c0_152 = arith.constant 0 : index
    %441 = vector.load %arg4[%c0_151, %c0_152] : memref<128x512xbf16, #tpu.memory_space<vmem>>, vector<128x512xbf16>
    %cst_153 = arith.constant dense<0.000000e+00> : vector<16x512xf32>
    %442 = tpu.matmul %440, %441, %cst_153 {dimension_numbers = #tpu.dot_dimension_numbers<[1], [0], [0], [1], [0, 0, 1, 1], [], []>} : vector<16x128xbf16>, vector<128x512xbf16>, vector<16x512xf32> -> vector<16x512xf32>
    %443 = arith.truncf %363 : vector<16x128xf32> to vector<16x128xbf16>
    %c0_154 = arith.constant 0 : index
    %c0_155 = arith.constant 0 : index
    %444 = vector.load %arg5[%c0_154, %c0_155] : memref<128x512xbf16, #tpu.memory_space<vmem>>, vector<128x512xbf16>
    %cst_156 = arith.constant dense<0.000000e+00> : vector<16x512xf32>
    %445 = tpu.matmul %443, %444, %cst_156 {dimension_numbers = #tpu.dot_dimension_numbers<[1], [0], [0], [1], [0, 0, 1, 1], [], []>} : vector<16x128xbf16>, vector<128x512xbf16>, vector<16x512xf32> -> vector<16x512xf32>
    %446 = arith.addf %442, %445 : vector<16x512xf32>
    %c0_157 = arith.constant 0 : index
    %c0_158 = arith.constant 0 : index
    %447 = vector.load %arg6[%c0_157, %c0_158] : memref<1x512xf32, #tpu.memory_space<vmem>>, vector<1x512xf32>
    %448 = vector.broadcast %447 : vector<1x512xf32> to vector<16x512xf32>
    %449 = arith.addf %446, %448 : vector<16x512xf32>
    %450 = vector.extract_strided_slice %449 {offsets = [0, 0], sizes = [16, 128], strides = [1, 1]} : vector<16x512xf32> to vector<16x128xf32>
    %cst_159 = arith.constant 5.000000e-01 : f32
    %451 = vector.broadcast %cst_159 : f32 to vector<16x128xf32>
    %452 = arith.mulf %451, %450 : vector<16x128xf32>
    %453 = math.tanh %452 : vector<16x128xf32>
    %cst_160 = arith.constant 5.000000e-01 : f32
    %454 = vector.broadcast %cst_160 : f32 to vector<16x128xf32>
    %455 = arith.mulf %454, %453 : vector<16x128xf32>
    %cst_161 = arith.constant 5.000000e-01 : f32
    %456 = vector.broadcast %cst_161 : f32 to vector<16x128xf32>
    %457 = arith.addf %455, %456 : vector<16x128xf32>
    %458 = vector.extract_strided_slice %449 {offsets = [0, 128], sizes = [16, 128], strides = [1, 1]} : vector<16x512xf32> to vector<16x128xf32>
    %cst_162 = arith.constant 5.000000e-01 : f32
    %459 = vector.broadcast %cst_162 : f32 to vector<16x128xf32>
    %460 = arith.mulf %459, %458 : vector<16x128xf32>
    %461 = math.tanh %460 : vector<16x128xf32>
    %cst_163 = arith.constant 5.000000e-01 : f32
    %462 = vector.broadcast %cst_163 : f32 to vector<16x128xf32>
    %463 = arith.mulf %462, %461 : vector<16x128xf32>
    %cst_164 = arith.constant 5.000000e-01 : f32
    %464 = vector.broadcast %cst_164 : f32 to vector<16x128xf32>
    %465 = arith.addf %463, %464 : vector<16x128xf32>
    %466 = vector.extract_strided_slice %449 {offsets = [0, 256], sizes = [16, 128], strides = [1, 1]} : vector<16x512xf32> to vector<16x128xf32>
    %467 = math.tanh %466 : vector<16x128xf32>
    %468 = vector.extract_strided_slice %449 {offsets = [0, 384], sizes = [16, 128], strides = [1, 1]} : vector<16x512xf32> to vector<16x128xf32>
    %cst_165 = arith.constant 5.000000e-01 : f32
    %469 = vector.broadcast %cst_165 : f32 to vector<16x128xf32>
    %470 = arith.mulf %469, %468 : vector<16x128xf32>
    %471 = math.tanh %470 : vector<16x128xf32>
    %cst_166 = arith.constant 5.000000e-01 : f32
    %472 = vector.broadcast %cst_166 : f32 to vector<16x128xf32>
    %473 = arith.mulf %472, %471 : vector<16x128xf32>
    %cst_167 = arith.constant 5.000000e-01 : f32
    %474 = vector.broadcast %cst_167 : f32 to vector<16x128xf32>
    %475 = arith.addf %473, %474 : vector<16x128xf32>
    %476 = arith.mulf %465, %361 : vector<16x128xf32>
    %477 = arith.mulf %457, %467 : vector<16x128xf32>
    %478 = arith.addf %476, %477 : vector<16x128xf32>
    %479 = math.tanh %478 : vector<16x128xf32>
    %480 = arith.mulf %475, %479 : vector<16x128xf32>
    %481 = arith.truncf %363 : vector<16x128xf32> to vector<16x128xbf16>
    %c0_168 = arith.constant 0 : index
    %c0_169 = arith.constant 0 : index
    %482 = vector.load %arg7[%c0_168, %c0_169] : memref<128x512xbf16, #tpu.memory_space<vmem>>, vector<128x512xbf16>
    %cst_170 = arith.constant dense<0.000000e+00> : vector<16x512xf32>
    %483 = tpu.matmul %481, %482, %cst_170 {dimension_numbers = #tpu.dot_dimension_numbers<[1], [0], [0], [1], [0, 0, 1, 1], [], []>} : vector<16x128xbf16>, vector<128x512xbf16>, vector<16x512xf32> -> vector<16x512xf32>
    %484 = arith.truncf %404 : vector<16x128xf32> to vector<16x128xbf16>
    %c0_171 = arith.constant 0 : index
    %c0_172 = arith.constant 0 : index
    %485 = vector.load %arg8[%c0_171, %c0_172] : memref<128x512xbf16, #tpu.memory_space<vmem>>, vector<128x512xbf16>
    %cst_173 = arith.constant dense<0.000000e+00> : vector<16x512xf32>
    %486 = tpu.matmul %484, %485, %cst_173 {dimension_numbers = #tpu.dot_dimension_numbers<[1], [0], [0], [1], [0, 0, 1, 1], [], []>} : vector<16x128xbf16>, vector<128x512xbf16>, vector<16x512xf32> -> vector<16x512xf32>
    %487 = arith.addf %483, %486 : vector<16x512xf32>
    %c0_174 = arith.constant 0 : index
    %c0_175 = arith.constant 0 : index
    %488 = vector.load %arg9[%c0_174, %c0_175] : memref<1x512xf32, #tpu.memory_space<vmem>>, vector<1x512xf32>
    %489 = vector.broadcast %488 : vector<1x512xf32> to vector<16x512xf32>
    %490 = arith.addf %487, %489 : vector<16x512xf32>
    %491 = vector.extract_strided_slice %490 {offsets = [0, 0], sizes = [16, 128], strides = [1, 1]} : vector<16x512xf32> to vector<16x128xf32>
    %cst_176 = arith.constant 5.000000e-01 : f32
    %492 = vector.broadcast %cst_176 : f32 to vector<16x128xf32>
    %493 = arith.mulf %492, %491 : vector<16x128xf32>
    %494 = math.tanh %493 : vector<16x128xf32>
    %cst_177 = arith.constant 5.000000e-01 : f32
    %495 = vector.broadcast %cst_177 : f32 to vector<16x128xf32>
    %496 = arith.mulf %495, %494 : vector<16x128xf32>
    %cst_178 = arith.constant 5.000000e-01 : f32
    %497 = vector.broadcast %cst_178 : f32 to vector<16x128xf32>
    %498 = arith.addf %496, %497 : vector<16x128xf32>
    %499 = vector.extract_strided_slice %490 {offsets = [0, 128], sizes = [16, 128], strides = [1, 1]} : vector<16x512xf32> to vector<16x128xf32>
    %cst_179 = arith.constant 5.000000e-01 : f32
    %500 = vector.broadcast %cst_179 : f32 to vector<16x128xf32>
    %501 = arith.mulf %500, %499 : vector<16x128xf32>
    %502 = math.tanh %501 : vector<16x128xf32>
    %cst_180 = arith.constant 5.000000e-01 : f32
    %503 = vector.broadcast %cst_180 : f32 to vector<16x128xf32>
    %504 = arith.mulf %503, %502 : vector<16x128xf32>
    %cst_181 = arith.constant 5.000000e-01 : f32
    %505 = vector.broadcast %cst_181 : f32 to vector<16x128xf32>
    %506 = arith.addf %504, %505 : vector<16x128xf32>
    %507 = vector.extract_strided_slice %490 {offsets = [0, 256], sizes = [16, 128], strides = [1, 1]} : vector<16x512xf32> to vector<16x128xf32>
    %508 = math.tanh %507 : vector<16x128xf32>
    %509 = vector.extract_strided_slice %490 {offsets = [0, 384], sizes = [16, 128], strides = [1, 1]} : vector<16x512xf32> to vector<16x128xf32>
    %cst_182 = arith.constant 5.000000e-01 : f32
    %510 = vector.broadcast %cst_182 : f32 to vector<16x128xf32>
    %511 = arith.mulf %510, %509 : vector<16x128xf32>
    %512 = math.tanh %511 : vector<16x128xf32>
    %cst_183 = arith.constant 5.000000e-01 : f32
    %513 = vector.broadcast %cst_183 : f32 to vector<16x128xf32>
    %514 = arith.mulf %513, %512 : vector<16x128xf32>
    %cst_184 = arith.constant 5.000000e-01 : f32
    %515 = vector.broadcast %cst_184 : f32 to vector<16x128xf32>
    %516 = arith.addf %514, %515 : vector<16x128xf32>
    %517 = arith.mulf %506, %402 : vector<16x128xf32>
    %518 = arith.mulf %498, %508 : vector<16x128xf32>
    %519 = arith.addf %517, %518 : vector<16x128xf32>
    %520 = math.tanh %519 : vector<16x128xf32>
    %521 = arith.mulf %516, %520 : vector<16x128xf32>
    %522 = arith.truncf %439 : vector<16x128xf32> to vector<16x128xbf16>
    %c0_185 = arith.constant 0 : index
    %c0_186 = arith.constant 0 : index
    %523 = vector.load %arg2[%c0_185, %c0_186] : memref<128x512xbf16, #tpu.memory_space<vmem>>, vector<128x512xbf16>
    %cst_187 = arith.constant dense<0.000000e+00> : vector<16x512xf32>
    %524 = tpu.matmul %522, %523, %cst_187 {dimension_numbers = #tpu.dot_dimension_numbers<[1], [0], [0], [1], [0, 0, 1, 1], [], []>} : vector<16x128xbf16>, vector<128x512xbf16>, vector<16x512xf32> -> vector<16x512xf32>
    %525 = arith.addf %44, %524 : vector<16x512xf32>
    %526 = vector.extract_strided_slice %525 {offsets = [0, 0], sizes = [16, 128], strides = [1, 1]} : vector<16x512xf32> to vector<16x128xf32>
    %cst_188 = arith.constant 5.000000e-01 : f32
    %527 = vector.broadcast %cst_188 : f32 to vector<16x128xf32>
    %528 = arith.mulf %527, %526 : vector<16x128xf32>
    %529 = math.tanh %528 : vector<16x128xf32>
    %cst_189 = arith.constant 5.000000e-01 : f32
    %530 = vector.broadcast %cst_189 : f32 to vector<16x128xf32>
    %531 = arith.mulf %530, %529 : vector<16x128xf32>
    %cst_190 = arith.constant 5.000000e-01 : f32
    %532 = vector.broadcast %cst_190 : f32 to vector<16x128xf32>
    %533 = arith.addf %531, %532 : vector<16x128xf32>
    %534 = vector.extract_strided_slice %525 {offsets = [0, 128], sizes = [16, 128], strides = [1, 1]} : vector<16x512xf32> to vector<16x128xf32>
    %cst_191 = arith.constant 5.000000e-01 : f32
    %535 = vector.broadcast %cst_191 : f32 to vector<16x128xf32>
    %536 = arith.mulf %535, %534 : vector<16x128xf32>
    %537 = math.tanh %536 : vector<16x128xf32>
    %cst_192 = arith.constant 5.000000e-01 : f32
    %538 = vector.broadcast %cst_192 : f32 to vector<16x128xf32>
    %539 = arith.mulf %538, %537 : vector<16x128xf32>
    %cst_193 = arith.constant 5.000000e-01 : f32
    %540 = vector.broadcast %cst_193 : f32 to vector<16x128xf32>
    %541 = arith.addf %539, %540 : vector<16x128xf32>
    %542 = vector.extract_strided_slice %525 {offsets = [0, 256], sizes = [16, 128], strides = [1, 1]} : vector<16x512xf32> to vector<16x128xf32>
    %543 = math.tanh %542 : vector<16x128xf32>
    %544 = vector.extract_strided_slice %525 {offsets = [0, 384], sizes = [16, 128], strides = [1, 1]} : vector<16x512xf32> to vector<16x128xf32>
    %cst_194 = arith.constant 5.000000e-01 : f32
    %545 = vector.broadcast %cst_194 : f32 to vector<16x128xf32>
    %546 = arith.mulf %545, %544 : vector<16x128xf32>
    %547 = math.tanh %546 : vector<16x128xf32>
    %cst_195 = arith.constant 5.000000e-01 : f32
    %548 = vector.broadcast %cst_195 : f32 to vector<16x128xf32>
    %549 = arith.mulf %548, %547 : vector<16x128xf32>
    %cst_196 = arith.constant 5.000000e-01 : f32
    %550 = vector.broadcast %cst_196 : f32 to vector<16x128xf32>
    %551 = arith.addf %549, %550 : vector<16x128xf32>
    %552 = arith.mulf %541, %437 : vector<16x128xf32>
    %553 = arith.mulf %533, %543 : vector<16x128xf32>
    %554 = arith.addf %552, %553 : vector<16x128xf32>
    %555 = math.tanh %554 : vector<16x128xf32>
    %556 = arith.mulf %551, %555 : vector<16x128xf32>
    %557 = arith.truncf %439 : vector<16x128xf32> to vector<16x128xbf16>
    %c0_197 = arith.constant 0 : index
    %c0_198 = arith.constant 0 : index
    %558 = vector.load %arg4[%c0_197, %c0_198] : memref<128x512xbf16, #tpu.memory_space<vmem>>, vector<128x512xbf16>
    %cst_199 = arith.constant dense<0.000000e+00> : vector<16x512xf32>
    %559 = tpu.matmul %557, %558, %cst_199 {dimension_numbers = #tpu.dot_dimension_numbers<[1], [0], [0], [1], [0, 0, 1, 1], [], []>} : vector<16x128xbf16>, vector<128x512xbf16>, vector<16x512xf32> -> vector<16x512xf32>
    %560 = arith.truncf %480 : vector<16x128xf32> to vector<16x128xbf16>
    %c0_200 = arith.constant 0 : index
    %c0_201 = arith.constant 0 : index
    %561 = vector.load %arg5[%c0_200, %c0_201] : memref<128x512xbf16, #tpu.memory_space<vmem>>, vector<128x512xbf16>
    %cst_202 = arith.constant dense<0.000000e+00> : vector<16x512xf32>
    %562 = tpu.matmul %560, %561, %cst_202 {dimension_numbers = #tpu.dot_dimension_numbers<[1], [0], [0], [1], [0, 0, 1, 1], [], []>} : vector<16x128xbf16>, vector<128x512xbf16>, vector<16x512xf32> -> vector<16x512xf32>
    %563 = arith.addf %559, %562 : vector<16x512xf32>
    %c0_203 = arith.constant 0 : index
    %c0_204 = arith.constant 0 : index
    %564 = vector.load %arg6[%c0_203, %c0_204] : memref<1x512xf32, #tpu.memory_space<vmem>>, vector<1x512xf32>
    %565 = vector.broadcast %564 : vector<1x512xf32> to vector<16x512xf32>
    %566 = arith.addf %563, %565 : vector<16x512xf32>
    %567 = vector.extract_strided_slice %566 {offsets = [0, 0], sizes = [16, 128], strides = [1, 1]} : vector<16x512xf32> to vector<16x128xf32>
    %cst_205 = arith.constant 5.000000e-01 : f32
    %568 = vector.broadcast %cst_205 : f32 to vector<16x128xf32>
    %569 = arith.mulf %568, %567 : vector<16x128xf32>
    %570 = math.tanh %569 : vector<16x128xf32>
    %cst_206 = arith.constant 5.000000e-01 : f32
    %571 = vector.broadcast %cst_206 : f32 to vector<16x128xf32>
    %572 = arith.mulf %571, %570 : vector<16x128xf32>
    %cst_207 = arith.constant 5.000000e-01 : f32
    %573 = vector.broadcast %cst_207 : f32 to vector<16x128xf32>
    %574 = arith.addf %572, %573 : vector<16x128xf32>
    %575 = vector.extract_strided_slice %566 {offsets = [0, 128], sizes = [16, 128], strides = [1, 1]} : vector<16x512xf32> to vector<16x128xf32>
    %cst_208 = arith.constant 5.000000e-01 : f32
    %576 = vector.broadcast %cst_208 : f32 to vector<16x128xf32>
    %577 = arith.mulf %576, %575 : vector<16x128xf32>
    %578 = math.tanh %577 : vector<16x128xf32>
    %cst_209 = arith.constant 5.000000e-01 : f32
    %579 = vector.broadcast %cst_209 : f32 to vector<16x128xf32>
    %580 = arith.mulf %579, %578 : vector<16x128xf32>
    %cst_210 = arith.constant 5.000000e-01 : f32
    %581 = vector.broadcast %cst_210 : f32 to vector<16x128xf32>
    %582 = arith.addf %580, %581 : vector<16x128xf32>
    %583 = vector.extract_strided_slice %566 {offsets = [0, 256], sizes = [16, 128], strides = [1, 1]} : vector<16x512xf32> to vector<16x128xf32>
    %584 = math.tanh %583 : vector<16x128xf32>
    %585 = vector.extract_strided_slice %566 {offsets = [0, 384], sizes = [16, 128], strides = [1, 1]} : vector<16x512xf32> to vector<16x128xf32>
    %cst_211 = arith.constant 5.000000e-01 : f32
    %586 = vector.broadcast %cst_211 : f32 to vector<16x128xf32>
    %587 = arith.mulf %586, %585 : vector<16x128xf32>
    %588 = math.tanh %587 : vector<16x128xf32>
    %cst_212 = arith.constant 5.000000e-01 : f32
    %589 = vector.broadcast %cst_212 : f32 to vector<16x128xf32>
    %590 = arith.mulf %589, %588 : vector<16x128xf32>
    %cst_213 = arith.constant 5.000000e-01 : f32
    %591 = vector.broadcast %cst_213 : f32 to vector<16x128xf32>
    %592 = arith.addf %590, %591 : vector<16x128xf32>
    %593 = arith.mulf %582, %478 : vector<16x128xf32>
    %594 = arith.mulf %574, %584 : vector<16x128xf32>
    %595 = arith.addf %593, %594 : vector<16x128xf32>
    %596 = math.tanh %595 : vector<16x128xf32>
    %597 = arith.mulf %592, %596 : vector<16x128xf32>
    %598 = arith.truncf %480 : vector<16x128xf32> to vector<16x128xbf16>
    %c0_214 = arith.constant 0 : index
    %c0_215 = arith.constant 0 : index
    %599 = vector.load %arg7[%c0_214, %c0_215] : memref<128x512xbf16, #tpu.memory_space<vmem>>, vector<128x512xbf16>
    %cst_216 = arith.constant dense<0.000000e+00> : vector<16x512xf32>
    %600 = tpu.matmul %598, %599, %cst_216 {dimension_numbers = #tpu.dot_dimension_numbers<[1], [0], [0], [1], [0, 0, 1, 1], [], []>} : vector<16x128xbf16>, vector<128x512xbf16>, vector<16x512xf32> -> vector<16x512xf32>
    %601 = arith.truncf %521 : vector<16x128xf32> to vector<16x128xbf16>
    %c0_217 = arith.constant 0 : index
    %c0_218 = arith.constant 0 : index
    %602 = vector.load %arg8[%c0_217, %c0_218] : memref<128x512xbf16, #tpu.memory_space<vmem>>, vector<128x512xbf16>
    %cst_219 = arith.constant dense<0.000000e+00> : vector<16x512xf32>
    %603 = tpu.matmul %601, %602, %cst_219 {dimension_numbers = #tpu.dot_dimension_numbers<[1], [0], [0], [1], [0, 0, 1, 1], [], []>} : vector<16x128xbf16>, vector<128x512xbf16>, vector<16x512xf32> -> vector<16x512xf32>
    %604 = arith.addf %600, %603 : vector<16x512xf32>
    %c0_220 = arith.constant 0 : index
    %c0_221 = arith.constant 0 : index
    %605 = vector.load %arg9[%c0_220, %c0_221] : memref<1x512xf32, #tpu.memory_space<vmem>>, vector<1x512xf32>
    %606 = vector.broadcast %605 : vector<1x512xf32> to vector<16x512xf32>
    %607 = arith.addf %604, %606 : vector<16x512xf32>
    %608 = vector.extract_strided_slice %607 {offsets = [0, 0], sizes = [16, 128], strides = [1, 1]} : vector<16x512xf32> to vector<16x128xf32>
    %cst_222 = arith.constant 5.000000e-01 : f32
    %609 = vector.broadcast %cst_222 : f32 to vector<16x128xf32>
    %610 = arith.mulf %609, %608 : vector<16x128xf32>
    %611 = math.tanh %610 : vector<16x128xf32>
    %cst_223 = arith.constant 5.000000e-01 : f32
    %612 = vector.broadcast %cst_223 : f32 to vector<16x128xf32>
    %613 = arith.mulf %612, %611 : vector<16x128xf32>
    %cst_224 = arith.constant 5.000000e-01 : f32
    %614 = vector.broadcast %cst_224 : f32 to vector<16x128xf32>
    %615 = arith.addf %613, %614 : vector<16x128xf32>
    %616 = vector.extract_strided_slice %607 {offsets = [0, 128], sizes = [16, 128], strides = [1, 1]} : vector<16x512xf32> to vector<16x128xf32>
    %cst_225 = arith.constant 5.000000e-01 : f32
    %617 = vector.broadcast %cst_225 : f32 to vector<16x128xf32>
    %618 = arith.mulf %617, %616 : vector<16x128xf32>
    %619 = math.tanh %618 : vector<16x128xf32>
    %cst_226 = arith.constant 5.000000e-01 : f32
    %620 = vector.broadcast %cst_226 : f32 to vector<16x128xf32>
    %621 = arith.mulf %620, %619 : vector<16x128xf32>
    %cst_227 = arith.constant 5.000000e-01 : f32
    %622 = vector.broadcast %cst_227 : f32 to vector<16x128xf32>
    %623 = arith.addf %621, %622 : vector<16x128xf32>
    %624 = vector.extract_strided_slice %607 {offsets = [0, 256], sizes = [16, 128], strides = [1, 1]} : vector<16x512xf32> to vector<16x128xf32>
    %625 = math.tanh %624 : vector<16x128xf32>
    %626 = vector.extract_strided_slice %607 {offsets = [0, 384], sizes = [16, 128], strides = [1, 1]} : vector<16x512xf32> to vector<16x128xf32>
    %cst_228 = arith.constant 5.000000e-01 : f32
    %627 = vector.broadcast %cst_228 : f32 to vector<16x128xf32>
    %628 = arith.mulf %627, %626 : vector<16x128xf32>
    %629 = math.tanh %628 : vector<16x128xf32>
    %cst_229 = arith.constant 5.000000e-01 : f32
    %630 = vector.broadcast %cst_229 : f32 to vector<16x128xf32>
    %631 = arith.mulf %630, %629 : vector<16x128xf32>
    %cst_230 = arith.constant 5.000000e-01 : f32
    %632 = vector.broadcast %cst_230 : f32 to vector<16x128xf32>
    %633 = arith.addf %631, %632 : vector<16x128xf32>
    %634 = arith.mulf %623, %519 : vector<16x128xf32>
    %635 = arith.mulf %615, %625 : vector<16x128xf32>
    %636 = arith.addf %634, %635 : vector<16x128xf32>
    %637 = math.tanh %636 : vector<16x128xf32>
    %638 = arith.mulf %633, %637 : vector<16x128xf32>
    %639 = arith.truncf %556 : vector<16x128xf32> to vector<16x128xbf16>
    %c0_231 = arith.constant 0 : index
    %c0_232 = arith.constant 0 : index
    %640 = vector.load %arg2[%c0_231, %c0_232] : memref<128x512xbf16, #tpu.memory_space<vmem>>, vector<128x512xbf16>
    %cst_233 = arith.constant dense<0.000000e+00> : vector<16x512xf32>
    %641 = tpu.matmul %639, %640, %cst_233 {dimension_numbers = #tpu.dot_dimension_numbers<[1], [0], [0], [1], [0, 0, 1, 1], [], []>} : vector<16x128xbf16>, vector<128x512xbf16>, vector<16x512xf32> -> vector<16x512xf32>
    %642 = arith.addf %51, %641 : vector<16x512xf32>
    %643 = vector.extract_strided_slice %642 {offsets = [0, 0], sizes = [16, 128], strides = [1, 1]} : vector<16x512xf32> to vector<16x128xf32>
    %cst_234 = arith.constant 5.000000e-01 : f32
    %644 = vector.broadcast %cst_234 : f32 to vector<16x128xf32>
    %645 = arith.mulf %644, %643 : vector<16x128xf32>
    %646 = math.tanh %645 : vector<16x128xf32>
    %cst_235 = arith.constant 5.000000e-01 : f32
    %647 = vector.broadcast %cst_235 : f32 to vector<16x128xf32>
    %648 = arith.mulf %647, %646 : vector<16x128xf32>
    %cst_236 = arith.constant 5.000000e-01 : f32
    %649 = vector.broadcast %cst_236 : f32 to vector<16x128xf32>
    %650 = arith.addf %648, %649 : vector<16x128xf32>
    %651 = vector.extract_strided_slice %642 {offsets = [0, 128], sizes = [16, 128], strides = [1, 1]} : vector<16x512xf32> to vector<16x128xf32>
    %cst_237 = arith.constant 5.000000e-01 : f32
    %652 = vector.broadcast %cst_237 : f32 to vector<16x128xf32>
    %653 = arith.mulf %652, %651 : vector<16x128xf32>
    %654 = math.tanh %653 : vector<16x128xf32>
    %cst_238 = arith.constant 5.000000e-01 : f32
    %655 = vector.broadcast %cst_238 : f32 to vector<16x128xf32>
    %656 = arith.mulf %655, %654 : vector<16x128xf32>
    %cst_239 = arith.constant 5.000000e-01 : f32
    %657 = vector.broadcast %cst_239 : f32 to vector<16x128xf32>
    %658 = arith.addf %656, %657 : vector<16x128xf32>
    %659 = vector.extract_strided_slice %642 {offsets = [0, 256], sizes = [16, 128], strides = [1, 1]} : vector<16x512xf32> to vector<16x128xf32>
    %660 = math.tanh %659 : vector<16x128xf32>
    %661 = vector.extract_strided_slice %642 {offsets = [0, 384], sizes = [16, 128], strides = [1, 1]} : vector<16x512xf32> to vector<16x128xf32>
    %cst_240 = arith.constant 5.000000e-01 : f32
    %662 = vector.broadcast %cst_240 : f32 to vector<16x128xf32>
    %663 = arith.mulf %662, %661 : vector<16x128xf32>
    %664 = math.tanh %663 : vector<16x128xf32>
    %cst_241 = arith.constant 5.000000e-01 : f32
    %665 = vector.broadcast %cst_241 : f32 to vector<16x128xf32>
    %666 = arith.mulf %665, %664 : vector<16x128xf32>
    %cst_242 = arith.constant 5.000000e-01 : f32
    %667 = vector.broadcast %cst_242 : f32 to vector<16x128xf32>
    %668 = arith.addf %666, %667 : vector<16x128xf32>
    %669 = arith.mulf %658, %554 : vector<16x128xf32>
    %670 = arith.mulf %650, %660 : vector<16x128xf32>
    %671 = arith.addf %669, %670 : vector<16x128xf32>
    %672 = math.tanh %671 : vector<16x128xf32>
    %673 = arith.mulf %668, %672 : vector<16x128xf32>
    %674 = arith.truncf %556 : vector<16x128xf32> to vector<16x128xbf16>
    %c0_243 = arith.constant 0 : index
    %c0_244 = arith.constant 0 : index
    %675 = vector.load %arg4[%c0_243, %c0_244] : memref<128x512xbf16, #tpu.memory_space<vmem>>, vector<128x512xbf16>
    %cst_245 = arith.constant dense<0.000000e+00> : vector<16x512xf32>
    %676 = tpu.matmul %674, %675, %cst_245 {dimension_numbers = #tpu.dot_dimension_numbers<[1], [0], [0], [1], [0, 0, 1, 1], [], []>} : vector<16x128xbf16>, vector<128x512xbf16>, vector<16x512xf32> -> vector<16x512xf32>
    %677 = arith.truncf %597 : vector<16x128xf32> to vector<16x128xbf16>
    %c0_246 = arith.constant 0 : index
    %c0_247 = arith.constant 0 : index
    %678 = vector.load %arg5[%c0_246, %c0_247] : memref<128x512xbf16, #tpu.memory_space<vmem>>, vector<128x512xbf16>
    %cst_248 = arith.constant dense<0.000000e+00> : vector<16x512xf32>
    %679 = tpu.matmul %677, %678, %cst_248 {dimension_numbers = #tpu.dot_dimension_numbers<[1], [0], [0], [1], [0, 0, 1, 1], [], []>} : vector<16x128xbf16>, vector<128x512xbf16>, vector<16x512xf32> -> vector<16x512xf32>
    %680 = arith.addf %676, %679 : vector<16x512xf32>
    %c0_249 = arith.constant 0 : index
    %c0_250 = arith.constant 0 : index
    %681 = vector.load %arg6[%c0_249, %c0_250] : memref<1x512xf32, #tpu.memory_space<vmem>>, vector<1x512xf32>
    %682 = vector.broadcast %681 : vector<1x512xf32> to vector<16x512xf32>
    %683 = arith.addf %680, %682 : vector<16x512xf32>
    %684 = vector.extract_strided_slice %683 {offsets = [0, 0], sizes = [16, 128], strides = [1, 1]} : vector<16x512xf32> to vector<16x128xf32>
    %cst_251 = arith.constant 5.000000e-01 : f32
    %685 = vector.broadcast %cst_251 : f32 to vector<16x128xf32>
    %686 = arith.mulf %685, %684 : vector<16x128xf32>
    %687 = math.tanh %686 : vector<16x128xf32>
    %cst_252 = arith.constant 5.000000e-01 : f32
    %688 = vector.broadcast %cst_252 : f32 to vector<16x128xf32>
    %689 = arith.mulf %688, %687 : vector<16x128xf32>
    %cst_253 = arith.constant 5.000000e-01 : f32
    %690 = vector.broadcast %cst_253 : f32 to vector<16x128xf32>
    %691 = arith.addf %689, %690 : vector<16x128xf32>
    %692 = vector.extract_strided_slice %683 {offsets = [0, 128], sizes = [16, 128], strides = [1, 1]} : vector<16x512xf32> to vector<16x128xf32>
    %cst_254 = arith.constant 5.000000e-01 : f32
    %693 = vector.broadcast %cst_254 : f32 to vector<16x128xf32>
    %694 = arith.mulf %693, %692 : vector<16x128xf32>
    %695 = math.tanh %694 : vector<16x128xf32>
    %cst_255 = arith.constant 5.000000e-01 : f32
    %696 = vector.broadcast %cst_255 : f32 to vector<16x128xf32>
    %697 = arith.mulf %696, %695 : vector<16x128xf32>
    %cst_256 = arith.constant 5.000000e-01 : f32
    %698 = vector.broadcast %cst_256 : f32 to vector<16x128xf32>
    %699 = arith.addf %697, %698 : vector<16x128xf32>
    %700 = vector.extract_strided_slice %683 {offsets = [0, 256], sizes = [16, 128], strides = [1, 1]} : vector<16x512xf32> to vector<16x128xf32>
    %701 = math.tanh %700 : vector<16x128xf32>
    %702 = vector.extract_strided_slice %683 {offsets = [0, 384], sizes = [16, 128], strides = [1, 1]} : vector<16x512xf32> to vector<16x128xf32>
    %cst_257 = arith.constant 5.000000e-01 : f32
    %703 = vector.broadcast %cst_257 : f32 to vector<16x128xf32>
    %704 = arith.mulf %703, %702 : vector<16x128xf32>
    %705 = math.tanh %704 : vector<16x128xf32>
    %cst_258 = arith.constant 5.000000e-01 : f32
    %706 = vector.broadcast %cst_258 : f32 to vector<16x128xf32>
    %707 = arith.mulf %706, %705 : vector<16x128xf32>
    %cst_259 = arith.constant 5.000000e-01 : f32
    %708 = vector.broadcast %cst_259 : f32 to vector<16x128xf32>
    %709 = arith.addf %707, %708 : vector<16x128xf32>
    %710 = arith.mulf %699, %595 : vector<16x128xf32>
    %711 = arith.mulf %691, %701 : vector<16x128xf32>
    %712 = arith.addf %710, %711 : vector<16x128xf32>
    %713 = math.tanh %712 : vector<16x128xf32>
    %714 = arith.mulf %709, %713 : vector<16x128xf32>
    %715 = arith.truncf %597 : vector<16x128xf32> to vector<16x128xbf16>
    %c0_260 = arith.constant 0 : index
    %c0_261 = arith.constant 0 : index
    %716 = vector.load %arg7[%c0_260, %c0_261] : memref<128x512xbf16, #tpu.memory_space<vmem>>, vector<128x512xbf16>
    %cst_262 = arith.constant dense<0.000000e+00> : vector<16x512xf32>
    %717 = tpu.matmul %715, %716, %cst_262 {dimension_numbers = #tpu.dot_dimension_numbers<[1], [0], [0], [1], [0, 0, 1, 1], [], []>} : vector<16x128xbf16>, vector<128x512xbf16>, vector<16x512xf32> -> vector<16x512xf32>
    %718 = arith.truncf %638 : vector<16x128xf32> to vector<16x128xbf16>
    %c0_263 = arith.constant 0 : index
    %c0_264 = arith.constant 0 : index
    %719 = vector.load %arg8[%c0_263, %c0_264] : memref<128x512xbf16, #tpu.memory_space<vmem>>, vector<128x512xbf16>
    %cst_265 = arith.constant dense<0.000000e+00> : vector<16x512xf32>
    %720 = tpu.matmul %718, %719, %cst_265 {dimension_numbers = #tpu.dot_dimension_numbers<[1], [0], [0], [1], [0, 0, 1, 1], [], []>} : vector<16x128xbf16>, vector<128x512xbf16>, vector<16x512xf32> -> vector<16x512xf32>
    %721 = arith.addf %717, %720 : vector<16x512xf32>
    %c0_266 = arith.constant 0 : index
    %c0_267 = arith.constant 0 : index
    %722 = vector.load %arg9[%c0_266, %c0_267] : memref<1x512xf32, #tpu.memory_space<vmem>>, vector<1x512xf32>
    %723 = vector.broadcast %722 : vector<1x512xf32> to vector<16x512xf32>
    %724 = arith.addf %721, %723 : vector<16x512xf32>
    %725 = vector.extract_strided_slice %724 {offsets = [0, 0], sizes = [16, 128], strides = [1, 1]} : vector<16x512xf32> to vector<16x128xf32>
    %cst_268 = arith.constant 5.000000e-01 : f32
    %726 = vector.broadcast %cst_268 : f32 to vector<16x128xf32>
    %727 = arith.mulf %726, %725 : vector<16x128xf32>
    %728 = math.tanh %727 : vector<16x128xf32>
    %cst_269 = arith.constant 5.000000e-01 : f32
    %729 = vector.broadcast %cst_269 : f32 to vector<16x128xf32>
    %730 = arith.mulf %729, %728 : vector<16x128xf32>
    %cst_270 = arith.constant 5.000000e-01 : f32
    %731 = vector.broadcast %cst_270 : f32 to vector<16x128xf32>
    %732 = arith.addf %730, %731 : vector<16x128xf32>
    %733 = vector.extract_strided_slice %724 {offsets = [0, 128], sizes = [16, 128], strides = [1, 1]} : vector<16x512xf32> to vector<16x128xf32>
    %cst_271 = arith.constant 5.000000e-01 : f32
    %734 = vector.broadcast %cst_271 : f32 to vector<16x128xf32>
    %735 = arith.mulf %734, %733 : vector<16x128xf32>
    %736 = math.tanh %735 : vector<16x128xf32>
    %cst_272 = arith.constant 5.000000e-01 : f32
    %737 = vector.broadcast %cst_272 : f32 to vector<16x128xf32>
    %738 = arith.mulf %737, %736 : vector<16x128xf32>
    %cst_273 = arith.constant 5.000000e-01 : f32
    %739 = vector.broadcast %cst_273 : f32 to vector<16x128xf32>
    %740 = arith.addf %738, %739 : vector<16x128xf32>
    %741 = vector.extract_strided_slice %724 {offsets = [0, 256], sizes = [16, 128], strides = [1, 1]} : vector<16x512xf32> to vector<16x128xf32>
    %742 = math.tanh %741 : vector<16x128xf32>
    %743 = vector.extract_strided_slice %724 {offsets = [0, 384], sizes = [16, 128], strides = [1, 1]} : vector<16x512xf32> to vector<16x128xf32>
    %cst_274 = arith.constant 5.000000e-01 : f32
    %744 = vector.broadcast %cst_274 : f32 to vector<16x128xf32>
    %745 = arith.mulf %744, %743 : vector<16x128xf32>
    %746 = math.tanh %745 : vector<16x128xf32>
    %cst_275 = arith.constant 5.000000e-01 : f32
    %747 = vector.broadcast %cst_275 : f32 to vector<16x128xf32>
    %748 = arith.mulf %747, %746 : vector<16x128xf32>
    %cst_276 = arith.constant 5.000000e-01 : f32
    %749 = vector.broadcast %cst_276 : f32 to vector<16x128xf32>
    %750 = arith.addf %748, %749 : vector<16x128xf32>
    %751 = arith.mulf %740, %636 : vector<16x128xf32>
    %752 = arith.mulf %732, %742 : vector<16x128xf32>
    %753 = arith.addf %751, %752 : vector<16x128xf32>
    %754 = math.tanh %753 : vector<16x128xf32>
    %755 = arith.mulf %750, %754 : vector<16x128xf32>
    %756 = arith.truncf %673 : vector<16x128xf32> to vector<16x128xbf16>
    %c0_277 = arith.constant 0 : index
    %c0_278 = arith.constant 0 : index
    %757 = vector.load %arg2[%c0_277, %c0_278] : memref<128x512xbf16, #tpu.memory_space<vmem>>, vector<128x512xbf16>
    %cst_279 = arith.constant dense<0.000000e+00> : vector<16x512xf32>
    %758 = tpu.matmul %756, %757, %cst_279 {dimension_numbers = #tpu.dot_dimension_numbers<[1], [0], [0], [1], [0, 0, 1, 1], [], []>} : vector<16x128xbf16>, vector<128x512xbf16>, vector<16x512xf32> -> vector<16x512xf32>
    %759 = arith.addf %58, %758 : vector<16x512xf32>
    %760 = vector.extract_strided_slice %759 {offsets = [0, 0], sizes = [16, 128], strides = [1, 1]} : vector<16x512xf32> to vector<16x128xf32>
    %cst_280 = arith.constant 5.000000e-01 : f32
    %761 = vector.broadcast %cst_280 : f32 to vector<16x128xf32>
    %762 = arith.mulf %761, %760 : vector<16x128xf32>
    %763 = math.tanh %762 : vector<16x128xf32>
    %cst_281 = arith.constant 5.000000e-01 : f32
    %764 = vector.broadcast %cst_281 : f32 to vector<16x128xf32>
    %765 = arith.mulf %764, %763 : vector<16x128xf32>
    %cst_282 = arith.constant 5.000000e-01 : f32
    %766 = vector.broadcast %cst_282 : f32 to vector<16x128xf32>
    %767 = arith.addf %765, %766 : vector<16x128xf32>
    %768 = vector.extract_strided_slice %759 {offsets = [0, 128], sizes = [16, 128], strides = [1, 1]} : vector<16x512xf32> to vector<16x128xf32>
    %cst_283 = arith.constant 5.000000e-01 : f32
    %769 = vector.broadcast %cst_283 : f32 to vector<16x128xf32>
    %770 = arith.mulf %769, %768 : vector<16x128xf32>
    %771 = math.tanh %770 : vector<16x128xf32>
    %cst_284 = arith.constant 5.000000e-01 : f32
    %772 = vector.broadcast %cst_284 : f32 to vector<16x128xf32>
    %773 = arith.mulf %772, %771 : vector<16x128xf32>
    %cst_285 = arith.constant 5.000000e-01 : f32
    %774 = vector.broadcast %cst_285 : f32 to vector<16x128xf32>
    %775 = arith.addf %773, %774 : vector<16x128xf32>
    %776 = vector.extract_strided_slice %759 {offsets = [0, 256], sizes = [16, 128], strides = [1, 1]} : vector<16x512xf32> to vector<16x128xf32>
    %777 = math.tanh %776 : vector<16x128xf32>
    %778 = vector.extract_strided_slice %759 {offsets = [0, 384], sizes = [16, 128], strides = [1, 1]} : vector<16x512xf32> to vector<16x128xf32>
    %cst_286 = arith.constant 5.000000e-01 : f32
    %779 = vector.broadcast %cst_286 : f32 to vector<16x128xf32>
    %780 = arith.mulf %779, %778 : vector<16x128xf32>
    %781 = math.tanh %780 : vector<16x128xf32>
    %cst_287 = arith.constant 5.000000e-01 : f32
    %782 = vector.broadcast %cst_287 : f32 to vector<16x128xf32>
    %783 = arith.mulf %782, %781 : vector<16x128xf32>
    %cst_288 = arith.constant 5.000000e-01 : f32
    %784 = vector.broadcast %cst_288 : f32 to vector<16x128xf32>
    %785 = arith.addf %783, %784 : vector<16x128xf32>
    %786 = arith.mulf %775, %671 : vector<16x128xf32>
    %787 = arith.mulf %767, %777 : vector<16x128xf32>
    %788 = arith.addf %786, %787 : vector<16x128xf32>
    %789 = math.tanh %788 : vector<16x128xf32>
    %790 = arith.mulf %785, %789 : vector<16x128xf32>
    %791 = arith.truncf %673 : vector<16x128xf32> to vector<16x128xbf16>
    %c0_289 = arith.constant 0 : index
    %c0_290 = arith.constant 0 : index
    %792 = vector.load %arg4[%c0_289, %c0_290] : memref<128x512xbf16, #tpu.memory_space<vmem>>, vector<128x512xbf16>
    %cst_291 = arith.constant dense<0.000000e+00> : vector<16x512xf32>
    %793 = tpu.matmul %791, %792, %cst_291 {dimension_numbers = #tpu.dot_dimension_numbers<[1], [0], [0], [1], [0, 0, 1, 1], [], []>} : vector<16x128xbf16>, vector<128x512xbf16>, vector<16x512xf32> -> vector<16x512xf32>
    %794 = arith.truncf %714 : vector<16x128xf32> to vector<16x128xbf16>
    %c0_292 = arith.constant 0 : index
    %c0_293 = arith.constant 0 : index
    %795 = vector.load %arg5[%c0_292, %c0_293] : memref<128x512xbf16, #tpu.memory_space<vmem>>, vector<128x512xbf16>
    %cst_294 = arith.constant dense<0.000000e+00> : vector<16x512xf32>
    %796 = tpu.matmul %794, %795, %cst_294 {dimension_numbers = #tpu.dot_dimension_numbers<[1], [0], [0], [1], [0, 0, 1, 1], [], []>} : vector<16x128xbf16>, vector<128x512xbf16>, vector<16x512xf32> -> vector<16x512xf32>
    %797 = arith.addf %793, %796 : vector<16x512xf32>
    %c0_295 = arith.constant 0 : index
    %c0_296 = arith.constant 0 : index
    %798 = vector.load %arg6[%c0_295, %c0_296] : memref<1x512xf32, #tpu.memory_space<vmem>>, vector<1x512xf32>
    %799 = vector.broadcast %798 : vector<1x512xf32> to vector<16x512xf32>
    %800 = arith.addf %797, %799 : vector<16x512xf32>
    %801 = vector.extract_strided_slice %800 {offsets = [0, 0], sizes = [16, 128], strides = [1, 1]} : vector<16x512xf32> to vector<16x128xf32>
    %cst_297 = arith.constant 5.000000e-01 : f32
    %802 = vector.broadcast %cst_297 : f32 to vector<16x128xf32>
    %803 = arith.mulf %802, %801 : vector<16x128xf32>
    %804 = math.tanh %803 : vector<16x128xf32>
    %cst_298 = arith.constant 5.000000e-01 : f32
    %805 = vector.broadcast %cst_298 : f32 to vector<16x128xf32>
    %806 = arith.mulf %805, %804 : vector<16x128xf32>
    %cst_299 = arith.constant 5.000000e-01 : f32
    %807 = vector.broadcast %cst_299 : f32 to vector<16x128xf32>
    %808 = arith.addf %806, %807 : vector<16x128xf32>
    %809 = vector.extract_strided_slice %800 {offsets = [0, 128], sizes = [16, 128], strides = [1, 1]} : vector<16x512xf32> to vector<16x128xf32>
    %cst_300 = arith.constant 5.000000e-01 : f32
    %810 = vector.broadcast %cst_300 : f32 to vector<16x128xf32>
    %811 = arith.mulf %810, %809 : vector<16x128xf32>
    %812 = math.tanh %811 : vector<16x128xf32>
    %cst_301 = arith.constant 5.000000e-01 : f32
    %813 = vector.broadcast %cst_301 : f32 to vector<16x128xf32>
    %814 = arith.mulf %813, %812 : vector<16x128xf32>
    %cst_302 = arith.constant 5.000000e-01 : f32
    %815 = vector.broadcast %cst_302 : f32 to vector<16x128xf32>
    %816 = arith.addf %814, %815 : vector<16x128xf32>
    %817 = vector.extract_strided_slice %800 {offsets = [0, 256], sizes = [16, 128], strides = [1, 1]} : vector<16x512xf32> to vector<16x128xf32>
    %818 = math.tanh %817 : vector<16x128xf32>
    %819 = vector.extract_strided_slice %800 {offsets = [0, 384], sizes = [16, 128], strides = [1, 1]} : vector<16x512xf32> to vector<16x128xf32>
    %cst_303 = arith.constant 5.000000e-01 : f32
    %820 = vector.broadcast %cst_303 : f32 to vector<16x128xf32>
    %821 = arith.mulf %820, %819 : vector<16x128xf32>
    %822 = math.tanh %821 : vector<16x128xf32>
    %cst_304 = arith.constant 5.000000e-01 : f32
    %823 = vector.broadcast %cst_304 : f32 to vector<16x128xf32>
    %824 = arith.mulf %823, %822 : vector<16x128xf32>
    %cst_305 = arith.constant 5.000000e-01 : f32
    %825 = vector.broadcast %cst_305 : f32 to vector<16x128xf32>
    %826 = arith.addf %824, %825 : vector<16x128xf32>
    %827 = arith.mulf %816, %712 : vector<16x128xf32>
    %828 = arith.mulf %808, %818 : vector<16x128xf32>
    %829 = arith.addf %827, %828 : vector<16x128xf32>
    %830 = math.tanh %829 : vector<16x128xf32>
    %831 = arith.mulf %826, %830 : vector<16x128xf32>
    %832 = arith.truncf %714 : vector<16x128xf32> to vector<16x128xbf16>
    %c0_306 = arith.constant 0 : index
    %c0_307 = arith.constant 0 : index
    %833 = vector.load %arg7[%c0_306, %c0_307] : memref<128x512xbf16, #tpu.memory_space<vmem>>, vector<128x512xbf16>
    %cst_308 = arith.constant dense<0.000000e+00> : vector<16x512xf32>
    %834 = tpu.matmul %832, %833, %cst_308 {dimension_numbers = #tpu.dot_dimension_numbers<[1], [0], [0], [1], [0, 0, 1, 1], [], []>} : vector<16x128xbf16>, vector<128x512xbf16>, vector<16x512xf32> -> vector<16x512xf32>
    %835 = arith.truncf %755 : vector<16x128xf32> to vector<16x128xbf16>
    %c0_309 = arith.constant 0 : index
    %c0_310 = arith.constant 0 : index
    %836 = vector.load %arg8[%c0_309, %c0_310] : memref<128x512xbf16, #tpu.memory_space<vmem>>, vector<128x512xbf16>
    %cst_311 = arith.constant dense<0.000000e+00> : vector<16x512xf32>
    %837 = tpu.matmul %835, %836, %cst_311 {dimension_numbers = #tpu.dot_dimension_numbers<[1], [0], [0], [1], [0, 0, 1, 1], [], []>} : vector<16x128xbf16>, vector<128x512xbf16>, vector<16x512xf32> -> vector<16x512xf32>
    %838 = arith.addf %834, %837 : vector<16x512xf32>
    %c0_312 = arith.constant 0 : index
    %c0_313 = arith.constant 0 : index
    %839 = vector.load %arg9[%c0_312, %c0_313] : memref<1x512xf32, #tpu.memory_space<vmem>>, vector<1x512xf32>
    %840 = vector.broadcast %839 : vector<1x512xf32> to vector<16x512xf32>
    %841 = arith.addf %838, %840 : vector<16x512xf32>
    %842 = vector.extract_strided_slice %841 {offsets = [0, 0], sizes = [16, 128], strides = [1, 1]} : vector<16x512xf32> to vector<16x128xf32>
    %cst_314 = arith.constant 5.000000e-01 : f32
    %843 = vector.broadcast %cst_314 : f32 to vector<16x128xf32>
    %844 = arith.mulf %843, %842 : vector<16x128xf32>
    %845 = math.tanh %844 : vector<16x128xf32>
    %cst_315 = arith.constant 5.000000e-01 : f32
    %846 = vector.broadcast %cst_315 : f32 to vector<16x128xf32>
    %847 = arith.mulf %846, %845 : vector<16x128xf32>
    %cst_316 = arith.constant 5.000000e-01 : f32
    %848 = vector.broadcast %cst_316 : f32 to vector<16x128xf32>
    %849 = arith.addf %847, %848 : vector<16x128xf32>
    %850 = vector.extract_strided_slice %841 {offsets = [0, 128], sizes = [16, 128], strides = [1, 1]} : vector<16x512xf32> to vector<16x128xf32>
    %cst_317 = arith.constant 5.000000e-01 : f32
    %851 = vector.broadcast %cst_317 : f32 to vector<16x128xf32>
    %852 = arith.mulf %851, %850 : vector<16x128xf32>
    %853 = math.tanh %852 : vector<16x128xf32>
    %cst_318 = arith.constant 5.000000e-01 : f32
    %854 = vector.broadcast %cst_318 : f32 to vector<16x128xf32>
    %855 = arith.mulf %854, %853 : vector<16x128xf32>
    %cst_319 = arith.constant 5.000000e-01 : f32
    %856 = vector.broadcast %cst_319 : f32 to vector<16x128xf32>
    %857 = arith.addf %855, %856 : vector<16x128xf32>
    %858 = vector.extract_strided_slice %841 {offsets = [0, 256], sizes = [16, 128], strides = [1, 1]} : vector<16x512xf32> to vector<16x128xf32>
    %859 = math.tanh %858 : vector<16x128xf32>
    %860 = vector.extract_strided_slice %841 {offsets = [0, 384], sizes = [16, 128], strides = [1, 1]} : vector<16x512xf32> to vector<16x128xf32>
    %cst_320 = arith.constant 5.000000e-01 : f32
    %861 = vector.broadcast %cst_320 : f32 to vector<16x128xf32>
    %862 = arith.mulf %861, %860 : vector<16x128xf32>
    %863 = math.tanh %862 : vector<16x128xf32>
    %cst_321 = arith.constant 5.000000e-01 : f32
    %864 = vector.broadcast %cst_321 : f32 to vector<16x128xf32>
    %865 = arith.mulf %864, %863 : vector<16x128xf32>
    %cst_322 = arith.constant 5.000000e-01 : f32
    %866 = vector.broadcast %cst_322 : f32 to vector<16x128xf32>
    %867 = arith.addf %865, %866 : vector<16x128xf32>
    %868 = arith.mulf %857, %753 : vector<16x128xf32>
    %869 = arith.mulf %849, %859 : vector<16x128xf32>
    %870 = arith.addf %868, %869 : vector<16x128xf32>
    %871 = math.tanh %870 : vector<16x128xf32>
    %872 = arith.mulf %867, %871 : vector<16x128xf32>
    %873 = arith.truncf %790 : vector<16x128xf32> to vector<16x128xbf16>
    %c0_323 = arith.constant 0 : index
    %c0_324 = arith.constant 0 : index
    %874 = vector.load %arg4[%c0_323, %c0_324] : memref<128x512xbf16, #tpu.memory_space<vmem>>, vector<128x512xbf16>
    %cst_325 = arith.constant dense<0.000000e+00> : vector<16x512xf32>
    %875 = tpu.matmul %873, %874, %cst_325 {dimension_numbers = #tpu.dot_dimension_numbers<[1], [0], [0], [1], [0, 0, 1, 1], [], []>} : vector<16x128xbf16>, vector<128x512xbf16>, vector<16x512xf32> -> vector<16x512xf32>
    %876 = arith.truncf %831 : vector<16x128xf32> to vector<16x128xbf16>
    %c0_326 = arith.constant 0 : index
    %c0_327 = arith.constant 0 : index
    %877 = vector.load %arg5[%c0_326, %c0_327] : memref<128x512xbf16, #tpu.memory_space<vmem>>, vector<128x512xbf16>
    %cst_328 = arith.constant dense<0.000000e+00> : vector<16x512xf32>
    %878 = tpu.matmul %876, %877, %cst_328 {dimension_numbers = #tpu.dot_dimension_numbers<[1], [0], [0], [1], [0, 0, 1, 1], [], []>} : vector<16x128xbf16>, vector<128x512xbf16>, vector<16x512xf32> -> vector<16x512xf32>
    %879 = arith.addf %875, %878 : vector<16x512xf32>
    %c0_329 = arith.constant 0 : index
    %c0_330 = arith.constant 0 : index
    %880 = vector.load %arg6[%c0_329, %c0_330] : memref<1x512xf32, #tpu.memory_space<vmem>>, vector<1x512xf32>
    %881 = vector.broadcast %880 : vector<1x512xf32> to vector<16x512xf32>
    %882 = arith.addf %879, %881 : vector<16x512xf32>
    %883 = vector.extract_strided_slice %882 {offsets = [0, 0], sizes = [16, 128], strides = [1, 1]} : vector<16x512xf32> to vector<16x128xf32>
    %cst_331 = arith.constant 5.000000e-01 : f32
    %884 = vector.broadcast %cst_331 : f32 to vector<16x128xf32>
    %885 = arith.mulf %884, %883 : vector<16x128xf32>
    %886 = math.tanh %885 : vector<16x128xf32>
    %cst_332 = arith.constant 5.000000e-01 : f32
    %887 = vector.broadcast %cst_332 : f32 to vector<16x128xf32>
    %888 = arith.mulf %887, %886 : vector<16x128xf32>
    %cst_333 = arith.constant 5.000000e-01 : f32
    %889 = vector.broadcast %cst_333 : f32 to vector<16x128xf32>
    %890 = arith.addf %888, %889 : vector<16x128xf32>
    %891 = vector.extract_strided_slice %882 {offsets = [0, 128], sizes = [16, 128], strides = [1, 1]} : vector<16x512xf32> to vector<16x128xf32>
    %cst_334 = arith.constant 5.000000e-01 : f32
    %892 = vector.broadcast %cst_334 : f32 to vector<16x128xf32>
    %893 = arith.mulf %892, %891 : vector<16x128xf32>
    %894 = math.tanh %893 : vector<16x128xf32>
    %cst_335 = arith.constant 5.000000e-01 : f32
    %895 = vector.broadcast %cst_335 : f32 to vector<16x128xf32>
    %896 = arith.mulf %895, %894 : vector<16x128xf32>
    %cst_336 = arith.constant 5.000000e-01 : f32
    %897 = vector.broadcast %cst_336 : f32 to vector<16x128xf32>
    %898 = arith.addf %896, %897 : vector<16x128xf32>
    %899 = vector.extract_strided_slice %882 {offsets = [0, 256], sizes = [16, 128], strides = [1, 1]} : vector<16x512xf32> to vector<16x128xf32>
    %900 = math.tanh %899 : vector<16x128xf32>
    %901 = vector.extract_strided_slice %882 {offsets = [0, 384], sizes = [16, 128], strides = [1, 1]} : vector<16x512xf32> to vector<16x128xf32>
    %cst_337 = arith.constant 5.000000e-01 : f32
    %902 = vector.broadcast %cst_337 : f32 to vector<16x128xf32>
    %903 = arith.mulf %902, %901 : vector<16x128xf32>
    %904 = math.tanh %903 : vector<16x128xf32>
    %cst_338 = arith.constant 5.000000e-01 : f32
    %905 = vector.broadcast %cst_338 : f32 to vector<16x128xf32>
    %906 = arith.mulf %905, %904 : vector<16x128xf32>
    %cst_339 = arith.constant 5.000000e-01 : f32
    %907 = vector.broadcast %cst_339 : f32 to vector<16x128xf32>
    %908 = arith.addf %906, %907 : vector<16x128xf32>
    %909 = arith.mulf %898, %829 : vector<16x128xf32>
    %910 = arith.mulf %890, %900 : vector<16x128xf32>
    %911 = arith.addf %909, %910 : vector<16x128xf32>
    %912 = math.tanh %911 : vector<16x128xf32>
    %913 = arith.mulf %908, %912 : vector<16x128xf32>
    %914 = arith.truncf %831 : vector<16x128xf32> to vector<16x128xbf16>
    %c0_340 = arith.constant 0 : index
    %c0_341 = arith.constant 0 : index
    %915 = vector.load %arg7[%c0_340, %c0_341] : memref<128x512xbf16, #tpu.memory_space<vmem>>, vector<128x512xbf16>
    %cst_342 = arith.constant dense<0.000000e+00> : vector<16x512xf32>
    %916 = tpu.matmul %914, %915, %cst_342 {dimension_numbers = #tpu.dot_dimension_numbers<[1], [0], [0], [1], [0, 0, 1, 1], [], []>} : vector<16x128xbf16>, vector<128x512xbf16>, vector<16x512xf32> -> vector<16x512xf32>
    %917 = arith.truncf %872 : vector<16x128xf32> to vector<16x128xbf16>
    %c0_343 = arith.constant 0 : index
    %c0_344 = arith.constant 0 : index
    %918 = vector.load %arg8[%c0_343, %c0_344] : memref<128x512xbf16, #tpu.memory_space<vmem>>, vector<128x512xbf16>
    %cst_345 = arith.constant dense<0.000000e+00> : vector<16x512xf32>
    %919 = tpu.matmul %917, %918, %cst_345 {dimension_numbers = #tpu.dot_dimension_numbers<[1], [0], [0], [1], [0, 0, 1, 1], [], []>} : vector<16x128xbf16>, vector<128x512xbf16>, vector<16x512xf32> -> vector<16x512xf32>
    %920 = arith.addf %916, %919 : vector<16x512xf32>
    %c0_346 = arith.constant 0 : index
    %c0_347 = arith.constant 0 : index
    %921 = vector.load %arg9[%c0_346, %c0_347] : memref<1x512xf32, #tpu.memory_space<vmem>>, vector<1x512xf32>
    %922 = vector.broadcast %921 : vector<1x512xf32> to vector<16x512xf32>
    %923 = arith.addf %920, %922 : vector<16x512xf32>
    %924 = vector.extract_strided_slice %923 {offsets = [0, 0], sizes = [16, 128], strides = [1, 1]} : vector<16x512xf32> to vector<16x128xf32>
    %cst_348 = arith.constant 5.000000e-01 : f32
    %925 = vector.broadcast %cst_348 : f32 to vector<16x128xf32>
    %926 = arith.mulf %925, %924 : vector<16x128xf32>
    %927 = math.tanh %926 : vector<16x128xf32>
    %cst_349 = arith.constant 5.000000e-01 : f32
    %928 = vector.broadcast %cst_349 : f32 to vector<16x128xf32>
    %929 = arith.mulf %928, %927 : vector<16x128xf32>
    %cst_350 = arith.constant 5.000000e-01 : f32
    %930 = vector.broadcast %cst_350 : f32 to vector<16x128xf32>
    %931 = arith.addf %929, %930 : vector<16x128xf32>
    %932 = vector.extract_strided_slice %923 {offsets = [0, 128], sizes = [16, 128], strides = [1, 1]} : vector<16x512xf32> to vector<16x128xf32>
    %cst_351 = arith.constant 5.000000e-01 : f32
    %933 = vector.broadcast %cst_351 : f32 to vector<16x128xf32>
    %934 = arith.mulf %933, %932 : vector<16x128xf32>
    %935 = math.tanh %934 : vector<16x128xf32>
    %cst_352 = arith.constant 5.000000e-01 : f32
    %936 = vector.broadcast %cst_352 : f32 to vector<16x128xf32>
    %937 = arith.mulf %936, %935 : vector<16x128xf32>
    %cst_353 = arith.constant 5.000000e-01 : f32
    %938 = vector.broadcast %cst_353 : f32 to vector<16x128xf32>
    %939 = arith.addf %937, %938 : vector<16x128xf32>
    %940 = vector.extract_strided_slice %923 {offsets = [0, 256], sizes = [16, 128], strides = [1, 1]} : vector<16x512xf32> to vector<16x128xf32>
    %941 = math.tanh %940 : vector<16x128xf32>
    %942 = vector.extract_strided_slice %923 {offsets = [0, 384], sizes = [16, 128], strides = [1, 1]} : vector<16x512xf32> to vector<16x128xf32>
    %cst_354 = arith.constant 5.000000e-01 : f32
    %943 = vector.broadcast %cst_354 : f32 to vector<16x128xf32>
    %944 = arith.mulf %943, %942 : vector<16x128xf32>
    %945 = math.tanh %944 : vector<16x128xf32>
    %cst_355 = arith.constant 5.000000e-01 : f32
    %946 = vector.broadcast %cst_355 : f32 to vector<16x128xf32>
    %947 = arith.mulf %946, %945 : vector<16x128xf32>
    %cst_356 = arith.constant 5.000000e-01 : f32
    %948 = vector.broadcast %cst_356 : f32 to vector<16x128xf32>
    %949 = arith.addf %947, %948 : vector<16x128xf32>
    %950 = arith.mulf %939, %870 : vector<16x128xf32>
    %951 = arith.mulf %931, %941 : vector<16x128xf32>
    %952 = arith.addf %950, %951 : vector<16x128xf32>
    %953 = math.tanh %952 : vector<16x128xf32>
    %954 = arith.mulf %949, %953 : vector<16x128xf32>
    %955 = arith.truncf %913 : vector<16x128xf32> to vector<16x128xbf16>
    %c0_357 = arith.constant 0 : index
    %c0_358 = arith.constant 0 : index
    %956 = vector.load %arg7[%c0_357, %c0_358] : memref<128x512xbf16, #tpu.memory_space<vmem>>, vector<128x512xbf16>
    %cst_359 = arith.constant dense<0.000000e+00> : vector<16x512xf32>
    %957 = tpu.matmul %955, %956, %cst_359 {dimension_numbers = #tpu.dot_dimension_numbers<[1], [0], [0], [1], [0, 0, 1, 1], [], []>} : vector<16x128xbf16>, vector<128x512xbf16>, vector<16x512xf32> -> vector<16x512xf32>
    %958 = arith.truncf %954 : vector<16x128xf32> to vector<16x128xbf16>
    %c0_360 = arith.constant 0 : index
    %c0_361 = arith.constant 0 : index
    %959 = vector.load %arg8[%c0_360, %c0_361] : memref<128x512xbf16, #tpu.memory_space<vmem>>, vector<128x512xbf16>
    %cst_362 = arith.constant dense<0.000000e+00> : vector<16x512xf32>
    %960 = tpu.matmul %958, %959, %cst_362 {dimension_numbers = #tpu.dot_dimension_numbers<[1], [0], [0], [1], [0, 0, 1, 1], [], []>} : vector<16x128xbf16>, vector<128x512xbf16>, vector<16x512xf32> -> vector<16x512xf32>
    %961 = arith.addf %957, %960 : vector<16x512xf32>
    %c0_363 = arith.constant 0 : index
    %c0_364 = arith.constant 0 : index
    %962 = vector.load %arg9[%c0_363, %c0_364] : memref<1x512xf32, #tpu.memory_space<vmem>>, vector<1x512xf32>
    %963 = vector.broadcast %962 : vector<1x512xf32> to vector<16x512xf32>
    %964 = arith.addf %961, %963 : vector<16x512xf32>
    %965 = vector.extract_strided_slice %964 {offsets = [0, 0], sizes = [16, 128], strides = [1, 1]} : vector<16x512xf32> to vector<16x128xf32>
    %cst_365 = arith.constant 5.000000e-01 : f32
    %966 = vector.broadcast %cst_365 : f32 to vector<16x128xf32>
    %967 = arith.mulf %966, %965 : vector<16x128xf32>
    %968 = math.tanh %967 : vector<16x128xf32>
    %cst_366 = arith.constant 5.000000e-01 : f32
    %969 = vector.broadcast %cst_366 : f32 to vector<16x128xf32>
    %970 = arith.mulf %969, %968 : vector<16x128xf32>
    %cst_367 = arith.constant 5.000000e-01 : f32
    %971 = vector.broadcast %cst_367 : f32 to vector<16x128xf32>
    %972 = arith.addf %970, %971 : vector<16x128xf32>
    %973 = vector.extract_strided_slice %964 {offsets = [0, 128], sizes = [16, 128], strides = [1, 1]} : vector<16x512xf32> to vector<16x128xf32>
    %cst_368 = arith.constant 5.000000e-01 : f32
    %974 = vector.broadcast %cst_368 : f32 to vector<16x128xf32>
    %975 = arith.mulf %974, %973 : vector<16x128xf32>
    %976 = math.tanh %975 : vector<16x128xf32>
    %cst_369 = arith.constant 5.000000e-01 : f32
    %977 = vector.broadcast %cst_369 : f32 to vector<16x128xf32>
    %978 = arith.mulf %977, %976 : vector<16x128xf32>
    %cst_370 = arith.constant 5.000000e-01 : f32
    %979 = vector.broadcast %cst_370 : f32 to vector<16x128xf32>
    %980 = arith.addf %978, %979 : vector<16x128xf32>
    %981 = vector.extract_strided_slice %964 {offsets = [0, 256], sizes = [16, 128], strides = [1, 1]} : vector<16x512xf32> to vector<16x128xf32>
    %982 = math.tanh %981 : vector<16x128xf32>
    %983 = vector.extract_strided_slice %964 {offsets = [0, 384], sizes = [16, 128], strides = [1, 1]} : vector<16x512xf32> to vector<16x128xf32>
    %cst_371 = arith.constant 5.000000e-01 : f32
    %984 = vector.broadcast %cst_371 : f32 to vector<16x128xf32>
    %985 = arith.mulf %984, %983 : vector<16x128xf32>
    %986 = math.tanh %985 : vector<16x128xf32>
    %cst_372 = arith.constant 5.000000e-01 : f32
    %987 = vector.broadcast %cst_372 : f32 to vector<16x128xf32>
    %988 = arith.mulf %987, %986 : vector<16x128xf32>
    %cst_373 = arith.constant 5.000000e-01 : f32
    %989 = vector.broadcast %cst_373 : f32 to vector<16x128xf32>
    %990 = arith.addf %988, %989 : vector<16x128xf32>
    %991 = arith.mulf %980, %952 : vector<16x128xf32>
    %992 = arith.mulf %972, %982 : vector<16x128xf32>
    %993 = arith.addf %991, %992 : vector<16x128xf32>
    %994 = math.tanh %993 : vector<16x128xf32>
    %995 = arith.mulf %990, %994 : vector<16x128xf32>
    %c0_374 = arith.constant 0 : index
    %c0_375 = arith.constant 0 : index
    %996 = vector.load %arg10[%c0_374, %c0_375] : memref<1x128xf32, #tpu.memory_space<vmem>>, vector<1x128xf32>
    %997 = vector.broadcast %996 : vector<1x128xf32> to vector<16x128xf32>
    %998 = arith.mulf %995, %997 : vector<16x128xf32>
    %cst_376 = arith.constant dense<0.000000e+00> : vector<16xf32>
    %999 = vector.multi_reduction <add>, %998, %cst_376 [1] : vector<16x128xf32> to vector<16xf32>
    %1000 = vector.shape_cast %999 : vector<16xf32> to vector<16x1xf32>
    %c0_377 = arith.constant 0 : index
    %c0_378 = arith.constant 0 : index
    %1001 = vector.load %arg11[%c0_377, %c0_378] : memref<1x1xf32, #tpu.memory_space<vmem>>, vector<1x1xf32>
    %1002 = vector.broadcast %1001 : vector<1x1xf32> to vector<16x1xf32>
    %1003 = arith.addf %1000, %1002 : vector<16x1xf32>
    %c0_379 = arith.constant 0 : index
    %c0_380 = arith.constant 0 : index
    %1004 = vector.load %arg12[%c0_379, %c0_380] : memref<16x1xf32, #tpu.memory_space<vmem>>, vector<16x1xf32>
    tpu.vector_store %arg12[%c0_379, %c0_380], %1003 {strides = array<i32>} : memref<16x1xf32, #tpu.memory_space<vmem>>, vector<16x1xf32>,
    return
  }
}

</mosaic_0001>

<bundles_post_ra>
// kernel: simple_lstm_forward.1
= control target key start
LH: loop header
LB: loop body
LE: loop exit
PB: predicated region body
PF: predicated region fallthrough
CT: control target
= control target key end

     0   :  { %s10828_s0 = inlined_call_operand.vmem [shape: f32[8,16,1], index: 0, kind: input, shape index: {}]   ;;  %s10829_s1 = inlined_call_operand.vmem [shape: f32[1,512], index: 1, kind: input, shape index: {}]   ;;  %s10830_s2 = inlined_call_operand.hbm [shape: bf16[128,512], index: 2, kind: input, shape index: {}]   ;;  %s10831_s3 = inlined_call_operand.vmem [shape: f32[1,512], index: 3, kind: input, shape index: {}]   ;;  %s10832_s4 = inlined_call_operand.hbm [shape: bf16[128,512], index: 4, kind: input, shape index: {}]   ;;  %s10833_s5 = inlined_call_operand.hbm [shape: bf16[128,512], index: 5, kind: input, shape index: {}]   ;;  %s10834_s6 = inlined_call_operand.vmem [shape: f32[1,512], index: 6, kind: input, shape index: {}]   ;;  %s10835_s7 = inlined_call_operand.hbm [shape: bf16[128,512], index: 7, kind: input, shape index: {}]   ;;  %s10836_s8 = inlined_call_operand.hbm [shape: bf16[128,512], index: 8, kind: input, shape index: {}]   ;;  %s10837_s9 = inlined_call_operand.vmem [shape: f32[1,512], index: 9, kind: input, shape index: {}]   ;;  %s10838_s10 = inlined_call_operand.vmem [shape: f32[1,128], index: 10, kind: input, shape index: {}]   ;;  %s10839_s11 = inlined_call_operand.<no memory space> [shape: f32[1,1], index: 11, kind: input, shape index: {}]   ;;  %s10840_s12 = inlined_call_operand.vmem [shape: f32[16,1], index: 12, kind: output, shape index: {}]  }
   0x1   :  { %v17_v0 = vstv %s10839_s11 }
   0x2   :  { %18 = vst [vmem:[#allocation2] sm:$0x1] %v17_v0 }
   0x3   :  { %19 = vsyncpa [#allocation4], 0 }
   0x4   :  { %20 = vsyncpa [#allocation6], 0 }
   0x5   :  { %21 = vsyncpa [#allocation9], 0  ;;  %s7413_s23 = smov [#allocation5]   ;;  %s7414_s25 = smov [#allocation8]  }
   0x6   :  { %s45_s24 = sshll.u32 %s7413_s23, 4  ;;  %s71_s26 = sshll.u32 %s7414_s25, 4  ;;  %s46_s24 = int_to_ptr.vmem [resolvable:$true] %s45_s24  ;;  %s72_s26 = int_to_ptr.vmem [resolvable:$true] %s71_s26 }
   0x7   :  { %s7315_s27 = scalar_lea.vmem %s46_s24, 4096  ;;  %p7320_p1 = scmp.lt.s32.totalorder %s46_s24, %s46_s24 }
   0x8   :  { %p7316_p0 = scmp.ne.s32.totalorder %s46_s24, %s7315_s27  ;;  %p7321_p2 = scmp.lt.s32.totalorder %s7315_s27, %s7315_s27 }
   0xa   :  { %p7322_p3 = por %p7321_p2, %p7320_p1 }
   0xc   :  { %p7323_p4 = pnand %p7322_p3, %p7316_p0 }
   0xe   :  { %7326 = shalt.err (!%p7323_p4)
}
   0xf   :  { %s7415_s28 = smov 256   ;;  %s7416_s29 = smov 16  }
  0x10   :  { %51 = dma.hbm_to_vmem [thread:$0]  %s10832_s4, 4096, %s46_s24, [#allocation6], %s7415_s28, %s7415_s28, %s7416_s29  }
  0x11   :  { %s7335_s13 = scalar_lea.vmem %s72_s26, 4096  ;;  %p7340_p6 = scmp.lt.s32.totalorder %s72_s26, %s72_s26 }
  0x12   :  { %p7336_p5 = scmp.ne.s32.totalorder %s72_s26, %s7335_s13  ;;  %p7341_p7 = scmp.lt.s32.totalorder %s7335_s13, %s7335_s13 }
  0x14   :  { %p7342_p8 = por %p7341_p7, %p7340_p6 }
  0x16   :  { %p7343_p9 = pnand %p7342_p8, %p7336_p5 }
  0x18   :  { %7346 = shalt.err (!%p7343_p9)
}
  0x19   :  { %77 = dma.hbm_to_vmem [thread:$0]  %s10835_s7, 4096, %s72_s26, [#allocation9], %s7415_s28, %s7415_s28, %s7416_s29  }
  0x1a   :  { %s7417_s16 = smov [#allocation3]   ;;  %s7418_s18 = smov [#allocation7]  }
  0x1b   :  { %s31_s17 = sshll.u32 %s7417_s16, 4  ;;  %s57_s19 = sshll.u32 %s7418_s18, 4  ;;  %s32_s17 = int_to_ptr.vmem [resolvable:$true] %s31_s17  ;;  %s58_s19 = int_to_ptr.vmem [resolvable:$true] %s57_s19 }
  0x1c   :  { %s7355_s4 = scalar_lea.vmem %s32_s17, 4096  ;;  %p7360_p11 = scmp.lt.s32.totalorder %s32_s17, %s32_s17 }
  0x1d   :  { %p7356_p10 = scmp.ne.s32.totalorder %s32_s17, %s7355_s4  ;;  %p7361_p12 = scmp.lt.s32.totalorder %s7355_s4, %s7355_s4 }
  0x1f   :  { %p7362_p13 = por %p7361_p12, %p7360_p11 }
  0x21   :  { %p7363_p0 = pnand %p7362_p13, %p7356_p10 }
  0x23   :  { %7366 = shalt.err (!%p7363_p0)
}
  0x24   :  { %37 = dma.hbm_to_vmem [thread:$0]  %s10830_s2, 4096, %s32_s17, [#allocation4], %s7415_s28, %s7415_s28, %s7416_s29  }
  0x25   :  { %s7375_s7 = scalar_lea.vmem %s58_s19, 4096  ;;  %p7380_p2 = scmp.lt.s32.totalorder %s58_s19, %s58_s19 }
  0x26   :  { %p7376_p1 = scmp.ne.s32.totalorder %s58_s19, %s7375_s7  ;;  %p7381_p3 = scmp.lt.s32.totalorder %s7375_s7, %s7375_s7 }
  0x28   :  { %p7382_p4 = por %p7381_p3, %p7380_p2 }
  0x2a   :  { %p7383_p5 = pnand %p7382_p4, %p7376_p1 }
  0x2c   :  { %7386 = shalt.err (!%p7383_p5)
}
  0x2d   :  { %63 = dma.hbm_to_vmem [thread:$0]  %s10833_s5, 4096, %s58_s19, [#allocation6], %s7415_s28, %s7415_s28, %s7416_s29  }
  0x2e   :  { %s7419_s24 = smov [#allocation10]  }
  0x2f   :  { %s83_s25 = sshll.u32 %s7419_s24, 4  ;;  %s84_s25 = int_to_ptr.vmem [resolvable:$true] %s83_s25 }
  0x30   :  { %s7395_s26 = scalar_lea.vmem %s84_s25, 4096  ;;  %p7400_p7 = scmp.lt.s32.totalorder %s84_s25, %s84_s25 }
  0x31   :  { %p7396_p6 = scmp.ne.s32.totalorder %s84_s25, %s7395_s26  ;;  %p7401_p8 = scmp.lt.s32.totalorder %s7395_s26, %s7395_s26 }
  0x33   :  { %p7402_p9 = por %p7401_p8, %p7400_p7 }
  0x35   :  { %p7403_p10 = pnand %p7402_p9, %p7396_p6 }
  0x37   :  { %7406 = shalt.err (!%p7403_p10)
}
  0x38   :  { %89 = dma.hbm_to_vmem [thread:$0]  %s10836_s8, 4096, %s84_s25, [#allocation9], %s7415_s28, %s7415_s28, %s7416_s29  }
  0x39   :  { %7407 = dma.done.wait [#allocation4], 4096  }
  0x3a   :  { %7408 = vsyncadd [#allocation4], 4294963200 }
  0x3b   :  { %7409 = dma.done.wait [#allocation6], 8192  }
  0x3c   :  { %7410 = vsyncadd [#allocation6], 4294959104 }
  0x3d   :  { %7411 = dma.done.wait [#allocation9], 8192  }
  0x3e   :  { %7412 = vsyncadd [#allocation9], 4294959104  ;;  %v10841_v1 = vmov 0   ;;  %v7523_v2 = vld [vmem:[#allocation3 + $0xe4] ss:$16 sps:$4 sm:$0xff]   ;;  %v141_v44 = vlaneseq  ;;  %vm5925_vm0 = vcmask 7168  }
  0x3f   :  { %604 = vmatprep.mubr.bf16.mxu0 %v10841_v1  ;;  %647 = vmatprep.mubr.bf16.mxu1 %v10841_v1  ;;  %v7525_v3 = vld [vmem:[#allocation3 + $0xec] ss:$16 sps:$4 sm:$0xff]   ;;  %v7528_v4 = vld [vmem:[#allocation3 + $0xe0] ss:$16 sps:$4 sm:$0xff]   ;;  %v7530_v5 = vld [vmem:[#allocation3 + $0xe8] ss:$16 sps:$4 sm:$0xff]  }
  0x40   :  { %6105 = vset.pattern.permute.xlu0 %v10841_v1  ;;  %6106 = vset.pattern.permute.xlu1 %v10841_v1  ;;  %v7533_v6 = vld [vmem:[#allocation3 + $0xc4] ss:$16 sps:$4 sm:$0xff]   ;;  %v7537_v7 = vld [vmem:[#allocation3 + $0xcc] ss:$16 sps:$4 sm:$0xff]   ;;  %v7539_v8 = vld [vmem:[#allocation3 + $0xc0] ss:$16 sps:$4 sm:$0xff]  }
  0x41   :  { %572 = vmatprep.subr.bf16.mxu0 %v7523_v2  ;;  %615 = vmatprep.subr.bf16.mxu1 %v7525_v3  ;;  %v7542_v9 = vld [vmem:[#allocation3 + $0xc8] ss:$16 sps:$4 sm:$0xff]   ;;  %v7545_v10 = vld [vmem:[#allocation3 + $0xa4] ss:$16 sps:$4 sm:$0xff]   ;;  %v7547_v11 = vld [vmem:[#allocation3 + $0xac] ss:$16 sps:$4 sm:$0xff]  }
  0x42   :  { %573 = vmatpush1.bf16.msra.mxu0 %v7528_v4  ;;  %616 = vmatpush1.bf16.msra.mxu1 %v7530_v5  ;;  %v7549_v12 = vld [vmem:[#allocation3 + $0xa0] ss:$16 sps:$4 sm:$0xff]   ;;  %v7551_v13 = vld [vmem:[#allocation3 + $0xa8] ss:$16 sps:$4 sm:$0xff]   ;;  %v7555_v14 = vld [vmem:[#allocation3 + $0x84] ss:$16 sps:$4 sm:$0xff]  }
  0x43   :  { %574 = vmatprep.subr.bf16.mxu0 %v7533_v6  ;;  %617 = vmatprep.subr.bf16.mxu1 %v7537_v7  ;;  %v7559_v15 = vld [vmem:[#allocation3 + $0x8c] ss:$16 sps:$4 sm:$0xff]   ;;  %v7561_v16 = vld [vmem:[#allocation3 + $0x80] ss:$16 sps:$4 sm:$0xff]   ;;  %v7565_v17 = vld [vmem:[#allocation3 + $0x88] ss:$16 sps:$4 sm:$0xff]  }
  0x44   :  { %v7567_v18 = vld [vmem:[#allocation3 + $0x64] ss:$16 sps:$4 sm:$0xff]   ;;  %v7571_v19 = vld [vmem:[#allocation3 + $0x6c] ss:$16 sps:$4 sm:$0xff]   ;;  %v7573_v20 = vld [vmem:[#allocation3 + $0x60] ss:$16 sps:$4 sm:$0xff]  }
  0x45   :  { %v7575_v21 = vld [vmem:[#allocation3 + $0x68] ss:$16 sps:$4 sm:$0xff]   ;;  %v7579_v22 = vld [vmem:[#allocation3 + $0x44] ss:$16 sps:$4 sm:$0xff]   ;;  %v7583_v23 = vld [vmem:[#allocation3 + $0x4c] ss:$16 sps:$4 sm:$0xff]  }
  0x46   :  { %575 = vmatpush1.bf16.msra.mxu0 %v7539_v8  ;;  %618 = vmatpush1.bf16.msra.mxu1 %v7542_v9  ;;  %v7587_v24 = vld [vmem:[#allocation3 + $0x40] ss:$16 sps:$4 sm:$0xff]   ;;  %v7589_v25 = vld [vmem:[#allocation3 + $0x48] ss:$16 sps:$4 sm:$0xff]   ;;  %v7593_v26 = vld [vmem:[#allocation3 + $0x24] ss:$16 sps:$4 sm:$0xff]  }
  0x47   :  { %576 = vmatprep.subr.bf16.mxu0 %v7545_v10  ;;  %619 = vmatprep.subr.bf16.mxu1 %v7547_v11  ;;  %v7595_v27 = vld [vmem:[#allocation3 + $0x2c] ss:$16 sps:$4 sm:$0xff]   ;;  %v7600_v29 = vld [vmem:[#allocation3 + $0x20] ss:$16 sps:$4 sm:$0xff]   ;;  %v7602_v30 = vld [vmem:[#allocation3 + $0x28] ss:$16 sps:$4 sm:$0xff]  }
  0x48   :  { %v112_v28 = vld [vmem:[%s10828_s0] sm:$0xff]  ;;  %v113_v33 = vld [vmem:[%s10828_s0 + $0x8] sm:$0xff]  ;;  %v118_v37 = vld [vmem:[%s10828_s0 + $0x30] sm:$0xff]  ;;  %v142_v45 = vshrl.u32 %v141_v44, 7 }
  0x49   :  { %132 = vperm.xlu0 %6105, %v112_v28   ;;  %v7604_v31 = vld [vmem:[#allocation3 + $0x4] ss:$16 sps:$4 sm:$0xff]   ;;  %v7606_v32 = vld [vmem:[#allocation3 + $0xc] ss:$16 sps:$4 sm:$0xff]   ;;  %v7618_v35 = vld [vmem:[#allocation3] ss:$16 sps:$4 sm:$0xff]  }
  0x4a   :  { %577 = vmatpush1.bf16.msra.mxu0 %v7549_v12  ;;  %620 = vmatpush1.bf16.msra.mxu1 %v7551_v13  ;;  %v116_v34 = vld [vmem:[%s10828_s0 + $0x20] sm:$0xff]  ;;  %v7620_v36 = vld [vmem:[#allocation3 + $0x8] ss:$16 sps:$4 sm:$0xff]   ;;  %v122_v39 = vld [vmem:[%s10828_s0 + $0x50] sm:$0xff]  ;;  %v7685_v46 = vsub.s32 0, %v142_v45  ;;  %v7690_v48 = vsub.s32 1, %v142_v45 }
  0x4b   :  { %578 = vmatprep.subr.bf16.mxu0 %v7555_v14  ;;  %621 = vmatprep.subr.bf16.mxu1 %v7559_v15  ;;  %v120_v38 = vld [vmem:[%s10828_s0 + $0x40] sm:$0xff]  ;;  %v126_v41 = vld [vmem:[%s10828_s0 + $0x70] sm:$0xff]  ;;  %v115_v51 = vld [vmem:[%s10828_s0 + $0x18] sm:$0xff]  ;;  %v7704_v53 = vsub.s32 2, %v142_v45 }
  0x4c   :  { %v124_v40 = vld [vmem:[%s10828_s0 + $0x60] sm:$0xff]  ;;  %v114_v49 = vld [vmem:[%s10828_s0 + $0x10] sm:$0xff]  ;;  %v117_v58 = vld [vmem:[%s10828_s0 + $0x28] sm:$0xff] }
  0x4d   :  { %137 = vperm.xlu0 %6105, %v113_v33   ;;  %v7679_v42 = vld [vmem:[#allocation7 + $0xe4] ss:$16 sps:$4 sm:$0xff]   ;;  %v7681_v43 = vld [vmem:[#allocation7 + $0xec] ss:$16 sps:$4 sm:$0xff]   ;;  %200 = vperm.xlu1 %6106, %v114_v49   ;;  %11272 = vst [vmem:[#allocation15_spill] sm:$0xff] %v7704_v53 }
  0x4e   :  { %579 = vmatpush1.bf16.msra.mxu0 %v7561_v16  ;;  %622 = vmatpush1.bf16.msra.mxu1 %v7565_v17  ;;  %v128_v47 = vld [vmem:[%s10829_s1] sm:$0xf]  ;;  %v119_v63 = vld [vmem:[%s10828_s0 + $0x38] sm:$0xff]  ;;  %v121_v28 = vld [vmem:[%s10828_s0 + $0x48] sm:$0xff] }
  0x4f   :  { %580 = vmatprep.subr.bf16.mxu0 %v7567_v18  ;;  %623 = vmatprep.subr.bf16.mxu1 %v7571_v19  ;;  %v7696_v50 = vrot.slane %v128_v47, %v7685_v46  ;;  %v129_v52 = vld [vmem:[%s10831_s3] sm:$0xf]  ;;  %v7707_v54 = vrot.slane %v128_v47, %v7690_v48  ;;  %v7717_v59 = vrot.slane %v128_v47, %v7704_v53 }
  0x50   :  { %v7711_v57 = vrot.slane %v129_v52, %v7685_v46  ;;  %v7721_v61 = vrot.slane %v129_v52, %v7690_v48 }
  0x51   :  { %226 = vperm.xlu0 %6105, %v116_v34   ;;  %11271 = vst [vmem:[#allocation14_spill] sm:$0xff] %v7696_v50  ;;  %11273 = vst [vmem:[#allocation16_spill] sm:$0xff] %v7707_v54  ;;  %205 = vperm.xlu1 %6106, %v115_v51  }
  0x52   :  { %581 = vmatpush1.bf16.msra.mxu0 %v7573_v20  ;;  %624 = vmatpush1.bf16.msra.mxu1 %v7575_v21  ;;  %11274 = vst [vmem:[#allocation17_spill] sm:$0xff] %v7711_v57  ;;  %11275 = vst [vmem:[#allocation18_spill] sm:$0xff] %v7717_v59 }
  0x53   :  { %582 = vmatprep.subr.bf16.mxu0 %v7579_v22  ;;  %625 = vmatprep.subr.bf16.mxu1 %v7583_v23  ;;  %11276 = vst [vmem:[#allocation19_spill] sm:$0xff] %v7721_v61 }
  0x55   :  { %252 = vperm.xlu0 %6105, %v118_v37   ;;  %231 = vperm.xlu1 %6106, %v117_v58   ;;  %v123_v58 = vld [vmem:[%s10828_s0 + $0x58] sm:$0xff] }
  0x56   :  { %583 = vmatpush1.bf16.msra.mxu0 %v7587_v24  ;;  %626 = vmatpush1.bf16.msra.mxu1 %v7589_v25 }
  0x57   :  { %584 = vmatprep.subr.bf16.mxu0 %v7593_v26  ;;  %627 = vmatprep.subr.bf16.mxu1 %v7595_v27 }
  0x59   :  { %278 = vperm.xlu0 %6105, %v120_v38   ;;  %257 = vperm.xlu1 %6106, %v119_v63  }
  0x5a   :  { %585 = vmatpush1.bf16.msra.mxu0 %v7600_v29  ;;  %628 = vmatpush1.bf16.msra.mxu1 %v7602_v30 }
  0x5b   :  { %586 = vmatprep.subr.bf16.mxu0 %v7604_v31  ;;  %629 = vmatprep.subr.bf16.mxu1 %v7606_v32 }
  0x5d   :  { %304 = vperm.xlu0 %6105, %v122_v39   ;;  %283 = vperm.xlu1 %6106, %v121_v28  }
  0x5e   :  { %587 = vmatpush1.bf16.msra.mxu0 %v7618_v35  ;;  %630 = vmatpush1.bf16.msra.mxu1 %v7620_v36 }
  0x5f   :  { %703 = vmatprep.subr.bf16.mxu0 %v7523_v2  ;;  %746 = vmatprep.subr.bf16.mxu1 %v7525_v3  ;;  %v7729_v3 = vrot.slane %v129_v52, %v7704_v53  ;;  %v7909_v53 = vld [vmem:[#allocation5 + $0x80] ss:$16 sps:$4 sm:$0xff]  }
  0x60   :  { %11310 = vst [vmem:[#allocation52_spill] sm:$0xff] %v7909_v53 }
  0x61   :  { %605 = vmatmul.mubr.bf16.vlgmr.msra.gmra.mxu0 %v10841_v1  ;;  %648 = vmatmul.mubr.bf16.vlgmr.msra.gmra.mxu1 %v10841_v1  ;;  %11277 = vst [vmem:[#allocation20_spill] sm:$0xff] %v7729_v3 }
  0x62   :  { %704 = vmatpush1.bf16.msra.mxu0 %v7528_v4  ;;  %747 = vmatpush1.bf16.msra.mxu1 %v7530_v5  ;;  %v7732_v5 = vsub.s32 3, %v142_v45 }
  0x63   :  { %705 = vmatprep.subr.bf16.mxu0 %v7533_v6  ;;  %748 = vmatprep.subr.bf16.mxu1 %v7537_v7 }
  0x64   :  { %735 = vmatprep.mubr.bf16.mxu0 %v10841_v1  ;;  %778 = vmatprep.mubr.bf16.mxu1 %v10841_v1  ;;  %11278 = vst [vmem:[#allocation21_spill] sm:$0xff] %v7732_v5  ;;  %v7741_v39 = vrot.slane %v128_v47, %v7732_v5  ;;  %v7750_v47 = vrot.slane %v129_v52, %v7732_v5  ;;  %v7845_v5 = vld [vmem:[#allocation7 + $0x20] ss:$16 sps:$4 sm:$0xff]  }
  0x65   :  { %330 = vperm.xlu0 %6105, %v124_v40   ;;  %309 = vperm.xlu1 %6106, %v123_v58   ;;  %11289 = vst [vmem:[#allocation32_spill] sm:$0xff] %v7845_v5 }
  0x66   :  { %706 = vmatpush1.bf16.msra.mxu0 %v7539_v8  ;;  %749 = vmatpush1.bf16.msra.mxu1 %v7542_v9  ;;  %11279 = vst [vmem:[#allocation22_spill] sm:$0xff] %v7741_v39  ;;  %11280 = vst [vmem:[#allocation23_spill] sm:$0xff] %v7750_v47 }
  0x67   :  { %707 = vmatprep.subr.bf16.mxu0 %v7545_v10  ;;  %750 = vmatprep.subr.bf16.mxu1 %v7547_v11 }
  0x69   :  { %356 = vperm.xlu0 %6105, %v126_v41  }
  0x6a   :  { %708 = vmatpush1.bf16.msra.mxu0 %v7549_v12  ;;  %751 = vmatpush1.bf16.msra.mxu1 %v7551_v13 }
  0x6b   :  { %709 = vmatprep.subr.bf16.mxu0 %v7555_v14  ;;  %752 = vmatprep.subr.bf16.mxu1 %v7559_v15 }
  0x6e   :  { %710 = vmatpush1.bf16.msra.mxu0 %v7561_v16  ;;  %753 = vmatpush1.bf16.msra.mxu1 %v7565_v17 }
  0x6f   :  { %711 = vmatprep.subr.bf16.mxu0 %v7567_v18  ;;  %754 = vmatprep.subr.bf16.mxu1 %v7571_v19 }
  0x72   :  { %712 = vmatpush1.bf16.msra.mxu0 %v7573_v20  ;;  %755 = vmatpush1.bf16.msra.mxu1 %v7575_v21 }
  0x73   :  { %713 = vmatprep.subr.bf16.mxu0 %v7579_v22  ;;  %756 = vmatprep.subr.bf16.mxu1 %v7583_v23 }
  0x76   :  { %714 = vmatpush1.bf16.msra.mxu0 %v7587_v24  ;;  %757 = vmatpush1.bf16.msra.mxu1 %v7589_v25 }
  0x77   :  { %715 = vmatprep.subr.bf16.mxu0 %v7593_v26  ;;  %758 = vmatprep.subr.bf16.mxu1 %v7595_v27 }
  0x7a   :  { %716 = vmatpush1.bf16.msra.mxu0 %v7600_v29  ;;  %759 = vmatpush1.bf16.msra.mxu1 %v7602_v30 }
  0x7b   :  { %717 = vmatprep.subr.bf16.mxu0 %v7604_v31  ;;  %760 = vmatprep.subr.bf16.mxu1 %v7606_v32 }
  0x7e   :  { %718 = vmatpush1.bf16.msra.mxu0 %v7618_v35  ;;  %761 = vmatpush1.bf16.msra.mxu1 %v7620_v36 }
  0x7f   :  { %1057 = vmatprep.subr.bf16.mxu0 %v7679_v42  ;;  %1100 = vmatprep.subr.bf16.mxu1 %v7681_v43 }
  0xc4   :  { %v133_v55 = vpop.permute.xlu0 %132 }
  0xc5   :  { %v161_v56 = vmul.f32 %v7696_v50, %v133_v55  ;;  %v162_v60 = vmul.f32 %v7707_v54, %v133_v55  ;;  %v163_v2 = vmul.f32 %v7717_v59, %v133_v55  ;;  %v164_v63 = vmul.f32 %v7741_v39, %v133_v55 }
  0xc7   :  { %v190_v62 = vadd.f32 %v7711_v57, %v161_v56  ;;  %v191_v4 = vadd.f32 %v7721_v61, %v162_v60  ;;  %v192_v33 = vadd.f32 %v7729_v3, %v163_v2 }
  0xc8   :  { %v138_v0 = vpop.permute.xlu0 %137 }
  0xc9   :  { %v165_v6 = vmul.f32 %v7696_v50, %v138_v0  ;;  %v166_v10 = vmul.f32 %v7707_v54, %v138_v0  ;;  %v167_v45 = vmul.f32 %v7717_v59, %v138_v0  ;;  %v168_v52 = vmul.f32 %v7741_v39, %v138_v0 }
  0xcb   :  { %v194_v40 = vadd.f32 %v7711_v57, %v165_v6  ;;  %v195_v56 = vadd.f32 %v7721_v61, %v166_v10  ;;  %v125_v10 = vld [vmem:[%s10828_s0 + $0x68] sm:$0xff] }
  0xcc   :  { %335 = vperm.xlu1 %6106, %v125_v10  }
 0x121   :  { %v606_v7 = vpop.f32.mrf.mxu0  ;;  %v649_v8 = vpop.f32.mrf.mxu1 }
 0x122   :  { %v658_v9 = vadd.f32 %v606_v7, %v190_v62  ;;  %v660_v60 = vadd.f32 %v649_v8, %v192_v33  ;;  %v196_v7 = vadd.f32 %v7729_v3, %v167_v45  ;;  %v193_v8 = vadd.f32 %v7750_v47, %v164_v63  ;;  %v127_v33 = vld [vmem:[%s10828_s0 + $0x78] sm:$0xff] }
 0x123   :  { %v608_v34 = vpop.f32.mrf.mxu0  ;;  %v651_v41 = vpop.f32.mrf.mxu1  ;;  %361 = vperm.xlu1 %6106, %v127_v33  }
 0x124   :  { %v666_v37 = vmul.f32 0.5, %v658_v9  ;;  %v659_v38 = vadd.f32 %v608_v34, %v191_v4  ;;  %v197_v34 = vadd.f32 %v7750_v47, %v168_v52 }
 0x125   :  { %v610_v44 = vpop.f32.mrf.mxu0  ;;  %v653_v6 = vpop.f32.mrf.mxu1 }
 0x126   :  { %6347 = vtanh.f32 %v666_v37  ;;  %v674_v49 = vmul.f32 0.5, %v659_v38  ;;  %v662_v51 = vadd.f32 %v610_v44, %v194_v40  ;;  %v664_v28 = vadd.f32 %v653_v6, %v196_v7 }
 0x127   :  { %v612_v62 = vpop.f32.mrf.mxu0  ;;  %v655_v55 = vpop.f32.mrf.mxu1  ;;  %v661_v37 = vadd.f32 %v651_v41, %v193_v8 }
 0x128   :  { %6349 = vtanh.f32 %v674_v49  ;;  %v667_v2 = vmul.f32 0.5, %v662_v51  ;;  %v663_v4 = vadd.f32 %v612_v62, %v195_v56  ;;  %v665_v38 = vadd.f32 %v655_v55, %v197_v34 }
 0x129   :  { %v684_v45 = vmul.f32 0.5, %v661_v37 }
 0x12a   :  { %6351 = vtanh.f32 %v667_v2  ;;  %v675_v9 = vmul.f32 0.5, %v663_v4  ;;  %v685_v49 = vmul.f32 0.5, %v665_v38 }
 0x12b   :  { %6353 = vtanh.f32 %v660_v60 }
 0x12c   :  { %6355 = vtanh.f32 %v675_v9 }
 0x12d   :  { %6357 = vtanh.f32 %v664_v28 }
 0x12e   :  { %6359 = vtanh.f32 %v684_v45 }
 0x12f   :  { %6361 = vtanh.f32 %v685_v49 }
 0x133   :  { %v6348_v40 = vpop.eup %6347 }
 0x134   :  { %v670_v44 = vmul.f32 0.5, %v6348_v40 }
 0x135   :  { %v6350_v0 = vpop.eup %6349 }
 0x136   :  { %v672_v51 = vadd.f32 0.5, %v670_v44  ;;  %v678_v56 = vmul.f32 0.5, %v6350_v0 }
 0x137   :  { %v6352_v58 = vpop.eup %6351 }
 0x138   :  { %v6354_v60 = vpop.eup %6353  ;;  %v680_v62 = vadd.f32 0.5, %v678_v56  ;;  %v671_v63 = vmul.f32 0.5, %v6352_v58  ;;  %v7769_v56 = vld [vmem:[#allocation7 + $0xe0] ss:$16 sps:$4 sm:$0xff]   ;;  %v7771_v58 = vld [vmem:[#allocation7 + $0xe8] ss:$16 sps:$4 sm:$0xff]  }
 0x139   :  { %v6356_v2 = vpop.eup %6355  ;;  %v694_v6 = vmul.f32 %v6354_v60, %v672_v51 }
 0x13a   :  { %v692_v4 = vmul.f32 0.0, %v680_v62  ;;  %v673_v41 = vadd.f32 0.5, %v671_v63  ;;  %v679_v7 = vmul.f32 0.5, %v6356_v2  ;;  %v6358_v52 = vpop.eup %6357  ;;  %v7775_v62 = vld [vmem:[#allocation7 + $0xc4] ss:$16 sps:$4 sm:$0xff]  }
 0x13b   :  { %v6360_v33 = vpop.eup %6359  ;;  %v7777_v63 = vld [vmem:[#allocation7 + $0xcc] ss:$16 sps:$4 sm:$0xff]   ;;  %v7783_v2 = vld [vmem:[#allocation7 + $0xc0] ss:$16 sps:$4 sm:$0xff]  }
 0x13c   :  { %v7763_v9 = vadd.f32 %v694_v6, %v692_v4  ;;  %v681_v10 = vadd.f32 0.5, %v679_v7  ;;  %v695_v28 = vmul.f32 %v6358_v52, %v673_v41  ;;  %v6362_v34 = vpop.eup %6361  ;;  %v688_v37 = vmul.f32 0.5, %v6360_v33  ;;  %v7785_v4 = vld [vmem:[#allocation7 + $0xc8] ss:$16 sps:$4 sm:$0xff]   ;;  %v7789_v6 = vld [vmem:[#allocation7 + $0xa4] ss:$16 sps:$4 sm:$0xff]  }
 0x13d   :  { %v689_v38 = vmul.f32 0.5, %v6362_v34  ;;  %v7791_v41 = vld [vmem:[#allocation7 + $0xac] ss:$16 sps:$4 sm:$0xff]   ;;  %v7797_v7 = vld [vmem:[#allocation7 + $0xa0] ss:$16 sps:$4 sm:$0xff]  }
 0x13e   :  { %v693_v8 = vmul.f32 0.0, %v681_v10  ;;  %6363 = vtanh.f32 %v7763_v9  ;;  %v690_v44 = vadd.f32 0.5, %v688_v37  ;;  %v7799_v10 = vld [vmem:[#allocation7 + $0xa8] ss:$16 sps:$4 sm:$0xff]   ;;  %v7803_v52 = vld [vmem:[#allocation7 + $0x84] ss:$16 sps:$4 sm:$0xff]  }
 0x13f   :  { %v691_v45 = vadd.f32 0.5, %v689_v38  ;;  %v7811_v33 = vld [vmem:[#allocation7 + $0x88] ss:$16 sps:$4 sm:$0xff]   ;;  %v7815_v34 = vld [vmem:[#allocation7 + $0x64] ss:$16 sps:$4 sm:$0xff]  }
 0x140   :  { %v7766_v55 = vadd.f32 %v695_v28, %v693_v8  ;;  %v7805_v8 = vld [vmem:[#allocation7 + $0x8c] ss:$16 sps:$4 sm:$0xff]   ;;  %v7809_v28 = vld [vmem:[#allocation7 + $0x80] ss:$16 sps:$4 sm:$0xff]  }
 0x141   :  { %v7817_v37 = vld [vmem:[#allocation7 + $0x6c] ss:$16 sps:$4 sm:$0xff]   ;;  %v7821_v38 = vld [vmem:[#allocation7 + $0x60] ss:$16 sps:$4 sm:$0xff]  }
 0x142   :  { %6365 = vtanh.f32 %v7766_v55  ;;  %11281 = vst [vmem:[#allocation24_spill] sm:$0xff] %v7821_v38 }
 0x14b   :  { %v6364_v40 = vpop.eup %6363 }
 0x14c   :  { %v700_v49 = vmul.f32 %v6364_v40, %v690_v44  ;;  %v7823_v40 = vld [vmem:[#allocation7 + $0x68] ss:$16 sps:$4 sm:$0xff]   ;;  %v7827_v44 = vld [vmem:[#allocation7 + $0x44] ss:$16 sps:$4 sm:$0xff]  }
 0x14d   :  { %11282 = vst [vmem:[#allocation25_spill] sm:$0xff] %v7823_v40  ;;  %11283 = vst [vmem:[#allocation26_spill] sm:$0xff] %v7827_v44 }
 0x14f   :  { %v6366_v0 = vpop.eup %6365 }
 0x150   :  { %v701_v51 = vmul.f32 %v6366_v0, %v691_v45  ;;  %v7829_v45 = vld [vmem:[#allocation7 + $0x4c] ss:$16 sps:$4 sm:$0xff]   ;;  %v7833_v0 = vld [vmem:[#allocation7 + $0x40] ss:$16 sps:$4 sm:$0xff]  }
 0x151   :  { %11284 = vst [vmem:[#allocation27_spill] sm:$0xff] %v7829_v45  ;;  %11285 = vst [vmem:[#allocation28_spill] sm:$0xff] %v7833_v0 }
 0x152   :  { %v7773_v60 = vpack.c.bf16 %v701_v51, %v700_v49  ;;  %v7835_v49 = vld [vmem:[#allocation7 + $0x48] ss:$16 sps:$4 sm:$0xff]   ;;  %v7839_v51 = vld [vmem:[#allocation7 + $0x24] ss:$16 sps:$4 sm:$0xff]  }
 0x153   :  { %11286 = vst [vmem:[#allocation29_spill] sm:$0xff] %v7835_v49  ;;  %11287 = vst [vmem:[#allocation30_spill] sm:$0xff] %v7839_v51 }
 0x154   :  { %736 = vmatmul.mubr.bf16.vlgmr.msra.gmra.mxu0 %v7773_v60  ;;  %779 = vmatmul.mubr.bf16.vlgmr.msra.gmra.mxu1 %v7773_v60 }
 0x155   :  { %1058 = vmatpush1.bf16.msra.mxu0 %v7769_v56  ;;  %1101 = vmatpush1.bf16.msra.mxu1 %v7771_v58 }
 0x156   :  { %1059 = vmatprep.subr.bf16.mxu0 %v7775_v62  ;;  %1102 = vmatprep.subr.bf16.mxu1 %v7777_v63 }
 0x157   :  { %1089 = vmatprep.mubr.bf16.mxu0 %v10841_v1  ;;  %1132 = vmatprep.mubr.bf16.mxu1 %v10841_v1  ;;  %v7841_v1 = vld [vmem:[#allocation7 + $0x2c] ss:$16 sps:$4 sm:$0xff]  }
 0x158   :  { %11288 = vst [vmem:[#allocation31_spill] sm:$0xff] %v7841_v1 }
 0x159   :  { %1060 = vmatpush1.bf16.msra.mxu0 %v7783_v2  ;;  %1103 = vmatpush1.bf16.msra.mxu1 %v7785_v4 }
 0x15a   :  { %1061 = vmatprep.subr.bf16.mxu0 %v7789_v6  ;;  %1104 = vmatprep.subr.bf16.mxu1 %v7791_v41 }
 0x15d   :  { %1062 = vmatpush1.bf16.msra.mxu0 %v7797_v7  ;;  %1105 = vmatpush1.bf16.msra.mxu1 %v7799_v10 }
 0x15e   :  { %1063 = vmatprep.subr.bf16.mxu0 %v7803_v52  ;;  %1106 = vmatprep.subr.bf16.mxu1 %v7805_v8 }
 0x161   :  { %1064 = vmatpush1.bf16.msra.mxu0 %v7809_v28  ;;  %1107 = vmatpush1.bf16.msra.mxu1 %v7811_v33 }
 0x162   :  { %1065 = vmatprep.subr.bf16.mxu0 %v7815_v34  ;;  %1108 = vmatprep.subr.bf16.mxu1 %v7817_v37 }
 0x165   :  { %1066 = vmatpush1.bf16.msra.mxu0 %v7821_v38  ;;  %1109 = vmatpush1.bf16.msra.mxu1 %v7823_v40  ;;  %v7847_v38 = vld [vmem:[#allocation7 + $0x28] ss:$16 sps:$4 sm:$0xff]   ;;  %v7851_v40 = vld [vmem:[#allocation7 + $0x4] ss:$16 sps:$4 sm:$0xff]  }
 0x166   :  { %1067 = vmatprep.subr.bf16.mxu0 %v7827_v44  ;;  %1110 = vmatprep.subr.bf16.mxu1 %v7829_v45  ;;  %11290 = vst [vmem:[#allocation33_spill] sm:$0xff] %v7847_v38  ;;  %11291 = vst [vmem:[#allocation34_spill] sm:$0xff] %v7851_v40  ;;  %v7853_v44 = vld [vmem:[#allocation7 + $0xc] ss:$16 sps:$4 sm:$0xff]   ;;  %v7857_v45 = vld [vmem:[#allocation7] ss:$16 sps:$4 sm:$0xff]  }
 0x167   :  { %11292 = vst [vmem:[#allocation35_spill] sm:$0xff] %v7853_v44  ;;  %11293 = vst [vmem:[#allocation36_spill] sm:$0xff] %v7857_v45 }
 0x169   :  { %1068 = vmatpush1.bf16.msra.mxu0 %v7833_v0  ;;  %1111 = vmatpush1.bf16.msra.mxu1 %v7835_v49  ;;  %v7859_v0 = vld [vmem:[#allocation7 + $0x8] ss:$16 sps:$4 sm:$0xff]   ;;  %v7863_v49 = vld [vmem:[#allocation5 + $0xe4] ss:$16 sps:$4 sm:$0xff]  }
 0x16a   :  { %1069 = vmatprep.subr.bf16.mxu0 %v7839_v51  ;;  %1112 = vmatprep.subr.bf16.mxu1 %v7841_v1  ;;  %11294 = vst [vmem:[#allocation37_spill] sm:$0xff] %v7859_v0  ;;  %11295 = vst [vmem:[#allocation38_spill] sm:$0xff] %v7863_v49  ;;  %v7865_v51 = vld [vmem:[#allocation5 + $0xec] ss:$16 sps:$4 sm:$0xff]   ;;  %v7869_v1 = vld [vmem:[#allocation5 + $0xe0] ss:$16 sps:$4 sm:$0xff]  }
 0x16b   :  { %11296 = vst [vmem:[#allocation39_spill] sm:$0xff] %v7865_v51  ;;  %11297 = vst [vmem:[#allocation40_spill] sm:$0xff] %v7869_v1 }
 0x16d   :  { %1070 = vmatpush1.bf16.msra.mxu0 %v7845_v5  ;;  %1113 = vmatpush1.bf16.msra.mxu1 %v7847_v38  ;;  %v7871_v5 = vld [vmem:[#allocation5 + $0xe8] ss:$16 sps:$4 sm:$0xff]   ;;  %v7875_v38 = vld [vmem:[#allocation5 + $0xc4] ss:$16 sps:$4 sm:$0xff]  }
 0x16e   :  { %1071 = vmatprep.subr.bf16.mxu0 %v7851_v40  ;;  %1114 = vmatprep.subr.bf16.mxu1 %v7853_v44  ;;  %11298 = vst [vmem:[#allocation41_spill] sm:$0xff] %v7871_v5  ;;  %11299 = vst [vmem:[#allocation42_spill] sm:$0xff] %v7875_v38  ;;  %v7877_v40 = vld [vmem:[#allocation5 + $0xcc] ss:$16 sps:$4 sm:$0xff]   ;;  %v11301_v44 = vmov 0  }
 0x16f   :  { %11300 = vst [vmem:[#allocation43_spill] sm:$0xff] %v7877_v40 }
 0x171   :  { %1072 = vmatpush1.bf16.msra.mxu0 %v7857_v45  ;;  %1115 = vmatpush1.bf16.msra.mxu1 %v7859_v0  ;;  %v7883_v0 = vld [vmem:[#allocation5 + $0xc0] ss:$16 sps:$4 sm:$0xff]   ;;  %v7885_v45 = vld [vmem:[#allocation5 + $0xc8] ss:$16 sps:$4 sm:$0xff]  }
 0x172   :  { %1303 = vmatprep.subr.bf16.mxu0 %v7863_v49  ;;  %1346 = vmatprep.subr.bf16.mxu1 %v7865_v51  ;;  %11302 = vst [vmem:[#allocation44_spill] sm:$0xff] %v7883_v0  ;;  %11303 = vst [vmem:[#allocation45_spill] sm:$0xff] %v7885_v45  ;;  %v7889_v51 = vld [vmem:[#allocation5 + $0xa4] ss:$16 sps:$4 sm:$0xff]   ;;  %v7891_v49 = vld [vmem:[#allocation5 + $0xac] ss:$16 sps:$4 sm:$0xff]  }
 0x173   :  { %11304 = vst [vmem:[#allocation46_spill] sm:$0xff] %v7889_v51  ;;  %11305 = vst [vmem:[#allocation47_spill] sm:$0xff] %v7891_v49 }
 0x174   :  { %1090 = vmatmul.mubr.bf16.vlgmr.msra.gmra.mxu0 %v11301_v44  ;;  %1133 = vmatmul.mubr.bf16.vlgmr.msra.gmra.mxu1 %v11301_v44 }
 0x175   :  { %1304 = vmatpush1.bf16.msra.mxu0 %v7869_v1  ;;  %1347 = vmatpush1.bf16.msra.mxu1 %v7871_v5  ;;  %v7897_v5 = vld [vmem:[#allocation5 + $0xa0] ss:$16 sps:$4 sm:$0xff]   ;;  %v7899_v1 = vld [vmem:[#allocation5 + $0xa8] ss:$16 sps:$4 sm:$0xff]  }
 0x176   :  { %1305 = vmatprep.subr.bf16.mxu0 %v7875_v38  ;;  %1348 = vmatprep.subr.bf16.mxu1 %v7877_v40  ;;  %11306 = vst [vmem:[#allocation48_spill] sm:$0xff] %v7897_v5  ;;  %11307 = vst [vmem:[#allocation49_spill] sm:$0xff] %v7899_v1  ;;  %v7903_v40 = vld [vmem:[#allocation5 + $0x84] ss:$16 sps:$4 sm:$0xff]   ;;  %v7905_v38 = vld [vmem:[#allocation5 + $0x8c] ss:$16 sps:$4 sm:$0xff]  }
 0x177   :  { %1335 = vmatprep.mubr.bf16.mxu0 %v11301_v44  ;;  %1378 = vmatprep.mubr.bf16.mxu1 %v11301_v44  ;;  %11308 = vst [vmem:[#allocation50_spill] sm:$0xff] %v7903_v40  ;;  %11309 = vst [vmem:[#allocation51_spill] sm:$0xff] %v7905_v38 }
 0x179   :  { %1306 = vmatpush1.bf16.msra.mxu0 %v7883_v0  ;;  %1349 = vmatpush1.bf16.msra.mxu1 %v7885_v45  ;;  %v7911_v0 = vld [vmem:[#allocation5 + $0x88] ss:$16 sps:$4 sm:$0xff]   ;;  %v7915_v45 = vld [vmem:[#allocation5 + $0x64] ss:$16 sps:$4 sm:$0xff]  }
 0x17a   :  { %1307 = vmatprep.subr.bf16.mxu0 %v7889_v51  ;;  %1350 = vmatprep.subr.bf16.mxu1 %v7891_v49  ;;  %11311 = vst [vmem:[#allocation53_spill] sm:$0xff] %v7911_v0  ;;  %11312 = vst [vmem:[#allocation54_spill] sm:$0xff] %v7915_v45  ;;  %v7917_v51 = vld [vmem:[#allocation5 + $0x6c] ss:$16 sps:$4 sm:$0xff]   ;;  %v7921_v49 = vld [vmem:[#allocation5 + $0x60] ss:$16 sps:$4 sm:$0xff]  }
 0x17b   :  { %11313 = vst [vmem:[#allocation55_spill] sm:$0xff] %v7917_v51  ;;  %11314 = vst [vmem:[#allocation56_spill] sm:$0xff] %v7921_v49 }
 0x17d   :  { %1308 = vmatpush1.bf16.msra.mxu0 %v7897_v5  ;;  %1351 = vmatpush1.bf16.msra.mxu1 %v7899_v1  ;;  %v7923_v5 = vld [vmem:[#allocation5 + $0x68] ss:$16 sps:$4 sm:$0xff]   ;;  %v7927_v1 = vld [vmem:[#allocation5 + $0x44] ss:$16 sps:$4 sm:$0xff]  }
 0x17e   :  { %1309 = vmatprep.subr.bf16.mxu0 %v7903_v40  ;;  %1352 = vmatprep.subr.bf16.mxu1 %v7905_v38  ;;  %11315 = vst [vmem:[#allocation57_spill] sm:$0xff] %v7923_v5  ;;  %11316 = vst [vmem:[#allocation58_spill] sm:$0xff] %v7927_v1  ;;  %v7929_v40 = vld [vmem:[#allocation5 + $0x4c] ss:$16 sps:$4 sm:$0xff]   ;;  %v7933_v38 = vld [vmem:[#allocation5 + $0x40] ss:$16 sps:$4 sm:$0xff]  }
 0x17f   :  { %11317 = vst [vmem:[#allocation59_spill] sm:$0xff] %v7929_v40  ;;  %11318 = vst [vmem:[#allocation60_spill] sm:$0xff] %v7933_v38 }
 0x181   :  { %1310 = vmatpush1.bf16.msra.mxu0 %v7909_v53  ;;  %1353 = vmatpush1.bf16.msra.mxu1 %v7911_v0  ;;  %v7935_v53 = vld [vmem:[#allocation5 + $0x48] ss:$16 sps:$4 sm:$0xff]   ;;  %v7939_v0 = vld [vmem:[#allocation5 + $0x24] ss:$16 sps:$4 sm:$0xff]  }
 0x182   :  { %1311 = vmatprep.subr.bf16.mxu0 %v7915_v45  ;;  %1354 = vmatprep.subr.bf16.mxu1 %v7917_v51  ;;  %11319 = vst [vmem:[#allocation61_spill] sm:$0xff] %v7939_v0  ;;  %v7941_v45 = vld [vmem:[#allocation5 + $0x2c] ss:$16 sps:$4 sm:$0xff]   ;;  %v7945_v51 = vld [vmem:[#allocation5 + $0x20] ss:$16 sps:$4 sm:$0xff]  }
 0x183   :  { %11320 = vst [vmem:[#allocation62_spill] sm:$0xff] %v7941_v45 }
 0x185   :  { %1312 = vmatpush1.bf16.msra.mxu0 %v7921_v49  ;;  %1355 = vmatpush1.bf16.msra.mxu1 %v7923_v5  ;;  %v7947_v49 = vld [vmem:[#allocation5 + $0x28] ss:$16 sps:$4 sm:$0xff]   ;;  %v7951_v5 = vld [vmem:[#allocation5 + $0x4] ss:$16 sps:$4 sm:$0xff]  }
 0x186   :  { %1313 = vmatprep.subr.bf16.mxu0 %v7927_v1  ;;  %1356 = vmatprep.subr.bf16.mxu1 %v7929_v40  ;;  %11321 = vst [vmem:[#allocation63_spill] sm:$0xff] %v7947_v49  ;;  %v7953_v1 = vld [vmem:[#allocation5 + $0xc] ss:$16 sps:$4 sm:$0xff]   ;;  %v7957_v40 = vld [vmem:[#allocation5] ss:$16 sps:$4 sm:$0xff]  }
 0x187   :  { %11322 = vst [vmem:[#allocation64_spill] sm:$0xff] %v7953_v1 }
 0x189   :  { %1314 = vmatpush1.bf16.msra.mxu0 %v7933_v38  ;;  %1357 = vmatpush1.bf16.msra.mxu1 %v7935_v53  ;;  %v7959_v38 = vld [vmem:[#allocation5 + $0x8] ss:$16 sps:$4 sm:$0xff]  }
 0x18a   :  { %1315 = vmatprep.subr.bf16.mxu0 %v7939_v0  ;;  %1358 = vmatprep.subr.bf16.mxu1 %v7941_v45  ;;  %11323 = vst [vmem:[#allocation65_spill] sm:$0xff] %v7959_v38  ;;  %v7965_v45 = vld [vmem:[#allocation3 + $0xe4] ss:$16 sps:$4 sm:$0xff]   ;;  %v7968_v0 = vld [vmem:[#allocation3 + $0xec] ss:$16 sps:$4 sm:$0xff]  }
 0x18b   :  { %11324 = vst [vmem:[#allocation66_spill] sm:$0xff] %v7965_v45 }
 0x18d   :  { %1316 = vmatpush1.bf16.msra.mxu0 %v7945_v51  ;;  %1359 = vmatpush1.bf16.msra.mxu1 %v7947_v49  ;;  %v7973_v49 = vld [vmem:[#allocation3 + $0xe0] ss:$16 sps:$4 sm:$0xff]  }
 0x18e   :  { %1317 = vmatprep.subr.bf16.mxu0 %v7951_v5  ;;  %1360 = vmatprep.subr.bf16.mxu1 %v7953_v1  ;;  %11325 = vst [vmem:[#allocation67_spill] sm:$0xff] %v7973_v49  ;;  %v7976_v1 = vld [vmem:[#allocation3 + $0xe8] ss:$16 sps:$4 sm:$0xff]  }
 0x18f   :  { %11326 = vst [vmem:[#allocation68_spill] sm:$0xff] %v7976_v1 }
 0x191   :  { %1318 = vmatpush1.bf16.msra.mxu0 %v7957_v40  ;;  %1361 = vmatpush1.bf16.msra.mxu1 %v7959_v38  ;;  %v7979_v38 = vld [vmem:[#allocation3 + $0xc4] ss:$16 sps:$4 sm:$0xff]  }
 0x192   :  { %1456 = vmatprep.subr.bf16.mxu0 %v7965_v45  ;;  %1499 = vmatprep.subr.bf16.mxu1 %v7968_v0  ;;  %v7982_v45 = vld [vmem:[#allocation3 + $0xcc] ss:$16 sps:$4 sm:$0xff]  }
 0x194   :  { %1336 = vmatmul.mubr.bf16.vlgmr.msra.gmra.mxu0 %v7773_v60  ;;  %1379 = vmatmul.mubr.bf16.vlgmr.msra.gmra.mxu1 %v7773_v60  ;;  %v7987_v60 = vld [vmem:[#allocation3 + $0xc0] ss:$16 sps:$4 sm:$0xff]  }
 0x195   :  { %1457 = vmatpush1.bf16.msra.mxu0 %v7973_v49  ;;  %1500 = vmatpush1.bf16.msra.mxu1 %v7976_v1  ;;  %v7990_v49 = vld [vmem:[#allocation3 + $0xc8] ss:$16 sps:$4 sm:$0xff]   ;;  %v7993_v1 = vld [vmem:[#allocation3 + $0xa4] ss:$16 sps:$4 sm:$0xff]  }
 0x196   :  { %1458 = vmatprep.subr.bf16.mxu0 %v7979_v38  ;;  %1501 = vmatprep.subr.bf16.mxu1 %v7982_v45 }
 0x197   :  { %1488 = vmatprep.mubr.bf16.mxu0 %v11301_v44  ;;  %1531 = vmatprep.mubr.bf16.mxu1 %v11301_v44 }
 0x199   :  { %1459 = vmatpush1.bf16.msra.mxu0 %v7987_v60  ;;  %1502 = vmatpush1.bf16.msra.mxu1 %v7990_v49 }
 0x19a   :  { %1460 = vmatprep.subr.bf16.mxu0 %v7993_v1  ;;  %1503 = vmatprep.subr.bf16.mxu1 %v7547_v11  ;;  %v201_v11 = vpop.permute.xlu1 %200 }
 0x19d   :  { %1461 = vmatpush1.bf16.msra.mxu0 %v7549_v12  ;;  %1504 = vmatpush1.bf16.msra.mxu1 %v7551_v13  ;;  %v208_v12 = vmul.f32 %v201_v11, %v7696_v50 }
 0x19e   :  { %1462 = vmatprep.subr.bf16.mxu0 %v7555_v14  ;;  %1505 = vmatprep.subr.bf16.mxu1 %v7559_v15  ;;  %v206_v13 = vpop.permute.xlu1 %205  ;;  %v209_v14 = vmul.f32 %v201_v11, %v7707_v54 }
 0x19f   :  { %v216_v15 = vadd.f32 %v208_v12, %v7711_v57 }
 0x1a1   :  { %1463 = vmatpush1.bf16.msra.mxu0 %v7561_v16  ;;  %1506 = vmatpush1.bf16.msra.mxu1 %v7565_v17  ;;  %v212_v16 = vmul.f32 %v206_v13, %v7696_v50  ;;  %v210_v17 = vmul.f32 %v201_v11, %v7717_v59 }
 0x1a2   :  { %1464 = vmatprep.subr.bf16.mxu0 %v7567_v18  ;;  %1507 = vmatprep.subr.bf16.mxu1 %v7571_v19  ;;  %v217_v18 = vadd.f32 %v209_v14, %v7721_v61  ;;  %v213_v19 = vmul.f32 %v206_v13, %v7707_v54 }
 0x1a5   :  { %1465 = vmatpush1.bf16.msra.mxu0 %v7573_v20  ;;  %1508 = vmatpush1.bf16.msra.mxu1 %v7575_v21 }
 0x1a6   :  { %1466 = vmatprep.subr.bf16.mxu0 %v7579_v22  ;;  %1509 = vmatprep.subr.bf16.mxu1 %v7583_v23  ;;  %v220_v23 = vadd.f32 %v212_v16, %v7711_v57 }
 0x1a9   :  { %1467 = vmatpush1.bf16.msra.mxu0 %v7587_v24  ;;  %1510 = vmatpush1.bf16.msra.mxu1 %v7589_v25  ;;  %v218_v24 = vadd.f32 %v210_v17, %v7729_v3 }
 0x1aa   :  { %1468 = vmatprep.subr.bf16.mxu0 %v7593_v26  ;;  %1511 = vmatprep.subr.bf16.mxu1 %v7595_v27 }
 0x1ad   :  { %1469 = vmatpush1.bf16.msra.mxu0 %v7600_v29  ;;  %1512 = vmatpush1.bf16.msra.mxu1 %v7602_v30  ;;  %v214_v29 = vmul.f32 %v206_v13, %v7717_v59  ;;  %v221_v30 = vadd.f32 %v213_v19, %v7721_v61 }
 0x1ae   :  { %1470 = vmatprep.subr.bf16.mxu0 %v7604_v31  ;;  %1513 = vmatprep.subr.bf16.mxu1 %v7606_v32 }
 0x1b1   :  { %1471 = vmatpush1.bf16.msra.mxu0 %v7618_v35  ;;  %1514 = vmatpush1.bf16.msra.mxu1 %v7620_v36 }
 0x1b2   :  { %1587 = vmatprep.subr.bf16.mxu0 %v7679_v42  ;;  %1630 = vmatprep.subr.bf16.mxu1 %v7681_v43  ;;  %v211_v43 = vmul.f32 %v201_v11, %v7741_v39 }
 0x1b4   :  { %v219_v19 = vadd.f32 %v211_v43, %v7750_v47 }
 0x214   :  { %v737_v20 = vpop.f32.mrf.mxu0  ;;  %v780_v21 = vpop.f32.mrf.mxu1 }
 0x215   :  { %v789_v22 = vadd.f32 %v737_v20, %v216_v15  ;;  %v791_v42 = vadd.f32 %v780_v21, %v218_v24  ;;  %v222_v15 = vadd.f32 %v214_v29, %v7729_v3 }
 0x216   :  { %v739_v25 = vpop.f32.mrf.mxu0  ;;  %v782_v31 = vpop.f32.mrf.mxu1 }
 0x217   :  { %v797_v26 = vmul.f32 0.5, %v789_v22  ;;  %v790_v27 = vadd.f32 %v739_v25, %v217_v18  ;;  %v215_v18 = vmul.f32 %v206_v13, %v7741_v39  ;;  %v792_v11 = vadd.f32 %v782_v31, %v219_v19 }
 0x218   :  { %v741_v32 = vpop.f32.mrf.mxu0  ;;  %v784_v17 = vpop.f32.mrf.mxu1 }
 0x219   :  { %6367 = vtanh.f32 %v797_v26  ;;  %v805_v35 = vmul.f32 0.5, %v790_v27  ;;  %v793_v36 = vadd.f32 %v741_v32, %v220_v23  ;;  %v795_v22 = vadd.f32 %v784_v17, %v222_v15 }
 0x21a   :  { %v743_v12 = vpop.f32.mrf.mxu0  ;;  %v223_v21 = vadd.f32 %v215_v18, %v7750_v47  ;;  %v786_v23 = vpop.f32.mrf.mxu1  ;;  %v815_v27 = vmul.f32 0.5, %v792_v11 }
 0x21b   :  { %6369 = vtanh.f32 %v805_v35  ;;  %v798_v14 = vmul.f32 0.5, %v793_v36  ;;  %v794_v16 = vadd.f32 %v743_v12, %v221_v30 }
 0x21c   :  { %v796_v24 = vadd.f32 %v786_v23, %v223_v21 }
 0x21d   :  { %6371 = vtanh.f32 %v798_v14  ;;  %v806_v20 = vmul.f32 0.5, %v794_v16 }
 0x21e   :  { %6373 = vtanh.f32 %v791_v42  ;;  %v816_v30 = vmul.f32 0.5, %v796_v24 }
 0x21f   :  { %6375 = vtanh.f32 %v806_v20 }
 0x220   :  { %6377 = vtanh.f32 %v795_v22 }
 0x221   :  { %6379 = vtanh.f32 %v815_v27 }
 0x222   :  { %6381 = vtanh.f32 %v816_v30 }
 0x226   :  { %v6368_v25 = vpop.eup %6367 }
 0x227   :  { %v801_v26 = vmul.f32 0.5, %v6368_v25 }
 0x228   :  { %v6370_v29 = vpop.eup %6369 }
 0x229   :  { %v803_v32 = vadd.f32 0.5, %v801_v26  ;;  %v809_v13 = vmul.f32 0.5, %v6370_v29 }
 0x22a   :  { %v6372_v35 = vpop.eup %6371 }
 0x22b   :  { %v6374_v36 = vpop.eup %6373  ;;  %v811_v42 = vadd.f32 0.5, %v809_v13  ;;  %v802_v43 = vmul.f32 0.5, %v6372_v35 }
 0x22c   :  { %v6376_v12 = vpop.eup %6375  ;;  %v825_v15 = vmul.f32 %v6374_v36, %v803_v32 }
 0x22d   :  { %v823_v14 = vmul.f32 %v811_v42, %v7763_v9  ;;  %v804_v31 = vadd.f32 0.5, %v802_v43  ;;  %v810_v16 = vmul.f32 0.5, %v6376_v12  ;;  %v6378_v20 = vpop.eup %6377 }
 0x22e   :  { %v6380_v23 = vpop.eup %6379 }
 0x22f   :  { %v8038_v17 = vadd.f32 %v825_v15, %v823_v14  ;;  %v812_v18 = vadd.f32 0.5, %v810_v16  ;;  %v826_v22 = vmul.f32 %v6378_v20, %v804_v31  ;;  %v6382_v11 = vpop.eup %6381  ;;  %v819_v24 = vmul.f32 0.5, %v6380_v23  ;;  %v11327_v14 = vld [vmem:[#allocation15_spill] sm:$0xff]  ;;  %v11328_v16 = vld [vmem:[#allocation24_spill] sm:$0xff] }
 0x230   :  { %v820_v9 = vmul.f32 0.5, %v6382_v11 }
 0x231   :  { %v824_v19 = vmul.f32 %v812_v18, %v7766_v55  ;;  %6383 = vtanh.f32 %v8038_v17  ;;  %v821_v26 = vadd.f32 0.5, %v819_v24 }
 0x232   :  { %v822_v27 = vadd.f32 0.5, %v820_v9 }
 0x233   :  { %v8042_v21 = vadd.f32 %v826_v22, %v824_v19 }
 0x234   :  { %v1091_v55 = vpop.f32.mrf.mxu0  ;;  %v1134_v35 = vpop.f32.mrf.mxu1 }
 0x235   :  { %6385 = vtanh.f32 %v8042_v21 }
 0x236   :  { %v1093_v36 = vpop.f32.mrf.mxu0  ;;  %v8053_v42 = vpop.f32.mrf.mxu1 }
 0x23e   :  { %v6384_v25 = vpop.eup %6383 }
 0x23f   :  { %v831_v30 = vmul.f32 %v6384_v25, %v821_v26  ;;  %v11332_v26 = vld [vmem:[#allocation28_spill] sm:$0xff] }
 0x242   :  { %v6386_v29 = vpop.eup %6385 }
 0x243   :  { %v832_v32 = vmul.f32 %v6386_v29, %v822_v27  ;;  %v11333_v27 = vld [vmem:[#allocation29_spill] sm:$0xff] }
 0x245   :  { %v8045_v13 = vpack.c.bf16 %v832_v32, %v831_v30  ;;  %v11334_v32 = vld [vmem:[#allocation30_spill] sm:$0xff] }
 0x247   :  { %1489 = vmatmul.mubr.bf16.vlgmr.msra.gmra.mxu0 %v8045_v13  ;;  %1532 = vmatmul.mubr.bf16.vlgmr.msra.gmra.mxu1 %v8045_v13 }
 0x248   :  { %1588 = vmatpush1.bf16.msra.mxu0 %v7769_v56  ;;  %1631 = vmatpush1.bf16.msra.mxu1 %v7771_v58  ;;  %v1095_v56 = vpop.f32.mrf.mxu0  ;;  %v1138_v58 = vpop.f32.mrf.mxu1 }
 0x249   :  { %1589 = vmatprep.subr.bf16.mxu0 %v7775_v62  ;;  %1632 = vmatprep.subr.bf16.mxu1 %v7777_v63  ;;  %v1389_v62 = vld [vmem:[%s10834_s6] sm:$0xf] }
 0x24a   :  { %1619 = vmatprep.mubr.bf16.mxu0 %v11301_v44  ;;  %1662 = vmatprep.mubr.bf16.mxu1 %v11301_v44  ;;  %v1097_v63 = vpop.f32.mrf.mxu0  ;;  %v8080_v15 = vrot.slane %v1389_v62, %v11327_v14 }
 0x24c   :  { %1590 = vmatpush1.bf16.msra.mxu0 %v7783_v2  ;;  %1633 = vmatpush1.bf16.msra.mxu1 %v7785_v4  ;;  %v1140_v2 = vpop.f32.mrf.mxu1  ;;  %v8069_v4 = vrot.slane %v1389_v62, %v7685_v46 }
 0x24d   :  { %1591 = vmatprep.subr.bf16.mxu0 %v7789_v6  ;;  %1634 = vmatprep.subr.bf16.mxu1 %v7791_v41 }
 0x250   :  { %1592 = vmatpush1.bf16.msra.mxu0 %v7797_v7  ;;  %1635 = vmatpush1.bf16.msra.mxu1 %v7799_v10  ;;  %v8074_v7 = vrot.slane %v1389_v62, %v7690_v48 }
 0x251   :  { %1593 = vmatprep.subr.bf16.mxu0 %v7803_v52  ;;  %1636 = vmatprep.subr.bf16.mxu1 %v7805_v8 }
 0x254   :  { %v1337_v6 = vpop.f32.mrf.mxu0  ;;  %v1380_v41 = vpop.f32.mrf.mxu1  ;;  %1594 = vmatpush1.bf16.msra.mxu0 %v7809_v28  ;;  %1637 = vmatpush1.bf16.msra.mxu1 %v7811_v33  ;;  %v11329_v33 = vld [vmem:[#allocation25_spill] sm:$0xff] }
 0x255   :  { %v1338_v43 = vadd.f32 %v1337_v6, %v1091_v55  ;;  %1595 = vmatprep.subr.bf16.mxu0 %v7815_v34  ;;  %1638 = vmatprep.subr.bf16.mxu1 %v7817_v37  ;;  %v1381_v12 = vadd.f32 %v1380_v41, %v1134_v35  ;;  %v11330_v34 = vld [vmem:[#allocation26_spill] sm:$0xff]  ;;  %v11331_v37 = vld [vmem:[#allocation27_spill] sm:$0xff]  ;;  %v11337_v6 = vld [vmem:[#allocation33_spill] sm:$0xff] }
 0x256   :  { %v1339_v10 = vpop.f32.mrf.mxu0  ;;  %v1382_v52 = vpop.f32.mrf.mxu1  ;;  %v11335_v55 = vld [vmem:[#allocation31_spill] sm:$0xff] }
 0x257   :  { %v1411_v8 = vadd.f32 %v8069_v4, %v1338_v43  ;;  %v1340_v31 = vadd.f32 %v1339_v10, %v1093_v36  ;;  %v1413_v11 = vadd.f32 %v8080_v15, %v1381_v12  ;;  %v11338_v43 = vld [vmem:[#allocation34_spill] sm:$0xff]  ;;  %v1383_v10 = vadd.f32 %v1382_v52, %v8053_v42 }
 0x258   :  { %v1341_v28 = vpop.f32.mrf.mxu0  ;;  %1596 = vmatpush1.bf16.msra.mxu0 %v11328_v16  ;;  %1639 = vmatpush1.bf16.msra.mxu1 %v11329_v33  ;;  %v1384_v22 = vpop.f32.mrf.mxu1  ;;  %v11342_v16 = vld [vmem:[#allocation37_spill] sm:$0xff]  ;;  %v11343_v33 = vld [vmem:[#allocation38_spill] sm:$0xff] }
 0x259   :  { %v1419_v18 = vmul.f32 0.5, %v1411_v8  ;;  %v1412_v20 = vadd.f32 %v8074_v7, %v1340_v31  ;;  %1597 = vmatprep.subr.bf16.mxu0 %v11330_v34  ;;  %1640 = vmatprep.subr.bf16.mxu1 %v11331_v37  ;;  %v1342_v19 = vadd.f32 %v1341_v28, %v1095_v56  ;;  %v1385_v29 = vadd.f32 %v1384_v22, %v1138_v58  ;;  %v11339_v58 = vld [vmem:[#allocation35_spill] sm:$0xff]  ;;  %v11340_v8 = vld [vmem:[#allocation21_spill] sm:$0xff]  ;;  %v11341_v28 = vld [vmem:[#allocation36_spill] sm:$0xff] }
 0x25a   :  { %v1343_v23 = vpop.f32.mrf.mxu0  ;;  %v1386_v56 = vpop.f32.mrf.mxu1  ;;  %v8101_v12 = vrot.slane %v1389_v62, %v11340_v8 }
 0x25b   :  { %6387 = vtanh.f32 %v1419_v18  ;;  %v1427_v24 = vmul.f32 0.5, %v1412_v20  ;;  %v1344_v9 = vadd.f32 %v1343_v23, %v1097_v63  ;;  %v1415_v25 = vadd.f32 %v8069_v4, %v1342_v19  ;;  %v11336_v63 = vld [vmem:[#allocation32_spill] sm:$0xff]  ;;  %v11344_v18 = vld [vmem:[#allocation39_spill] sm:$0xff] }
 0x25c   :  { %1598 = vmatpush1.bf16.msra.mxu0 %v11332_v26  ;;  %1641 = vmatpush1.bf16.msra.mxu1 %v11333_v27  ;;  %v1417_v41 = vadd.f32 %v8080_v15, %v1385_v29  ;;  %v1387_v31 = vadd.f32 %v1386_v56, %v1140_v2  ;;  %v1414_v20 = vadd.f32 %v8101_v12, %v1383_v10 }
 0x25d   :  { %6389 = vtanh.f32 %v1427_v24  ;;  %v1416_v30 = vadd.f32 %v8074_v7, %v1344_v9  ;;  %1599 = vmatprep.subr.bf16.mxu0 %v11334_v32  ;;  %1642 = vmatprep.subr.bf16.mxu1 %v11335_v55  ;;  %v1420_v35 = vmul.f32 0.5, %v1415_v25 }
 0x25e   :  { %6391 = vtanh.f32 %v1413_v11  ;;  %v1418_v34 = vadd.f32 %v8101_v12, %v1387_v31  ;;  %v1437_v52 = vmul.f32 0.5, %v1414_v20 }
 0x25f   :  { %v1428_v36 = vmul.f32 0.5, %v1416_v30  ;;  %6393 = vtanh.f32 %v1420_v35 }
 0x260   :  { %1600 = vmatpush1.bf16.msra.mxu0 %v11336_v63  ;;  %1643 = vmatpush1.bf16.msra.mxu1 %v11337_v6  ;;  %v1438_v2 = vmul.f32 0.5, %v1418_v34  ;;  %v11345_v34 = vld [vmem:[#allocation40_spill] sm:$0xff] }
 0x261   :  { %6395 = vtanh.f32 %v1428_v36  ;;  %1601 = vmatprep.subr.bf16.mxu0 %v11338_v43  ;;  %1644 = vmatprep.subr.bf16.mxu1 %v11339_v58 }
 0x262   :  { %6397 = vtanh.f32 %v1417_v41 }
 0x263   :  { %6399 = vtanh.f32 %v1437_v52  ;;  %v11349_v52 = vld [vmem:[#allocation44_spill] sm:$0xff] }
 0x264   :  { %1602 = vmatpush1.bf16.msra.mxu0 %v11341_v28  ;;  %1645 = vmatpush1.bf16.msra.mxu1 %v11342_v16  ;;  %6401 = vtanh.f32 %v1438_v2  ;;  %v11352_v2 = vld [vmem:[#allocation47_spill] sm:$0xff] }
 0x265   :  { %1673 = vmatprep.subr.bf16.mxu0 %v11343_v33  ;;  %1716 = vmatprep.subr.bf16.mxu1 %v11344_v18 }
 0x268   :  { %v6388_v37 = vpop.eup %6387 }
 0x269   :  { %v1423_v19 = vmul.f32 0.5, %v6388_v37  ;;  %v11346_v37 = vld [vmem:[#allocation41_spill] sm:$0xff] }
 0x26a   :  { %v6390_v42 = vpop.eup %6389 }
 0x26b   :  { %v1425_v62 = vadd.f32 0.5, %v1423_v19  ;;  %v1431_v22 = vmul.f32 0.5, %v6390_v42  ;;  %v6392_v23 = vpop.eup %6391  ;;  %v11347_v19 = vld [vmem:[#allocation42_spill] sm:$0xff]  ;;  %v11348_v42 = vld [vmem:[#allocation43_spill] sm:$0xff] }
 0x26c   :  { %v6394_v11 = vpop.eup %6393 }
 0x26d   :  { %v1433_v24 = vadd.f32 0.5, %v1431_v22  ;;  %v1424_v25 = vmul.f32 0.5, %v6394_v11  ;;  %v1447_v27 = vmul.f32 %v6392_v23, %v1425_v62  ;;  %v11350_v62 = vld [vmem:[#allocation45_spill] sm:$0xff]  ;;  %v11351_v22 = vld [vmem:[#allocation46_spill] sm:$0xff]  ;;  %v11353_v23 = vld [vmem:[#allocation48_spill] sm:$0xff] }
 0x26e   :  { %v6396_v9 = vpop.eup %6395  ;;  %v11354_v11 = vld [vmem:[#allocation49_spill] sm:$0xff] }
 0x26f   :  { %v1445_v26 = vmul.f32 0.0, %v1433_v24  ;;  %v1432_v29 = vmul.f32 0.5, %v6396_v9  ;;  %v1426_v30 = vadd.f32 0.5, %v1424_v25  ;;  %v6398_v35 = vpop.eup %6397  ;;  %v11355_v24 = vld [vmem:[#allocation50_spill] sm:$0xff]  ;;  %v11356_v9 = vld [vmem:[#allocation51_spill] sm:$0xff]  ;;  %v11357_v25 = vld [vmem:[#allocation52_spill] sm:$0xff] }
 0x270   :  { %v6400_v6 = vpop.eup %6399 }
 0x271   :  { %v8109_v32 = vadd.f32 %v1447_v27, %v1445_v26  ;;  %v1434_v55 = vadd.f32 0.5, %v1432_v29  ;;  %v1448_v56 = vmul.f32 %v6398_v35, %v1426_v30  ;;  %v6402_v41 = vpop.eup %6401  ;;  %v1441_v43 = vmul.f32 0.5, %v6400_v6  ;;  %v11358_v26 = vld [vmem:[#allocation53_spill] sm:$0xff]  ;;  %v11359_v27 = vld [vmem:[#allocation54_spill] sm:$0xff]  ;;  %v11360_v29 = vld [vmem:[#allocation55_spill] sm:$0xff] }
 0x272   :  { %v1442_v58 = vmul.f32 0.5, %v6402_v41  ;;  %v11361_v30 = vld [vmem:[#allocation56_spill] sm:$0xff]  ;;  %v11363_v35 = vld [vmem:[#allocation58_spill] sm:$0xff]  ;;  %v11366_v6 = vld [vmem:[#allocation61_spill] sm:$0xff] }
 0x273   :  { %v1446_v36 = vmul.f32 0.0, %v1434_v55  ;;  %6403 = vtanh.f32 %v8109_v32  ;;  %v1443_v31 = vadd.f32 0.5, %v1441_v43  ;;  %v11362_v55 = vld [vmem:[#allocation57_spill] sm:$0xff]  ;;  %v11367_v41 = vld [vmem:[#allocation62_spill] sm:$0xff]  ;;  %v11368_v43 = vld [vmem:[#allocation63_spill] sm:$0xff] }
 0x274   :  { %v1444_v28 = vadd.f32 0.5, %v1442_v58  ;;  %v11369_v58 = vld [vmem:[#allocation64_spill] sm:$0xff] }
 0x275   :  { %v8112_v63 = vadd.f32 %v1448_v56, %v1446_v36  ;;  %v11364_v36 = vld [vmem:[#allocation59_spill] sm:$0xff]  ;;  %v11365_v56 = vld [vmem:[#allocation60_spill] sm:$0xff] }
 0x277   :  { %6405 = vtanh.f32 %v8112_v63 }
 0x280   :  { %v6404_v10 = vpop.eup %6403 }
 0x281   :  { %v1453_v33 = vmul.f32 %v6404_v10, %v1443_v31  ;;  %v8149_v10 = vld [vmem:[#allocation10 + $0xe4] ss:$16 sps:$4 sm:$0xff]   ;;  %v8151_v31 = vld [vmem:[#allocation10 + $0xec] ss:$16 sps:$4 sm:$0xff]  }
 0x284   :  { %v6406_v16 = vpop.eup %6405 }
 0x285   :  { %v1454_v18 = vmul.f32 %v6406_v16, %v1444_v28  ;;  %v11370_v28 = vld [vmem:[#allocation65_spill] sm:$0xff] }
 0x286   :  { %v8157_v16 = vld [vmem:[#allocation10 + $0xe8] ss:$16 sps:$4 sm:$0xff]  }
 0x287   :  { %v8115_v20 = vpack.c.bf16 %v1454_v18, %v1453_v33  ;;  %v8171_v33 = vld [vmem:[#allocation10 + $0xc8] ss:$16 sps:$4 sm:$0xff]   ;;  %v8175_v18 = vld [vmem:[#allocation10 + $0xa4] ss:$16 sps:$4 sm:$0xff]  }
 0x289   :  { %1620 = vmatmul.mubr.bf16.vlgmr.msra.gmra.mxu0 %v8115_v20  ;;  %1663 = vmatmul.mubr.bf16.vlgmr.msra.gmra.mxu1 %v8115_v20 }
 0x28a   :  { %1674 = vmatpush1.bf16.msra.mxu0 %v11345_v34  ;;  %1717 = vmatpush1.bf16.msra.mxu1 %v11346_v37  ;;  %v8177_v34 = vld [vmem:[#allocation10 + $0xac] ss:$16 sps:$4 sm:$0xff]   ;;  %v8185_v37 = vld [vmem:[#allocation10 + $0xa8] ss:$16 sps:$4 sm:$0xff]  }
 0x28b   :  { %1675 = vmatprep.subr.bf16.mxu0 %v11347_v19  ;;  %1718 = vmatprep.subr.bf16.mxu1 %v11348_v42  ;;  %v8189_v19 = vld [vmem:[#allocation10 + $0x84] ss:$16 sps:$4 sm:$0xff]   ;;  %v8191_v42 = vld [vmem:[#allocation10 + $0x8c] ss:$16 sps:$4 sm:$0xff]  }
 0x28c   :  { %1705 = vmatprep.mubr.bf16.mxu0 %v11301_v44  ;;  %1748 = vmatprep.mubr.bf16.mxu1 %v11301_v44 }
 0x28e   :  { %1676 = vmatpush1.bf16.msra.mxu0 %v11349_v52  ;;  %1719 = vmatpush1.bf16.msra.mxu1 %v11350_v62  ;;  %v8195_v52 = vld [vmem:[#allocation10 + $0x80] ss:$16 sps:$4 sm:$0xff]   ;;  %v8197_v62 = vld [vmem:[#allocation10 + $0x88] ss:$16 sps:$4 sm:$0xff]  }
 0x28f   :  { %1677 = vmatprep.subr.bf16.mxu0 %v11351_v22  ;;  %1720 = vmatprep.subr.bf16.mxu1 %v11352_v2  ;;  %v8201_v22 = vld [vmem:[#allocation10 + $0x64] ss:$16 sps:$4 sm:$0xff]   ;;  %v8203_v2 = vld [vmem:[#allocation10 + $0x6c] ss:$16 sps:$4 sm:$0xff]  }
 0x292   :  { %1678 = vmatpush1.bf16.msra.mxu0 %v11353_v23  ;;  %1721 = vmatpush1.bf16.msra.mxu1 %v11354_v11  ;;  %v8207_v23 = vld [vmem:[#allocation10 + $0x60] ss:$16 sps:$4 sm:$0xff]   ;;  %v8209_v11 = vld [vmem:[#allocation10 + $0x68] ss:$16 sps:$4 sm:$0xff]  }
 0x293   :  { %1679 = vmatprep.subr.bf16.mxu0 %v11355_v24  ;;  %1722 = vmatprep.subr.bf16.mxu1 %v11356_v9  ;;  %v8213_v24 = vld [vmem:[#allocation10 + $0x44] ss:$16 sps:$4 sm:$0xff]   ;;  %v8215_v9 = vld [vmem:[#allocation10 + $0x4c] ss:$16 sps:$4 sm:$0xff]  }
 0x296   :  { %1680 = vmatpush1.bf16.msra.mxu0 %v11357_v25  ;;  %1723 = vmatpush1.bf16.msra.mxu1 %v11358_v26  ;;  %v8219_v25 = vld [vmem:[#allocation10 + $0x40] ss:$16 sps:$4 sm:$0xff]   ;;  %v8221_v26 = vld [vmem:[#allocation10 + $0x48] ss:$16 sps:$4 sm:$0xff]  }
 0x297   :  { %1681 = vmatprep.subr.bf16.mxu0 %v11359_v27  ;;  %1724 = vmatprep.subr.bf16.mxu1 %v11360_v29  ;;  %11371 = vst [vmem:[#allocation15_spill] sm:$0xff] %v8219_v25  ;;  %11372 = vst [vmem:[#allocation24_spill] sm:$0xff] %v8221_v26  ;;  %v8225_v27 = vld [vmem:[#allocation10 + $0x24] ss:$16 sps:$4 sm:$0xff]   ;;  %v8227_v29 = vld [vmem:[#allocation10 + $0x2c] ss:$16 sps:$4 sm:$0xff]  }
 0x298   :  { %11373 = vst [vmem:[#allocation25_spill] sm:$0xff] %v8225_v27  ;;  %11374 = vst [vmem:[#allocation26_spill] sm:$0xff] %v8227_v29 }
 0x29a   :  { %1682 = vmatpush1.bf16.msra.mxu0 %v11361_v30  ;;  %1725 = vmatpush1.bf16.msra.mxu1 %v11362_v55  ;;  %v8231_v30 = vld [vmem:[#allocation10 + $0x20] ss:$16 sps:$4 sm:$0xff]   ;;  %v8233_v55 = vld [vmem:[#allocation10 + $0x28] ss:$16 sps:$4 sm:$0xff]  }
 0x29b   :  { %1683 = vmatprep.subr.bf16.mxu0 %v11363_v35  ;;  %1726 = vmatprep.subr.bf16.mxu1 %v11364_v36  ;;  %11375 = vst [vmem:[#allocation27_spill] sm:$0xff] %v8231_v30  ;;  %11376 = vst [vmem:[#allocation28_spill] sm:$0xff] %v8233_v55  ;;  %v8237_v35 = vld [vmem:[#allocation10 + $0x4] ss:$16 sps:$4 sm:$0xff]   ;;  %v8239_v36 = vld [vmem:[#allocation10 + $0xc] ss:$16 sps:$4 sm:$0xff]  }
 0x29c   :  { %11377 = vst [vmem:[#allocation29_spill] sm:$0xff] %v8237_v35  ;;  %11378 = vst [vmem:[#allocation30_spill] sm:$0xff] %v8239_v36 }
 0x29e   :  { %1684 = vmatpush1.bf16.msra.mxu0 %v11365_v56  ;;  %1727 = vmatpush1.bf16.msra.mxu1 %v7935_v53  ;;  %v8155_v53 = vld [vmem:[#allocation10 + $0xe0] ss:$16 sps:$4 sm:$0xff]  }
 0x29f   :  { %1685 = vmatprep.subr.bf16.mxu0 %v11366_v6  ;;  %1728 = vmatprep.subr.bf16.mxu1 %v11367_v41  ;;  %v8243_v56 = vld [vmem:[#allocation10] ss:$16 sps:$4 sm:$0xff]   ;;  %v8245_v6 = vld [vmem:[#allocation10 + $0x8] ss:$16 sps:$4 sm:$0xff]   ;;  %v8249_v41 = vld [vmem:[#allocation8 + $0xe4] ss:$16 sps:$4 sm:$0xff]  }
 0x2a0   :  { %11379 = vst [vmem:[#allocation31_spill] sm:$0xff] %v8243_v56  ;;  %11380 = vst [vmem:[#allocation32_spill] sm:$0xff] %v8245_v6 }
 0x2a1   :  { %11381 = vst [vmem:[#allocation33_spill] sm:$0xff] %v8249_v41 }
 0x2a2   :  { %1686 = vmatpush1.bf16.msra.mxu0 %v7945_v51  ;;  %1729 = vmatpush1.bf16.msra.mxu1 %v11368_v43  ;;  %v8161_v51 = vld [vmem:[#allocation10 + $0xc4] ss:$16 sps:$4 sm:$0xff]   ;;  %v8251_v43 = vld [vmem:[#allocation8 + $0xec] ss:$16 sps:$4 sm:$0xff]  }
 0x2a3   :  { %1687 = vmatprep.subr.bf16.mxu0 %v7951_v5  ;;  %1730 = vmatprep.subr.bf16.mxu1 %v11369_v58  ;;  %v8163_v5 = vld [vmem:[#allocation10 + $0xcc] ss:$16 sps:$4 sm:$0xff]   ;;  %11382 = vst [vmem:[#allocation34_spill] sm:$0xff] %v8251_v43  ;;  %v8255_v58 = vld [vmem:[#allocation8 + $0xe0] ss:$16 sps:$4 sm:$0xff]  }
 0x2a4   :  { %11383 = vst [vmem:[#allocation35_spill] sm:$0xff] %v8255_v58 }
 0x2a6   :  { %1688 = vmatpush1.bf16.msra.mxu0 %v7957_v40  ;;  %1731 = vmatpush1.bf16.msra.mxu1 %v11370_v28  ;;  %v8169_v40 = vld [vmem:[#allocation10 + $0xc0] ss:$16 sps:$4 sm:$0xff]   ;;  %v8257_v28 = vld [vmem:[#allocation8 + $0xe8] ss:$16 sps:$4 sm:$0xff]  }
 0x2a7   :  { %2027 = vmatprep.subr.bf16.mxu0 %v8149_v10  ;;  %2070 = vmatprep.subr.bf16.mxu1 %v8151_v31  ;;  %11384 = vst [vmem:[#allocation21_spill] sm:$0xff] %v8257_v28 }
 0x2a9   :  { %1706 = vmatmul.mubr.bf16.vlgmr.msra.gmra.mxu0 %v8045_v13  ;;  %1749 = vmatmul.mubr.bf16.vlgmr.msra.gmra.mxu1 %v8045_v13  ;;  %v8183_v13 = vld [vmem:[#allocation10 + $0xa0] ss:$16 sps:$4 sm:$0xff]  }
 0x2aa   :  { %2028 = vmatpush1.bf16.msra.mxu0 %v8155_v53  ;;  %2071 = vmatpush1.bf16.msra.mxu1 %v8157_v16 }
 0x2ab   :  { %2029 = vmatprep.subr.bf16.mxu0 %v8161_v51  ;;  %2072 = vmatprep.subr.bf16.mxu1 %v8163_v5 }
 0x2ac   :  { %2059 = vmatprep.mubr.bf16.mxu0 %v11301_v44  ;;  %2102 = vmatprep.mubr.bf16.mxu1 %v11301_v44 }
 0x2ae   :  { %2030 = vmatpush1.bf16.msra.mxu0 %v8169_v40  ;;  %2073 = vmatpush1.bf16.msra.mxu1 %v8171_v33 }
 0x2af   :  { %2031 = vmatprep.subr.bf16.mxu0 %v8175_v18  ;;  %2074 = vmatprep.subr.bf16.mxu1 %v8177_v34 }
 0x2b2   :  { %2032 = vmatpush1.bf16.msra.mxu0 %v8183_v13  ;;  %2075 = vmatpush1.bf16.msra.mxu1 %v8185_v37 }
 0x2b3   :  { %2033 = vmatprep.subr.bf16.mxu0 %v8189_v19  ;;  %2076 = vmatprep.subr.bf16.mxu1 %v8191_v42 }
 0x2b6   :  { %2034 = vmatpush1.bf16.msra.mxu0 %v8195_v52  ;;  %2077 = vmatpush1.bf16.msra.mxu1 %v8197_v62 }
 0x2b7   :  { %2035 = vmatprep.subr.bf16.mxu0 %v8201_v22  ;;  %2078 = vmatprep.subr.bf16.mxu1 %v8203_v2 }
 0x2ba   :  { %2036 = vmatpush1.bf16.msra.mxu0 %v8207_v23  ;;  %2079 = vmatpush1.bf16.msra.mxu1 %v8209_v11 }
 0x2bb   :  { %2037 = vmatprep.subr.bf16.mxu0 %v8213_v24  ;;  %2080 = vmatprep.subr.bf16.mxu1 %v8215_v9 }
 0x2be   :  { %2038 = vmatpush1.bf16.msra.mxu0 %v8219_v25  ;;  %2081 = vmatpush1.bf16.msra.mxu1 %v8221_v26 }
 0x2bf   :  { %2039 = vmatprep.subr.bf16.mxu0 %v8225_v27  ;;  %2082 = vmatprep.subr.bf16.mxu1 %v8227_v29 }
 0x2c2   :  { %2040 = vmatpush1.bf16.msra.mxu0 %v8231_v30  ;;  %2083 = vmatpush1.bf16.msra.mxu1 %v8233_v55  ;;  %v8261_v55 = vld [vmem:[#allocation8 + $0xc4] ss:$16 sps:$4 sm:$0xff]  }
 0x2c3   :  { %2041 = vmatprep.subr.bf16.mxu0 %v8237_v35  ;;  %2084 = vmatprep.subr.bf16.mxu1 %v8239_v36  ;;  %11385 = vst [vmem:[#allocation36_spill] sm:$0xff] %v8261_v55  ;;  %v8263_v35 = vld [vmem:[#allocation8 + $0xcc] ss:$16 sps:$4 sm:$0xff]   ;;  %v8295_v36 = vld [vmem:[#allocation8 + $0x80] ss:$16 sps:$4 sm:$0xff]  }
 0x2c4   :  { %11386 = vst [vmem:[#allocation37_spill] sm:$0xff] %v8263_v35  ;;  %11395 = vst [vmem:[#allocation46_spill] sm:$0xff] %v8295_v36 }
 0x2c6   :  { %2042 = vmatpush1.bf16.msra.mxu0 %v8243_v56  ;;  %2085 = vmatpush1.bf16.msra.mxu1 %v8245_v6  ;;  %v8269_v6 = vld [vmem:[#allocation8 + $0xc0] ss:$16 sps:$4 sm:$0xff]   ;;  %v8271_v56 = vld [vmem:[#allocation8 + $0xc8] ss:$16 sps:$4 sm:$0xff]  }
 0x2c7   :  { %2273 = vmatprep.subr.bf16.mxu0 %v8249_v41  ;;  %2316 = vmatprep.subr.bf16.mxu1 %v8251_v43  ;;  %11387 = vst [vmem:[#allocation38_spill] sm:$0xff] %v8269_v6  ;;  %11388 = vst [vmem:[#allocation39_spill] sm:$0xff] %v8271_v56  ;;  %v8275_v43 = vld [vmem:[#allocation8 + $0xa4] ss:$16 sps:$4 sm:$0xff]   ;;  %v8277_v41 = vld [vmem:[#allocation8 + $0xac] ss:$16 sps:$4 sm:$0xff]  }
 0x2c8   :  { %11389 = vst [vmem:[#allocation40_spill] sm:$0xff] %v8275_v43  ;;  %11390 = vst [vmem:[#allocation41_spill] sm:$0xff] %v8277_v41 }
 0x2c9   :  { %2060 = vmatmul.mubr.bf16.vlgmr.msra.gmra.mxu0 %v11301_v44  ;;  %2103 = vmatmul.mubr.bf16.vlgmr.msra.gmra.mxu1 %v11301_v44 }
 0x2ca   :  { %2274 = vmatpush1.bf16.msra.mxu0 %v8255_v58  ;;  %2317 = vmatpush1.bf16.msra.mxu1 %v8257_v28  ;;  %v8283_v28 = vld [vmem:[#allocation8 + $0xa0] ss:$16 sps:$4 sm:$0xff]   ;;  %v8285_v58 = vld [vmem:[#allocation8 + $0xa8] ss:$16 sps:$4 sm:$0xff]  }
 0x2cb   :  { %2275 = vmatprep.subr.bf16.mxu0 %v8261_v55  ;;  %2318 = vmatprep.subr.bf16.mxu1 %v8263_v35  ;;  %11391 = vst [vmem:[#allocation42_spill] sm:$0xff] %v8283_v28  ;;  %11392 = vst [vmem:[#allocation43_spill] sm:$0xff] %v8285_v58  ;;  %v8289_v35 = vld [vmem:[#allocation8 + $0x84] ss:$16 sps:$4 sm:$0xff]   ;;  %v8291_v55 = vld [vmem:[#allocation8 + $0x8c] ss:$16 sps:$4 sm:$0xff]  }
 0x2cc   :  { %2305 = vmatprep.mubr.bf16.mxu0 %v11301_v44  ;;  %2348 = vmatprep.mubr.bf16.mxu1 %v11301_v44  ;;  %11393 = vst [vmem:[#allocation44_spill] sm:$0xff] %v8289_v35  ;;  %11394 = vst [vmem:[#allocation45_spill] sm:$0xff] %v8291_v55 }
 0x2ce   :  { %2276 = vmatpush1.bf16.msra.mxu0 %v8269_v6  ;;  %2319 = vmatpush1.bf16.msra.mxu1 %v8271_v56  ;;  %v8297_v6 = vld [vmem:[#allocation8 + $0x88] ss:$16 sps:$4 sm:$0xff]   ;;  %v8301_v56 = vld [vmem:[#allocation8 + $0x64] ss:$16 sps:$4 sm:$0xff]  }
 0x2cf   :  { %2277 = vmatprep.subr.bf16.mxu0 %v8275_v43  ;;  %2320 = vmatprep.subr.bf16.mxu1 %v8277_v41  ;;  %11396 = vst [vmem:[#allocation47_spill] sm:$0xff] %v8297_v6  ;;  %11397 = vst [vmem:[#allocation48_spill] sm:$0xff] %v8301_v56  ;;  %v8303_v43 = vld [vmem:[#allocation8 + $0x6c] ss:$16 sps:$4 sm:$0xff]   ;;  %v8307_v41 = vld [vmem:[#allocation8 + $0x60] ss:$16 sps:$4 sm:$0xff]  }
 0x2d0   :  { %11398 = vst [vmem:[#allocation49_spill] sm:$0xff] %v8303_v43  ;;  %11399 = vst [vmem:[#allocation50_spill] sm:$0xff] %v8307_v41 }
 0x2d2   :  { %2278 = vmatpush1.bf16.msra.mxu0 %v8283_v28  ;;  %2321 = vmatpush1.bf16.msra.mxu1 %v8285_v58  ;;  %v8309_v28 = vld [vmem:[#allocation8 + $0x68] ss:$16 sps:$4 sm:$0xff]   ;;  %v8313_v58 = vld [vmem:[#allocation8 + $0x44] ss:$16 sps:$4 sm:$0xff]  }
 0x2d3   :  { %2279 = vmatprep.subr.bf16.mxu0 %v8289_v35  ;;  %2322 = vmatprep.subr.bf16.mxu1 %v8291_v55  ;;  %11400 = vst [vmem:[#allocation51_spill] sm:$0xff] %v8309_v28  ;;  %11401 = vst [vmem:[#allocation52_spill] sm:$0xff] %v8313_v58  ;;  %v8315_v35 = vld [vmem:[#allocation8 + $0x4c] ss:$16 sps:$4 sm:$0xff]   ;;  %v8319_v55 = vld [vmem:[#allocation8 + $0x40] ss:$16 sps:$4 sm:$0xff]  }
 0x2d4   :  { %11402 = vst [vmem:[#allocation53_spill] sm:$0xff] %v8315_v35  ;;  %11403 = vst [vmem:[#allocation54_spill] sm:$0xff] %v8319_v55 }
 0x2d6   :  { %2280 = vmatpush1.bf16.msra.mxu0 %v8295_v36  ;;  %2323 = vmatpush1.bf16.msra.mxu1 %v8297_v6  ;;  %v8321_v36 = vld [vmem:[#allocation8 + $0x48] ss:$16 sps:$4 sm:$0xff]   ;;  %v8325_v6 = vld [vmem:[#allocation8 + $0x24] ss:$16 sps:$4 sm:$0xff]  }
 0x2d7   :  { %2281 = vmatprep.subr.bf16.mxu0 %v8301_v56  ;;  %2324 = vmatprep.subr.bf16.mxu1 %v8303_v43  ;;  %11404 = vst [vmem:[#allocation55_spill] sm:$0xff] %v8321_v36  ;;  %11405 = vst [vmem:[#allocation56_spill] sm:$0xff] %v8325_v6  ;;  %v8327_v56 = vld [vmem:[#allocation8 + $0x2c] ss:$16 sps:$4 sm:$0xff]   ;;  %v8331_v43 = vld [vmem:[#allocation8 + $0x20] ss:$16 sps:$4 sm:$0xff]  }
 0x2d8   :  { %11406 = vst [vmem:[#allocation57_spill] sm:$0xff] %v8327_v56  ;;  %11407 = vst [vmem:[#allocation58_spill] sm:$0xff] %v8331_v43 }
 0x2da   :  { %2282 = vmatpush1.bf16.msra.mxu0 %v8307_v41  ;;  %2325 = vmatpush1.bf16.msra.mxu1 %v8309_v28  ;;  %v8333_v41 = vld [vmem:[#allocation8 + $0x28] ss:$16 sps:$4 sm:$0xff]   ;;  %v8337_v28 = vld [vmem:[#allocation8 + $0x4] ss:$16 sps:$4 sm:$0xff]  }
 0x2db   :  { %2283 = vmatprep.subr.bf16.mxu0 %v8313_v58  ;;  %2326 = vmatprep.subr.bf16.mxu1 %v8315_v35  ;;  %11408 = vst [vmem:[#allocation59_spill] sm:$0xff] %v8333_v41  ;;  %11409 = vst [vmem:[#allocation60_spill] sm:$0xff] %v8337_v28  ;;  %v8339_v58 = vld [vmem:[#allocation8 + $0xc] ss:$16 sps:$4 sm:$0xff]   ;;  %v8343_v35 = vld [vmem:[#allocation8] ss:$16 sps:$4 sm:$0xff]  }
 0x2dc   :  { %11410 = vst [vmem:[#allocation61_spill] sm:$0xff] %v8339_v58  ;;  %11411 = vst [vmem:[#allocation62_spill] sm:$0xff] %v8343_v35 }
 0x2de   :  { %2284 = vmatpush1.bf16.msra.mxu0 %v8319_v55  ;;  %2327 = vmatpush1.bf16.msra.mxu1 %v8321_v36  ;;  %v8345_v55 = vld [vmem:[#allocation8 + $0x8] ss:$16 sps:$4 sm:$0xff]  }
 0x2df   :  { %2285 = vmatprep.subr.bf16.mxu0 %v8325_v6  ;;  %2328 = vmatprep.subr.bf16.mxu1 %v8327_v56  ;;  %11412 = vst [vmem:[#allocation63_spill] sm:$0xff] %v8345_v55  ;;  %v11413_v56 = vld [vmem:[#allocation66_spill] sm:$0xff] }
 0x2e2   :  { %2286 = vmatpush1.bf16.msra.mxu0 %v8331_v43  ;;  %2329 = vmatpush1.bf16.msra.mxu1 %v8333_v41  ;;  %v11414_v41 = vld [vmem:[#allocation67_spill] sm:$0xff]  ;;  %v11415_v43 = vld [vmem:[#allocation68_spill] sm:$0xff] }
 0x2e3   :  { %2287 = vmatprep.subr.bf16.mxu0 %v8337_v28  ;;  %2330 = vmatprep.subr.bf16.mxu1 %v8339_v58  ;;  %v8441_v58 = vld [vmem:[#allocation7 + $0xec] ss:$16 sps:$4 sm:$0xff]  }
 0x2e4   :  { %11440 = vst [vmem:[#allocation88_spill] sm:$0xff] %v8441_v58 }
 0x2e6   :  { %2288 = vmatpush1.bf16.msra.mxu0 %v8343_v35  ;;  %2331 = vmatpush1.bf16.msra.mxu1 %v8345_v55 }
 0x2e7   :  { %2426 = vmatprep.subr.bf16.mxu0 %v11413_v56  ;;  %2469 = vmatprep.subr.bf16.mxu1 %v7968_v0  ;;  %v8364_v0 = vld [vmem:[#allocation3 + $0xac] ss:$16 sps:$4 sm:$0xff]   ;;  %v8385_v56 = vld [vmem:[#allocation3 + $0x64] ss:$16 sps:$4 sm:$0xff]  }
 0x2e8   :  { %11416 = vst [vmem:[#allocation64_spill] sm:$0xff] %v8364_v0  ;;  %11423 = vst [vmem:[#allocation71_spill] sm:$0xff] %v8385_v56 }
 0x2e9   :  { %2306 = vmatmul.mubr.bf16.vlgmr.msra.gmra.mxu0 %v8115_v20  ;;  %2349 = vmatmul.mubr.bf16.vlgmr.msra.gmra.mxu1 %v8115_v20  ;;  %v8367_v20 = vld [vmem:[#allocation3 + $0xa0] ss:$16 sps:$4 sm:$0xff]  }
 0x2ea   :  { %2427 = vmatpush1.bf16.msra.mxu0 %v11414_v41  ;;  %2470 = vmatpush1.bf16.msra.mxu1 %v11415_v43  ;;  %11417 = vst [vmem:[#allocation65_spill] sm:$0xff] %v8367_v20  ;;  %v8388_v41 = vld [vmem:[#allocation3 + $0x6c] ss:$16 sps:$4 sm:$0xff]   ;;  %v8391_v43 = vld [vmem:[#allocation3 + $0x60] ss:$16 sps:$4 sm:$0xff]  }
 0x2eb   :  { %2428 = vmatprep.subr.bf16.mxu0 %v7979_v38  ;;  %2471 = vmatprep.subr.bf16.mxu1 %v7982_v45  ;;  %v8370_v38 = vld [vmem:[#allocation3 + $0xa8] ss:$16 sps:$4 sm:$0xff]   ;;  %v8373_v45 = vld [vmem:[#allocation3 + $0x84] ss:$16 sps:$4 sm:$0xff]   ;;  %11424 = vst [vmem:[#allocation72_spill] sm:$0xff] %v8388_v41  ;;  %11425 = vst [vmem:[#allocation73_spill] sm:$0xff] %v8391_v43 }
 0x2ec   :  { %2458 = vmatprep.mubr.bf16.mxu0 %v11301_v44  ;;  %2501 = vmatprep.mubr.bf16.mxu1 %v11301_v44  ;;  %11418 = vst [vmem:[#allocation66_spill] sm:$0xff] %v8370_v38  ;;  %11419 = vst [vmem:[#allocation67_spill] sm:$0xff] %v8373_v45 }
 0x2ee   :  { %2429 = vmatpush1.bf16.msra.mxu0 %v7987_v60  ;;  %2472 = vmatpush1.bf16.msra.mxu1 %v7990_v49  ;;  %v8376_v60 = vld [vmem:[#allocation3 + $0x8c] ss:$16 sps:$4 sm:$0xff]   ;;  %v8382_v49 = vld [vmem:[#allocation3 + $0x88] ss:$16 sps:$4 sm:$0xff]  }
 0x2ef   :  { %2430 = vmatprep.subr.bf16.mxu0 %v7993_v1  ;;  %2473 = vmatprep.subr.bf16.mxu1 %v8364_v0  ;;  %11420 = vst [vmem:[#allocation68_spill] sm:$0xff] %v8376_v60  ;;  %v8379_v1 = vld [vmem:[#allocation3 + $0x80] ss:$16 sps:$4 sm:$0xff]   ;;  %11422 = vst [vmem:[#allocation70_spill] sm:$0xff] %v8382_v49 }
 0x2f0   :  { %11421 = vst [vmem:[#allocation69_spill] sm:$0xff] %v8379_v1 }
 0x2f2   :  { %2431 = vmatpush1.bf16.msra.mxu0 %v8367_v20  ;;  %2474 = vmatpush1.bf16.msra.mxu1 %v8370_v38  ;;  %v232_v38 = vpop.permute.xlu1 %231 }
 0x2f3   :  { %2432 = vmatprep.subr.bf16.mxu0 %v8373_v45  ;;  %2475 = vmatprep.subr.bf16.mxu1 %v8376_v60  ;;  %v8394_v60 = vld [vmem:[#allocation3 + $0x68] ss:$16 sps:$4 sm:$0xff]   ;;  %v238_v0 = vmul.f32 %v232_v38, %v7696_v50 }
 0x2f4   :  { %11426 = vst [vmem:[#allocation74_spill] sm:$0xff] %v8394_v60 }
 0x2f5   :  { %v246_v36 = vadd.f32 %v238_v0, %v7711_v57  ;;  %v241_v0 = vmul.f32 %v232_v38, %v7741_v39 }
 0x2f6   :  { %2433 = vmatpush1.bf16.msra.mxu0 %v8379_v1  ;;  %2476 = vmatpush1.bf16.msra.mxu1 %v8382_v49  ;;  %v8397_v1 = vld [vmem:[#allocation3 + $0x44] ss:$16 sps:$4 sm:$0xff]   ;;  %v8400_v49 = vld [vmem:[#allocation3 + $0x4c] ss:$16 sps:$4 sm:$0xff]  }
 0x2f7   :  { %2434 = vmatprep.subr.bf16.mxu0 %v8385_v56  ;;  %2477 = vmatprep.subr.bf16.mxu1 %v8388_v41  ;;  %11427 = vst [vmem:[#allocation75_spill] sm:$0xff] %v8397_v1  ;;  %11428 = vst [vmem:[#allocation76_spill] sm:$0xff] %v8400_v49  ;;  %v8403_v56 = vld [vmem:[#allocation3 + $0x40] ss:$16 sps:$4 sm:$0xff]   ;;  %v8406_v41 = vld [vmem:[#allocation3 + $0x48] ss:$16 sps:$4 sm:$0xff]  }
 0x2f8   :  { %11429 = vst [vmem:[#allocation77_spill] sm:$0xff] %v8403_v56  ;;  %11430 = vst [vmem:[#allocation78_spill] sm:$0xff] %v8406_v41 }
 0x2fa   :  { %2435 = vmatpush1.bf16.msra.mxu0 %v8391_v43  ;;  %2478 = vmatpush1.bf16.msra.mxu1 %v8394_v60  ;;  %v8409_v43 = vld [vmem:[#allocation3 + $0x24] ss:$16 sps:$4 sm:$0xff]   ;;  %v8412_v60 = vld [vmem:[#allocation3 + $0x2c] ss:$16 sps:$4 sm:$0xff]  }
 0x2fb   :  { %2436 = vmatprep.subr.bf16.mxu0 %v8397_v1  ;;  %2479 = vmatprep.subr.bf16.mxu1 %v8400_v49  ;;  %11431 = vst [vmem:[#allocation79_spill] sm:$0xff] %v8409_v43  ;;  %11432 = vst [vmem:[#allocation80_spill] sm:$0xff] %v8412_v60  ;;  %v227_v1 = vpop.permute.xlu0 %226  ;;  %v8416_v49 = vld [vmem:[#allocation3 + $0x20] ss:$16 sps:$4 sm:$0xff]  }
 0x2fc   :  { %v234_v45 = vmul.f32 %v227_v1, %v7696_v50  ;;  %11433 = vst [vmem:[#allocation81_spill] sm:$0xff] %v8416_v49  ;;  %v236_v55 = vmul.f32 %v227_v1, %v7717_v59 }
 0x2fe   :  { %2437 = vmatpush1.bf16.msra.mxu0 %v8403_v56  ;;  %2480 = vmatpush1.bf16.msra.mxu1 %v8406_v41  ;;  %v8419_v56 = vld [vmem:[#allocation3 + $0x28] ss:$16 sps:$4 sm:$0xff]   ;;  %v8422_v41 = vld [vmem:[#allocation3 + $0x4] ss:$16 sps:$4 sm:$0xff]   ;;  %v242_v20 = vadd.f32 %v234_v45, %v7711_v57  ;;  %v244_v30 = vadd.f32 %v236_v55, %v7729_v3 }
 0x2ff   :  { %2438 = vmatprep.subr.bf16.mxu0 %v8409_v43  ;;  %2481 = vmatprep.subr.bf16.mxu1 %v8412_v60  ;;  %11434 = vst [vmem:[#allocation82_spill] sm:$0xff] %v8419_v56  ;;  %11435 = vst [vmem:[#allocation83_spill] sm:$0xff] %v8422_v41  ;;  %v8425_v43 = vld [vmem:[#allocation3 + $0xc] ss:$16 sps:$4 sm:$0xff]   ;;  %v235_v60 = vmul.f32 %v227_v1, %v7707_v54 }
 0x300   :  { %11436 = vst [vmem:[#allocation84_spill] sm:$0xff] %v8425_v43 }
 0x301   :  { %v243_v28 = vadd.f32 %v235_v60, %v7721_v61 }
 0x302   :  { %2439 = vmatpush1.bf16.msra.mxu0 %v8416_v49  ;;  %2482 = vmatpush1.bf16.msra.mxu1 %v8419_v56  ;;  %v8431_v49 = vld [vmem:[#allocation3] ss:$16 sps:$4 sm:$0xff]   ;;  %v8434_v56 = vld [vmem:[#allocation3 + $0x8] ss:$16 sps:$4 sm:$0xff]  }
 0x303   :  { %2440 = vmatprep.subr.bf16.mxu0 %v8422_v41  ;;  %2483 = vmatprep.subr.bf16.mxu1 %v8425_v43  ;;  %11437 = vst [vmem:[#allocation85_spill] sm:$0xff] %v8431_v49  ;;  %11438 = vst [vmem:[#allocation86_spill] sm:$0xff] %v8434_v56  ;;  %v8438_v43 = vld [vmem:[#allocation7 + $0xe4] ss:$16 sps:$4 sm:$0xff]  }
 0x304   :  { %11439 = vst [vmem:[#allocation87_spill] sm:$0xff] %v8438_v43 }
 0x306   :  { %2441 = vmatpush1.bf16.msra.mxu0 %v8431_v49  ;;  %2484 = vmatpush1.bf16.msra.mxu1 %v8434_v56  ;;  %v239_v49 = vmul.f32 %v232_v38, %v7707_v54 }
 0x307   :  { %v1490_v41 = vpop.f32.mrf.mxu0  ;;  %v1533_v35 = vpop.f32.mrf.mxu1  ;;  %2557 = vmatprep.subr.bf16.mxu0 %v8438_v43  ;;  %2600 = vmatprep.subr.bf16.mxu1 %v8441_v58  ;;  %v240_v43 = vmul.f32 %v232_v38, %v7717_v59 }
 0x308   :  { %v1542_v45 = vadd.f32 %v1490_v41, %v242_v20  ;;  %v247_v20 = vadd.f32 %v239_v49, %v7721_v61  ;;  %v1544_v41 = vadd.f32 %v1533_v35, %v244_v30  ;;  %v249_v30 = vadd.f32 %v241_v0, %v7750_v47 }
 0x309   :  { %v1492_v50 = vpop.f32.mrf.mxu0  ;;  %v1535_v29 = vpop.f32.mrf.mxu1  ;;  %v248_v55 = vadd.f32 %v240_v43, %v7729_v3 }
 0x30a   :  { %v1550_v6 = vmul.f32 0.5, %v1542_v45  ;;  %v1543_v56 = vadd.f32 %v1492_v50, %v243_v28  ;;  %v237_v50 = vmul.f32 %v227_v1, %v7741_v39 }
 0x30b   :  { %v1494_v27 = vpop.f32.mrf.mxu0  ;;  %v1537_v45 = vpop.f32.mrf.mxu1 }
 0x30c   :  { %6407 = vtanh.f32 %v1550_v6  ;;  %v1558_v26 = vmul.f32 0.5, %v1543_v56  ;;  %v1546_v25 = vadd.f32 %v1494_v27, %v246_v36  ;;  %v1548_v6 = vadd.f32 %v1537_v45, %v248_v55 }
 0x30d   :  { %v1496_v60 = vpop.f32.mrf.mxu0  ;;  %v245_v27 = vadd.f32 %v237_v50, %v7750_v47  ;;  %v1539_v36 = vpop.f32.mrf.mxu1 }
 0x30e   :  { %6409 = vtanh.f32 %v1558_v26  ;;  %v1551_v58 = vmul.f32 0.5, %v1546_v25  ;;  %v1547_v54 = vadd.f32 %v1496_v60, %v247_v20  ;;  %v1549_v25 = vadd.f32 %v1539_v36, %v249_v30 }
 0x30f   :  { %v1545_v26 = vadd.f32 %v1535_v29, %v245_v27 }
 0x310   :  { %6411 = vtanh.f32 %v1551_v58  ;;  %v1559_v28 = vmul.f32 0.5, %v1547_v54  ;;  %v1569_v56 = vmul.f32 0.5, %v1549_v25 }
 0x311   :  { %6413 = vtanh.f32 %v1544_v41  ;;  %v1568_v1 = vmul.f32 0.5, %v1545_v26 }
 0x312   :  { %6415 = vtanh.f32 %v1559_v28 }
 0x313   :  { %6417 = vtanh.f32 %v1548_v6 }
 0x314   :  { %6419 = vtanh.f32 %v1568_v1 }
 0x315   :  { %6421 = vtanh.f32 %v1569_v56 }
 0x319   :  { %v6408_v35 = vpop.eup %6407 }
 0x31a   :  { %v1554_v49 = vmul.f32 0.5, %v6408_v35 }
 0x31b   :  { %v6410_v58 = vpop.eup %6409 }
 0x31c   :  { %v1556_v43 = vadd.f32 0.5, %v1554_v49  ;;  %v1562_v54 = vmul.f32 0.5, %v6410_v58 }
 0x31d   :  { %v6412_v20 = vpop.eup %6411 }
 0x31e   :  { %v6414_v41 = vpop.eup %6413  ;;  %v1564_v38 = vadd.f32 0.5, %v1562_v54  ;;  %v1555_v60 = vmul.f32 0.5, %v6412_v20 }
 0x31f   :  { %v6416_v45 = vpop.eup %6415  ;;  %v1578_v55 = vmul.f32 %v6414_v41, %v1556_v43 }
 0x320   :  { %v1576_v50 = vmul.f32 %v1564_v38, %v8038_v17  ;;  %v1557_v29 = vadd.f32 0.5, %v1555_v60  ;;  %v1563_v28 = vmul.f32 0.5, %v6416_v45  ;;  %v6418_v27 = vpop.eup %6417  ;;  %v8470_v38 = vld [vmem:[#allocation7 + $0xe8] ss:$16 sps:$4 sm:$0xff]   ;;  %v8473_v60 = vld [vmem:[#allocation7 + $0xc4] ss:$16 sps:$4 sm:$0xff]  }
 0x321   :  { %v6420_v25 = vpop.eup %6419  ;;  %11444 = vst [vmem:[#allocation92_spill] sm:$0xff] %v8470_v38  ;;  %11445 = vst [vmem:[#allocation93_spill] sm:$0xff] %v8473_v60  ;;  %v8476_v45 = vld [vmem:[#allocation7 + $0xcc] ss:$16 sps:$4 sm:$0xff]  }
 0x322   :  { %v8456_v0 = vadd.f32 %v1578_v55, %v1576_v50  ;;  %v1565_v6 = vadd.f32 0.5, %v1563_v28  ;;  %v1579_v30 = vmul.f32 %v6418_v27, %v1557_v29  ;;  %v6422_v35 = vpop.eup %6421  ;;  %v1572_v49 = vmul.f32 0.5, %v6420_v25  ;;  %11446 = vst [vmem:[#allocation94_spill] sm:$0xff] %v8476_v45  ;;  %v8481_v50 = vld [vmem:[#allocation7 + $0xc0] ss:$16 sps:$4 sm:$0xff]  }
 0x323   :  { %v1573_v17 = vmul.f32 0.5, %v6422_v35  ;;  %11447 = vst [vmem:[#allocation95_spill] sm:$0xff] %v8481_v50  ;;  %v8484_v55 = vld [vmem:[#allocation7 + $0xc8] ss:$16 sps:$4 sm:$0xff]   ;;  %v8487_v29 = vld [vmem:[#allocation7 + $0xa4] ss:$16 sps:$4 sm:$0xff]  }
 0x324   :  { %11441 = vst [vmem:[#allocation89_spill] sm:$0xff] %v8456_v0  ;;  %v1577_v36 = vmul.f32 %v1565_v6, %v8042_v21  ;;  %6423 = vtanh.f32 %v8456_v0  ;;  %v1574_v58 = vadd.f32 0.5, %v1572_v49  ;;  %v8467_v21 = vld [vmem:[#allocation7 + $0xe0] ss:$16 sps:$4 sm:$0xff]   ;;  %11448 = vst [vmem:[#allocation96_spill] sm:$0xff] %v8484_v55 }
 0x325   :  { %v1575_v56 = vadd.f32 0.5, %v1573_v17  ;;  %11443 = vst [vmem:[#allocation91_spill] sm:$0xff] %v8467_v21  ;;  %11449 = vst [vmem:[#allocation97_spill] sm:$0xff] %v8487_v29  ;;  %v8490_v28 = vld [vmem:[#allocation7 + $0xac] ss:$16 sps:$4 sm:$0xff]  }
 0x326   :  { %v8460_v26 = vadd.f32 %v1579_v30, %v1577_v36  ;;  %11450 = vst [vmem:[#allocation98_spill] sm:$0xff] %v8490_v28  ;;  %v8493_v6 = vld [vmem:[#allocation7 + $0xa0] ss:$16 sps:$4 sm:$0xff]   ;;  %v8496_v27 = vld [vmem:[#allocation7 + $0xa8] ss:$16 sps:$4 sm:$0xff]  }
 0x327   :  { %11451 = vst [vmem:[#allocation99_spill] sm:$0xff] %v8493_v6  ;;  %11452 = vst [vmem:[#allocation100_spill] sm:$0xff] %v8496_v27  ;;  %v8499_v36 = vld [vmem:[#allocation7 + $0x84] ss:$16 sps:$4 sm:$0xff]   ;;  %v8502_v30 = vld [vmem:[#allocation7 + $0x8c] ss:$16 sps:$4 sm:$0xff]  }
 0x328   :  { %11442 = vst [vmem:[#allocation90_spill] sm:$0xff] %v8460_v26  ;;  %6425 = vtanh.f32 %v8460_v26  ;;  %11453 = vst [vmem:[#allocation101_spill] sm:$0xff] %v8499_v36  ;;  %v8505_v25 = vld [vmem:[#allocation7 + $0x80] ss:$16 sps:$4 sm:$0xff]   ;;  %v8508_v35 = vld [vmem:[#allocation7 + $0x88] ss:$16 sps:$4 sm:$0xff]  }
 0x329   :  { %11454 = vst [vmem:[#allocation102_spill] sm:$0xff] %v8502_v30  ;;  %11455 = vst [vmem:[#allocation103_spill] sm:$0xff] %v8505_v25  ;;  %v8511_v49 = vld [vmem:[#allocation7 + $0x64] ss:$16 sps:$4 sm:$0xff]   ;;  %v8514_v17 = vld [vmem:[#allocation7 + $0x6c] ss:$16 sps:$4 sm:$0xff]  }
 0x32a   :  { %11456 = vst [vmem:[#allocation104_spill] sm:$0xff] %v8508_v35  ;;  %11457 = vst [vmem:[#allocation105_spill] sm:$0xff] %v8511_v49 }
 0x32b   :  { %11458 = vst [vmem:[#allocation106_spill] sm:$0xff] %v8514_v17 }
 0x331   :  { %v6424_v1 = vpop.eup %6423 }
 0x332   :  { %v1584_v54 = vmul.f32 %v6424_v1, %v1574_v58  ;;  %v8517_v1 = vld [vmem:[#allocation7 + $0x60] ss:$16 sps:$4 sm:$0xff]   ;;  %v8520_v58 = vld [vmem:[#allocation7 + $0x68] ss:$16 sps:$4 sm:$0xff]  }
 0x333   :  { %11459 = vst [vmem:[#allocation107_spill] sm:$0xff] %v8517_v1  ;;  %11460 = vst [vmem:[#allocation108_spill] sm:$0xff] %v8520_v58 }
 0x335   :  { %v6426_v43 = vpop.eup %6425 }
 0x336   :  { %v1585_v20 = vmul.f32 %v6426_v43, %v1575_v56  ;;  %v8523_v56 = vld [vmem:[#allocation7 + $0x44] ss:$16 sps:$4 sm:$0xff]   ;;  %v8526_v43 = vld [vmem:[#allocation7 + $0x4c] ss:$16 sps:$4 sm:$0xff]  }
 0x337   :  { %11461 = vst [vmem:[#allocation109_spill] sm:$0xff] %v8523_v56  ;;  %11462 = vst [vmem:[#allocation110_spill] sm:$0xff] %v8526_v43 }
 0x338   :  { %v8463_v41 = vpack.c.bf16 %v1585_v20, %v1584_v54  ;;  %v8529_v54 = vld [vmem:[#allocation7 + $0x40] ss:$16 sps:$4 sm:$0xff]   ;;  %v8532_v20 = vld [vmem:[#allocation7 + $0x48] ss:$16 sps:$4 sm:$0xff]  }
 0x339   :  { %11463 = vst [vmem:[#allocation111_spill] sm:$0xff] %v8529_v54  ;;  %11464 = vst [vmem:[#allocation112_spill] sm:$0xff] %v8532_v20 }
 0x33a   :  { %2459 = vmatmul.mubr.bf16.vlgmr.msra.gmra.mxu0 %v8463_v41  ;;  %2502 = vmatmul.mubr.bf16.vlgmr.msra.gmra.mxu1 %v8463_v41 }
 0x33b   :  { %2558 = vmatpush1.bf16.msra.mxu0 %v8467_v21  ;;  %2601 = vmatpush1.bf16.msra.mxu1 %v8470_v38 }
 0x33c   :  { %2559 = vmatprep.subr.bf16.mxu0 %v8473_v60  ;;  %2602 = vmatprep.subr.bf16.mxu1 %v8476_v45 }
 0x33d   :  { %2589 = vmatprep.mubr.bf16.mxu0 %v11301_v44  ;;  %2632 = vmatprep.mubr.bf16.mxu1 %v11301_v44 }
 0x33f   :  { %2560 = vmatpush1.bf16.msra.mxu0 %v8481_v50  ;;  %2603 = vmatpush1.bf16.msra.mxu1 %v8484_v55 }
 0x340   :  { %2561 = vmatprep.subr.bf16.mxu0 %v8487_v29  ;;  %2604 = vmatprep.subr.bf16.mxu1 %v8490_v28 }
 0x343   :  { %2562 = vmatpush1.bf16.msra.mxu0 %v8493_v6  ;;  %2605 = vmatpush1.bf16.msra.mxu1 %v8496_v27 }
 0x344   :  { %2563 = vmatprep.subr.bf16.mxu0 %v8499_v36  ;;  %2606 = vmatprep.subr.bf16.mxu1 %v8502_v30 }
 0x347   :  { %2564 = vmatpush1.bf16.msra.mxu0 %v8505_v25  ;;  %2607 = vmatpush1.bf16.msra.mxu1 %v8508_v35 }
 0x348   :  { %2565 = vmatprep.subr.bf16.mxu0 %v8511_v49  ;;  %2608 = vmatprep.subr.bf16.mxu1 %v8514_v17 }
 0x349   :  { %v1664_v17 = vpop.f32.mrf.mxu1 }
 0x34b   :  { %2566 = vmatpush1.bf16.msra.mxu0 %v8517_v1  ;;  %2609 = vmatpush1.bf16.msra.mxu1 %v8520_v58  ;;  %v8535_v1 = vld [vmem:[#allocation7 + $0x24] ss:$16 sps:$4 sm:$0xff]   ;;  %v8538_v58 = vld [vmem:[#allocation7 + $0x2c] ss:$16 sps:$4 sm:$0xff]  }
 0x34c   :  { %2567 = vmatprep.subr.bf16.mxu0 %v8523_v56  ;;  %2610 = vmatprep.subr.bf16.mxu1 %v8526_v43  ;;  %11465 = vst [vmem:[#allocation113_spill] sm:$0xff] %v8535_v1  ;;  %11466 = vst [vmem:[#allocation114_spill] sm:$0xff] %v8538_v58  ;;  %v8541_v56 = vld [vmem:[#allocation7 + $0x20] ss:$16 sps:$4 sm:$0xff]   ;;  %v8544_v43 = vld [vmem:[#allocation7 + $0x28] ss:$16 sps:$4 sm:$0xff]  }
 0x34d   :  { %11467 = vst [vmem:[#allocation115_spill] sm:$0xff] %v8541_v56  ;;  %11468 = vst [vmem:[#allocation116_spill] sm:$0xff] %v8544_v43 }
 0x34f   :  { %2568 = vmatpush1.bf16.msra.mxu0 %v8529_v54  ;;  %2611 = vmatpush1.bf16.msra.mxu1 %v8532_v20  ;;  %v8547_v54 = vld [vmem:[#allocation7 + $0x4] ss:$16 sps:$4 sm:$0xff]   ;;  %v8550_v20 = vld [vmem:[#allocation7 + $0xc] ss:$16 sps:$4 sm:$0xff]  }
 0x350   :  { %2569 = vmatprep.subr.bf16.mxu0 %v8535_v1  ;;  %2612 = vmatprep.subr.bf16.mxu1 %v8538_v58  ;;  %11469 = vst [vmem:[#allocation117_spill] sm:$0xff] %v8547_v54  ;;  %11470 = vst [vmem:[#allocation118_spill] sm:$0xff] %v8550_v20  ;;  %v8553_v1 = vld [vmem:[#allocation7] ss:$16 sps:$4 sm:$0xff]   ;;  %v8556_v58 = vld [vmem:[#allocation7 + $0x8] ss:$16 sps:$4 sm:$0xff]  }
 0x351   :  { %11471 = vst [vmem:[#allocation119_spill] sm:$0xff] %v8553_v1  ;;  %11472 = vst [vmem:[#allocation120_spill] sm:$0xff] %v8556_v58 }
 0x353   :  { %2570 = vmatpush1.bf16.msra.mxu0 %v8541_v56  ;;  %2613 = vmatpush1.bf16.msra.mxu1 %v8544_v43  ;;  %v8559_v56 = vld [vmem:[#allocation5 + $0xe4] ss:$16 sps:$4 sm:$0xff]   ;;  %v8562_v43 = vld [vmem:[#allocation5 + $0xec] ss:$16 sps:$4 sm:$0xff]  }
 0x354   :  { %2571 = vmatprep.subr.bf16.mxu0 %v8547_v54  ;;  %2614 = vmatprep.subr.bf16.mxu1 %v8550_v20  ;;  %11473 = vst [vmem:[#allocation121_spill] sm:$0xff] %v8559_v56  ;;  %11474 = vst [vmem:[#allocation122_spill] sm:$0xff] %v8562_v43  ;;  %v1621_v54 = vpop.f32.mrf.mxu0  ;;  %v1666_v20 = vpop.f32.mrf.mxu1 }
 0x356   :  { %v1623_v49 = vpop.f32.mrf.mxu0  ;;  %v1668_v25 = vpop.f32.mrf.mxu1 }
 0x357   :  { %2572 = vmatpush1.bf16.msra.mxu0 %v8553_v1  ;;  %2615 = vmatpush1.bf16.msra.mxu1 %v8556_v58 }
 0x358   :  { %2643 = vmatprep.subr.bf16.mxu0 %v8559_v56  ;;  %2686 = vmatprep.subr.bf16.mxu1 %v8562_v43  ;;  %v1625_v35 = vpop.f32.mrf.mxu0  ;;  %v1670_v1 = vpop.f32.mrf.mxu1 }
 0x35a   :  { %v1627_v30 = vpop.f32.mrf.mxu0 }
 0x369   :  { %v1707_v36 = vpop.f32.mrf.mxu0  ;;  %v1750_v27 = vpop.f32.mrf.mxu1 }
 0x36a   :  { %v1708_v6 = vadd.f32 %v1707_v36, %v1621_v54  ;;  %v1751_v56 = vadd.f32 %v1750_v27, %v1664_v17 }
 0x36b   :  { %v1709_v58 = vpop.f32.mrf.mxu0  ;;  %v1752_v28 = vpop.f32.mrf.mxu1 }
 0x36c   :  { %v1759_v29 = vadd.f32 %v1708_v6, %v8069_v4  ;;  %v1710_v55 = vadd.f32 %v1709_v58, %v1623_v49  ;;  %v1761_v26 = vadd.f32 %v1751_v56, %v8080_v15 }
 0x36d   :  { %v1711_v50 = vpop.f32.mrf.mxu0  ;;  %v1754_v38 = vpop.f32.mrf.mxu1 }
 0x36e   :  { %v1767_v45 = vmul.f32 0.5, %v1759_v29  ;;  %v1760_v43 = vadd.f32 %v1710_v55, %v8074_v7  ;;  %v1712_v60 = vadd.f32 %v1711_v50, %v1625_v35  ;;  %v1755_v54 = vadd.f32 %v1754_v38, %v1668_v25 }
 0x36f   :  { %v1713_v21 = vpop.f32.mrf.mxu0  ;;  %v1756_v29 = vpop.f32.mrf.mxu1  ;;  %v1753_v55 = vadd.f32 %v1752_v28, %v1666_v20 }
 0x370   :  { %6427 = vtanh.f32 %v1767_v45  ;;  %v1775_v0 = vmul.f32 0.5, %v1760_v43  ;;  %v1714_v47 = vadd.f32 %v1713_v21, %v1627_v30  ;;  %v1763_v36 = vadd.f32 %v1712_v60, %v8069_v4 }
 0x371   :  { %v1765_v50 = vadd.f32 %v1755_v54, %v8080_v15  ;;  %v1757_v45 = vadd.f32 %v1756_v29, %v1670_v1  ;;  %v1762_v35 = vadd.f32 %v1753_v55, %v8101_v12 }
 0x372   :  { %6429 = vtanh.f32 %v1775_v0  ;;  %v1764_v6 = vadd.f32 %v1714_v47, %v8074_v7  ;;  %v1768_v27 = vmul.f32 0.5, %v1763_v36 }
 0x373   :  { %6431 = vtanh.f32 %v1761_v26  ;;  %v1766_v21 = vadd.f32 %v1757_v45, %v8101_v12  ;;  %v1785_v30 = vmul.f32 0.5, %v1762_v35 }
 0x374   :  { %v1776_v49 = vmul.f32 0.5, %v1764_v6  ;;  %6433 = vtanh.f32 %v1768_v27 }
 0x375   :  { %v1786_v26 = vmul.f32 0.5, %v1766_v21 }
 0x376   :  { %6435 = vtanh.f32 %v1776_v49 }
 0x377   :  { %6437 = vtanh.f32 %v1765_v50 }
 0x378   :  { %6439 = vtanh.f32 %v1785_v30 }
 0x379   :  { %6441 = vtanh.f32 %v1786_v26 }
 0x37d   :  { %v6428_v60 = vpop.eup %6427 }
 0x37e   :  { %v1771_v0 = vmul.f32 0.5, %v6428_v60 }
 0x37f   :  { %v6430_v38 = vpop.eup %6429 }
 0x380   :  { %v1773_v47 = vadd.f32 0.5, %v1771_v0  ;;  %v1779_v25 = vmul.f32 0.5, %v6430_v38  ;;  %v6432_v17 = vpop.eup %6431 }
 0x381   :  { %v6434_v58 = vpop.eup %6433 }
 0x382   :  { %v1781_v56 = vadd.f32 0.5, %v1779_v25  ;;  %v1772_v36 = vmul.f32 0.5, %v6434_v58  ;;  %v1795_v1 = vmul.f32 %v6432_v17, %v1773_v47 }
 0x383   :  { %v6436_v43 = vpop.eup %6435 }
 0x384   :  { %v1793_v28 = vmul.f32 %v1781_v56, %v8109_v32  ;;  %v1780_v20 = vmul.f32 0.5, %v6436_v43  ;;  %v1774_v54 = vadd.f32 0.5, %v1772_v36  ;;  %v6438_v49 = vpop.eup %6437  ;;  %v8587_v43 = vld [vmem:[#allocation5 + $0xe0] ss:$16 sps:$4 sm:$0xff]   ;;  %v8590_v36 = vld [vmem:[#allocation5 + $0xe8] ss:$16 sps:$4 sm:$0xff]  }
 0x385   :  { %v6440_v45 = vpop.eup %6439 }
 0x386   :  { %v8574_v6 = vadd.f32 %v1795_v1, %v1793_v28  ;;  %v1782_v27 = vadd.f32 0.5, %v1780_v20  ;;  %v1796_v50 = vmul.f32 %v6438_v49, %v1774_v54  ;;  %v6442_v35 = vpop.eup %6441  ;;  %v1789_v32 = vmul.f32 0.5, %v6440_v45  ;;  %v8593_v28 = vld [vmem:[#allocation5 + $0xc4] ss:$16 sps:$4 sm:$0xff]   ;;  %v8596_v1 = vld [vmem:[#allocation5 + $0xcc] ss:$16 sps:$4 sm:$0xff]  }
 0x387   :  { %v1790_v21 = vmul.f32 0.5, %v6442_v35  ;;  %11475 = vst [vmem:[#allocation123_spill] sm:$0xff] %v8593_v28  ;;  %11476 = vst [vmem:[#allocation124_spill] sm:$0xff] %v8596_v1  ;;  %v8604_v49 = vld [vmem:[#allocation5 + $0xc8] ss:$16 sps:$4 sm:$0xff]  }
 0x388   :  { %v1794_v29 = vmul.f32 %v1782_v27, %v8112_v63  ;;  %6443 = vtanh.f32 %v8574_v6  ;;  %v1791_v0 = vadd.f32 0.5, %v1789_v32  ;;  %v8601_v27 = vld [vmem:[#allocation5 + $0xc0] ss:$16 sps:$4 sm:$0xff]   ;;  %11478 = vst [vmem:[#allocation126_spill] sm:$0xff] %v8604_v49 }
 0x389   :  { %v1792_v38 = vadd.f32 0.5, %v1790_v21  ;;  %v2061_v26 = vpop.f32.mrf.mxu0  ;;  %v2104_v17 = vpop.f32.mrf.mxu1  ;;  %11477 = vst [vmem:[#allocation125_spill] sm:$0xff] %v8601_v27  ;;  %v8616_v45 = vld [vmem:[%s10837_s9] sm:$0xf] }
 0x38a   :  { %v8578_v55 = vadd.f32 %v1796_v50, %v1794_v29  ;;  %v8607_v29 = vld [vmem:[#allocation5 + $0xa4] ss:$16 sps:$4 sm:$0xff]   ;;  %v8610_v50 = vld [vmem:[#allocation5 + $0xac] ss:$16 sps:$4 sm:$0xff]   ;;  %v8620_v21 = vld [vmem:[#allocation5 + $0xa0] ss:$16 sps:$4 sm:$0xff]  }
 0x38b   :  { %v2063_v58 = vpop.f32.mrf.mxu0  ;;  %v8585_v56 = vpop.f32.mrf.mxu1  ;;  %11479 = vst [vmem:[#allocation127_spill] sm:$0xff] %v8607_v29  ;;  %11480 = vst [vmem:[#allocation128_spill] sm:$0xff] %v8610_v50 }
 0x38c   :  { %6445 = vtanh.f32 %v8578_v55  ;;  %11481 = vst [vmem:[#allocation129_spill] sm:$0xff] %v8620_v21 }
 0x38d   :  { %v2065_v20 = vpop.f32.mrf.mxu0  ;;  %v2108_v54 = vpop.f32.mrf.mxu1 }
 0x38f   :  { %v2067_v35 = vpop.f32.mrf.mxu0  ;;  %v8618_v32 = vpop.f32.mrf.mxu1 }
 0x395   :  { %v6444_v60 = vpop.eup %6443 }
 0x396   :  { %v1801_v47 = vmul.f32 %v6444_v60, %v1791_v0  ;;  %v8623_v60 = vld [vmem:[#allocation5 + $0xa8] ss:$16 sps:$4 sm:$0xff]   ;;  %v8628_v0 = vrot.slane %v8616_v45, %v7685_v46 }
 0x397   :  { %11482 = vst [vmem:[#allocation130_spill] sm:$0xff] %v8623_v60  ;;  %v8643_v46 = vld [vmem:[#allocation5 + $0x88] ss:$16 sps:$4 sm:$0xff]  }
 0x398   :  { %11486 = vst [vmem:[#allocation134_spill] sm:$0xff] %v8643_v46 }
 0x399   :  { %v6446_v30 = vpop.eup %6445 }
 0x39a   :  { %v1802_v25 = vmul.f32 %v6446_v30, %v1792_v38  ;;  %v8630_v38 = vld [vmem:[#allocation5 + $0x84] ss:$16 sps:$4 sm:$0xff]   ;;  %v8633_v30 = vld [vmem:[#allocation5 + $0x8c] ss:$16 sps:$4 sm:$0xff]  }
 0x39b   :  { %11483 = vst [vmem:[#allocation131_spill] sm:$0xff] %v8630_v38  ;;  %11484 = vst [vmem:[#allocation132_spill] sm:$0xff] %v8633_v30 }
 0x39c   :  { %v8581_v63 = vpack.c.bf16 %v1802_v25, %v1801_v47 }
 0x39e   :  { %2590 = vmatmul.mubr.bf16.vlgmr.msra.gmra.mxu0 %v8581_v63  ;;  %2633 = vmatmul.mubr.bf16.vlgmr.msra.gmra.mxu1 %v8581_v63 }
 0x39f   :  { %2644 = vmatpush1.bf16.msra.mxu0 %v8587_v43  ;;  %2687 = vmatpush1.bf16.msra.mxu1 %v8590_v36 }
 0x3a0   :  { %2645 = vmatprep.subr.bf16.mxu0 %v8593_v28  ;;  %2688 = vmatprep.subr.bf16.mxu1 %v8596_v1 }
 0x3a1   :  { %2675 = vmatprep.mubr.bf16.mxu0 %v11301_v44  ;;  %2718 = vmatprep.mubr.bf16.mxu1 %v11301_v44 }
 0x3a3   :  { %2646 = vmatpush1.bf16.msra.mxu0 %v8601_v27  ;;  %2689 = vmatpush1.bf16.msra.mxu1 %v8604_v49 }
 0x3a4   :  { %2647 = vmatprep.subr.bf16.mxu0 %v8607_v29  ;;  %2690 = vmatprep.subr.bf16.mxu1 %v8610_v50 }
 0x3a7   :  { %2648 = vmatpush1.bf16.msra.mxu0 %v8620_v21  ;;  %2691 = vmatpush1.bf16.msra.mxu1 %v8623_v60  ;;  %v8638_v21 = vrot.slane %v8616_v45, %v7690_v48  ;;  %v8640_v60 = vld [vmem:[#allocation5 + $0x80] ss:$16 sps:$4 sm:$0xff]   ;;  %v8651_v48 = vld [vmem:[#allocation5 + $0x64] ss:$16 sps:$4 sm:$0xff]  }
 0x3a8   :  { %2649 = vmatprep.subr.bf16.mxu0 %v8630_v38  ;;  %2692 = vmatprep.subr.bf16.mxu1 %v8633_v30  ;;  %11485 = vst [vmem:[#allocation133_spill] sm:$0xff] %v8640_v60  ;;  %11487 = vst [vmem:[#allocation135_spill] sm:$0xff] %v8651_v48 }
 0x3a9   :  { %v2307_v47 = vpop.f32.mrf.mxu0  ;;  %v2350_v25 = vpop.f32.mrf.mxu1 }
 0x3aa   :  { %v2308_v50 = vadd.f32 %v2307_v47, %v2061_v26  ;;  %v2351_v30 = vadd.f32 %v2350_v25, %v2104_v17  ;;  %v8649_v26 = vrot.slane %v8616_v45, %v11327_v14  ;;  %v8658_v17 = vld [vmem:[#allocation5 + $0x60] ss:$16 sps:$4 sm:$0xff]   ;;  %v8661_v14 = vld [vmem:[#allocation5 + $0x68] ss:$16 sps:$4 sm:$0xff]  }
 0x3ab   :  { %2650 = vmatpush1.bf16.msra.mxu0 %v8640_v60  ;;  %2693 = vmatpush1.bf16.msra.mxu1 %v8643_v46  ;;  %v2309_v38 = vpop.f32.mrf.mxu0  ;;  %v2352_v29 = vpop.f32.mrf.mxu1  ;;  %v8654_v60 = vld [vmem:[#allocation5 + $0x6c] ss:$16 sps:$4 sm:$0xff]   ;;  %11489 = vst [vmem:[#allocation137_spill] sm:$0xff] %v8661_v14 }
 0x3ac   :  { %v2381_v49 = vadd.f32 %v8628_v0, %v2308_v50  ;;  %v2310_v47 = vadd.f32 %v2309_v38, %v2063_v58  ;;  %2651 = vmatprep.subr.bf16.mxu0 %v8651_v48  ;;  %11488 = vst [vmem:[#allocation136_spill] sm:$0xff] %v8654_v60  ;;  %2694 = vmatprep.subr.bf16.mxu1 %v8654_v60  ;;  %v8665_v60 = vld [vmem:[#allocation5 + $0x44] ss:$16 sps:$4 sm:$0xff]  }
 0x3ad   :  { %v2311_v27 = vpop.f32.mrf.mxu0  ;;  %v2354_v50 = vpop.f32.mrf.mxu1  ;;  %v2383_v38 = vadd.f32 %v8649_v26, %v2351_v30  ;;  %v8679_v30 = vld [vmem:[#allocation5 + $0x24] ss:$16 sps:$4 sm:$0xff]  }
 0x3ae   :  { %v2389_v46 = vmul.f32 0.5, %v2381_v49  ;;  %v2382_v1 = vadd.f32 %v8638_v21, %v2310_v47  ;;  %v2312_v28 = vadd.f32 %v2311_v27, %v2065_v20  ;;  %v8668_v20 = vld [vmem:[#allocation5 + $0x4c] ss:$16 sps:$4 sm:$0xff]   ;;  %v2355_v49 = vadd.f32 %v2354_v50, %v2108_v54 }
 0x3af   :  { %2652 = vmatpush1.bf16.msra.mxu0 %v8658_v17  ;;  %2695 = vmatpush1.bf16.msra.mxu1 %v8661_v14  ;;  %v2313_v58 = vpop.f32.mrf.mxu0  ;;  %v2356_v54 = vpop.f32.mrf.mxu1  ;;  %v2353_v50 = vadd.f32 %v2352_v29, %v8585_v56  ;;  %v8705_v56 = vld [vmem:[#allocation5] ss:$16 sps:$4 sm:$0xff]   ;;  %v8708_v29 = vld [vmem:[#allocation5 + $0x8] ss:$16 sps:$4 sm:$0xff]  }
 0x3b0   :  { %6447 = vtanh.f32 %v2389_v46  ;;  %v2397_v25 = vmul.f32 0.5, %v2382_v1  ;;  %v2314_v48 = vadd.f32 %v2313_v58, %v2067_v35  ;;  %2653 = vmatprep.subr.bf16.mxu0 %v8665_v60  ;;  %2696 = vmatprep.subr.bf16.mxu1 %v8668_v20  ;;  %v2385_v27 = vadd.f32 %v8628_v0, %v2312_v28  ;;  %v8673_v46 = vld [vmem:[#allocation5 + $0x40] ss:$16 sps:$4 sm:$0xff]   ;;  %v8676_v1 = vld [vmem:[#allocation5 + $0x48] ss:$16 sps:$4 sm:$0xff]   ;;  %11490 = vst [vmem:[#allocation138_spill] sm:$0xff] %v8708_v29 }
 0x3b1   :  { %v8682_v28 = vld [vmem:[#allocation5 + $0x2c] ss:$16 sps:$4 sm:$0xff]   ;;  %v8689_v58 = vrot.slane %v8616_v45, %v11340_v8 }
 0x3b2   :  { %6449 = vtanh.f32 %v2397_v25  ;;  %v2386_v47 = vadd.f32 %v8638_v21, %v2314_v48  ;;  %v2390_v14 = vmul.f32 0.5, %v2385_v27  ;;  %v2387_v48 = vadd.f32 %v8649_v26, %v2355_v49  ;;  %v8694_v25 = vld [vmem:[#allocation5 + $0x28] ss:$16 sps:$4 sm:$0xff]   ;;  %v8698_v27 = vld [vmem:[#allocation5 + $0x4] ss:$16 sps:$4 sm:$0xff]  }
 0x3b3   :  { %2654 = vmatpush1.bf16.msra.mxu0 %v8673_v46  ;;  %2697 = vmatpush1.bf16.msra.mxu1 %v8676_v1  ;;  %6451 = vtanh.f32 %v2383_v38  ;;  %v8691_v38 = vld [vmem:[#allocation5 + $0x20] ss:$16 sps:$4 sm:$0xff]   ;;  %v8701_v49 = vld [vmem:[#allocation5 + $0xc] ss:$16 sps:$4 sm:$0xff]   ;;  %v2384_v8 = vadd.f32 %v8689_v58, %v2353_v50 }
 0x3b4   :  { %v2398_v35 = vmul.f32 0.5, %v2386_v47  ;;  %2655 = vmatprep.subr.bf16.mxu0 %v8679_v30  ;;  %2698 = vmatprep.subr.bf16.mxu1 %v8682_v28  ;;  %6453 = vtanh.f32 %v2390_v14  ;;  %v2357_v14 = vadd.f32 %v2356_v54, %v8618_v32 }
 0x3b5   :  { %v2407_v54 = vmul.f32 0.5, %v2384_v8 }
 0x3b6   :  { %6455 = vtanh.f32 %v2398_v35  ;;  %v2388_v45 = vadd.f32 %v8689_v58, %v2357_v14 }
 0x3b7   :  { %2656 = vmatpush1.bf16.msra.mxu0 %v8691_v38  ;;  %2699 = vmatpush1.bf16.msra.mxu1 %v8694_v25  ;;  %6457 = vtanh.f32 %v2387_v48 }
 0x3b8   :  { %2657 = vmatprep.subr.bf16.mxu0 %v8698_v27  ;;  %2700 = vmatprep.subr.bf16.mxu1 %v8701_v49  ;;  %6459 = vtanh.f32 %v2407_v54 }
 0x3bb   :  { %2658 = vmatpush1.bf16.msra.mxu0 %v8705_v56  ;;  %2701 = vmatpush1.bf16.msra.mxu1 %v8708_v29  ;;  %v2408_v29 = vmul.f32 0.5, %v2388_v45 }
 0x3bc   :  { %2774 = vmatprep.subr.bf16.mxu0 %v8149_v10  ;;  %2817 = vmatprep.subr.bf16.mxu1 %v8151_v31 }
 0x3bd   :  { %v6448_v32 = vpop.eup %6447  ;;  %6461 = vtanh.f32 %v2408_v29  ;;  %v11497_v29 = vld [vmem:[#allocation29_spill] sm:$0xff] }
 0x3be   :  { %v2393_v47 = vmul.f32 0.5, %v6448_v32  ;;  %2676 = vmatmul.mubr.bf16.vlgmr.msra.gmra.mxu0 %v8463_v41  ;;  %2719 = vmatmul.mubr.bf16.vlgmr.msra.gmra.mxu1 %v8463_v41 }
 0x3bf   :  { %v6450_v35 = vpop.eup %6449  ;;  %2775 = vmatpush1.bf16.msra.mxu0 %v8155_v53  ;;  %2818 = vmatpush1.bf16.msra.mxu1 %v8157_v16 }
 0x3c0   :  { %v2395_v48 = vadd.f32 0.5, %v2393_v47  ;;  %v2401_v50 = vmul.f32 0.5, %v6450_v35  ;;  %2776 = vmatprep.subr.bf16.mxu0 %v8161_v51  ;;  %2819 = vmatprep.subr.bf16.mxu1 %v8163_v5  ;;  %v6452_v10 = vpop.eup %6451 }
 0x3c1   :  { %2806 = vmatprep.mubr.bf16.mxu0 %v11301_v44  ;;  %2849 = vmatprep.mubr.bf16.mxu1 %v11301_v44  ;;  %v6454_v31 = vpop.eup %6453 }
 0x3c2   :  { %v2403_v41 = vadd.f32 0.5, %v2401_v50  ;;  %v2394_v8 = vmul.f32 0.5, %v6454_v31  ;;  %v2417_v16 = vmul.f32 %v6452_v10, %v2395_v48  ;;  %v11499_v10 = vld [vmem:[#allocation31_spill] sm:$0xff]  ;;  %v11500_v31 = vld [vmem:[#allocation32_spill] sm:$0xff] }
 0x3c3   :  { %v6456_v14 = vpop.eup %6455  ;;  %2777 = vmatpush1.bf16.msra.mxu0 %v8169_v40  ;;  %2820 = vmatpush1.bf16.msra.mxu1 %v8171_v33 }
 0x3c4   :  { %v2415_v53 = vmul.f32 0.0, %v2403_v41  ;;  %v2402_v45 = vmul.f32 0.5, %v6456_v14  ;;  %2778 = vmatprep.subr.bf16.mxu0 %v8175_v18  ;;  %2821 = vmatprep.subr.bf16.mxu1 %v8177_v34  ;;  %v2396_v51 = vadd.f32 0.5, %v2394_v8  ;;  %v6458_v47 = vpop.eup %6457  ;;  %v11501_v41 = vld [vmem:[#allocation33_spill] sm:$0xff]  ;;  %v11502_v14 = vld [vmem:[#allocation34_spill] sm:$0xff] }
 0x3c5   :  { %v6460_v18 = vpop.eup %6459 }
 0x3c6   :  { %v8726_v5 = vadd.f32 %v2417_v16, %v2415_v53  ;;  %v2404_v32 = vadd.f32 0.5, %v2402_v45  ;;  %v2418_v35 = vmul.f32 %v6458_v47, %v2396_v51  ;;  %v11503_v53 = vld [vmem:[#allocation35_spill] sm:$0xff]  ;;  %v11504_v16 = vld [vmem:[#allocation21_spill] sm:$0xff]  ;;  %v11505_v45 = vld [vmem:[#allocation36_spill] sm:$0xff] }
 0x3c7   :  { %2779 = vmatpush1.bf16.msra.mxu0 %v8183_v13  ;;  %2822 = vmatpush1.bf16.msra.mxu1 %v8185_v37  ;;  %v11491_v13 = vld [vmem:[#allocation15_spill] sm:$0xff]  ;;  %v11492_v37 = vld [vmem:[#allocation24_spill] sm:$0xff]  ;;  %v11506_v51 = vld [vmem:[#allocation37_spill] sm:$0xff] }
 0x3c8   :  { %v2416_v40 = vmul.f32 0.0, %v2404_v32  ;;  %2780 = vmatprep.subr.bf16.mxu0 %v8189_v19  ;;  %2823 = vmatprep.subr.bf16.mxu1 %v8191_v42  ;;  %6463 = vtanh.f32 %v8726_v5  ;;  %v2411_v19 = vmul.f32 0.5, %v6460_v18  ;;  %v11507_v32 = vld [vmem:[#allocation38_spill] sm:$0xff]  ;;  %v11508_v47 = vld [vmem:[#allocation39_spill] sm:$0xff] }
 0x3c9   :  { %v11511_v18 = vld [vmem:[#allocation42_spill] sm:$0xff] }
 0x3ca   :  { %v8733_v33 = vadd.f32 %v2418_v35, %v2416_v40  ;;  %v6462_v34 = vpop.eup %6461  ;;  %v11509_v40 = vld [vmem:[#allocation40_spill] sm:$0xff]  ;;  %v11510_v35 = vld [vmem:[#allocation41_spill] sm:$0xff] }
 0x3cb   :  { %2781 = vmatpush1.bf16.msra.mxu0 %v8195_v52  ;;  %2824 = vmatpush1.bf16.msra.mxu1 %v8197_v62  ;;  %v2412_v42 = vmul.f32 0.5, %v6462_v34  ;;  %v11493_v52 = vld [vmem:[#allocation25_spill] sm:$0xff]  ;;  %v11494_v62 = vld [vmem:[#allocation26_spill] sm:$0xff]  ;;  %v11512_v34 = vld [vmem:[#allocation43_spill] sm:$0xff] }
 0x3cc   :  { %6465 = vtanh.f32 %v8733_v33  ;;  %2782 = vmatprep.subr.bf16.mxu0 %v8201_v22  ;;  %2825 = vmatprep.subr.bf16.mxu1 %v8203_v2  ;;  %v11495_v2 = vld [vmem:[#allocation27_spill] sm:$0xff] }
 0x3cf   :  { %2783 = vmatpush1.bf16.msra.mxu0 %v8207_v23  ;;  %2826 = vmatpush1.bf16.msra.mxu1 %v8209_v11  ;;  %v11496_v23 = vld [vmem:[#allocation28_spill] sm:$0xff]  ;;  %v2413_v11 = vadd.f32 0.5, %v2411_v19  ;;  %v11515_v19 = vld [vmem:[#allocation46_spill] sm:$0xff] }
 0x3d0   :  { %2784 = vmatprep.subr.bf16.mxu0 %v8213_v24  ;;  %2827 = vmatprep.subr.bf16.mxu1 %v8215_v9  ;;  %v2414_v24 = vadd.f32 0.5, %v2412_v42  ;;  %v11498_v9 = vld [vmem:[#allocation30_spill] sm:$0xff]  ;;  %v11516_v42 = vld [vmem:[#allocation47_spill] sm:$0xff] }
 0x3d3   :  { %2785 = vmatpush1.bf16.msra.mxu0 %v11491_v13  ;;  %2828 = vmatpush1.bf16.msra.mxu1 %v11492_v37  ;;  %v11513_v13 = vld [vmem:[#allocation44_spill] sm:$0xff]  ;;  %v11514_v37 = vld [vmem:[#allocation45_spill] sm:$0xff] }
 0x3d4   :  { %2786 = vmatprep.subr.bf16.mxu0 %v11493_v52  ;;  %2829 = vmatprep.subr.bf16.mxu1 %v11494_v62  ;;  %v11517_v52 = vld [vmem:[#allocation48_spill] sm:$0xff]  ;;  %v11518_v62 = vld [vmem:[#allocation49_spill] sm:$0xff] }
 0x3d5   :  { %v6464_v22 = vpop.eup %6463 }
 0x3d6   :  { %v2423_v48 = vmul.f32 %v6464_v22, %v2413_v11  ;;  %v11519_v22 = vld [vmem:[#allocation50_spill] sm:$0xff]  ;;  %v11522_v11 = vld [vmem:[#allocation53_spill] sm:$0xff] }
 0x3d7   :  { %2787 = vmatpush1.bf16.msra.mxu0 %v11495_v2  ;;  %2830 = vmatpush1.bf16.msra.mxu1 %v11496_v23  ;;  %v11520_v2 = vld [vmem:[#allocation51_spill] sm:$0xff]  ;;  %v11521_v23 = vld [vmem:[#allocation52_spill] sm:$0xff] }
 0x3d8   :  { %2788 = vmatprep.subr.bf16.mxu0 %v11497_v29  ;;  %2831 = vmatprep.subr.bf16.mxu1 %v11498_v9  ;;  %v11524_v29 = vld [vmem:[#allocation55_spill] sm:$0xff]  ;;  %v253_v9 = vpop.permute.xlu0 %252 }
 0x3d9   :  { %v6466_v54 = vpop.eup %6465 }
 0x3da   :  { %v2424_v50 = vmul.f32 %v6466_v54, %v2414_v24  ;;  %v11523_v24 = vld [vmem:[#allocation54_spill] sm:$0xff]  ;;  %v11525_v54 = vld [vmem:[#allocation56_spill] sm:$0xff] }
 0x3db   :  { %2789 = vmatpush1.bf16.msra.mxu0 %v11499_v10  ;;  %2832 = vmatpush1.bf16.msra.mxu1 %v11500_v31  ;;  %v11528_v31 = vld [vmem:[#allocation58_spill] sm:$0xff] }
 0x3dc   :  { %2860 = vmatprep.subr.bf16.mxu0 %v11501_v41  ;;  %2903 = vmatprep.subr.bf16.mxu1 %v11502_v14  ;;  %v2773_v8 = vpack.c.bf16 %v2424_v50, %v2423_v48  ;;  %v11526_v48 = vld [vmem:[#allocation57_spill] sm:$0xff]  ;;  %v11527_v50 = vld [vmem:[#allocation14_spill] sm:$0xff]  ;;  %v11529_v41 = vld [vmem:[#allocation59_spill] sm:$0xff] }
 0x3dd   :  { %v260_v10 = vmul.f32 %v253_v9, %v11527_v50  ;;  %v11530_v14 = vld [vmem:[#allocation16_spill] sm:$0xff] }
 0x3de   :  { %2807 = vmatmul.mubr.bf16.vlgmr.msra.gmra.mxu0 %v2773_v8  ;;  %2850 = vmatmul.mubr.bf16.vlgmr.msra.gmra.mxu1 %v2773_v8  ;;  %v261_v8 = vmul.f32 %v253_v9, %v11530_v14 }
 0x3df   :  { %2861 = vmatpush1.bf16.msra.mxu0 %v11503_v53  ;;  %2904 = vmatpush1.bf16.msra.mxu1 %v11504_v16  ;;  %v258_v53 = vpop.permute.xlu1 %257  ;;  %v11531_v16 = vld [vmem:[#allocation60_spill] sm:$0xff] }
 0x3e0   :  { %2862 = vmatprep.subr.bf16.mxu0 %v11505_v45  ;;  %2905 = vmatprep.subr.bf16.mxu1 %v11506_v51  ;;  %v11532_v45 = vld [vmem:[#allocation61_spill] sm:$0xff]  ;;  %v268_v51 = vadd.f32 %v260_v10, %v7711_v57 }
 0x3e1   :  { %2892 = vmatprep.mubr.bf16.mxu0 %v11301_v44  ;;  %2935 = vmatprep.mubr.bf16.mxu1 %v11301_v44 }
 0x3e3   :  { %2863 = vmatpush1.bf16.msra.mxu0 %v11507_v32  ;;  %2906 = vmatpush1.bf16.msra.mxu1 %v11508_v47  ;;  %v264_v32 = vmul.f32 %v258_v53, %v11527_v50 }
 0x3e4   :  { %2864 = vmatprep.subr.bf16.mxu0 %v11509_v40  ;;  %2907 = vmatprep.subr.bf16.mxu1 %v11510_v35  ;;  %v262_v40 = vmul.f32 %v253_v9, %v7717_v59 }
 0x3e7   :  { %2865 = vmatpush1.bf16.msra.mxu0 %v11511_v18  ;;  %2908 = vmatpush1.bf16.msra.mxu1 %v11512_v34  ;;  %v11533_v18 = vld [vmem:[#allocation62_spill] sm:$0xff]  ;;  %v11534_v34 = vld [vmem:[#allocation63_spill] sm:$0xff] }
 0x3e8   :  { %2866 = vmatprep.subr.bf16.mxu0 %v11513_v13  ;;  %2909 = vmatprep.subr.bf16.mxu1 %v11514_v37  ;;  %v269_v37 = vadd.f32 %v261_v8, %v7721_v61  ;;  %v8810_v8 = vld [vmem:[#allocation3 + $0xe8] ss:$16 sps:$4 sm:$0xff]  }
 0x3e9   :  { %11535 = vst [vmem:[#allocation15_spill] sm:$0xff] %v8810_v8 }
 0x3eb   :  { %2867 = vmatpush1.bf16.msra.mxu0 %v11515_v19  ;;  %2910 = vmatpush1.bf16.msra.mxu1 %v11516_v42  ;;  %v265_v19 = vmul.f32 %v258_v53, %v11530_v14 }
 0x3ec   :  { %2868 = vmatprep.subr.bf16.mxu0 %v11517_v52  ;;  %2911 = vmatprep.subr.bf16.mxu1 %v11518_v62  ;;  %v8795_v52 = vld [vmem:[#allocation3 + $0xe4] ss:$16 sps:$4 sm:$0xff]   ;;  %v8798_v62 = vld [vmem:[#allocation3 + $0xec] ss:$16 sps:$4 sm:$0xff]  }
 0x3ef   :  { %2869 = vmatpush1.bf16.msra.mxu0 %v11519_v22  ;;  %2912 = vmatpush1.bf16.msra.mxu1 %v11520_v2 }
 0x3f0   :  { %2870 = vmatprep.subr.bf16.mxu0 %v11521_v23  ;;  %2913 = vmatprep.subr.bf16.mxu1 %v11522_v11  ;;  %v272_v23 = vadd.f32 %v264_v32, %v7711_v57  ;;  %v270_v11 = vadd.f32 %v262_v40, %v7729_v3 }
 0x3f3   :  { %2871 = vmatpush1.bf16.msra.mxu0 %v11523_v24  ;;  %2914 = vmatpush1.bf16.msra.mxu1 %v11524_v29 }
 0x3f4   :  { %2872 = vmatprep.subr.bf16.mxu0 %v11525_v54  ;;  %2915 = vmatprep.subr.bf16.mxu1 %v11526_v48  ;;  %v266_v54 = vmul.f32 %v258_v53, %v7717_v59 }
 0x3f7   :  { %2873 = vmatpush1.bf16.msra.mxu0 %v11528_v31  ;;  %2916 = vmatpush1.bf16.msra.mxu1 %v11529_v41  ;;  %v273_v31 = vadd.f32 %v265_v19, %v7721_v61  ;;  %v8807_v41 = vld [vmem:[#allocation3 + $0xe0] ss:$16 sps:$4 sm:$0xff]   ;;  %v267_v19 = vmul.f32 %v258_v53, %v7741_v39 }
 0x3f8   :  { %2874 = vmatprep.subr.bf16.mxu0 %v11531_v16  ;;  %2917 = vmatprep.subr.bf16.mxu1 %v11532_v45  ;;  %v11546_v53 = vld [vmem:[#allocation68_spill] sm:$0xff] }
 0x3fa   :  { %v2460_v47 = vpop.f32.mrf.mxu0  ;;  %v2503_v35 = vpop.f32.mrf.mxu1 }
 0x3fb   :  { %2875 = vmatpush1.bf16.msra.mxu0 %v11533_v18  ;;  %2918 = vmatpush1.bf16.msra.mxu1 %v11534_v34  ;;  %v2512_v13 = vadd.f32 %v2460_v47, %v268_v51  ;;  %v2514_v16 = vadd.f32 %v2503_v35, %v270_v11  ;;  %v8816_v51 = vld [vmem:[#allocation3 + $0xcc] ss:$16 sps:$4 sm:$0xff]   ;;  %v263_v18 = vmul.f32 %v253_v9, %v7741_v39  ;;  %v11541_v9 = vld [vmem:[#allocation64_spill] sm:$0xff] }
 0x3fc   :  { %v2462_v42 = vpop.f32.mrf.mxu0  ;;  %2991 = vmatprep.subr.bf16.mxu0 %v8795_v52  ;;  %3034 = vmatprep.subr.bf16.mxu1 %v8798_v62  ;;  %v2505_v24 = vpop.f32.mrf.mxu1  ;;  %11537 = vst [vmem:[#allocation25_spill] sm:$0xff] %v8816_v51  ;;  %v274_v35 = vadd.f32 %v266_v54, %v7729_v3  ;;  %v11544_v54 = vld [vmem:[#allocation66_spill] sm:$0xff] }
 0x3fd   :  { %v2520_v22 = vmul.f32 0.5, %v2512_v13  ;;  %v2513_v2 = vadd.f32 %v2462_v42, %v269_v37  ;;  %v8823_v13 = vld [vmem:[#allocation3 + $0xc0] ss:$16 sps:$4 sm:$0xff]   ;;  %v8826_v37 = vld [vmem:[#allocation3 + $0xc8] ss:$16 sps:$4 sm:$0xff]  }
 0x3fe   :  { %2893 = vmatmul.mubr.bf16.vlgmr.msra.gmra.mxu0 %v8581_v63  ;;  %2936 = vmatmul.mubr.bf16.vlgmr.msra.gmra.mxu1 %v8581_v63  ;;  %v2464_v29 = vpop.f32.mrf.mxu0  ;;  %v8813_v63 = vld [vmem:[#allocation3 + $0xc4] ss:$16 sps:$4 sm:$0xff]   ;;  %v2507_v40 = vpop.f32.mrf.mxu1  ;;  %11538 = vst [vmem:[#allocation26_spill] sm:$0xff] %v8823_v13  ;;  %11539 = vst [vmem:[#allocation27_spill] sm:$0xff] %v8826_v37 }
 0x3ff   :  { %6467 = vtanh.f32 %v2520_v22  ;;  %v2528_v48 = vmul.f32 0.5, %v2513_v2  ;;  %v2516_v10 = vadd.f32 %v2464_v29, %v272_v23  ;;  %2992 = vmatpush1.bf16.msra.mxu0 %v8807_v41  ;;  %3035 = vmatpush1.bf16.msra.mxu1 %v8810_v8  ;;  %11536 = vst [vmem:[#allocation24_spill] sm:$0xff] %v8813_v63  ;;  %v8830_v42 = vld [vmem:[#allocation3 + $0xa4] ss:$16 sps:$4 sm:$0xff]   ;;  %v2518_v22 = vadd.f32 %v2507_v40, %v274_v35  ;;  %v11542_v2 = vld [vmem:[#allocation23_spill] sm:$0xff]  ;;  %v11543_v29 = vld [vmem:[#allocation65_spill] sm:$0xff] }
 0x400   :  { %v2466_v45 = vpop.f32.mrf.mxu0  ;;  %2993 = vmatprep.subr.bf16.mxu0 %v8813_v63  ;;  %3036 = vmatprep.subr.bf16.mxu1 %v8816_v51  ;;  %11540 = vst [vmem:[#allocation28_spill] sm:$0xff] %v8830_v42  ;;  %v271_v23 = vadd.f32 %v263_v18, %v11542_v2  ;;  %v2509_v11 = vpop.f32.mrf.mxu1  ;;  %v11549_v40 = vld [vmem:[#allocation71_spill] sm:$0xff]  ;;  %v11550_v18 = vld [vmem:[#allocation72_spill] sm:$0xff] }
 0x401   :  { %6469 = vtanh.f32 %v2528_v48  ;;  %v2521_v32 = vmul.f32 0.5, %v2516_v10  ;;  %v2517_v47 = vadd.f32 %v2466_v45, %v273_v31  ;;  %3023 = vmatprep.mubr.bf16.mxu0 %v11301_v44  ;;  %3066 = vmatprep.mubr.bf16.mxu1 %v11301_v44  ;;  %v275_v48 = vadd.f32 %v267_v19, %v11542_v2  ;;  %v11545_v10 = vld [vmem:[#allocation67_spill] sm:$0xff]  ;;  %v11547_v45 = vld [vmem:[#allocation69_spill] sm:$0xff] }
 0x402   :  { %v2515_v31 = vadd.f32 %v2505_v24, %v271_v23  ;;  %v11552_v24 = vld [vmem:[#allocation74_spill] sm:$0xff]  ;;  %v11553_v23 = vld [vmem:[#allocation75_spill] sm:$0xff] }
 0x403   :  { %6471 = vtanh.f32 %v2521_v32  ;;  %v2529_v34 = vmul.f32 0.5, %v2517_v47  ;;  %2994 = vmatpush1.bf16.msra.mxu0 %v8823_v13  ;;  %3037 = vmatpush1.bf16.msra.mxu1 %v8826_v37  ;;  %v11548_v32 = vld [vmem:[#allocation70_spill] sm:$0xff] }
 0x404   :  { %6473 = vtanh.f32 %v2514_v16  ;;  %2995 = vmatprep.subr.bf16.mxu0 %v8830_v42  ;;  %3038 = vmatprep.subr.bf16.mxu1 %v11541_v9  ;;  %v2519_v16 = vadd.f32 %v2509_v11, %v275_v48  ;;  %v11554_v11 = vld [vmem:[#allocation76_spill] sm:$0xff]  ;;  %v11562_v42 = vld [vmem:[#allocation81_spill] sm:$0xff] }
 0x405   :  { %6475 = vtanh.f32 %v2529_v34  ;;  %v2538_v34 = vmul.f32 0.5, %v2515_v31  ;;  %v11555_v31 = vld [vmem:[#allocation89_spill] sm:$0xff] }
 0x406   :  { %6477 = vtanh.f32 %v2518_v22  ;;  %v2539_v19 = vmul.f32 0.5, %v2519_v16 }
 0x407   :  { %2996 = vmatpush1.bf16.msra.mxu0 %v11543_v29  ;;  %3039 = vmatpush1.bf16.msra.mxu1 %v11544_v54  ;;  %6479 = vtanh.f32 %v2538_v34 }
 0x408   :  { %2997 = vmatprep.subr.bf16.mxu0 %v11545_v10  ;;  %3040 = vmatprep.subr.bf16.mxu1 %v11546_v53  ;;  %v11551_v10 = vld [vmem:[#allocation73_spill] sm:$0xff]  ;;  %6481 = vtanh.f32 %v2539_v19 }
 0x40b   :  { %2998 = vmatpush1.bf16.msra.mxu0 %v11547_v45  ;;  %3041 = vmatpush1.bf16.msra.mxu1 %v11548_v32 }
 0x40c   :  { %v6468_v47 = vpop.eup %6467  ;;  %2999 = vmatprep.subr.bf16.mxu0 %v11549_v40  ;;  %3042 = vmatprep.subr.bf16.mxu1 %v11550_v18 }
 0x40d   :  { %v2524_v35 = vmul.f32 0.5, %v6468_v47 }
 0x40e   :  { %v6470_v9 = vpop.eup %6469 }
 0x40f   :  { %v2526_v29 = vadd.f32 0.5, %v2524_v35  ;;  %v2532_v54 = vmul.f32 0.5, %v6470_v9  ;;  %3000 = vmatpush1.bf16.msra.mxu0 %v11551_v10  ;;  %3043 = vmatpush1.bf16.msra.mxu1 %v11552_v24  ;;  %v11556_v35 = vld [vmem:[#allocation77_spill] sm:$0xff]  ;;  %v11557_v9 = vld [vmem:[#allocation78_spill] sm:$0xff]  ;;  %v11558_v10 = vld [vmem:[#allocation79_spill] sm:$0xff] }
 0x410   :  { %v6472_v22 = vpop.eup %6471  ;;  %3001 = vmatprep.subr.bf16.mxu0 %v11553_v23  ;;  %3044 = vmatprep.subr.bf16.mxu1 %v11554_v11  ;;  %v11559_v24 = vld [vmem:[#allocation80_spill] sm:$0xff] }
 0x411   :  { %v6474_v48 = vpop.eup %6473  ;;  %v2534_v53 = vadd.f32 0.5, %v2532_v54  ;;  %v2525_v45 = vmul.f32 0.5, %v6472_v22  ;;  %v11561_v22 = vld [vmem:[#allocation90_spill] sm:$0xff] }
 0x412   :  { %v6476_v32 = vpop.eup %6475  ;;  %v2548_v16 = vmul.f32 %v6474_v48, %v2526_v29  ;;  %v11563_v29 = vld [vmem:[#allocation82_spill] sm:$0xff]  ;;  %v11564_v48 = vld [vmem:[#allocation83_spill] sm:$0xff] }
 0x413   :  { %v2546_v47 = vmul.f32 %v2534_v53, %v11555_v31  ;;  %v2527_v40 = vadd.f32 0.5, %v2525_v45  ;;  %v2533_v18 = vmul.f32 0.5, %v6476_v32  ;;  %3002 = vmatpush1.bf16.msra.mxu0 %v11556_v35  ;;  %3045 = vmatpush1.bf16.msra.mxu1 %v11557_v9  ;;  %v6478_v34 = vpop.eup %6477  ;;  %v11565_v53 = vld [vmem:[#allocation84_spill] sm:$0xff]  ;;  %v11567_v32 = vld [vmem:[#allocation85_spill] sm:$0xff]  ;;  %v11568_v31 = vld [vmem:[#allocation86_spill] sm:$0xff] }
 0x414   :  { %3003 = vmatprep.subr.bf16.mxu0 %v11558_v10  ;;  %3046 = vmatprep.subr.bf16.mxu1 %v11559_v24 }
 0x415   :  { %v8853_v23 = vadd.f32 %v2548_v16, %v2546_v47  ;;  %v2535_v54 = vadd.f32 0.5, %v2533_v18  ;;  %v2549_v19 = vmul.f32 %v6478_v34, %v2527_v40  ;;  %v11569_v47 = vld [vmem:[#allocation87_spill] sm:$0xff]  ;;  %v11570_v16 = vld [vmem:[#allocation88_spill] sm:$0xff] }
 0x417   :  { %11560 = vst [vmem:[#allocation29_spill] sm:$0xff] %v8853_v23  ;;  %v2547_v11 = vmul.f32 %v2535_v54, %v11561_v22  ;;  %3004 = vmatpush1.bf16.msra.mxu0 %v11562_v42  ;;  %3047 = vmatpush1.bf16.msra.mxu1 %v11563_v29  ;;  %6483 = vtanh.f32 %v8853_v23  ;;  %v6480_v42 = vpop.eup %6479  ;;  %v11572_v29 = vld [vmem:[#allocation92_spill] sm:$0xff] }
 0x418   :  { %3005 = vmatprep.subr.bf16.mxu0 %v11564_v48  ;;  %3048 = vmatprep.subr.bf16.mxu1 %v11565_v53  ;;  %v6482_v40 = vpop.eup %6481  ;;  %v2542_v18 = vmul.f32 0.5, %v6480_v42  ;;  %v11573_v48 = vld [vmem:[#allocation93_spill] sm:$0xff]  ;;  %v11574_v53 = vld [vmem:[#allocation94_spill] sm:$0xff]  ;;  %v11579_v42 = vld [vmem:[#allocation99_spill] sm:$0xff] }
 0x419   :  { %v8861_v45 = vadd.f32 %v2549_v19, %v2547_v11  ;;  %v2543_v35 = vmul.f32 0.5, %v6482_v40  ;;  %v11571_v19 = vld [vmem:[#allocation91_spill] sm:$0xff]  ;;  %v11580_v40 = vld [vmem:[#allocation100_spill] sm:$0xff] }
 0x41a   :  { %v2544_v10 = vadd.f32 0.5, %v2542_v18  ;;  %v11581_v18 = vld [vmem:[#allocation101_spill] sm:$0xff] }
 0x41b   :  { %11566 = vst [vmem:[#allocation30_spill] sm:$0xff] %v8861_v45  ;;  %6485 = vtanh.f32 %v8861_v45  ;;  %3006 = vmatpush1.bf16.msra.mxu0 %v11567_v32  ;;  %3049 = vmatpush1.bf16.msra.mxu1 %v11568_v31  ;;  %v2545_v24 = vadd.f32 0.5, %v2543_v35  ;;  %v11575_v32 = vld [vmem:[#allocation95_spill] sm:$0xff]  ;;  %v11576_v31 = vld [vmem:[#allocation96_spill] sm:$0xff]  ;;  %v11582_v35 = vld [vmem:[#allocation102_spill] sm:$0xff] }
 0x41c   :  { %3122 = vmatprep.subr.bf16.mxu0 %v11569_v47  ;;  %3165 = vmatprep.subr.bf16.mxu1 %v11570_v16  ;;  %v11577_v47 = vld [vmem:[#allocation97_spill] sm:$0xff]  ;;  %v11578_v16 = vld [vmem:[#allocation98_spill] sm:$0xff] }
 0x424   :  { %v6484_v9 = vpop.eup %6483 }
 0x425   :  { %v2554_v34 = vmul.f32 %v6484_v9, %v2544_v10  ;;  %v11583_v9 = vld [vmem:[#allocation103_spill] sm:$0xff]  ;;  %v11584_v10 = vld [vmem:[#allocation104_spill] sm:$0xff] }
 0x428   :  { %v6486_v54 = vpop.eup %6485 }
 0x429   :  { %v2555_v22 = vmul.f32 %v6486_v54, %v2545_v24  ;;  %v11585_v24 = vld [vmem:[#allocation105_spill] sm:$0xff]  ;;  %v11586_v54 = vld [vmem:[#allocation106_spill] sm:$0xff] }
 0x42b   :  { %v8868_v11 = vpack.c.bf16 %v2555_v22, %v2554_v34  ;;  %v11587_v34 = vld [vmem:[#allocation107_spill] sm:$0xff]  ;;  %v11588_v22 = vld [vmem:[#allocation108_spill] sm:$0xff] }
 0x42d   :  { %3024 = vmatmul.mubr.bf16.vlgmr.msra.gmra.mxu0 %v8868_v11  ;;  %3067 = vmatmul.mubr.bf16.vlgmr.msra.gmra.mxu1 %v8868_v11 }
 0x42e   :  { %3123 = vmatpush1.bf16.msra.mxu0 %v11571_v19  ;;  %3166 = vmatpush1.bf16.msra.mxu1 %v11572_v29  ;;  %v11589_v19 = vld [vmem:[#allocation109_spill] sm:$0xff]  ;;  %v11590_v29 = vld [vmem:[#allocation110_spill] sm:$0xff] }
 0x42f   :  { %3124 = vmatprep.subr.bf16.mxu0 %v11573_v48  ;;  %3167 = vmatprep.subr.bf16.mxu1 %v11574_v53  ;;  %v11591_v48 = vld [vmem:[#allocation111_spill] sm:$0xff]  ;;  %v11592_v53 = vld [vmem:[#allocation112_spill] sm:$0xff] }
 0x430   :  { %3154 = vmatprep.mubr.bf16.mxu0 %v11301_v44  ;;  %3197 = vmatprep.mubr.bf16.mxu1 %v11301_v44 }
 0x432   :  { %3125 = vmatpush1.bf16.msra.mxu0 %v11575_v32  ;;  %3168 = vmatpush1.bf16.msra.mxu1 %v11576_v31  ;;  %v11593_v32 = vld [vmem:[#allocation113_spill] sm:$0xff]  ;;  %v11594_v31 = vld [vmem:[#allocation114_spill] sm:$0xff] }
 0x433   :  { %3126 = vmatprep.subr.bf16.mxu0 %v11577_v47  ;;  %3169 = vmatprep.subr.bf16.mxu1 %v11578_v16  ;;  %v11595_v47 = vld [vmem:[#allocation115_spill] sm:$0xff]  ;;  %v11596_v16 = vld [vmem:[#allocation116_spill] sm:$0xff] }
 0x436   :  { %3127 = vmatpush1.bf16.msra.mxu0 %v11579_v42  ;;  %3170 = vmatpush1.bf16.msra.mxu1 %v11580_v40  ;;  %v11597_v42 = vld [vmem:[#allocation117_spill] sm:$0xff]  ;;  %v11598_v40 = vld [vmem:[#allocation118_spill] sm:$0xff] }
 0x437   :  { %3128 = vmatprep.subr.bf16.mxu0 %v11581_v18  ;;  %3171 = vmatprep.subr.bf16.mxu1 %v11582_v35  ;;  %v11599_v18 = vld [vmem:[#allocation119_spill] sm:$0xff]  ;;  %v11600_v35 = vld [vmem:[#allocation120_spill] sm:$0xff] }
 0x43a   :  { %3129 = vmatpush1.bf16.msra.mxu0 %v11583_v9  ;;  %3172 = vmatpush1.bf16.msra.mxu1 %v11584_v10  ;;  %v11601_v9 = vld [vmem:[#allocation121_spill] sm:$0xff]  ;;  %v11602_v10 = vld [vmem:[#allocation122_spill] sm:$0xff] }
 0x43b   :  { %3130 = vmatprep.subr.bf16.mxu0 %v11585_v24  ;;  %3173 = vmatprep.subr.bf16.mxu1 %v11586_v54 }
 0x43e   :  { %3131 = vmatpush1.bf16.msra.mxu0 %v11587_v34  ;;  %3174 = vmatpush1.bf16.msra.mxu1 %v11588_v22 }
 0x43f   :  { %3132 = vmatprep.subr.bf16.mxu0 %v11589_v19  ;;  %3175 = vmatprep.subr.bf16.mxu1 %v11590_v29 }
 0x442   :  { %3133 = vmatpush1.bf16.msra.mxu0 %v11591_v48  ;;  %3176 = vmatpush1.bf16.msra.mxu1 %v11592_v53 }
 0x443   :  { %3134 = vmatprep.subr.bf16.mxu0 %v11593_v32  ;;  %3177 = vmatprep.subr.bf16.mxu1 %v11594_v31 }
 0x446   :  { %3135 = vmatpush1.bf16.msra.mxu0 %v11595_v47  ;;  %3178 = vmatpush1.bf16.msra.mxu1 %v11596_v16 }
 0x447   :  { %3136 = vmatprep.subr.bf16.mxu0 %v11597_v42  ;;  %3179 = vmatprep.subr.bf16.mxu1 %v11598_v40 }
 0x44a   :  { %3137 = vmatpush1.bf16.msra.mxu0 %v11599_v18  ;;  %3180 = vmatpush1.bf16.msra.mxu1 %v11600_v35 }
 0x44b   :  { %3208 = vmatprep.subr.bf16.mxu0 %v11601_v9  ;;  %3251 = vmatprep.subr.bf16.mxu1 %v11602_v10 }
 0x45e   :  { %v2591_v24 = vpop.f32.mrf.mxu0  ;;  %v2634_v54 = vpop.f32.mrf.mxu1 }
 0x460   :  { %v2593_v34 = vpop.f32.mrf.mxu0  ;;  %v2636_v22 = vpop.f32.mrf.mxu1 }
 0x462   :  { %v2595_v19 = vpop.f32.mrf.mxu0  ;;  %v2638_v29 = vpop.f32.mrf.mxu1 }
 0x464   :  { %v2597_v48 = vpop.f32.mrf.mxu0  ;;  %v2640_v53 = vpop.f32.mrf.mxu1 }
 0x47e   :  { %v2677_v32 = vpop.f32.mrf.mxu0  ;;  %v2720_v31 = vpop.f32.mrf.mxu1 }
 0x47f   :  { %v2678_v47 = vadd.f32 %v2677_v32, %v2591_v24  ;;  %v2721_v18 = vadd.f32 %v2720_v31, %v2634_v54 }
 0x480   :  { %v2679_v16 = vpop.f32.mrf.mxu0  ;;  %v2722_v42 = vpop.f32.mrf.mxu1 }
 0x481   :  { %v2729_v40 = vadd.f32 %v2678_v47, %v8069_v4  ;;  %v2680_v35 = vadd.f32 %v2679_v16, %v2593_v34  ;;  %v2731_v63 = vadd.f32 %v2721_v18, %v8080_v15  ;;  %v2723_v16 = vadd.f32 %v2722_v42, %v2636_v22 }
 0x482   :  { %v2681_v9 = vpop.f32.mrf.mxu0  ;;  %v2724_v23 = vpop.f32.mrf.mxu1 }
 0x483   :  { %v2737_v37 = vmul.f32 0.5, %v2729_v40  ;;  %v2730_v10 = vadd.f32 %v2680_v35, %v8074_v7  ;;  %v2682_v13 = vadd.f32 %v2681_v9, %v2595_v19  ;;  %v2725_v32 = vadd.f32 %v2724_v23, %v2638_v29 }
 0x484   :  { %v2683_v51 = vpop.f32.mrf.mxu0  ;;  %v2726_v31 = vpop.f32.mrf.mxu1  ;;  %v2732_v40 = vadd.f32 %v2723_v16, %v8101_v12 }
 0x485   :  { %6487 = vtanh.f32 %v2737_v37  ;;  %v2745_v45 = vmul.f32 0.5, %v2730_v10  ;;  %v2684_v8 = vadd.f32 %v2683_v51, %v2597_v48  ;;  %v2733_v24 = vadd.f32 %v2682_v13, %v8069_v4 }
 0x486   :  { %v2735_v19 = vadd.f32 %v2725_v32, %v8080_v15  ;;  %v2727_v37 = vadd.f32 %v2726_v31, %v2640_v53  ;;  %v2755_v29 = vmul.f32 0.5, %v2732_v40 }
 0x487   :  { %6489 = vtanh.f32 %v2745_v45  ;;  %v2734_v47 = vadd.f32 %v2684_v8, %v8074_v7  ;;  %v2738_v54 = vmul.f32 0.5, %v2733_v24 }
 0x488   :  { %6491 = vtanh.f32 %v2731_v63  ;;  %v2736_v51 = vadd.f32 %v2727_v37, %v8101_v12 }
 0x489   :  { %v2746_v34 = vmul.f32 0.5, %v2734_v47  ;;  %6493 = vtanh.f32 %v2738_v54 }
 0x48a   :  { %v2756_v63 = vmul.f32 0.5, %v2736_v51 }
 0x48b   :  { %6495 = vtanh.f32 %v2746_v34 }
 0x48c   :  { %6497 = vtanh.f32 %v2735_v19 }
 0x48d   :  { %6499 = vtanh.f32 %v2755_v29 }
 0x48e   :  { %6501 = vtanh.f32 %v2756_v63 }
 0x492   :  { %v6488_v13 = vpop.eup %6487 }
 0x493   :  { %v2741_v45 = vmul.f32 0.5, %v6488_v13 }
 0x494   :  { %v6490_v23 = vpop.eup %6489 }
 0x495   :  { %v2743_v8 = vadd.f32 0.5, %v2741_v45  ;;  %v2749_v48 = vmul.f32 0.5, %v6490_v23  ;;  %v6492_v18 = vpop.eup %6491 }
 0x496   :  { %v6494_v35 = vpop.eup %6493 }
 0x497   :  { %v2751_v9 = vadd.f32 0.5, %v2749_v48  ;;  %v2742_v24 = vmul.f32 0.5, %v6494_v35  ;;  %v2765_v53 = vmul.f32 %v6492_v18, %v2743_v8 }
 0x498   :  { %v6496_v10 = vpop.eup %6495 }
 0x499   :  { %v2763_v22 = vmul.f32 %v2751_v9, %v8574_v6  ;;  %v2750_v42 = vmul.f32 0.5, %v6496_v10  ;;  %v2744_v32 = vadd.f32 0.5, %v2742_v24  ;;  %v6498_v34 = vpop.eup %6497  ;;  %v11603_v10 = vld [vmem:[#allocation123_spill] sm:$0xff]  ;;  %v11604_v24 = vld [vmem:[#allocation124_spill] sm:$0xff] }
 0x49a   :  { %v6500_v37 = vpop.eup %6499 }
 0x49b   :  { %v8915_v47 = vadd.f32 %v2765_v53, %v2763_v22  ;;  %v2752_v54 = vadd.f32 0.5, %v2750_v42  ;;  %v2766_v19 = vmul.f32 %v6498_v34, %v2744_v32  ;;  %v6502_v40 = vpop.eup %6501  ;;  %v2759_v6 = vmul.f32 0.5, %v6500_v37  ;;  %v11605_v42 = vld [vmem:[#allocation125_spill] sm:$0xff]  ;;  %v11606_v32 = vld [vmem:[#allocation126_spill] sm:$0xff]  ;;  %v11608_v34 = vld [vmem:[#allocation128_spill] sm:$0xff] }
 0x49c   :  { %v2760_v51 = vmul.f32 0.5, %v6502_v40  ;;  %v11611_v37 = vld [vmem:[#allocation131_spill] sm:$0xff]  ;;  %v11612_v40 = vld [vmem:[#allocation132_spill] sm:$0xff] }
 0x49d   :  { %v2764_v31 = vmul.f32 %v2752_v54, %v8578_v55  ;;  %6503 = vtanh.f32 %v8915_v47  ;;  %v2761_v45 = vadd.f32 0.5, %v2759_v6  ;;  %v11607_v54 = vld [vmem:[#allocation127_spill] sm:$0xff] }
 0x49e   :  { %v2762_v23 = vadd.f32 0.5, %v2760_v51  ;;  %v2808_v63 = vpop.f32.mrf.mxu0  ;;  %v2851_v18 = vpop.f32.mrf.mxu1 }
 0x49f   :  { %v8919_v16 = vadd.f32 %v2766_v19, %v2764_v31  ;;  %v11609_v31 = vld [vmem:[#allocation129_spill] sm:$0xff]  ;;  %v11610_v19 = vld [vmem:[#allocation130_spill] sm:$0xff] }
 0x4a0   :  { %v2810_v35 = vpop.f32.mrf.mxu0  ;;  %v2853_v9 = vpop.f32.mrf.mxu1 }
 0x4a1   :  { %6505 = vtanh.f32 %v8919_v16 }
 0x4a2   :  { %v2812_v22 = vpop.f32.mrf.mxu0  ;;  %v2855_v53 = vpop.f32.mrf.mxu1 }
 0x4aa   :  { %v6504_v13 = vpop.eup %6503 }
 0x4ab   :  { %v2771_v8 = vmul.f32 %v6504_v13, %v2761_v45  ;;  %v11613_v45 = vld [vmem:[#allocation133_spill] sm:$0xff] }
 0x4ae   :  { %v6506_v29 = vpop.eup %6505 }
 0x4af   :  { %v2772_v48 = vmul.f32 %v6506_v29, %v2762_v23  ;;  %v11614_v23 = vld [vmem:[#allocation134_spill] sm:$0xff] }
 0x4b1   :  { %v8922_v55 = vpack.c.bf16 %v2772_v48, %v2771_v8 }
 0x4b3   :  { %3155 = vmatmul.mubr.bf16.vlgmr.msra.gmra.mxu0 %v8922_v55  ;;  %3198 = vmatmul.mubr.bf16.vlgmr.msra.gmra.mxu1 %v8922_v55 }
 0x4b4   :  { %3209 = vmatpush1.bf16.msra.mxu0 %v8587_v43  ;;  %3252 = vmatpush1.bf16.msra.mxu1 %v8590_v36  ;;  %v2814_v43 = vpop.f32.mrf.mxu0  ;;  %v2857_v36 = vpop.f32.mrf.mxu1 }
 0x4b5   :  { %3210 = vmatprep.subr.bf16.mxu0 %v11603_v10  ;;  %3253 = vmatprep.subr.bf16.mxu1 %v11604_v24 }
 0x4b6   :  { %3240 = vmatprep.mubr.bf16.mxu0 %v11301_v44  ;;  %3283 = vmatprep.mubr.bf16.mxu1 %v11301_v44 }
 0x4b8   :  { %3211 = vmatpush1.bf16.msra.mxu0 %v11605_v42  ;;  %3254 = vmatpush1.bf16.msra.mxu1 %v11606_v32  ;;  %v11615_v42 = vld [vmem:[#allocation135_spill] sm:$0xff] }
 0x4b9   :  { %3212 = vmatprep.subr.bf16.mxu0 %v11607_v54  ;;  %3255 = vmatprep.subr.bf16.mxu1 %v11608_v34  ;;  %v11616_v54 = vld [vmem:[#allocation136_spill] sm:$0xff] }
 0x4bc   :  { %3213 = vmatpush1.bf16.msra.mxu0 %v11609_v31  ;;  %3256 = vmatpush1.bf16.msra.mxu1 %v11610_v19 }
 0x4bd   :  { %3214 = vmatprep.subr.bf16.mxu0 %v11611_v37  ;;  %3257 = vmatprep.subr.bf16.mxu1 %v11612_v40  ;;  %v11617_v37 = vld [vmem:[#allocation137_spill] sm:$0xff] }
 0x4be   :  { %v2894_v6 = vpop.f32.mrf.mxu0  ;;  %v2937_v51 = vpop.f32.mrf.mxu1 }
 0x4bf   :  { %v2895_v13 = vadd.f32 %v2894_v6, %v2808_v63  ;;  %v2938_v10 = vadd.f32 %v2937_v51, %v2851_v18 }
 0x4c0   :  { %3215 = vmatpush1.bf16.msra.mxu0 %v11613_v45  ;;  %3258 = vmatpush1.bf16.msra.mxu1 %v11614_v23  ;;  %v2896_v29 = vpop.f32.mrf.mxu0  ;;  %v2939_v8 = vpop.f32.mrf.mxu1 }
 0x4c1   :  { %v2946_v48 = vadd.f32 %v2895_v13, %v8628_v0  ;;  %v2897_v24 = vadd.f32 %v2896_v29, %v2810_v35  ;;  %3216 = vmatprep.subr.bf16.mxu0 %v11615_v42  ;;  %3259 = vmatprep.subr.bf16.mxu1 %v11616_v54  ;;  %v2948_v6 = vadd.f32 %v2938_v10, %v8649_v26  ;;  %v8983_v10 = vld [vmem:[#allocation10 + $0xcc] ss:$16 sps:$4 sm:$0xff]  }
 0x4c2   :  { %v2898_v32 = vpop.f32.mrf.mxu0  ;;  %v2941_v63 = vpop.f32.mrf.mxu1 }
 0x4c3   :  { %v2954_v34 = vmul.f32 0.5, %v2946_v48  ;;  %v2947_v31 = vadd.f32 %v2897_v24, %v8638_v21  ;;  %v2899_v19 = vadd.f32 %v2898_v32, %v2812_v22  ;;  %v2942_v13 = vadd.f32 %v2941_v63, %v2855_v53  ;;  %v8980_v48 = vld [vmem:[#allocation10 + $0xc4] ss:$16 sps:$4 sm:$0xff]  }
 0x4c4   :  { %3217 = vmatpush1.bf16.msra.mxu0 %v8658_v17  ;;  %3260 = vmatpush1.bf16.msra.mxu1 %v11617_v37  ;;  %v2900_v40 = vpop.f32.mrf.mxu0 }
 0x4c5   :  { %6507 = vtanh.f32 %v2954_v34  ;;  %v2962_v18 = vmul.f32 0.5, %v2947_v31  ;;  %v2901_v35 = vadd.f32 %v2900_v40, %v2814_v43  ;;  %3218 = vmatprep.subr.bf16.mxu0 %v8665_v60  ;;  %3261 = vmatprep.subr.bf16.mxu1 %v8668_v20  ;;  %v2950_v51 = vadd.f32 %v2899_v19, %v8628_v0  ;;  %v2943_v60 = vpop.f32.mrf.mxu1  ;;  %v8988_v34 = vld [vmem:[#allocation10 + $0xc0] ss:$16 sps:$4 sm:$0xff]   ;;  %v8991_v31 = vld [vmem:[#allocation10 + $0xc8] ss:$16 sps:$4 sm:$0xff]  }
 0x4c6   :  { %v2952_v20 = vadd.f32 %v2942_v13, %v8649_v26  ;;  %v2940_v43 = vadd.f32 %v2939_v8, %v2853_v9  ;;  %v2944_v53 = vadd.f32 %v2943_v60, %v2857_v36  ;;  %v8974_v9 = vld [vmem:[#allocation10 + $0xe0] ss:$16 sps:$4 sm:$0xff]   ;;  %v8977_v36 = vld [vmem:[#allocation10 + $0xe8] ss:$16 sps:$4 sm:$0xff]   ;;  %v8995_v40 = vld [vmem:[#allocation10 + $0xa4] ss:$16 sps:$4 sm:$0xff]  }
 0x4c7   :  { %6509 = vtanh.f32 %v2962_v18  ;;  %v2951_v22 = vadd.f32 %v2901_v35, %v8638_v21  ;;  %v2955_v45 = vmul.f32 0.5, %v2950_v51  ;;  %v9010_v60 = vld [vmem:[#allocation10 + $0x84] ss:$16 sps:$4 sm:$0xff]  }
 0x4c8   :  { %3219 = vmatpush1.bf16.msra.mxu0 %v8673_v46  ;;  %3262 = vmatpush1.bf16.msra.mxu1 %v8676_v1  ;;  %6511 = vtanh.f32 %v2948_v6  ;;  %v2949_v46 = vadd.f32 %v2940_v43, %v8689_v58  ;;  %v11618_v1 = vld [vmem:[#allocation138_spill] sm:$0xff]  ;;  %v8998_v6 = vld [vmem:[#allocation10 + $0xac] ss:$16 sps:$4 sm:$0xff]  }
 0x4c9   :  { %v2963_v17 = vmul.f32 0.5, %v2951_v22  ;;  %3220 = vmatprep.subr.bf16.mxu0 %v8679_v30  ;;  %3263 = vmatprep.subr.bf16.mxu1 %v8682_v28  ;;  %6513 = vtanh.f32 %v2955_v45  ;;  %v2953_v30 = vadd.f32 %v2944_v53, %v8689_v58  ;;  %v8966_v28 = vld [vmem:[#allocation10 + $0xe4] ss:$16 sps:$4 sm:$0xff]   ;;  %v9003_v22 = vld [vmem:[#allocation10 + $0xa0] ss:$16 sps:$4 sm:$0xff]  }
 0x4ca   :  { %v9019_v53 = vld [vmem:[#allocation10 + $0x80] ss:$16 sps:$4 sm:$0xff]  }
 0x4cb   :  { %6515 = vtanh.f32 %v2963_v17  ;;  %v2973_v8 = vmul.f32 0.5, %v2953_v30  ;;  %v9032_v30 = vld [vmem:[#allocation10 + $0x60] ss:$16 sps:$4 sm:$0xff]  }
 0x4cc   :  { %3221 = vmatpush1.bf16.msra.mxu0 %v8691_v38  ;;  %3264 = vmatpush1.bf16.msra.mxu1 %v8694_v25  ;;  %6517 = vtanh.f32 %v2952_v20  ;;  %v8969_v38 = vld [vmem:[#allocation10 + $0xec] ss:$16 sps:$4 sm:$0xff]  }
 0x4cd   :  { %3222 = vmatprep.subr.bf16.mxu0 %v8698_v27  ;;  %3265 = vmatprep.subr.bf16.mxu1 %v8701_v49  ;;  %v9013_v20 = vld [vmem:[#allocation10 + $0x8c] ss:$16 sps:$4 sm:$0xff]  }
 0x4d0   :  { %3223 = vmatpush1.bf16.msra.mxu0 %v8705_v56  ;;  %3266 = vmatpush1.bf16.msra.mxu1 %v11618_v1  ;;  %v2972_v56 = vmul.f32 0.5, %v2949_v46  ;;  %v9022_v46 = vld [vmem:[#allocation10 + $0x88] ss:$16 sps:$4 sm:$0xff]   ;;  %v9029_v1 = vld [vmem:[#allocation10 + $0x6c] ss:$16 sps:$4 sm:$0xff]  }
 0x4d1   :  { %3339 = vmatprep.subr.bf16.mxu0 %v8966_v28  ;;  %3382 = vmatprep.subr.bf16.mxu1 %v8969_v38 }
 0x4d2   :  { %v6508_v25 = vpop.eup %6507  ;;  %6519 = vtanh.f32 %v2972_v56  ;;  %v9041_v56 = vld [vmem:[#allocation10 + $0x4c] ss:$16 sps:$4 sm:$0xff]  }
 0x4d3   :  { %v2958_v27 = vmul.f32 0.5, %v6508_v25  ;;  %3241 = vmatmul.mubr.bf16.vlgmr.msra.gmra.mxu0 %v8868_v11  ;;  %3284 = vmatmul.mubr.bf16.vlgmr.msra.gmra.mxu1 %v8868_v11  ;;  %6521 = vtanh.f32 %v2973_v8  ;;  %v9035_v25 = vld [vmem:[#allocation10 + $0x68] ss:$16 sps:$4 sm:$0xff]  }
 0x4d4   :  { %v6510_v49 = vpop.eup %6509  ;;  %3340 = vmatpush1.bf16.msra.mxu0 %v8974_v9  ;;  %3383 = vmatpush1.bf16.msra.mxu1 %v8977_v36  ;;  %v9047_v8 = vld [vmem:[#allocation10 + $0x48] ss:$16 sps:$4 sm:$0xff]  }
 0x4d5   :  { %v2960_v23 = vadd.f32 0.5, %v2958_v27  ;;  %v2966_v29 = vmul.f32 0.5, %v6510_v49  ;;  %3341 = vmatprep.subr.bf16.mxu0 %v8980_v48  ;;  %3384 = vmatprep.subr.bf16.mxu1 %v8983_v10  ;;  %v6512_v11 = vpop.eup %6511  ;;  %v9038_v49 = vld [vmem:[#allocation10 + $0x44] ss:$16 sps:$4 sm:$0xff]   ;;  %11620 = vst [vmem:[#allocation32_spill] sm:$0xff] %v9047_v8 }
 0x4d6   :  { %3371 = vmatprep.mubr.bf16.mxu0 %v11301_v44  ;;  %3414 = vmatprep.mubr.bf16.mxu1 %v11301_v44  ;;  %v6514_v24 = vpop.eup %6513 }
 0x4d7   :  { %v2968_v42 = vadd.f32 0.5, %v2966_v29  ;;  %v2959_v54 = vmul.f32 0.5, %v6514_v24  ;;  %v2982_v63 = vmul.f32 %v6512_v11, %v2960_v23  ;;  %v9044_v29 = vld [vmem:[#allocation10 + $0x40] ss:$16 sps:$4 sm:$0xff]  }
 0x4d8   :  { %v6516_v32 = vpop.eup %6515  ;;  %3342 = vmatpush1.bf16.msra.mxu0 %v8988_v34  ;;  %3385 = vmatpush1.bf16.msra.mxu1 %v8991_v31  ;;  %11619 = vst [vmem:[#allocation31_spill] sm:$0xff] %v9044_v29 }
 0x4d9   :  { %v2980_v19 = vmul.f32 %v2968_v42, %v8726_v5  ;;  %v2967_v37 = vmul.f32 0.5, %v6516_v32  ;;  %3343 = vmatprep.subr.bf16.mxu0 %v8995_v40  ;;  %3386 = vmatprep.subr.bf16.mxu1 %v8998_v6  ;;  %v2961_v18 = vadd.f32 0.5, %v2959_v54  ;;  %v6518_v13 = vpop.eup %6517  ;;  %v9006_v5 = vld [vmem:[#allocation10 + $0xa8] ss:$16 sps:$4 sm:$0xff]   ;;  %v9050_v42 = vld [vmem:[#allocation10 + $0x24] ss:$16 sps:$4 sm:$0xff]  }
 0x4da   :  { %11621 = vst [vmem:[#allocation33_spill] sm:$0xff] %v9050_v42  ;;  %v9053_v32 = vld [vmem:[#allocation10 + $0x2c] ss:$16 sps:$4 sm:$0xff]  }
 0x4db   :  { %v9001_v35 = vadd.f32 %v2982_v63, %v2980_v19  ;;  %v2969_v51 = vadd.f32 0.5, %v2967_v37  ;;  %v2983_v17 = vmul.f32 %v6518_v13, %v2961_v18  ;;  %11622 = vst [vmem:[#allocation34_spill] sm:$0xff] %v9053_v32  ;;  %v9056_v19 = vld [vmem:[#allocation10 + $0x20] ss:$16 sps:$4 sm:$0xff]   ;;  %v9059_v63 = vld [vmem:[#allocation10 + $0x28] ss:$16 sps:$4 sm:$0xff]  }
 0x4dc   :  { %3344 = vmatpush1.bf16.msra.mxu0 %v9003_v22  ;;  %3387 = vmatpush1.bf16.msra.mxu1 %v9006_v5  ;;  %11623 = vst [vmem:[#allocation35_spill] sm:$0xff] %v9056_v19  ;;  %11624 = vst [vmem:[#allocation21_spill] sm:$0xff] %v9059_v63  ;;  %v9065_v13 = vld [vmem:[#allocation10 + $0xc] ss:$16 sps:$4 sm:$0xff]  }
 0x4dd   :  { %v2981_v45 = vmul.f32 %v2969_v51, %v8733_v33  ;;  %3345 = vmatprep.subr.bf16.mxu0 %v9010_v60  ;;  %3388 = vmatprep.subr.bf16.mxu1 %v9013_v20  ;;  %6523 = vtanh.f32 %v9001_v35  ;;  %v9026_v33 = vld [vmem:[#allocation10 + $0x64] ss:$16 sps:$4 sm:$0xff]   ;;  %11626 = vst [vmem:[#allocation37_spill] sm:$0xff] %v9065_v13 }
 0x4de   :  { %v9062_v51 = vld [vmem:[#allocation10 + $0x4] ss:$16 sps:$4 sm:$0xff]  }
 0x4df   :  { %v9017_v43 = vadd.f32 %v2983_v17, %v2981_v45  ;;  %v6520_v27 = vpop.eup %6519  ;;  %11625 = vst [vmem:[#allocation36_spill] sm:$0xff] %v9062_v51 }
 0x4e0   :  { %3346 = vmatpush1.bf16.msra.mxu0 %v9019_v53  ;;  %3389 = vmatpush1.bf16.msra.mxu1 %v9022_v46  ;;  %v6522_v23 = vpop.eup %6521  ;;  %v2976_v11 = vmul.f32 0.5, %v6520_v27  ;;  %v9068_v27 = vpop.permute.xlu1 %283 }
 0x4e1   :  { %6525 = vtanh.f32 %v9017_v43  ;;  %3347 = vmatprep.subr.bf16.mxu0 %v9026_v33  ;;  %3390 = vmatprep.subr.bf16.mxu1 %v9029_v1  ;;  %v2977_v24 = vmul.f32 0.5, %v6522_v23  ;;  %v9070_v23 = vpop.permute.xlu0 %278 }
 0x4e2   :  { %v2978_v37 = vadd.f32 0.5, %v2976_v11  ;;  %v291_v11 = vmul.f32 %v9068_v27, %v11530_v14 }
 0x4e3   :  { %v2979_v18 = vadd.f32 0.5, %v2977_v24  ;;  %v9074_v24 = vld [vmem:[#allocation10] ss:$16 sps:$4 sm:$0xff]  }
 0x4e4   :  { %3348 = vmatpush1.bf16.msra.mxu0 %v9032_v30  ;;  %3391 = vmatpush1.bf16.msra.mxu1 %v9035_v25  ;;  %11627 = vst [vmem:[#allocation38_spill] sm:$0xff] %v9074_v24 }
 0x4e5   :  { %3349 = vmatprep.subr.bf16.mxu0 %v9038_v49  ;;  %3392 = vmatprep.subr.bf16.mxu1 %v9041_v56 }
 0x4e8   :  { %3350 = vmatpush1.bf16.msra.mxu0 %v9044_v29  ;;  %3393 = vmatpush1.bf16.msra.mxu1 %v9047_v8  ;;  %v9101_v29 = vld [vmem:[#allocation8 + $0xc4] ss:$16 sps:$4 sm:$0xff]  }
 0x4e9   :  { %3351 = vmatprep.subr.bf16.mxu0 %v9050_v42  ;;  %3394 = vmatprep.subr.bf16.mxu1 %v9053_v32  ;;  %11633 = vst [vmem:[#allocation44_spill] sm:$0xff] %v9101_v29 }
 0x4ea   :  { %v6524_v54 = vpop.eup %6523 }
 0x4eb   :  { %v2988_v32 = vmul.f32 %v6524_v54, %v2978_v37  ;;  %v9085_v54 = vld [vmem:[#allocation8 + $0xec] ss:$16 sps:$4 sm:$0xff]  }
 0x4ec   :  { %3352 = vmatpush1.bf16.msra.mxu0 %v9056_v19  ;;  %3395 = vmatpush1.bf16.msra.mxu1 %v9059_v63  ;;  %v9082_v63 = vld [vmem:[#allocation8 + $0xe4] ss:$16 sps:$4 sm:$0xff]   ;;  %11630 = vst [vmem:[#allocation41_spill] sm:$0xff] %v9085_v54 }
 0x4ed   :  { %3353 = vmatprep.subr.bf16.mxu0 %v9062_v51  ;;  %3396 = vmatprep.subr.bf16.mxu1 %v9065_v13  ;;  %v3025_v45 = vpop.f32.mrf.mxu0  ;;  %v9077_v51 = vld [vmem:[#allocation10 + $0x8] ss:$16 sps:$4 sm:$0xff]   ;;  %v287_v13 = vmul.f32 %v9070_v23, %v11530_v14  ;;  %11629 = vst [vmem:[#allocation40_spill] sm:$0xff] %v9082_v63 }
 0x4ee   :  { %v6526_v17 = vpop.eup %6525  ;;  %11628 = vst [vmem:[#allocation39_spill] sm:$0xff] %v9077_v51 }
 0x4ef   :  { %v3027_v19 = vpop.f32.mrf.mxu0  ;;  %v2989_v42 = vmul.f32 %v6526_v17, %v2979_v18  ;;  %v290_v18 = vmul.f32 %v9068_v27, %v11527_v50  ;;  %v295_v8 = vadd.f32 %v287_v13, %v7721_v61 }
 0x4f0   :  { %3354 = vmatpush1.bf16.msra.mxu0 %v9074_v24  ;;  %3397 = vmatpush1.bf16.msra.mxu1 %v9077_v51  ;;  %v286_v24 = vmul.f32 %v9070_v23, %v11527_v50  ;;  %v299_v51 = vadd.f32 %v291_v11, %v7721_v61 }
 0x4f1   :  { %3425 = vmatprep.subr.bf16.mxu0 %v9082_v63  ;;  %3468 = vmatprep.subr.bf16.mxu1 %v9085_v54  ;;  %v3338_v37 = vpack.c.bf16 %v2989_v42, %v2988_v32  ;;  %v3029_v17 = vpop.f32.mrf.mxu0  ;;  %v9094_v63 = vld [vmem:[#allocation8 + $0xe0] ss:$16 sps:$4 sm:$0xff]   ;;  %v9097_v54 = vld [vmem:[#allocation8 + $0xe8] ss:$16 sps:$4 sm:$0xff]   ;;  %v298_v42 = vadd.f32 %v290_v18, %v7711_v57  ;;  %v3078_v13 = vadd.f32 %v3027_v19, %v295_v8  ;;  %v9119_v8 = vld [vmem:[#allocation8 + $0xac] ss:$16 sps:$4 sm:$0xff]   ;;  %v3068_v19 = vpop.f32.mrf.mxu1 }
 0x4f2   :  { %11631 = vst [vmem:[#allocation42_spill] sm:$0xff] %v9094_v63  ;;  %11632 = vst [vmem:[#allocation43_spill] sm:$0xff] %v9097_v54  ;;  %v294_v11 = vadd.f32 %v286_v24, %v7711_v57 }
 0x4f3   :  { %3372 = vmatmul.mubr.bf16.vlgmr.msra.gmra.mxu0 %v3338_v37  ;;  %3415 = vmatmul.mubr.bf16.vlgmr.msra.gmra.mxu1 %v3338_v37  ;;  %v3031_v14 = vpop.f32.mrf.mxu0  ;;  %v9104_v37 = vld [vmem:[#allocation8 + $0xcc] ss:$16 sps:$4 sm:$0xff]   ;;  %11638 = vst [vmem:[#allocation49_spill] sm:$0xff] %v9119_v8  ;;  %v3093_v24 = vmul.f32 0.5, %v3078_v13  ;;  %v292_v13 = vmul.f32 %v9068_v27, %v7717_v59 }
 0x4f4   :  { %3426 = vmatpush1.bf16.msra.mxu0 %v9094_v63  ;;  %3469 = vmatpush1.bf16.msra.mxu1 %v9097_v54  ;;  %v3082_v32 = vadd.f32 %v3031_v14, %v299_v51  ;;  %11634 = vst [vmem:[#allocation45_spill] sm:$0xff] %v9104_v37  ;;  %v3081_v63 = vadd.f32 %v3029_v17, %v298_v42  ;;  %v9110_v54 = vld [vmem:[#allocation8 + $0xc0] ss:$16 sps:$4 sm:$0xff]   ;;  %v9113_v14 = vld [vmem:[#allocation8 + $0xc8] ss:$16 sps:$4 sm:$0xff]  }
 0x4f5   :  { %3427 = vmatprep.subr.bf16.mxu0 %v9101_v29  ;;  %3470 = vmatprep.subr.bf16.mxu1 %v9104_v37  ;;  %11635 = vst [vmem:[#allocation46_spill] sm:$0xff] %v9110_v54  ;;  %11636 = vst [vmem:[#allocation47_spill] sm:$0xff] %v9113_v14  ;;  %v3077_v51 = vadd.f32 %v3025_v45, %v294_v11  ;;  %v9116_v29 = vld [vmem:[#allocation8 + $0xa4] ss:$16 sps:$4 sm:$0xff]   ;;  %v9122_v42 = vld [vmem:[#allocation8 + $0xa0] ss:$16 sps:$4 sm:$0xff]  }
 0x4f6   :  { %3457 = vmatprep.mubr.bf16.mxu0 %v11301_v44  ;;  %3500 = vmatprep.mubr.bf16.mxu1 %v11301_v44  ;;  %v3094_v18 = vmul.f32 0.5, %v3082_v32  ;;  %11637 = vst [vmem:[#allocation48_spill] sm:$0xff] %v9116_v29  ;;  %v3086_v17 = vmul.f32 0.5, %v3081_v63  ;;  %11639 = vst [vmem:[#allocation50_spill] sm:$0xff] %v9122_v42  ;;  %v9128_v32 = vld [vmem:[#allocation8 + $0x84] ss:$16 sps:$4 sm:$0xff]   ;;  %v3070_v63 = vpop.f32.mrf.mxu1 }
 0x4f7   :  { %v3085_v45 = vmul.f32 0.5, %v3077_v51  ;;  %11641 = vst [vmem:[#allocation52_spill] sm:$0xff] %v9128_v32  ;;  %v9131_v11 = vld [vmem:[#allocation8 + $0x8c] ss:$16 sps:$4 sm:$0xff]   ;;  %v9139_v51 = vld [vmem:[#allocation8 + $0x88] ss:$16 sps:$4 sm:$0xff]  }
 0x4f8   :  { %3428 = vmatpush1.bf16.msra.mxu0 %v9110_v54  ;;  %3471 = vmatpush1.bf16.msra.mxu1 %v9113_v14  ;;  %v9125_v54 = vld [vmem:[#allocation8 + $0xa8] ss:$16 sps:$4 sm:$0xff]   ;;  %6527 = vtanh.f32 %v3094_v18  ;;  %11642 = vst [vmem:[#allocation53_spill] sm:$0xff] %v9131_v11  ;;  %11644 = vst [vmem:[#allocation55_spill] sm:$0xff] %v9139_v51  ;;  %v288_v18 = vmul.f32 %v9070_v23, %v7717_v59 }
 0x4f9   :  { %3429 = vmatprep.subr.bf16.mxu0 %v9116_v29  ;;  %3472 = vmatprep.subr.bf16.mxu1 %v9119_v8  ;;  %11640 = vst [vmem:[#allocation51_spill] sm:$0xff] %v9125_v54  ;;  %6529 = vtanh.f32 %v3093_v24  ;;  %v9147_v24 = vld [vmem:[#allocation8 + $0x6c] ss:$16 sps:$4 sm:$0xff]   ;;  %v9194_v8 = vld [vmem:[#allocation8] ss:$16 sps:$4 sm:$0xff]  }
 0x4fa   :  { %6531 = vtanh.f32 %v3086_v17  ;;  %11646 = vst [vmem:[#allocation57_spill] sm:$0xff] %v9147_v24  ;;  %v3072_v17 = vpop.f32.mrf.mxu1  ;;  %11659 = vst [vmem:[#allocation70_spill] sm:$0xff] %v9194_v8 }
 0x4fb   :  { %6533 = vtanh.f32 %v3085_v45  ;;  %v296_v45 = vadd.f32 %v288_v18, %v7729_v3  ;;  %v9172_v18 = vld [vmem:[#allocation8 + $0x24] ss:$16 sps:$4 sm:$0xff]  }
 0x4fc   :  { %3430 = vmatpush1.bf16.msra.mxu0 %v9122_v42  ;;  %3473 = vmatpush1.bf16.msra.mxu1 %v9125_v54  ;;  %v9136_v42 = vld [vmem:[#allocation8 + $0x80] ss:$16 sps:$4 sm:$0xff]   ;;  %v9158_v54 = vld [vmem:[#allocation8 + $0x44] ss:$16 sps:$4 sm:$0xff]   ;;  %11653 = vst [vmem:[#allocation64_spill] sm:$0xff] %v9172_v18 }
 0x4fd   :  { %3431 = vmatprep.subr.bf16.mxu0 %v9128_v32  ;;  %3474 = vmatprep.subr.bf16.mxu1 %v9131_v11  ;;  %11643 = vst [vmem:[#allocation54_spill] sm:$0xff] %v9136_v42  ;;  %v9144_v32 = vld [vmem:[#allocation8 + $0x64] ss:$16 sps:$4 sm:$0xff]   ;;  %v300_v11 = vadd.f32 %v292_v13, %v7729_v3  ;;  %11649 = vst [vmem:[#allocation60_spill] sm:$0xff] %v9158_v54  ;;  %v3079_v13 = vadd.f32 %v3068_v19, %v296_v45 }
 0x4fe   :  { %11645 = vst [vmem:[#allocation56_spill] sm:$0xff] %v9144_v32 }
 0x4ff   :  { %v3083_v59 = vadd.f32 %v3072_v17, %v300_v11  ;;  %v293_v11 = vmul.f32 %v9068_v27, %v7741_v39  ;;  %v9175_v17 = vld [vmem:[#allocation8 + $0x2c] ss:$16 sps:$4 sm:$0xff]   ;;  %v9183_v27 = vld [vmem:[#allocation8 + $0x28] ss:$16 sps:$4 sm:$0xff]  }
 0x500   :  { %3432 = vmatpush1.bf16.msra.mxu0 %v9136_v42  ;;  %3475 = vmatpush1.bf16.msra.mxu1 %v9139_v51  ;;  %v9151_v42 = vld [vmem:[#allocation8 + $0x60] ss:$16 sps:$4 sm:$0xff]   ;;  %v9154_v51 = vld [vmem:[#allocation8 + $0x68] ss:$16 sps:$4 sm:$0xff]   ;;  %11654 = vst [vmem:[#allocation65_spill] sm:$0xff] %v9175_v17  ;;  %11656 = vst [vmem:[#allocation67_spill] sm:$0xff] %v9183_v27 }
 0x501   :  { %3433 = vmatprep.subr.bf16.mxu0 %v9144_v32  ;;  %3476 = vmatprep.subr.bf16.mxu1 %v9147_v24  ;;  %11647 = vst [vmem:[#allocation58_spill] sm:$0xff] %v9151_v42  ;;  %11648 = vst [vmem:[#allocation59_spill] sm:$0xff] %v9154_v51  ;;  %v9161_v32 = vld [vmem:[#allocation8 + $0x4c] ss:$16 sps:$4 sm:$0xff]   ;;  %v9164_v24 = vld [vmem:[#allocation8 + $0x40] ss:$16 sps:$4 sm:$0xff]   ;;  %6535 = vtanh.f32 %v3083_v59 }
 0x502   :  { %11650 = vst [vmem:[#allocation61_spill] sm:$0xff] %v9161_v32  ;;  %11651 = vst [vmem:[#allocation62_spill] sm:$0xff] %v9164_v24  ;;  %6537 = vtanh.f32 %v3079_v13  ;;  %v9180_v59 = vld [vmem:[#allocation8 + $0x20] ss:$16 sps:$4 sm:$0xff]   ;;  %v9190_v13 = vld [vmem:[#allocation8 + $0xc] ss:$16 sps:$4 sm:$0xff]  }
 0x503   :  { %11655 = vst [vmem:[#allocation66_spill] sm:$0xff] %v9180_v59  ;;  %11658 = vst [vmem:[#allocation69_spill] sm:$0xff] %v9190_v13 }
 0x504   :  { %3434 = vmatpush1.bf16.msra.mxu0 %v9151_v42  ;;  %3477 = vmatpush1.bf16.msra.mxu1 %v9154_v51  ;;  %v9167_v42 = vld [vmem:[#allocation8 + $0x48] ss:$16 sps:$4 sm:$0xff]  }
 0x505   :  { %3435 = vmatprep.subr.bf16.mxu0 %v9158_v54  ;;  %3478 = vmatprep.subr.bf16.mxu1 %v9161_v32  ;;  %11652 = vst [vmem:[#allocation63_spill] sm:$0xff] %v9167_v42  ;;  %v6528_v19 = vpop.eup %6527  ;;  %v301_v54 = vadd.f32 %v293_v11, %v11542_v2 }
 0x506   :  { %v6530_v45 = vpop.eup %6529 }
 0x507   :  { %v6532_v32 = vpop.eup %6531 }
 0x508   :  { %3436 = vmatpush1.bf16.msra.mxu0 %v9164_v24  ;;  %3479 = vmatpush1.bf16.msra.mxu1 %v9167_v42  ;;  %v289_v24 = vmul.f32 %v9070_v23, %v7741_v39  ;;  %v3074_v42 = vpop.f32.mrf.mxu1  ;;  %v6534_v23 = vpop.eup %6533  ;;  %v3097_v39 = vmul.f32 0.5, %v6530_v45 }
 0x509   :  { %3437 = vmatprep.subr.bf16.mxu0 %v9172_v18  ;;  %3480 = vmatprep.subr.bf16.mxu1 %v9175_v17  ;;  %v3098_v18 = vmul.f32 0.5, %v6528_v19  ;;  %v9187_v17 = vld [vmem:[#allocation8 + $0x4] ss:$16 sps:$4 sm:$0xff]   ;;  %v3084_v3 = vadd.f32 %v3074_v42, %v301_v54  ;;  %v9197_v19 = vld [vmem:[#allocation8 + $0x8] ss:$16 sps:$4 sm:$0xff]   ;;  %v3089_v11 = vmul.f32 0.5, %v6534_v23 }
 0x50a   :  { %11657 = vst [vmem:[#allocation68_spill] sm:$0xff] %v9187_v17  ;;  %v297_v51 = vadd.f32 %v289_v24, %v11542_v2  ;;  %11660 = vst [vmem:[#allocation71_spill] sm:$0xff] %v9197_v19  ;;  %v3099_v45 = vadd.f32 0.5, %v3097_v39  ;;  %v11661_v54 = vld [vmem:[#allocation15_spill] sm:$0xff]  ;;  %v11662_v23 = vld [vmem:[#allocation30_spill] sm:$0xff] }
 0x50b   :  { %v3104_v24 = vmul.f32 0.5, %v3084_v3  ;;  %v3091_v42 = vadd.f32 0.5, %v3089_v11  ;;  %v11665_v3 = vld [vmem:[#allocation29_spill] sm:$0xff]  ;;  %v11669_v11 = vld [vmem:[#allocation28_spill] sm:$0xff] }
 0x50c   :  { %3438 = vmatpush1.bf16.msra.mxu0 %v9180_v59  ;;  %3481 = vmatpush1.bf16.msra.mxu1 %v9183_v27  ;;  %v3090_v59 = vmul.f32 0.5, %v6532_v32  ;;  %v3100_v27 = vadd.f32 0.5, %v3098_v18  ;;  %v3111_v39 = vmul.f32 %v3099_v45, %v11665_v3  ;;  %v11666_v18 = vld [vmem:[#allocation26_spill] sm:$0xff] }
 0x50d   :  { %3439 = vmatprep.subr.bf16.mxu0 %v9187_v17  ;;  %3482 = vmatprep.subr.bf16.mxu1 %v9190_v13  ;;  %v3080_v17 = vadd.f32 %v3070_v63, %v297_v51  ;;  %v11663_v51 = vld [vmem:[#allocation24_spill] sm:$0xff]  ;;  %6539 = vtanh.f32 %v3104_v24 }
 0x50e   :  { %v3092_v13 = vadd.f32 0.5, %v3090_v59  ;;  %v3112_v63 = vmul.f32 %v3100_v27, %v11662_v23  ;;  %v11667_v59 = vld [vmem:[#allocation27_spill] sm:$0xff]  ;;  %v9222_v45 = vld [vmem:[#allocation3 + $0xa0] ss:$16 sps:$4 sm:$0xff]   ;;  %v9229_v24 = vld [vmem:[#allocation3 + $0x84] ss:$16 sps:$4 sm:$0xff]  }
 0x50f   :  { %v3103_v32 = vmul.f32 0.5, %v3080_v17  ;;  %11672 = vst [vmem:[#allocation75_spill] sm:$0xff] %v9222_v45  ;;  %11674 = vst [vmem:[#allocation89_spill] sm:$0xff] %v9229_v24  ;;  %v9248_v3 = vld [vmem:[#allocation3 + $0x60] ss:$16 sps:$4 sm:$0xff]  }
 0x510   :  { %3440 = vmatpush1.bf16.msra.mxu0 %v9194_v8  ;;  %3483 = vmatpush1.bf16.msra.mxu1 %v9197_v19  ;;  %11680 = vst [vmem:[#allocation81_spill] sm:$0xff] %v9248_v3 }
 0x511   :  { %3556 = vmatprep.subr.bf16.mxu0 %v8795_v52  ;;  %3599 = vmatprep.subr.bf16.mxu1 %v8798_v62  ;;  %v11664_v52 = vld [vmem:[#allocation25_spill] sm:$0xff]  ;;  %v6536_v62 = vpop.eup %6535  ;;  %6541 = vtanh.f32 %v3103_v32  ;;  %v9236_v32 = vld [vmem:[#allocation3 + $0x80] ss:$16 sps:$4 sm:$0xff]  }
 0x512   :  { %11676 = vst [vmem:[#allocation78_spill] sm:$0xff] %v9236_v32 }
 0x513   :  { %3458 = vmatmul.mubr.bf16.vlgmr.msra.gmra.mxu0 %v8922_v55  ;;  %3501 = vmatmul.mubr.bf16.vlgmr.msra.gmra.mxu1 %v8922_v55  ;;  %v3114_v55 = vmul.f32 %v6536_v62, %v3092_v13  ;;  %v9225_v13 = vld [vmem:[#allocation3 + $0xa8] ss:$16 sps:$4 sm:$0xff]  }
 0x514   :  { %3557 = vmatpush1.bf16.msra.mxu0 %v8807_v41  ;;  %3600 = vmatpush1.bf16.msra.mxu1 %v11661_v54  ;;  %v6538_v41 = vpop.eup %6537  ;;  %v9217_v54 = vld [vmem:[#allocation3 + $0xac] ss:$16 sps:$4 sm:$0xff]   ;;  %11673 = vst [vmem:[#allocation76_spill] sm:$0xff] %v9225_v13 }
 0x515   :  { %3558 = vmatprep.subr.bf16.mxu0 %v11663_v51  ;;  %3601 = vmatprep.subr.bf16.mxu1 %v11664_v52  ;;  %v3113_v17 = vmul.f32 %v6538_v41, %v3091_v42  ;;  %v9214_v27 = vadd.f32 %v3114_v55, %v3112_v63  ;;  %11670 = vst [vmem:[#allocation73_spill] sm:$0xff] %v9217_v54  ;;  %v9232_v42 = vld [vmem:[#allocation3 + $0x8c] ss:$16 sps:$4 sm:$0xff]   ;;  %v9239_v63 = vld [vmem:[#allocation3 + $0x88] ss:$16 sps:$4 sm:$0xff]  }
 0x516   :  { %3588 = vmatprep.mubr.bf16.mxu0 %v11301_v44  ;;  %3631 = vmatprep.mubr.bf16.mxu1 %v11301_v44  ;;  %11675 = vst [vmem:[#allocation77_spill] sm:$0xff] %v9232_v42  ;;  %11677 = vst [vmem:[#allocation79_spill] sm:$0xff] %v9239_v63  ;;  %v9242_v51 = vld [vmem:[#allocation3 + $0x64] ss:$16 sps:$4 sm:$0xff]   ;;  %v9245_v52 = vld [vmem:[#allocation3 + $0x6c] ss:$16 sps:$4 sm:$0xff]  }
 0x517   :  { %11668 = vst [vmem:[#allocation72_spill] sm:$0xff] %v9214_v27  ;;  %v9220_v23 = vadd.f32 %v3113_v17, %v3111_v39  ;;  %6543 = vtanh.f32 %v9214_v27  ;;  %11678 = vst [vmem:[#allocation80_spill] sm:$0xff] %v9242_v51  ;;  %v9251_v39 = vld [vmem:[#allocation3 + $0x68] ss:$16 sps:$4 sm:$0xff]   ;;  %v9254_v55 = vld [vmem:[#allocation3 + $0x44] ss:$16 sps:$4 sm:$0xff]  }
 0x518   :  { %3559 = vmatpush1.bf16.msra.mxu0 %v11666_v18  ;;  %3602 = vmatpush1.bf16.msra.mxu1 %v11667_v59  ;;  %11679 = vst [vmem:[#allocation90_spill] sm:$0xff] %v9245_v52  ;;  %11681 = vst [vmem:[#allocation82_spill] sm:$0xff] %v9251_v39  ;;  %v9257_v41 = vld [vmem:[#allocation3 + $0x4c] ss:$16 sps:$4 sm:$0xff]   ;;  %v9260_v17 = vld [vmem:[#allocation3 + $0x40] ss:$16 sps:$4 sm:$0xff]  }
 0x519   :  { %3560 = vmatprep.subr.bf16.mxu0 %v11669_v11  ;;  %3603 = vmatprep.subr.bf16.mxu1 %v9217_v54  ;;  %11671 = vst [vmem:[#allocation74_spill] sm:$0xff] %v9220_v23  ;;  %6545 = vtanh.f32 %v9220_v23  ;;  %11682 = vst [vmem:[#allocation83_spill] sm:$0xff] %v9254_v55  ;;  %v9263_v11 = vld [vmem:[#allocation3 + $0x48] ss:$16 sps:$4 sm:$0xff]  }
 0x51a   :  { %v6540_v62 = vpop.eup %6539  ;;  %11683 = vst [vmem:[#allocation84_spill] sm:$0xff] %v9257_v41  ;;  %11684 = vst [vmem:[#allocation85_spill] sm:$0xff] %v9260_v17 }
 0x51b   :  { %v3108_v59 = vmul.f32 0.5, %v6540_v62  ;;  %11685 = vst [vmem:[#allocation86_spill] sm:$0xff] %v9263_v11 }
 0x51c   :  { %3561 = vmatpush1.bf16.msra.mxu0 %v9222_v45  ;;  %3604 = vmatpush1.bf16.msra.mxu1 %v9225_v13 }
 0x51d   :  { %3562 = vmatprep.subr.bf16.mxu0 %v9229_v24  ;;  %3605 = vmatprep.subr.bf16.mxu1 %v9232_v42 }
 0x51e   :  { %v6542_v18 = vpop.eup %6541 }
 0x520   :  { %3563 = vmatpush1.bf16.msra.mxu0 %v9236_v32  ;;  %3606 = vmatpush1.bf16.msra.mxu1 %v9239_v63  ;;  %v9278_v63 = vld [vmem:[#allocation3 + $0x4] ss:$16 sps:$4 sm:$0xff]  }
 0x521   :  { %3564 = vmatprep.subr.bf16.mxu0 %v9242_v51  ;;  %3607 = vmatprep.subr.bf16.mxu1 %v9245_v52  ;;  %v3110_v52 = vadd.f32 0.5, %v3108_v59  ;;  %v9272_v51 = vld [vmem:[#allocation3 + $0x20] ss:$16 sps:$4 sm:$0xff]   ;;  %11690 = vst [vmem:[#allocation93_spill] sm:$0xff] %v9278_v63 }
 0x522   :  { %11688 = vst [vmem:[#allocation91_spill] sm:$0xff] %v9272_v51 }
 0x524   :  { %3565 = vmatpush1.bf16.msra.mxu0 %v9248_v3  ;;  %3608 = vmatpush1.bf16.msra.mxu1 %v9251_v39  ;;  %v3107_v3 = vmul.f32 0.5, %v6542_v18  ;;  %v9266_v39 = vld [vmem:[#allocation3 + $0x24] ss:$16 sps:$4 sm:$0xff]  }
 0x525   :  { %3566 = vmatprep.subr.bf16.mxu0 %v9254_v55  ;;  %3609 = vmatprep.subr.bf16.mxu1 %v9257_v41  ;;  %11686 = vst [vmem:[#allocation87_spill] sm:$0xff] %v9266_v39  ;;  %v9269_v55 = vld [vmem:[#allocation3 + $0x2c] ss:$16 sps:$4 sm:$0xff]   ;;  %v6544_v41 = vpop.eup %6543 }
 0x526   :  { %11687 = vst [vmem:[#allocation88_spill] sm:$0xff] %v9269_v55  ;;  %v6546_v62 = vpop.eup %6545  ;;  %v3109_v18 = vadd.f32 0.5, %v3107_v3  ;;  %v9295_v3 = vld [vmem:[#allocation7 + $0xec] ss:$16 sps:$4 sm:$0xff]  }
 0x527   :  { %11695 = vst [vmem:[#allocation98_spill] sm:$0xff] %v9295_v3 }
 0x528   :  { %3567 = vmatpush1.bf16.msra.mxu0 %v9260_v17  ;;  %3610 = vmatpush1.bf16.msra.mxu1 %v9263_v11  ;;  %v9275_v17 = vld [vmem:[#allocation3 + $0x28] ss:$16 sps:$4 sm:$0xff]   ;;  %v3120_v11 = vmul.f32 %v6544_v41, %v3110_v52  ;;  %v3119_v59 = vmul.f32 %v6546_v62, %v3109_v18  ;;  %v9292_v52 = vld [vmem:[#allocation7 + $0xe4] ss:$16 sps:$4 sm:$0xff]   ;;  %v9300_v41 = vld [vmem:[#allocation7 + $0xe0] ss:$16 sps:$4 sm:$0xff]  }
 0x529   :  { %3568 = vmatprep.subr.bf16.mxu0 %v9266_v39  ;;  %3611 = vmatprep.subr.bf16.mxu1 %v9269_v55  ;;  %11689 = vst [vmem:[#allocation92_spill] sm:$0xff] %v9275_v17  ;;  %v9281_v39 = vld [vmem:[#allocation3 + $0xc] ss:$16 sps:$4 sm:$0xff]   ;;  %v9284_v55 = vld [vmem:[#allocation3] ss:$16 sps:$4 sm:$0xff]   ;;  %11694 = vst [vmem:[#allocation97_spill] sm:$0xff] %v9292_v52 }
 0x52a   :  { %11691 = vst [vmem:[#allocation94_spill] sm:$0xff] %v9281_v39  ;;  %11692 = vst [vmem:[#allocation95_spill] sm:$0xff] %v9284_v55  ;;  %v9303_v62 = vld [vmem:[#allocation7 + $0xe8] ss:$16 sps:$4 sm:$0xff]   ;;  %v9309_v18 = vld [vmem:[#allocation7 + $0xcc] ss:$16 sps:$4 sm:$0xff]  }
 0x52b   :  { %11696 = vst [vmem:[#allocation99_spill] sm:$0xff] %v9300_v41  ;;  %11697 = vst [vmem:[#allocation100_spill] sm:$0xff] %v9303_v62 }
 0x52c   :  { %3569 = vmatpush1.bf16.msra.mxu0 %v9272_v51  ;;  %3612 = vmatpush1.bf16.msra.mxu1 %v9275_v17  ;;  %v9287_v51 = vld [vmem:[#allocation3 + $0x8] ss:$16 sps:$4 sm:$0xff]   ;;  %v9290_v17 = vpack.c.bf16 %v3120_v11, %v3119_v59  ;;  %v9306_v11 = vld [vmem:[#allocation7 + $0xc4] ss:$16 sps:$4 sm:$0xff]   ;;  %11699 = vst [vmem:[#allocation102_spill] sm:$0xff] %v9309_v18 }
 0x52d   :  { %3570 = vmatprep.subr.bf16.mxu0 %v9278_v63  ;;  %3613 = vmatprep.subr.bf16.mxu1 %v9281_v39  ;;  %11693 = vst [vmem:[#allocation96_spill] sm:$0xff] %v9287_v51  ;;  %11698 = vst [vmem:[#allocation101_spill] sm:$0xff] %v9306_v11  ;;  %v9314_v59 = vld [vmem:[#allocation7 + $0xc0] ss:$16 sps:$4 sm:$0xff]  }
 0x52e   :  { %11700 = vst [vmem:[#allocation103_spill] sm:$0xff] %v9314_v59 }
 0x530   :  { %3571 = vmatpush1.bf16.msra.mxu0 %v9284_v55  ;;  %3614 = vmatpush1.bf16.msra.mxu1 %v9287_v51 }
 0x531   :  { %3687 = vmatprep.subr.bf16.mxu0 %v9292_v52  ;;  %3730 = vmatprep.subr.bf16.mxu1 %v9295_v3  ;;  %v9329_v3 = vld [vmem:[#allocation7 + $0xa8] ss:$16 sps:$4 sm:$0xff]  }
 0x532   :  { %11705 = vst [vmem:[#allocation108_spill] sm:$0xff] %v9329_v3 }
 0x533   :  { %3589 = vmatmul.mubr.bf16.vlgmr.msra.gmra.mxu0 %v9290_v17  ;;  %3632 = vmatmul.mubr.bf16.vlgmr.msra.gmra.mxu1 %v9290_v17 }
 0x534   :  { %3688 = vmatpush1.bf16.msra.mxu0 %v9300_v41  ;;  %3731 = vmatpush1.bf16.msra.mxu1 %v9303_v62  ;;  %v9317_v41 = vld [vmem:[#allocation7 + $0xc8] ss:$16 sps:$4 sm:$0xff]   ;;  %v9320_v62 = vld [vmem:[#allocation7 + $0xa4] ss:$16 sps:$4 sm:$0xff]  }
 0x535   :  { %3689 = vmatprep.subr.bf16.mxu0 %v9306_v11  ;;  %3732 = vmatprep.subr.bf16.mxu1 %v9309_v18  ;;  %11701 = vst [vmem:[#allocation104_spill] sm:$0xff] %v9317_v41  ;;  %11702 = vst [vmem:[#allocation105_spill] sm:$0xff] %v9320_v62  ;;  %v9323_v11 = vld [vmem:[#allocation7 + $0xac] ss:$16 sps:$4 sm:$0xff]   ;;  %v9326_v18 = vld [vmem:[#allocation7 + $0xa0] ss:$16 sps:$4 sm:$0xff]  }
 0x536   :  { %3719 = vmatprep.mubr.bf16.mxu0 %v11301_v44  ;;  %3762 = vmatprep.mubr.bf16.mxu1 %v11301_v44  ;;  %11703 = vst [vmem:[#allocation106_spill] sm:$0xff] %v9323_v11  ;;  %11704 = vst [vmem:[#allocation107_spill] sm:$0xff] %v9326_v18 }
 0x538   :  { %3690 = vmatpush1.bf16.msra.mxu0 %v9314_v59  ;;  %3733 = vmatpush1.bf16.msra.mxu1 %v9317_v41  ;;  %v9332_v59 = vld [vmem:[#allocation7 + $0x84] ss:$16 sps:$4 sm:$0xff]   ;;  %v9335_v41 = vld [vmem:[#allocation7 + $0x8c] ss:$16 sps:$4 sm:$0xff]  }
 0x539   :  { %3691 = vmatprep.subr.bf16.mxu0 %v9320_v62  ;;  %3734 = vmatprep.subr.bf16.mxu1 %v9323_v11  ;;  %11706 = vst [vmem:[#allocation109_spill] sm:$0xff] %v9332_v59  ;;  %11707 = vst [vmem:[#allocation110_spill] sm:$0xff] %v9335_v41  ;;  %v9338_v62 = vld [vmem:[#allocation7 + $0x80] ss:$16 sps:$4 sm:$0xff]   ;;  %v9341_v11 = vld [vmem:[#allocation7 + $0x88] ss:$16 sps:$4 sm:$0xff]  }
 0x53a   :  { %11708 = vst [vmem:[#allocation111_spill] sm:$0xff] %v9338_v62  ;;  %11709 = vst [vmem:[#allocation112_spill] sm:$0xff] %v9341_v11 }
 0x53c   :  { %3692 = vmatpush1.bf16.msra.mxu0 %v9326_v18  ;;  %3735 = vmatpush1.bf16.msra.mxu1 %v9329_v3  ;;  %v9344_v18 = vld [vmem:[#allocation7 + $0x64] ss:$16 sps:$4 sm:$0xff]   ;;  %v9347_v3 = vld [vmem:[#allocation7 + $0x6c] ss:$16 sps:$4 sm:$0xff]  }
 0x53d   :  { %3693 = vmatprep.subr.bf16.mxu0 %v9332_v59  ;;  %3736 = vmatprep.subr.bf16.mxu1 %v9335_v41  ;;  %11710 = vst [vmem:[#allocation113_spill] sm:$0xff] %v9344_v18  ;;  %11711 = vst [vmem:[#allocation114_spill] sm:$0xff] %v9347_v3  ;;  %v9350_v59 = vld [vmem:[#allocation7 + $0x60] ss:$16 sps:$4 sm:$0xff]   ;;  %v9353_v41 = vld [vmem:[#allocation7 + $0x68] ss:$16 sps:$4 sm:$0xff]  }
 0x53e   :  { %11712 = vst [vmem:[#allocation115_spill] sm:$0xff] %v9350_v59  ;;  %11713 = vst [vmem:[#allocation116_spill] sm:$0xff] %v9353_v41 }
 0x540   :  { %3694 = vmatpush1.bf16.msra.mxu0 %v9338_v62  ;;  %3737 = vmatpush1.bf16.msra.mxu1 %v9341_v11  ;;  %v9356_v62 = vld [vmem:[#allocation7 + $0x44] ss:$16 sps:$4 sm:$0xff]   ;;  %v9359_v11 = vld [vmem:[#allocation7 + $0x4c] ss:$16 sps:$4 sm:$0xff]  }
 0x541   :  { %3695 = vmatprep.subr.bf16.mxu0 %v9344_v18  ;;  %3738 = vmatprep.subr.bf16.mxu1 %v9347_v3  ;;  %11714 = vst [vmem:[#allocation117_spill] sm:$0xff] %v9356_v62  ;;  %11715 = vst [vmem:[#allocation118_spill] sm:$0xff] %v9359_v11  ;;  %v9362_v18 = vld [vmem:[#allocation7 + $0x40] ss:$16 sps:$4 sm:$0xff]   ;;  %v9365_v3 = vld [vmem:[#allocation7 + $0x48] ss:$16 sps:$4 sm:$0xff]  }
 0x542   :  { %11716 = vst [vmem:[#allocation119_spill] sm:$0xff] %v9362_v18  ;;  %11717 = vst [vmem:[#allocation120_spill] sm:$0xff] %v9365_v3 }
 0x544   :  { %3696 = vmatpush1.bf16.msra.mxu0 %v9350_v59  ;;  %3739 = vmatpush1.bf16.msra.mxu1 %v9353_v41  ;;  %v9368_v59 = vld [vmem:[#allocation7 + $0x24] ss:$16 sps:$4 sm:$0xff]   ;;  %v9371_v41 = vld [vmem:[#allocation7 + $0x2c] ss:$16 sps:$4 sm:$0xff]  }
 0x545   :  { %3697 = vmatprep.subr.bf16.mxu0 %v9356_v62  ;;  %3740 = vmatprep.subr.bf16.mxu1 %v9359_v11  ;;  %11718 = vst [vmem:[#allocation121_spill] sm:$0xff] %v9368_v59  ;;  %11719 = vst [vmem:[#allocation122_spill] sm:$0xff] %v9371_v41  ;;  %v9374_v62 = vld [vmem:[#allocation7 + $0x20] ss:$16 sps:$4 sm:$0xff]   ;;  %v9377_v11 = vld [vmem:[#allocation7 + $0x28] ss:$16 sps:$4 sm:$0xff]  }
 0x546   :  { %11720 = vst [vmem:[#allocation123_spill] sm:$0xff] %v9374_v62  ;;  %11721 = vst [vmem:[#allocation124_spill] sm:$0xff] %v9377_v11 }
 0x548   :  { %3698 = vmatpush1.bf16.msra.mxu0 %v9362_v18  ;;  %3741 = vmatpush1.bf16.msra.mxu1 %v9365_v3  ;;  %v9380_v18 = vld [vmem:[#allocation7 + $0x4] ss:$16 sps:$4 sm:$0xff]   ;;  %v9383_v3 = vld [vmem:[#allocation7 + $0xc] ss:$16 sps:$4 sm:$0xff]  }
 0x549   :  { %3699 = vmatprep.subr.bf16.mxu0 %v9368_v59  ;;  %3742 = vmatprep.subr.bf16.mxu1 %v9371_v41  ;;  %11722 = vst [vmem:[#allocation125_spill] sm:$0xff] %v9380_v18  ;;  %11723 = vst [vmem:[#allocation126_spill] sm:$0xff] %v9383_v3  ;;  %v9386_v59 = vld [vmem:[#allocation7] ss:$16 sps:$4 sm:$0xff]   ;;  %v9389_v41 = vld [vmem:[#allocation7 + $0x8] ss:$16 sps:$4 sm:$0xff]  }
 0x54a   :  { %11724 = vst [vmem:[#allocation127_spill] sm:$0xff] %v9386_v59  ;;  %11725 = vst [vmem:[#allocation128_spill] sm:$0xff] %v9389_v41 }
 0x54c   :  { %3700 = vmatpush1.bf16.msra.mxu0 %v9374_v62  ;;  %3743 = vmatpush1.bf16.msra.mxu1 %v9377_v11  ;;  %v9392_v62 = vld [vmem:[#allocation5 + $0xe4] ss:$16 sps:$4 sm:$0xff]   ;;  %v9395_v11 = vld [vmem:[#allocation5 + $0xec] ss:$16 sps:$4 sm:$0xff]  }
 0x54d   :  { %3701 = vmatprep.subr.bf16.mxu0 %v9380_v18  ;;  %3744 = vmatprep.subr.bf16.mxu1 %v9383_v3  ;;  %11726 = vst [vmem:[#allocation129_spill] sm:$0xff] %v9392_v62  ;;  %11727 = vst [vmem:[#allocation130_spill] sm:$0xff] %v9395_v11 }
 0x550   :  { %3702 = vmatpush1.bf16.msra.mxu0 %v9386_v59  ;;  %3745 = vmatpush1.bf16.msra.mxu1 %v9389_v41 }
 0x551   :  { %3773 = vmatprep.subr.bf16.mxu0 %v9392_v62  ;;  %3816 = vmatprep.subr.bf16.mxu1 %v9395_v11 }
 0x573   :  { %v3156_v18 = vpop.f32.mrf.mxu0  ;;  %v3199_v52 = vpop.f32.mrf.mxu1 }
 0x575   :  { %v3158_v51 = vpop.f32.mrf.mxu0  ;;  %v3201_v3 = vpop.f32.mrf.mxu1 }
 0x577   :  { %v3160_v55 = vpop.f32.mrf.mxu0  ;;  %v3203_v39 = vpop.f32.mrf.mxu1 }
 0x579   :  { %v3162_v63 = vpop.f32.mrf.mxu0  ;;  %v3205_v59 = vpop.f32.mrf.mxu1 }
 0x593   :  { %v3242_v32 = vpop.f32.mrf.mxu0  ;;  %v3285_v42 = vpop.f32.mrf.mxu1 }
 0x594   :  { %v3243_v24 = vadd.f32 %v3242_v32, %v3156_v18  ;;  %v3286_v62 = vadd.f32 %v3285_v42, %v3199_v52 }
 0x595   :  { %v3244_v41 = vpop.f32.mrf.mxu0  ;;  %v3287_v13 = vpop.f32.mrf.mxu1 }
 0x596   :  { %v3294_v45 = vadd.f32 %v3243_v24, %v8069_v4  ;;  %v3245_v54 = vadd.f32 %v3244_v41, %v3158_v51  ;;  %v3296_v29 = vadd.f32 %v3286_v62, %v8080_v15 }
 0x597   :  { %v3246_v23 = vpop.f32.mrf.mxu0  ;;  %v3289_v8 = vpop.f32.mrf.mxu1 }
 0x598   :  { %v3302_v27 = vmul.f32 0.5, %v3294_v45  ;;  %v3295_v11 = vadd.f32 %v3245_v54, %v8074_v7  ;;  %v3247_v19 = vadd.f32 %v3246_v23, %v3160_v55  ;;  %v3290_v18 = vadd.f32 %v3289_v8, %v3203_v39 }
 0x599   :  { %v3248_v2 = vpop.f32.mrf.mxu0  ;;  %v3291_v45 = vpop.f32.mrf.mxu1  ;;  %v3288_v23 = vadd.f32 %v3287_v13, %v3201_v3 }
 0x59a   :  { %6547 = vtanh.f32 %v3302_v27  ;;  %v3310_v14 = vmul.f32 0.5, %v3295_v11  ;;  %v3249_v37 = vadd.f32 %v3248_v2, %v3162_v63  ;;  %v3298_v32 = vadd.f32 %v3247_v19, %v8069_v4 }
 0x59b   :  { %v3300_v54 = vadd.f32 %v3290_v18, %v8080_v15  ;;  %v3292_v27 = vadd.f32 %v3291_v45, %v3205_v59  ;;  %v3297_v55 = vadd.f32 %v3288_v23, %v8101_v12 }
 0x59c   :  { %6549 = vtanh.f32 %v3310_v14  ;;  %v3299_v24 = vadd.f32 %v3249_v37, %v8074_v7  ;;  %v3303_v42 = vmul.f32 0.5, %v3298_v32 }
 0x59d   :  { %6551 = vtanh.f32 %v3296_v29  ;;  %v3301_v2 = vadd.f32 %v3292_v27, %v8101_v12  ;;  %v3320_v63 = vmul.f32 0.5, %v3297_v55 }
 0x59e   :  { %v3311_v51 = vmul.f32 0.5, %v3299_v24  ;;  %6553 = vtanh.f32 %v3303_v42 }
 0x59f   :  { %v3321_v29 = vmul.f32 0.5, %v3301_v2 }
 0x5a0   :  { %6555 = vtanh.f32 %v3311_v51 }
 0x5a1   :  { %6557 = vtanh.f32 %v3300_v54 }
 0x5a2   :  { %6559 = vtanh.f32 %v3320_v63 }
 0x5a3   :  { %6561 = vtanh.f32 %v3321_v29 }
 0x5a7   :  { %v6548_v19 = vpop.eup %6547 }
 0x5a8   :  { %v3306_v14 = vmul.f32 0.5, %v6548_v19 }
 0x5a9   :  { %v6550_v8 = vpop.eup %6549 }
 0x5aa   :  { %v3308_v37 = vadd.f32 0.5, %v3306_v14  ;;  %v3314_v39 = vmul.f32 0.5, %v6550_v8  ;;  %v6552_v52 = vpop.eup %6551 }
 0x5ab   :  { %v6554_v41 = vpop.eup %6553 }
 0x5ac   :  { %v3316_v62 = vadd.f32 0.5, %v3314_v39  ;;  %v3307_v32 = vmul.f32 0.5, %v6554_v41  ;;  %v3330_v3 = vmul.f32 %v6552_v52, %v3308_v37 }
 0x5ad   :  { %v6556_v11 = vpop.eup %6555 }
 0x5ae   :  { %v3328_v13 = vmul.f32 %v3316_v62, %v8915_v47  ;;  %v3315_v59 = vmul.f32 0.5, %v6556_v11  ;;  %v3309_v18 = vadd.f32 0.5, %v3307_v32  ;;  %v6558_v51 = vpop.eup %6557  ;;  %v9420_v11 = vld [vmem:[#allocation5 + $0xe0] ss:$16 sps:$4 sm:$0xff]   ;;  %v9423_v32 = vld [vmem:[#allocation5 + $0xe8] ss:$16 sps:$4 sm:$0xff]  }
 0x5af   :  { %v6560_v27 = vpop.eup %6559 }
 0x5b0   :  { %v9407_v24 = vadd.f32 %v3330_v3, %v3328_v13  ;;  %v3317_v42 = vadd.f32 0.5, %v3315_v59  ;;  %v3331_v54 = vmul.f32 %v6558_v51, %v3309_v18  ;;  %v6562_v55 = vpop.eup %6561  ;;  %v3324_v47 = vmul.f32 0.5, %v6560_v27  ;;  %v9426_v13 = vld [vmem:[#allocation5 + $0xc4] ss:$16 sps:$4 sm:$0xff]   ;;  %v9429_v3 = vld [vmem:[#allocation5 + $0xcc] ss:$16 sps:$4 sm:$0xff]  }
 0x5b1   :  { %v3325_v2 = vmul.f32 0.5, %v6562_v55  ;;  %11728 = vst [vmem:[#allocation131_spill] sm:$0xff] %v9426_v13  ;;  %11729 = vst [vmem:[#allocation132_spill] sm:$0xff] %v9429_v3  ;;  %v9437_v51 = vld [vmem:[#allocation5 + $0xc8] ss:$16 sps:$4 sm:$0xff]  }
 0x5b2   :  { %v3329_v45 = vmul.f32 %v3317_v42, %v8919_v16  ;;  %6563 = vtanh.f32 %v9407_v24  ;;  %v3326_v14 = vadd.f32 0.5, %v3324_v47  ;;  %v9434_v42 = vld [vmem:[#allocation5 + $0xc0] ss:$16 sps:$4 sm:$0xff]   ;;  %11731 = vst [vmem:[#allocation134_spill] sm:$0xff] %v9437_v51 }
 0x5b3   :  { %v3327_v8 = vadd.f32 0.5, %v3325_v2  ;;  %v3373_v29 = vpop.f32.mrf.mxu0  ;;  %v3416_v52 = vpop.f32.mrf.mxu1  ;;  %11730 = vst [vmem:[#allocation133_spill] sm:$0xff] %v9434_v42  ;;  %v9448_v47 = vld [vmem:[#allocation5 + $0xa0] ss:$16 sps:$4 sm:$0xff]   ;;  %v9451_v2 = vld [vmem:[#allocation5 + $0xa8] ss:$16 sps:$4 sm:$0xff]  }
 0x5b4   :  { %v9411_v23 = vadd.f32 %v3331_v54, %v3329_v45  ;;  %v9440_v45 = vld [vmem:[#allocation5 + $0xa4] ss:$16 sps:$4 sm:$0xff]   ;;  %v9443_v54 = vld [vmem:[#allocation5 + $0xac] ss:$16 sps:$4 sm:$0xff]   ;;  %11734 = vst [vmem:[#allocation137_spill] sm:$0xff] %v9448_v47  ;;  %11735 = vst [vmem:[#allocation138_spill] sm:$0xff] %v9451_v2 }
 0x5b5   :  { %v3375_v41 = vpop.f32.mrf.mxu0  ;;  %v9418_v62 = vpop.f32.mrf.mxu1  ;;  %11732 = vst [vmem:[#allocation135_spill] sm:$0xff] %v9440_v45  ;;  %11733 = vst [vmem:[#allocation136_spill] sm:$0xff] %v9443_v54 }
 0x5b6   :  { %6565 = vtanh.f32 %v9411_v23 }
 0x5b7   :  { %v3377_v59 = vpop.f32.mrf.mxu0  ;;  %v3420_v18 = vpop.f32.mrf.mxu1 }
 0x5b9   :  { %v3379_v27 = vpop.f32.mrf.mxu0  ;;  %v9446_v55 = vpop.f32.mrf.mxu1 }
 0x5bf   :  { %v6564_v19 = vpop.eup %6563 }
 0x5c0   :  { %v3336_v37 = vmul.f32 %v6564_v19, %v3326_v14  ;;  %v9454_v19 = vld [vmem:[#allocation5 + $0x84] ss:$16 sps:$4 sm:$0xff]   ;;  %v9457_v14 = vld [vmem:[#allocation5 + $0x8c] ss:$16 sps:$4 sm:$0xff]  }
 0x5c1   :  { %11736 = vst [vmem:[#allocation15_spill] sm:$0xff] %v9454_v19  ;;  %11737 = vst [vmem:[#allocation30_spill] sm:$0xff] %v9457_v14 }
 0x5c3   :  { %v6566_v63 = vpop.eup %6565 }
 0x5c4   :  { %v3337_v39 = vmul.f32 %v6566_v63, %v3327_v8 }
 0x5c6   :  { %v9414_v16 = vpack.c.bf16 %v3337_v39, %v3336_v37  ;;  %v9460_v39 = vld [vmem:[#allocation5 + $0x80] ss:$16 sps:$4 sm:$0xff]  }
 0x5c7   :  { %11738 = vst [vmem:[#allocation24_spill] sm:$0xff] %v9460_v39 }
 0x5c8   :  { %3720 = vmatmul.mubr.bf16.vlgmr.msra.gmra.mxu0 %v9414_v16  ;;  %3763 = vmatmul.mubr.bf16.vlgmr.msra.gmra.mxu1 %v9414_v16 }
 0x5c9   :  { %3774 = vmatpush1.bf16.msra.mxu0 %v9420_v11  ;;  %3817 = vmatpush1.bf16.msra.mxu1 %v9423_v32 }
 0x5ca   :  { %3775 = vmatprep.subr.bf16.mxu0 %v9426_v13  ;;  %3818 = vmatprep.subr.bf16.mxu1 %v9429_v3  ;;  %v9474_v13 = vld [vmem:[#allocation5 + $0x60] ss:$16 sps:$4 sm:$0xff]  }
 0x5cb   :  { %3805 = vmatprep.mubr.bf16.mxu0 %v11301_v44  ;;  %3848 = vmatprep.mubr.bf16.mxu1 %v11301_v44 }
 0x5cd   :  { %3776 = vmatpush1.bf16.msra.mxu0 %v9434_v42  ;;  %3819 = vmatpush1.bf16.msra.mxu1 %v9437_v51  ;;  %v9467_v42 = vld [vmem:[#allocation5 + $0x64] ss:$16 sps:$4 sm:$0xff]  }
 0x5ce   :  { %3777 = vmatprep.subr.bf16.mxu0 %v9440_v45  ;;  %3820 = vmatprep.subr.bf16.mxu1 %v9443_v54 }
 0x5d1   :  { %3778 = vmatpush1.bf16.msra.mxu0 %v9448_v47  ;;  %3821 = vmatpush1.bf16.msra.mxu1 %v9451_v2  ;;  %v9463_v47 = vld [vmem:[#allocation5 + $0x88] ss:$16 sps:$4 sm:$0xff]  }
 0x5d2   :  { %3779 = vmatprep.subr.bf16.mxu0 %v9454_v19  ;;  %3822 = vmatprep.subr.bf16.mxu1 %v9457_v14  ;;  %11739 = vst [vmem:[#allocation25_spill] sm:$0xff] %v9463_v47 }
 0x5d3   :  { %v3459_v8 = vpop.f32.mrf.mxu0  ;;  %v3502_v63 = vpop.f32.mrf.mxu1 }
 0x5d4   :  { %v3460_v37 = vadd.f32 %v3459_v8, %v3373_v29  ;;  %v3503_v19 = vadd.f32 %v3502_v63, %v3416_v52  ;;  %v9470_v29 = vld [vmem:[#allocation5 + $0x6c] ss:$16 sps:$4 sm:$0xff]   ;;  %v9477_v52 = vld [vmem:[#allocation5 + $0x68] ss:$16 sps:$4 sm:$0xff]  }
 0x5d5   :  { %3780 = vmatpush1.bf16.msra.mxu0 %v9460_v39  ;;  %3823 = vmatpush1.bf16.msra.mxu1 %v9463_v47  ;;  %v3461_v2 = vpop.f32.mrf.mxu0  ;;  %v3504_v54 = vpop.f32.mrf.mxu1  ;;  %11740 = vst [vmem:[#allocation29_spill] sm:$0xff] %v9470_v29  ;;  %11741 = vst [vmem:[#allocation26_spill] sm:$0xff] %v9477_v52 }
 0x5d6   :  { %v3511_v45 = vadd.f32 %v3460_v37, %v8628_v0  ;;  %v3462_v51 = vadd.f32 %v3461_v2, %v3375_v41  ;;  %3781 = vmatprep.subr.bf16.mxu0 %v9467_v42  ;;  %3824 = vmatprep.subr.bf16.mxu1 %v9470_v29  ;;  %v3513_v2 = vadd.f32 %v3503_v19, %v8649_v26  ;;  %v9481_v29 = vld [vmem:[#allocation5 + $0x44] ss:$16 sps:$4 sm:$0xff]  }
 0x5d7   :  { %v3463_v14 = vpop.f32.mrf.mxu0  ;;  %v3506_v47 = vpop.f32.mrf.mxu1 }
 0x5d8   :  { %v3519_v8 = vmul.f32 0.5, %v3511_v45  ;;  %v3512_v39 = vadd.f32 %v3462_v51, %v8638_v21  ;;  %v3464_v3 = vadd.f32 %v3463_v14, %v3377_v59  ;;  %v9484_v59 = vld [vmem:[#allocation5 + $0x4c] ss:$16 sps:$4 sm:$0xff]   ;;  %v3507_v45 = vadd.f32 %v3506_v47, %v3420_v18 }
 0x5d9   :  { %3782 = vmatpush1.bf16.msra.mxu0 %v9474_v13  ;;  %3825 = vmatpush1.bf16.msra.mxu1 %v9477_v52  ;;  %v3465_v41 = vpop.f32.mrf.mxu0  ;;  %v3508_v18 = vpop.f32.mrf.mxu1 }
 0x5da   :  { %6567 = vtanh.f32 %v3519_v8  ;;  %v3527_v63 = vmul.f32 0.5, %v3512_v39  ;;  %v3466_v37 = vadd.f32 %v3465_v41, %v3379_v27  ;;  %3783 = vmatprep.subr.bf16.mxu0 %v9481_v29  ;;  %3826 = vmatprep.subr.bf16.mxu1 %v9484_v59  ;;  %v3515_v51 = vadd.f32 %v3464_v3, %v8628_v0  ;;  %v9489_v8 = vld [vmem:[#allocation5 + $0x40] ss:$16 sps:$4 sm:$0xff]   ;;  %v9492_v27 = vld [vmem:[#allocation5 + $0x48] ss:$16 sps:$4 sm:$0xff]  }
 0x5db   :  { %v9495_v39 = vld [vmem:[#allocation5 + $0x24] ss:$16 sps:$4 sm:$0xff]   ;;  %v9498_v3 = vld [vmem:[#allocation5 + $0x2c] ss:$16 sps:$4 sm:$0xff]   ;;  %v3517_v47 = vadd.f32 %v3507_v45, %v8649_v26  ;;  %v3505_v41 = vadd.f32 %v3504_v54, %v9418_v62  ;;  %v9517_v54 = vld [vmem:[#allocation5] ss:$16 sps:$4 sm:$0xff]  }
 0x5dc   :  { %6569 = vtanh.f32 %v3527_v63  ;;  %v3516_v14 = vadd.f32 %v3466_v37, %v8638_v21  ;;  %v3520_v52 = vmul.f32 0.5, %v3515_v51  ;;  %v9503_v63 = vld [vmem:[#allocation5 + $0x20] ss:$16 sps:$4 sm:$0xff]   ;;  %v3509_v37 = vadd.f32 %v3508_v18, %v9446_v55  ;;  %v9510_v51 = vld [vmem:[#allocation5 + $0x4] ss:$16 sps:$4 sm:$0xff]   ;;  %11742 = vst [vmem:[#allocation27_spill] sm:$0xff] %v9517_v54 }
 0x5dd   :  { %3784 = vmatpush1.bf16.msra.mxu0 %v9489_v8  ;;  %3827 = vmatpush1.bf16.msra.mxu1 %v9492_v27  ;;  %6571 = vtanh.f32 %v3513_v2  ;;  %v9506_v2 = vld [vmem:[#allocation5 + $0x28] ss:$16 sps:$4 sm:$0xff]   ;;  %v3514_v62 = vadd.f32 %v3505_v41, %v8689_v58 }
 0x5de   :  { %v3528_v19 = vmul.f32 0.5, %v3516_v14  ;;  %3785 = vmatprep.subr.bf16.mxu0 %v9495_v39  ;;  %3828 = vmatprep.subr.bf16.mxu1 %v9498_v3  ;;  %6573 = vtanh.f32 %v3520_v52  ;;  %v9513_v52 = vld [vmem:[#allocation5 + $0xc] ss:$16 sps:$4 sm:$0xff]   ;;  %v9520_v45 = vld [vmem:[#allocation5 + $0x8] ss:$16 sps:$4 sm:$0xff]   ;;  %v3518_v55 = vadd.f32 %v3509_v37, %v8689_v58 }
 0x5df   :  { %11743 = vst [vmem:[#allocation28_spill] sm:$0xff] %v9520_v45 }
 0x5e0   :  { %6575 = vtanh.f32 %v3528_v19 }
 0x5e1   :  { %3786 = vmatpush1.bf16.msra.mxu0 %v9503_v63  ;;  %3829 = vmatpush1.bf16.msra.mxu1 %v9506_v2  ;;  %6577 = vtanh.f32 %v3517_v47  ;;  %v3537_v47 = vmul.f32 0.5, %v3514_v62 }
 0x5e2   :  { %3787 = vmatprep.subr.bf16.mxu0 %v9510_v51  ;;  %3830 = vmatprep.subr.bf16.mxu1 %v9513_v52 }
 0x5e3   :  { %6579 = vtanh.f32 %v3537_v47  ;;  %v9566_v47 = vpop.permute.xlu1 %309 }
 0x5e5   :  { %3788 = vmatpush1.bf16.msra.mxu0 %v9517_v54  ;;  %3831 = vmatpush1.bf16.msra.mxu1 %v9520_v45  ;;  %v3538_v54 = vmul.f32 0.5, %v3518_v55 }
 0x5e6   :  { %3904 = vmatprep.subr.bf16.mxu0 %v8966_v28  ;;  %3947 = vmatprep.subr.bf16.mxu1 %v8969_v38 }
 0x5e7   :  { %v6568_v14 = vpop.eup %6567  ;;  %6581 = vtanh.f32 %v3538_v54  ;;  %v11750_v54 = vld [vmem:[#allocation36_spill] sm:$0xff] }
 0x5e8   :  { %v3523_v19 = vmul.f32 0.5, %v6568_v14  ;;  %3806 = vmatmul.mubr.bf16.vlgmr.msra.gmra.mxu0 %v9290_v17  ;;  %3849 = vmatmul.mubr.bf16.vlgmr.msra.gmra.mxu1 %v9290_v17 }
 0x5e9   :  { %v6570_v18 = vpop.eup %6569  ;;  %3905 = vmatpush1.bf16.msra.mxu0 %v8974_v9  ;;  %3948 = vmatpush1.bf16.msra.mxu1 %v8977_v36 }
 0x5ea   :  { %v3525_v41 = vadd.f32 0.5, %v3523_v19  ;;  %v3531_v45 = vmul.f32 0.5, %v6570_v18  ;;  %3906 = vmatprep.subr.bf16.mxu0 %v8980_v48  ;;  %3949 = vmatprep.subr.bf16.mxu1 %v8983_v10  ;;  %v6572_v28 = vpop.eup %6571  ;;  %v11751_v19 = vld [vmem:[#allocation37_spill] sm:$0xff] }
 0x5eb   :  { %3936 = vmatprep.mubr.bf16.mxu0 %v11301_v44  ;;  %3979 = vmatprep.mubr.bf16.mxu1 %v11301_v44  ;;  %v6574_v38 = vpop.eup %6573 }
 0x5ec   :  { %v3533_v17 = vadd.f32 0.5, %v3531_v45  ;;  %v3524_v62 = vmul.f32 0.5, %v6574_v38  ;;  %v3547_v36 = vmul.f32 %v6572_v28, %v3525_v41  ;;  %v9568_v28 = vpop.permute.xlu0 %304  ;;  %v11752_v38 = vld [vmem:[#allocation16_spill] sm:$0xff] }
 0x5ed   :  { %v6576_v37 = vpop.eup %6575  ;;  %3907 = vmatpush1.bf16.msra.mxu0 %v8988_v34  ;;  %3950 = vmatpush1.bf16.msra.mxu1 %v8991_v31 }
 0x5ee   :  { %v3545_v9 = vmul.f32 %v3533_v17, %v9001_v35  ;;  %v3532_v48 = vmul.f32 0.5, %v6576_v37  ;;  %3908 = vmatprep.subr.bf16.mxu0 %v8995_v40  ;;  %3951 = vmatprep.subr.bf16.mxu1 %v8998_v6  ;;  %v3526_v10 = vadd.f32 0.5, %v3524_v62  ;;  %v6578_v14 = vpop.eup %6577  ;;  %v317_v17 = vmul.f32 %v9566_v47, %v11752_v38 }
 0x5f0   :  { %v9539_v55 = vadd.f32 %v3547_v36, %v3545_v9  ;;  %v3534_v45 = vadd.f32 0.5, %v3532_v48  ;;  %v3548_v31 = vmul.f32 %v6578_v14, %v3526_v10  ;;  %v6580_v6 = vpop.eup %6579  ;;  %v313_v9 = vmul.f32 %v9568_v28, %v11752_v38  ;;  %v11753_v36 = vld [vmem:[#allocation38_spill] sm:$0xff]  ;;  %v11754_v48 = vld [vmem:[#allocation39_spill] sm:$0xff]  ;;  %v11756_v14 = vld [vmem:[#allocation41_spill] sm:$0xff] }
 0x5f1   :  { %3909 = vmatpush1.bf16.msra.mxu0 %v9003_v22  ;;  %3952 = vmatpush1.bf16.msra.mxu1 %v9006_v5  ;;  %v11744_v5 = vld [vmem:[#allocation31_spill] sm:$0xff]  ;;  %v316_v10 = vmul.f32 %v9566_v47, %v11527_v50 }
 0x5f2   :  { %v3546_v34 = vmul.f32 %v3534_v45, %v9017_v43  ;;  %3910 = vmatprep.subr.bf16.mxu0 %v9010_v60  ;;  %3953 = vmatprep.subr.bf16.mxu1 %v9013_v20  ;;  %6583 = vtanh.f32 %v9539_v55  ;;  %v11745_v60 = vld [vmem:[#allocation32_spill] sm:$0xff]  ;;  %v3541_v20 = vmul.f32 0.5, %v6580_v6  ;;  %v312_v6 = vmul.f32 %v9568_v28, %v11527_v50 }
 0x5f3   :  { %v3590_v22 = vpop.f32.mrf.mxu0  ;;  %v11755_v45 = vld [vmem:[#allocation40_spill] sm:$0xff] }
 0x5f4   :  { %v9547_v40 = vadd.f32 %v3548_v31, %v3546_v34  ;;  %v6582_v35 = vpop.eup %6581 }
 0x5f5   :  { %3911 = vmatpush1.bf16.msra.mxu0 %v9019_v53  ;;  %3954 = vmatpush1.bf16.msra.mxu1 %v9022_v46  ;;  %v3542_v43 = vmul.f32 0.5, %v6582_v35  ;;  %v11746_v53 = vld [vmem:[#allocation33_spill] sm:$0xff]  ;;  %v11747_v46 = vld [vmem:[#allocation34_spill] sm:$0xff]  ;;  %v325_v35 = vadd.f32 %v317_v17, %v7721_v61  ;;  %v11763_v17 = vld [vmem:[#allocation48_spill] sm:$0xff] }
 0x5f6   :  { %6585 = vtanh.f32 %v9547_v40  ;;  %3912 = vmatprep.subr.bf16.mxu0 %v9026_v33  ;;  %3955 = vmatprep.subr.bf16.mxu1 %v9029_v1  ;;  %v3592_v33 = vpop.f32.mrf.mxu0 }
 0x5f8   :  { %v3594_v41 = vpop.f32.mrf.mxu0 }
 0x5f9   :  { %3913 = vmatpush1.bf16.msra.mxu0 %v9032_v30  ;;  %3956 = vmatpush1.bf16.msra.mxu1 %v9035_v25  ;;  %v11748_v30 = vld [vmem:[#allocation35_spill] sm:$0xff]  ;;  %v11749_v25 = vld [vmem:[#allocation21_spill] sm:$0xff] }
 0x5fa   :  { %3914 = vmatprep.subr.bf16.mxu0 %v9038_v49  ;;  %3957 = vmatprep.subr.bf16.mxu1 %v9041_v56  ;;  %v3543_v49 = vadd.f32 0.5, %v3541_v20  ;;  %v3544_v56 = vadd.f32 0.5, %v3542_v43  ;;  %v3596_v31 = vpop.f32.mrf.mxu0  ;;  %v11758_v20 = vld [vmem:[#allocation43_spill] sm:$0xff]  ;;  %v324_v43 = vadd.f32 %v316_v10, %v7711_v57 }
 0x5fd   :  { %3915 = vmatpush1.bf16.msra.mxu0 %v11744_v5  ;;  %3958 = vmatpush1.bf16.msra.mxu1 %v11745_v60  ;;  %v321_v5 = vadd.f32 %v313_v9, %v7721_v61  ;;  %v11757_v60 = vld [vmem:[#allocation42_spill] sm:$0xff] }
 0x5fe   :  { %3916 = vmatprep.subr.bf16.mxu0 %v11746_v53  ;;  %3959 = vmatprep.subr.bf16.mxu1 %v11747_v46  ;;  %v3647_v53 = vadd.f32 %v3596_v31, %v325_v35  ;;  %v11759_v46 = vld [vmem:[#allocation44_spill] sm:$0xff]  ;;  %v11770_v31 = vld [vmem:[#allocation54_spill] sm:$0xff] }
 0x5ff   :  { %v6584_v1 = vpop.eup %6583 }
 0x600   :  { %v3553_v37 = vmul.f32 %v6584_v1, %v3543_v49  ;;  %v11760_v1 = vld [vmem:[#allocation45_spill] sm:$0xff]  ;;  %v3646_v49 = vadd.f32 %v3594_v41, %v324_v43  ;;  %v11767_v41 = vld [vmem:[#allocation52_spill] sm:$0xff] }
 0x601   :  { %3917 = vmatpush1.bf16.msra.mxu0 %v11748_v30  ;;  %3960 = vmatpush1.bf16.msra.mxu1 %v11749_v25  ;;  %v3643_v30 = vadd.f32 %v3592_v33, %v321_v5  ;;  %v320_v25 = vadd.f32 %v312_v6, %v7711_v57  ;;  %v11771_v6 = vld [vmem:[#allocation55_spill] sm:$0xff]  ;;  %v11772_v5 = vld [vmem:[#allocation56_spill] sm:$0xff] }
 0x602   :  { %3918 = vmatprep.subr.bf16.mxu0 %v11750_v54  ;;  %3961 = vmatprep.subr.bf16.mxu1 %v11751_v19  ;;  %v11762_v54 = vld [vmem:[#allocation47_spill] sm:$0xff]  ;;  %v3651_v33 = vmul.f32 0.5, %v3646_v49  ;;  %v11774_v43 = vld [vmem:[#allocation20_spill] sm:$0xff] }
 0x603   :  { %v6586_v18 = vpop.eup %6585  ;;  %v3642_v19 = vadd.f32 %v3590_v22, %v320_v25  ;;  %v3658_v9 = vmul.f32 0.5, %v3643_v30  ;;  %v11777_v49 = vld [vmem:[#allocation60_spill] sm:$0xff] }
 0x604   :  { %v3554_v62 = vmul.f32 %v6586_v18, %v3544_v56  ;;  %v11761_v56 = vld [vmem:[#allocation46_spill] sm:$0xff]  ;;  %v3659_v18 = vmul.f32 0.5, %v3647_v53 }
 0x605   :  { %3919 = vmatpush1.bf16.msra.mxu0 %v11753_v36  ;;  %3962 = vmatpush1.bf16.msra.mxu1 %v11754_v48  ;;  %v11765_v36 = vld [vmem:[#allocation50_spill] sm:$0xff]  ;;  %v11766_v48 = vld [vmem:[#allocation51_spill] sm:$0xff]  ;;  %v3650_v10 = vmul.f32 0.5, %v3642_v19 }
 0x606   :  { %3990 = vmatprep.subr.bf16.mxu0 %v11755_v45  ;;  %4033 = vmatprep.subr.bf16.mxu1 %v11756_v14  ;;  %v3903_v34 = vpack.c.bf16 %v3554_v62, %v3553_v37  ;;  %v11764_v37 = vld [vmem:[#allocation49_spill] sm:$0xff]  ;;  %v3633_v62 = vpop.f32.mrf.mxu1  ;;  %6587 = vtanh.f32 %v3659_v18  ;;  %v11769_v14 = vld [vmem:[#allocation18_spill] sm:$0xff]  ;;  %v11780_v18 = vld [vmem:[#allocation63_spill] sm:$0xff] }
 0x607   :  { %v11768_v45 = vld [vmem:[#allocation53_spill] sm:$0xff]  ;;  %6589 = vtanh.f32 %v3658_v9  ;;  %v314_v35 = vmul.f32 %v9568_v28, %v11769_v14  ;;  %v11779_v19 = vld [vmem:[#allocation62_spill] sm:$0xff]  ;;  %v11782_v9 = vld [vmem:[#allocation64_spill] sm:$0xff] }
 0x608   :  { %3937 = vmatmul.mubr.bf16.vlgmr.msra.gmra.mxu0 %v3903_v34  ;;  %3980 = vmatmul.mubr.bf16.vlgmr.msra.gmra.mxu1 %v3903_v34  ;;  %v3635_v22 = vpop.f32.mrf.mxu1  ;;  %6591 = vtanh.f32 %v3651_v33  ;;  %v318_v34 = vmul.f32 %v9566_v47, %v11769_v14  ;;  %v11783_v33 = vld [vmem:[#allocation65_spill] sm:$0xff] }
 0x609   :  { %3991 = vmatpush1.bf16.msra.mxu0 %v11757_v60  ;;  %4034 = vmatpush1.bf16.msra.mxu1 %v11758_v20  ;;  %6593 = vtanh.f32 %v3650_v10  ;;  %v11773_v60 = vld [vmem:[#allocation57_spill] sm:$0xff]  ;;  %v322_v30 = vadd.f32 %v314_v35, %v11774_v43 }
 0x60a   :  { %3992 = vmatprep.subr.bf16.mxu0 %v11759_v46  ;;  %4035 = vmatprep.subr.bf16.mxu1 %v11760_v1  ;;  %v3637_v20 = vpop.f32.mrf.mxu1  ;;  %v326_v53 = vadd.f32 %v318_v34, %v11774_v43  ;;  %v11775_v46 = vld [vmem:[#allocation58_spill] sm:$0xff]  ;;  %v11776_v1 = vld [vmem:[#allocation59_spill] sm:$0xff] }
 0x60b   :  { %4022 = vmatprep.mubr.bf16.mxu0 %v11301_v44  ;;  %4065 = vmatprep.mubr.bf16.mxu1 %v11301_v44  ;;  %v11785_v34 = vld [vmem:[#allocation67_spill] sm:$0xff] }
 0x60c   :  { %v3648_v25 = vadd.f32 %v3637_v20, %v326_v53 }
 0x60d   :  { %3993 = vmatpush1.bf16.msra.mxu0 %v11761_v56  ;;  %4036 = vmatpush1.bf16.msra.mxu1 %v11762_v54  ;;  %v11778_v56 = vld [vmem:[#allocation61_spill] sm:$0xff]  ;;  %v3644_v54 = vadd.f32 %v3633_v62, %v322_v30  ;;  %v3639_v62 = vpop.f32.mrf.mxu1  ;;  %v11790_v30 = vld [vmem:[#allocation71_spill] sm:$0xff] }
 0x60e   :  { %3994 = vmatprep.subr.bf16.mxu0 %v11763_v17  ;;  %4037 = vmatprep.subr.bf16.mxu1 %v11764_v37  ;;  %6595 = vtanh.f32 %v3648_v25  ;;  %v11781_v17 = vld [vmem:[#allocation22_spill] sm:$0xff] }
 0x60f   :  { %v319_v37 = vmul.f32 %v9566_v47, %v11781_v17  ;;  %6597 = vtanh.f32 %v3644_v54  ;;  %v315_v10 = vmul.f32 %v9568_v28, %v11781_v17  ;;  %v11787_v47 = vld [vmem:[#allocation68_spill] sm:$0xff]  ;;  %v11789_v28 = vld [vmem:[#allocation70_spill] sm:$0xff] }
 0x610   :  { %v9630_v54 = vld [vmem:[#allocation3 + $0xe4] ss:$16 sps:$4 sm:$0xff]  }
 0x611   :  { %3995 = vmatpush1.bf16.msra.mxu0 %v11765_v36  ;;  %4038 = vmatpush1.bf16.msra.mxu1 %v11766_v48 }
 0x612   :  { %3996 = vmatprep.subr.bf16.mxu0 %v11767_v41  ;;  %4039 = vmatprep.subr.bf16.mxu1 %v11768_v45  ;;  %v11784_v45 = vld [vmem:[#allocation66_spill] sm:$0xff] }
 0x613   :  { %v6588_v36 = vpop.eup %6587 }
 0x614   :  { %v6590_v48 = vpop.eup %6589 }
 0x615   :  { %3997 = vmatpush1.bf16.msra.mxu0 %v11770_v31  ;;  %4040 = vmatpush1.bf16.msra.mxu1 %v11771_v6  ;;  %v6592_v41 = vpop.eup %6591  ;;  %v3663_v31 = vmul.f32 0.5, %v6588_v36  ;;  %v11786_v6 = vld [vmem:[#allocation23_spill] sm:$0xff]  ;;  %v3662_v20 = vmul.f32 0.5, %v6590_v48 }
 0x616   :  { %3998 = vmatprep.subr.bf16.mxu0 %v11772_v5  ;;  %4041 = vmatprep.subr.bf16.mxu1 %v11773_v60  ;;  %v327_v35 = vadd.f32 %v319_v37, %v11786_v6  ;;  %v11788_v5 = vld [vmem:[#allocation69_spill] sm:$0xff]  ;;  %v6594_v60 = vpop.eup %6593  ;;  %v323_v53 = vadd.f32 %v315_v10, %v11786_v6  ;;  %v11792_v10 = vld [vmem:[#allocation72_spill] sm:$0xff] }
 0x617   :  { %v3654_v25 = vmul.f32 0.5, %v6594_v60  ;;  %v9657_v60 = vld [vmem:[#allocation3 + $0xc8] ss:$16 sps:$4 sm:$0xff]  }
 0x618   :  { %11797 = vst [vmem:[#allocation35_spill] sm:$0xff] %v9657_v60 }
 0x619   :  { %3999 = vmatpush1.bf16.msra.mxu0 %v11775_v46  ;;  %4042 = vmatpush1.bf16.msra.mxu1 %v11776_v1  ;;  %v3655_v46 = vmul.f32 0.5, %v6592_v41  ;;  %v3649_v1 = vadd.f32 %v3639_v62, %v327_v35  ;;  %v3656_v36 = vadd.f32 0.5, %v3654_v25  ;;  %v9645_v62 = vld [vmem:[#allocation3 + $0xc4] ss:$16 sps:$4 sm:$0xff]  }
 0x61a   :  { %4000 = vmatprep.subr.bf16.mxu0 %v11777_v49  ;;  %4043 = vmatprep.subr.bf16.mxu1 %v11778_v56  ;;  %v3645_v49 = vadd.f32 %v3635_v22, %v323_v53  ;;  %v3665_v56 = vadd.f32 0.5, %v3663_v31  ;;  %v9641_v22 = vld [vmem:[#allocation3 + $0xe8] ss:$16 sps:$4 sm:$0xff]   ;;  %11793 = vst [vmem:[#allocation32_spill] sm:$0xff] %v9645_v62  ;;  %v11803_v25 = vld [vmem:[#allocation76_spill] sm:$0xff] }
 0x61b   :  { %v3657_v37 = vadd.f32 0.5, %v3655_v46  ;;  %11791 = vst [vmem:[#allocation31_spill] sm:$0xff] %v9641_v22  ;;  %v9662_v46 = vld [vmem:[#allocation3 + $0xa4] ss:$16 sps:$4 sm:$0xff]  }
 0x61c   :  { %v3668_v48 = vmul.f32 0.5, %v3645_v49  ;;  %v3677_v41 = vmul.f32 %v3665_v56, %v11792_v10  ;;  %11799 = vst [vmem:[#allocation36_spill] sm:$0xff] %v9662_v46  ;;  %v11804_v49 = vld [vmem:[#allocation89_spill] sm:$0xff] }
 0x61d   :  { %4001 = vmatpush1.bf16.msra.mxu0 %v11779_v19  ;;  %4044 = vmatpush1.bf16.msra.mxu1 %v11780_v18  ;;  %v9633_v19 = vld [vmem:[#allocation3 + $0xec] ss:$16 sps:$4 sm:$0xff]   ;;  %v3664_v18 = vadd.f32 0.5, %v3662_v20 }
 0x61e   :  { %4002 = vmatprep.subr.bf16.mxu0 %v11782_v9  ;;  %4045 = vmatprep.subr.bf16.mxu1 %v11783_v33  ;;  %v3669_v9 = vmul.f32 0.5, %v3649_v1  ;;  %v9638_v33 = vld [vmem:[#allocation3 + $0xe0] ss:$16 sps:$4 sm:$0xff]   ;;  %v11800_v1 = vld [vmem:[#allocation73_spill] sm:$0xff] }
 0x61f   :  { %v11805_v56 = vld [vmem:[#allocation77_spill] sm:$0xff] }
 0x620   :  { %6599 = vtanh.f32 %v3669_v9  ;;  %v11808_v9 = vld [vmem:[#allocation80_spill] sm:$0xff]  ;;  %v11810_v10 = vld [vmem:[#allocation81_spill] sm:$0xff] }
 0x621   :  { %4003 = vmatpush1.bf16.msra.mxu0 %v11784_v45  ;;  %4046 = vmatpush1.bf16.msra.mxu1 %v11785_v34  ;;  %v9648_v45 = vld [vmem:[#allocation3 + $0xcc] ss:$16 sps:$4 sm:$0xff]   ;;  %v11795_v34 = vld [vmem:[#allocation74_spill] sm:$0xff]  ;;  %6601 = vtanh.f32 %v3668_v48 }
 0x622   :  { %4004 = vmatprep.subr.bf16.mxu0 %v11787_v47  ;;  %4047 = vmatprep.subr.bf16.mxu1 %v11788_v5  ;;  %11794 = vst [vmem:[#allocation33_spill] sm:$0xff] %v9648_v45  ;;  %v3676_v31 = vmul.f32 %v3664_v18, %v11795_v34  ;;  %v9654_v5 = vld [vmem:[#allocation3 + $0xc0] ss:$16 sps:$4 sm:$0xff]  }
 0x623   :  { %11796 = vst [vmem:[#allocation34_spill] sm:$0xff] %v9654_v5  ;;  %v11806_v18 = vld [vmem:[#allocation78_spill] sm:$0xff]  ;;  %v11813_v34 = vld [vmem:[#allocation84_spill] sm:$0xff] }
 0x625   :  { %4005 = vmatpush1.bf16.msra.mxu0 %v11789_v28  ;;  %4048 = vmatpush1.bf16.msra.mxu1 %v11790_v30  ;;  %v11802_v30 = vld [vmem:[#allocation75_spill] sm:$0xff] }
 0x626   :  { %4121 = vmatprep.subr.bf16.mxu0 %v9630_v54  ;;  %4164 = vmatprep.subr.bf16.mxu1 %v9633_v19 }
 0x628   :  { %4023 = vmatmul.mubr.bf16.vlgmr.msra.gmra.mxu0 %v9414_v16  ;;  %4066 = vmatmul.mubr.bf16.vlgmr.msra.gmra.mxu1 %v9414_v16  ;;  %v6596_v16 = vpop.eup %6595 }
 0x629   :  { %4122 = vmatpush1.bf16.msra.mxu0 %v9638_v33  ;;  %4165 = vmatpush1.bf16.msra.mxu1 %v9641_v22  ;;  %v3679_v35 = vmul.f32 %v6596_v16, %v3657_v37  ;;  %v6598_v47 = vpop.eup %6597  ;;  %v11807_v37 = vld [vmem:[#allocation79_spill] sm:$0xff] }
 0x62a   :  { %4123 = vmatprep.subr.bf16.mxu0 %v9645_v62  ;;  %4166 = vmatprep.subr.bf16.mxu1 %v9648_v45  ;;  %v3678_v20 = vmul.f32 %v6598_v47, %v3656_v36  ;;  %v11809_v36 = vld [vmem:[#allocation90_spill] sm:$0xff]  ;;  %v11812_v16 = vld [vmem:[#allocation83_spill] sm:$0xff]  ;;  %v11814_v47 = vld [vmem:[#allocation85_spill] sm:$0xff] }
 0x62b   :  { %4153 = vmatprep.mubr.bf16.mxu0 %v11301_v44  ;;  %4196 = vmatprep.mubr.bf16.mxu1 %v11301_v44  ;;  %v9660_v53 = vadd.f32 %v3679_v35, %v3677_v41  ;;  %v11811_v41 = vld [vmem:[#allocation82_spill] sm:$0xff] }
 0x62c   :  { %v9666_v28 = vadd.f32 %v3678_v20, %v3676_v31  ;;  %v11815_v20 = vld [vmem:[#allocation86_spill] sm:$0xff] }
 0x62d   :  { %4124 = vmatpush1.bf16.msra.mxu0 %v9654_v5  ;;  %4167 = vmatpush1.bf16.msra.mxu1 %v9657_v60  ;;  %11798 = vst [vmem:[#allocation21_spill] sm:$0xff] %v9660_v53  ;;  %6603 = vtanh.f32 %v9660_v53  ;;  %v6600_v48 = vpop.eup %6599 }
 0x62e   :  { %4125 = vmatprep.subr.bf16.mxu0 %v9662_v46  ;;  %4168 = vmatprep.subr.bf16.mxu1 %v11800_v1  ;;  %11801 = vst [vmem:[#allocation37_spill] sm:$0xff] %v9666_v28  ;;  %6605 = vtanh.f32 %v9666_v28  ;;  %v6602_v31 = vpop.eup %6601  ;;  %v3673_v35 = vmul.f32 0.5, %v6600_v48  ;;  %v11821_v48 = vld [vmem:[#allocation94_spill] sm:$0xff] }
 0x62f   :  { %v3672_v1 = vmul.f32 0.5, %v6602_v31  ;;  %v11823_v31 = vld [vmem:[#allocation96_spill] sm:$0xff] }
 0x631   :  { %4126 = vmatpush1.bf16.msra.mxu0 %v11802_v30  ;;  %4169 = vmatpush1.bf16.msra.mxu1 %v11803_v25  ;;  %v11816_v30 = vld [vmem:[#allocation87_spill] sm:$0xff]  ;;  %v11817_v25 = vld [vmem:[#allocation88_spill] sm:$0xff] }
 0x632   :  { %4127 = vmatprep.subr.bf16.mxu0 %v11804_v49  ;;  %4170 = vmatprep.subr.bf16.mxu1 %v11805_v56  ;;  %v3675_v56 = vadd.f32 0.5, %v3673_v35  ;;  %v11825_v35 = vld [vmem:[#allocation98_spill] sm:$0xff] }
 0x635   :  { %4128 = vmatpush1.bf16.msra.mxu0 %v11806_v18  ;;  %4171 = vmatpush1.bf16.msra.mxu1 %v11807_v37  ;;  %v11818_v37 = vld [vmem:[#allocation91_spill] sm:$0xff] }
 0x636   :  { %4129 = vmatprep.subr.bf16.mxu0 %v11808_v9  ;;  %4172 = vmatprep.subr.bf16.mxu1 %v11809_v36  ;;  %v11819_v9 = vld [vmem:[#allocation92_spill] sm:$0xff]  ;;  %v3674_v36 = vadd.f32 0.5, %v3672_v1  ;;  %v11826_v1 = vld [vmem:[#allocation99_spill] sm:$0xff] }
 0x639   :  { %4130 = vmatpush1.bf16.msra.mxu0 %v11810_v10  ;;  %4173 = vmatpush1.bf16.msra.mxu1 %v11811_v41  ;;  %v11820_v41 = vld [vmem:[#allocation93_spill] sm:$0xff] }
 0x63a   :  { %4131 = vmatprep.subr.bf16.mxu0 %v11812_v16  ;;  %4174 = vmatprep.subr.bf16.mxu1 %v11813_v34  ;;  %v6604_v49 = vpop.eup %6603  ;;  %v11822_v34 = vld [vmem:[#allocation95_spill] sm:$0xff] }
 0x63b   :  { %v6606_v18 = vpop.eup %6605  ;;  %v3685_v10 = vmul.f32 %v6604_v49, %v3675_v56  ;;  %v11829_v49 = vld [vmem:[#allocation102_spill] sm:$0xff]  ;;  %v11830_v56 = vld [vmem:[#allocation103_spill] sm:$0xff] }
 0x63c   :  { %v3684_v16 = vmul.f32 %v6606_v18, %v3674_v36  ;;  %v11831_v18 = vld [vmem:[#allocation104_spill] sm:$0xff]  ;;  %v11834_v36 = vld [vmem:[#allocation107_spill] sm:$0xff] }
 0x63d   :  { %4132 = vmatpush1.bf16.msra.mxu0 %v11814_v47  ;;  %4175 = vmatpush1.bf16.msra.mxu1 %v11815_v20  ;;  %v11824_v20 = vld [vmem:[#allocation97_spill] sm:$0xff] }
 0x63e   :  { %4133 = vmatprep.subr.bf16.mxu0 %v11816_v30  ;;  %4176 = vmatprep.subr.bf16.mxu1 %v11817_v25  ;;  %v9692_v47 = vpack.c.bf16 %v3685_v10, %v3684_v16  ;;  %v11827_v30 = vld [vmem:[#allocation100_spill] sm:$0xff]  ;;  %v11828_v25 = vld [vmem:[#allocation101_spill] sm:$0xff]  ;;  %v11838_v16 = vld [vmem:[#allocation111_spill] sm:$0xff] }
 0x63f   :  { %v11835_v10 = vld [vmem:[#allocation108_spill] sm:$0xff] }
 0x641   :  { %4134 = vmatpush1.bf16.msra.mxu0 %v11818_v37  ;;  %4177 = vmatpush1.bf16.msra.mxu1 %v11819_v9  ;;  %v11832_v37 = vld [vmem:[#allocation105_spill] sm:$0xff]  ;;  %v11833_v9 = vld [vmem:[#allocation106_spill] sm:$0xff] }
 0x642   :  { %4135 = vmatprep.subr.bf16.mxu0 %v11820_v41  ;;  %4178 = vmatprep.subr.bf16.mxu1 %v11821_v48  ;;  %v11836_v41 = vld [vmem:[#allocation109_spill] sm:$0xff]  ;;  %v11837_v48 = vld [vmem:[#allocation110_spill] sm:$0xff] }
 0x645   :  { %4136 = vmatpush1.bf16.msra.mxu0 %v11822_v34  ;;  %4179 = vmatpush1.bf16.msra.mxu1 %v11823_v31  ;;  %v11839_v34 = vld [vmem:[#allocation112_spill] sm:$0xff]  ;;  %v11840_v31 = vld [vmem:[#allocation113_spill] sm:$0xff] }
 0x646   :  { %4252 = vmatprep.subr.bf16.mxu0 %v11824_v20  ;;  %4295 = vmatprep.subr.bf16.mxu1 %v11825_v35  ;;  %v11841_v20 = vld [vmem:[#allocation114_spill] sm:$0xff]  ;;  %v11842_v35 = vld [vmem:[#allocation115_spill] sm:$0xff] }
 0x648   :  { %4154 = vmatmul.mubr.bf16.vlgmr.msra.gmra.mxu0 %v9692_v47  ;;  %4197 = vmatmul.mubr.bf16.vlgmr.msra.gmra.mxu1 %v9692_v47 }
 0x649   :  { %4253 = vmatpush1.bf16.msra.mxu0 %v11826_v1  ;;  %4296 = vmatpush1.bf16.msra.mxu1 %v11827_v30  ;;  %v11843_v1 = vld [vmem:[#allocation116_spill] sm:$0xff]  ;;  %v11844_v30 = vld [vmem:[#allocation117_spill] sm:$0xff] }
 0x64a   :  { %4254 = vmatprep.subr.bf16.mxu0 %v11828_v25  ;;  %4297 = vmatprep.subr.bf16.mxu1 %v11829_v49  ;;  %v11845_v25 = vld [vmem:[#allocation118_spill] sm:$0xff]  ;;  %v11846_v49 = vld [vmem:[#allocation119_spill] sm:$0xff] }
 0x64b   :  { %4284 = vmatprep.mubr.bf16.mxu0 %v11301_v44  ;;  %4327 = vmatprep.mubr.bf16.mxu1 %v11301_v44 }
 0x64d   :  { %4255 = vmatpush1.bf16.msra.mxu0 %v11830_v56  ;;  %4298 = vmatpush1.bf16.msra.mxu1 %v11831_v18  ;;  %v11847_v56 = vld [vmem:[#allocation120_spill] sm:$0xff]  ;;  %v11848_v18 = vld [vmem:[#allocation121_spill] sm:$0xff] }
 0x64e   :  { %4256 = vmatprep.subr.bf16.mxu0 %v11832_v37  ;;  %4299 = vmatprep.subr.bf16.mxu1 %v11833_v9  ;;  %v11849_v37 = vld [vmem:[#allocation122_spill] sm:$0xff]  ;;  %v11850_v9 = vld [vmem:[#allocation123_spill] sm:$0xff] }
 0x651   :  { %4257 = vmatpush1.bf16.msra.mxu0 %v11834_v36  ;;  %4300 = vmatpush1.bf16.msra.mxu1 %v11835_v10  ;;  %v11851_v36 = vld [vmem:[#allocation124_spill] sm:$0xff]  ;;  %v11852_v10 = vld [vmem:[#allocation125_spill] sm:$0xff] }
 0x652   :  { %4258 = vmatprep.subr.bf16.mxu0 %v11836_v41  ;;  %4301 = vmatprep.subr.bf16.mxu1 %v11837_v48  ;;  %v11853_v41 = vld [vmem:[#allocation126_spill] sm:$0xff]  ;;  %v11854_v48 = vld [vmem:[#allocation127_spill] sm:$0xff] }
 0x655   :  { %4259 = vmatpush1.bf16.msra.mxu0 %v11838_v16  ;;  %4302 = vmatpush1.bf16.msra.mxu1 %v11839_v34  ;;  %v11855_v16 = vld [vmem:[#allocation128_spill] sm:$0xff]  ;;  %v11856_v34 = vld [vmem:[#allocation129_spill] sm:$0xff] }
 0x656   :  { %4260 = vmatprep.subr.bf16.mxu0 %v11840_v31  ;;  %4303 = vmatprep.subr.bf16.mxu1 %v11841_v20  ;;  %v11857_v31 = vld [vmem:[#allocation130_spill] sm:$0xff] }
 0x659   :  { %4261 = vmatpush1.bf16.msra.mxu0 %v11842_v35  ;;  %4304 = vmatpush1.bf16.msra.mxu1 %v11843_v1 }
 0x65a   :  { %4262 = vmatprep.subr.bf16.mxu0 %v11844_v30  ;;  %4305 = vmatprep.subr.bf16.mxu1 %v11845_v25 }
 0x65d   :  { %4263 = vmatpush1.bf16.msra.mxu0 %v11846_v49  ;;  %4306 = vmatpush1.bf16.msra.mxu1 %v11847_v56 }
 0x65e   :  { %4264 = vmatprep.subr.bf16.mxu0 %v11848_v18  ;;  %4307 = vmatprep.subr.bf16.mxu1 %v11849_v37 }
 0x661   :  { %4265 = vmatpush1.bf16.msra.mxu0 %v11850_v9  ;;  %4308 = vmatpush1.bf16.msra.mxu1 %v11851_v36 }
 0x662   :  { %4266 = vmatprep.subr.bf16.mxu0 %v11852_v10  ;;  %4309 = vmatprep.subr.bf16.mxu1 %v11853_v41 }
 0x665   :  { %4267 = vmatpush1.bf16.msra.mxu0 %v11854_v48  ;;  %4310 = vmatpush1.bf16.msra.mxu1 %v11855_v16 }
 0x666   :  { %4338 = vmatprep.subr.bf16.mxu0 %v11856_v34  ;;  %4381 = vmatprep.subr.bf16.mxu1 %v11857_v31 }
 0x688   :  { %v3721_v20 = vpop.f32.mrf.mxu0  ;;  %v3764_v35 = vpop.f32.mrf.mxu1 }
 0x68a   :  { %v3723_v1 = vpop.f32.mrf.mxu0  ;;  %v3766_v30 = vpop.f32.mrf.mxu1 }
 0x68c   :  { %v3725_v25 = vpop.f32.mrf.mxu0  ;;  %v3768_v49 = vpop.f32.mrf.mxu1 }
 0x68e   :  { %v3727_v56 = vpop.f32.mrf.mxu0  ;;  %v3770_v18 = vpop.f32.mrf.mxu1 }
 0x6a8   :  { %v3807_v37 = vpop.f32.mrf.mxu0  ;;  %v3850_v9 = vpop.f32.mrf.mxu1 }
 0x6a9   :  { %v3808_v36 = vadd.f32 %v3807_v37, %v3721_v20  ;;  %v3851_v16 = vadd.f32 %v3850_v9, %v3764_v35 }
 0x6aa   :  { %v3809_v10 = vpop.f32.mrf.mxu0  ;;  %v3852_v41 = vpop.f32.mrf.mxu1 }
 0x6ab   :  { %v3859_v48 = vadd.f32 %v3808_v36, %v8069_v4  ;;  %v3810_v46 = vadd.f32 %v3809_v10, %v3723_v1  ;;  %v3861_v62 = vadd.f32 %v3851_v16, %v8080_v15 }
 0x6ac   :  { %v3811_v34 = vpop.f32.mrf.mxu0  ;;  %v3854_v28 = vpop.f32.mrf.mxu1 }
 0x6ad   :  { %v3867_v60 = vmul.f32 0.5, %v3859_v48  ;;  %v3860_v31 = vadd.f32 %v3810_v46, %v8074_v7  ;;  %v3812_v5 = vadd.f32 %v3811_v34, %v3725_v25  ;;  %v3855_v37 = vadd.f32 %v3854_v28, %v3768_v49 }
 0x6ae   :  { %v3813_v45 = vpop.f32.mrf.mxu0  ;;  %v3856_v9 = vpop.f32.mrf.mxu1  ;;  %v3853_v25 = vadd.f32 %v3852_v41, %v3766_v30 }
 0x6af   :  { %6607 = vtanh.f32 %v3867_v60  ;;  %v3875_v53 = vmul.f32 0.5, %v3860_v31  ;;  %v3814_v22 = vadd.f32 %v3813_v45, %v3727_v56  ;;  %v3863_v20 = vadd.f32 %v3812_v5, %v8069_v4 }
 0x6b0   :  { %v3865_v46 = vadd.f32 %v3855_v37, %v8080_v15  ;;  %v3857_v60 = vadd.f32 %v3856_v9, %v3770_v18  ;;  %v3862_v10 = vadd.f32 %v3853_v25, %v8101_v12 }
 0x6b1   :  { %6609 = vtanh.f32 %v3875_v53  ;;  %v3864_v36 = vadd.f32 %v3814_v22, %v8074_v7  ;;  %v3868_v35 = vmul.f32 0.5, %v3863_v20 }
 0x6b2   :  { %6611 = vtanh.f32 %v3861_v62  ;;  %v3866_v45 = vadd.f32 %v3857_v60, %v8101_v12  ;;  %v3885_v49 = vmul.f32 0.5, %v3862_v10 }
 0x6b3   :  { %v3876_v1 = vmul.f32 0.5, %v3864_v36  ;;  %6613 = vtanh.f32 %v3868_v35 }
 0x6b4   :  { %v3886_v62 = vmul.f32 0.5, %v3866_v45 }
 0x6b5   :  { %6615 = vtanh.f32 %v3876_v1 }
 0x6b6   :  { %6617 = vtanh.f32 %v3865_v46 }
 0x6b7   :  { %6619 = vtanh.f32 %v3885_v49 }
 0x6b8   :  { %6621 = vtanh.f32 %v3886_v62 }
 0x6bc   :  { %v6608_v5 = vpop.eup %6607 }
 0x6bd   :  { %v3871_v53 = vmul.f32 0.5, %v6608_v5 }
 0x6be   :  { %v6610_v28 = vpop.eup %6609 }
 0x6bf   :  { %v3873_v22 = vadd.f32 0.5, %v3871_v53  ;;  %v3879_v56 = vmul.f32 0.5, %v6610_v28  ;;  %v6612_v48 = vpop.eup %6611 }
 0x6c0   :  { %v6614_v16 = vpop.eup %6613 }
 0x6c1   :  { %v3881_v34 = vadd.f32 0.5, %v3879_v56  ;;  %v3872_v20 = vmul.f32 0.5, %v6614_v16  ;;  %v3895_v18 = vmul.f32 %v6612_v48, %v3873_v22 }
 0x6c2   :  { %v6616_v31 = vpop.eup %6615 }
 0x6c3   :  { %v3893_v30 = vmul.f32 %v3881_v34, %v9407_v24  ;;  %v3880_v41 = vmul.f32 0.5, %v6616_v31  ;;  %v3874_v37 = vadd.f32 0.5, %v3872_v20  ;;  %v6618_v1 = vpop.eup %6617  ;;  %v11858_v31 = vld [vmem:[#allocation131_spill] sm:$0xff]  ;;  %v11859_v20 = vld [vmem:[#allocation132_spill] sm:$0xff] }
 0x6c4   :  { %v6620_v60 = vpop.eup %6619 }
 0x6c5   :  { %v9741_v36 = vadd.f32 %v3895_v18, %v3893_v30  ;;  %v3882_v35 = vadd.f32 0.5, %v3880_v41  ;;  %v3896_v46 = vmul.f32 %v6618_v1, %v3874_v37  ;;  %v6622_v10 = vpop.eup %6621  ;;  %v3889_v24 = vmul.f32 0.5, %v6620_v60  ;;  %v11860_v41 = vld [vmem:[#allocation133_spill] sm:$0xff]  ;;  %v11861_v37 = vld [vmem:[#allocation134_spill] sm:$0xff]  ;;  %v11863_v1 = vld [vmem:[#allocation136_spill] sm:$0xff] }
 0x6c6   :  { %v3890_v45 = vmul.f32 0.5, %v6622_v10  ;;  %v11866_v60 = vld [vmem:[#allocation15_spill] sm:$0xff]  ;;  %v11867_v10 = vld [vmem:[#allocation30_spill] sm:$0xff] }
 0x6c7   :  { %v3894_v9 = vmul.f32 %v3882_v35, %v9411_v23  ;;  %6623 = vtanh.f32 %v9741_v36  ;;  %v3891_v53 = vadd.f32 0.5, %v3889_v24  ;;  %v11862_v35 = vld [vmem:[#allocation135_spill] sm:$0xff] }
 0x6c8   :  { %v3892_v28 = vadd.f32 0.5, %v3890_v45  ;;  %v3938_v62 = vpop.f32.mrf.mxu0  ;;  %v3981_v48 = vpop.f32.mrf.mxu1 }
 0x6c9   :  { %v9745_v25 = vadd.f32 %v3896_v46, %v3894_v9  ;;  %v11864_v9 = vld [vmem:[#allocation137_spill] sm:$0xff]  ;;  %v11865_v46 = vld [vmem:[#allocation138_spill] sm:$0xff] }
 0x6ca   :  { %v3940_v16 = vpop.f32.mrf.mxu0  ;;  %v3983_v34 = vpop.f32.mrf.mxu1 }
 0x6cb   :  { %6625 = vtanh.f32 %v9745_v25 }
 0x6cc   :  { %v3942_v30 = vpop.f32.mrf.mxu0  ;;  %v3985_v18 = vpop.f32.mrf.mxu1 }
 0x6d4   :  { %v6624_v5 = vpop.eup %6623 }
 0x6d5   :  { %v3901_v22 = vmul.f32 %v6624_v5, %v3891_v53  ;;  %v11868_v53 = vld [vmem:[#allocation24_spill] sm:$0xff] }
 0x6d8   :  { %v6626_v49 = vpop.eup %6625 }
 0x6d9   :  { %v3902_v56 = vmul.f32 %v6626_v49, %v3892_v28  ;;  %v11869_v28 = vld [vmem:[#allocation25_spill] sm:$0xff] }
 0x6db   :  { %v9748_v23 = vpack.c.bf16 %v3902_v56, %v3901_v22 }
 0x6dd   :  { %4285 = vmatmul.mubr.bf16.vlgmr.msra.gmra.mxu0 %v9748_v23  ;;  %4328 = vmatmul.mubr.bf16.vlgmr.msra.gmra.mxu1 %v9748_v23 }
 0x6de   :  { %4339 = vmatpush1.bf16.msra.mxu0 %v9420_v11  ;;  %4382 = vmatpush1.bf16.msra.mxu1 %v9423_v32  ;;  %v3944_v11 = vpop.f32.mrf.mxu0  ;;  %v3987_v32 = vpop.f32.mrf.mxu1 }
 0x6df   :  { %4340 = vmatprep.subr.bf16.mxu0 %v11858_v31  ;;  %4383 = vmatprep.subr.bf16.mxu1 %v11859_v20 }
 0x6e0   :  { %4370 = vmatprep.mubr.bf16.mxu0 %v11301_v44  ;;  %4413 = vmatprep.mubr.bf16.mxu1 %v11301_v44 }
 0x6e2   :  { %4341 = vmatpush1.bf16.msra.mxu0 %v11860_v41  ;;  %4384 = vmatpush1.bf16.msra.mxu1 %v11861_v37  ;;  %v11870_v37 = vld [vmem:[#allocation29_spill] sm:$0xff] }
 0x6e3   :  { %4342 = vmatprep.subr.bf16.mxu0 %v11862_v35  ;;  %4385 = vmatprep.subr.bf16.mxu1 %v11863_v1 }
 0x6e6   :  { %4343 = vmatpush1.bf16.msra.mxu0 %v11864_v9  ;;  %4386 = vmatpush1.bf16.msra.mxu1 %v11865_v46  ;;  %v11871_v46 = vld [vmem:[#allocation26_spill] sm:$0xff] }
 0x6e7   :  { %4344 = vmatprep.subr.bf16.mxu0 %v11866_v60  ;;  %4387 = vmatprep.subr.bf16.mxu1 %v11867_v10 }
 0x6e8   :  { %v4024_v24 = vpop.f32.mrf.mxu0  ;;  %v4067_v45 = vpop.f32.mrf.mxu1 }
 0x6e9   :  { %v4025_v5 = vadd.f32 %v4024_v24, %v3938_v62  ;;  %v4068_v31 = vadd.f32 %v4067_v45, %v3981_v48 }
 0x6ea   :  { %4345 = vmatpush1.bf16.msra.mxu0 %v11868_v53  ;;  %4388 = vmatpush1.bf16.msra.mxu1 %v11869_v28  ;;  %v4026_v49 = vpop.f32.mrf.mxu0  ;;  %v4069_v22 = vpop.f32.mrf.mxu1  ;;  %v9803_v53 = vld [vmem:[#allocation10 + $0xe8] ss:$16 sps:$4 sm:$0xff]  }
 0x6eb   :  { %v4076_v56 = vadd.f32 %v4025_v5, %v8628_v0  ;;  %v4027_v20 = vadd.f32 %v4026_v49, %v3940_v16  ;;  %4346 = vmatprep.subr.bf16.mxu0 %v9467_v42  ;;  %4389 = vmatprep.subr.bf16.mxu1 %v11870_v37  ;;  %v4078_v10 = vadd.f32 %v4068_v31, %v8649_v26  ;;  %v9792_v5 = vld [vmem:[#allocation10 + $0xe4] ss:$16 sps:$4 sm:$0xff]   ;;  %v9809_v31 = vld [vmem:[#allocation10 + $0xcc] ss:$16 sps:$4 sm:$0xff]  }
 0x6ec   :  { %v4028_v41 = vpop.f32.mrf.mxu0  ;;  %v4071_v62 = vpop.f32.mrf.mxu1 }
 0x6ed   :  { %v4084_v35 = vmul.f32 0.5, %v4076_v56  ;;  %v4077_v1 = vadd.f32 %v4027_v20, %v8638_v21  ;;  %v4029_v9 = vadd.f32 %v4028_v41, %v3942_v30  ;;  %v4072_v24 = vadd.f32 %v4071_v62, %v3985_v18  ;;  %v9806_v56 = vld [vmem:[#allocation10 + $0xc4] ss:$16 sps:$4 sm:$0xff]  }
 0x6ee   :  { %4347 = vmatpush1.bf16.msra.mxu0 %v9474_v13  ;;  %4390 = vmatpush1.bf16.msra.mxu1 %v11871_v46  ;;  %v4030_v60 = vpop.f32.mrf.mxu0 }
 0x6ef   :  { %6627 = vtanh.f32 %v4084_v35  ;;  %v4092_v48 = vmul.f32 0.5, %v4077_v1  ;;  %v4031_v16 = vadd.f32 %v4030_v60, %v3944_v11  ;;  %4348 = vmatprep.subr.bf16.mxu0 %v9481_v29  ;;  %4391 = vmatprep.subr.bf16.mxu1 %v9484_v59  ;;  %v4080_v42 = vadd.f32 %v4029_v9, %v8628_v0  ;;  %v4073_v29 = vpop.f32.mrf.mxu1  ;;  %v9814_v1 = vld [vmem:[#allocation10 + $0xc0] ss:$16 sps:$4 sm:$0xff]   ;;  %v9817_v9 = vld [vmem:[#allocation10 + $0xc8] ss:$16 sps:$4 sm:$0xff]  }
 0x6f0   :  { %v4082_v59 = vadd.f32 %v4072_v24, %v8649_v26  ;;  %v4070_v11 = vadd.f32 %v4069_v22, %v3983_v34  ;;  %v4074_v18 = vadd.f32 %v4073_v29, %v3987_v32  ;;  %v9800_v32 = vld [vmem:[#allocation10 + $0xe0] ss:$16 sps:$4 sm:$0xff]  }
 0x6f1   :  { %6629 = vtanh.f32 %v4092_v48  ;;  %v4081_v30 = vadd.f32 %v4031_v16, %v8638_v21  ;;  %v4085_v45 = vmul.f32 0.5, %v4080_v42  ;;  %v9824_v48 = vld [vmem:[#allocation10 + $0xac] ss:$16 sps:$4 sm:$0xff]  }
 0x6f2   :  { %4349 = vmatpush1.bf16.msra.mxu0 %v9489_v8  ;;  %4392 = vmatpush1.bf16.msra.mxu1 %v9492_v27  ;;  %6631 = vtanh.f32 %v4078_v10  ;;  %v4079_v8 = vadd.f32 %v4070_v11, %v8689_v58  ;;  %v11872_v27 = vld [vmem:[#allocation27_spill] sm:$0xff]  ;;  %v9821_v10 = vld [vmem:[#allocation10 + $0xa4] ss:$16 sps:$4 sm:$0xff]  }
 0x6f3   :  { %v4093_v13 = vmul.f32 0.5, %v4081_v30  ;;  %4350 = vmatprep.subr.bf16.mxu0 %v9495_v39  ;;  %4393 = vmatprep.subr.bf16.mxu1 %v9498_v3  ;;  %6633 = vtanh.f32 %v4085_v45  ;;  %v11873_v39 = vld [vmem:[#allocation28_spill] sm:$0xff]  ;;  %v4083_v3 = vadd.f32 %v4074_v18, %v8689_v58  ;;  %v9839_v11 = vld [vmem:[#allocation10 + $0x8c] ss:$16 sps:$4 sm:$0xff]  }
 0x6f4   :  { %v4102_v34 = vmul.f32 0.5, %v4079_v8  ;;  %v9829_v45 = vld [vmem:[#allocation10 + $0xa0] ss:$16 sps:$4 sm:$0xff]  }
 0x6f5   :  { %6635 = vtanh.f32 %v4093_v13  ;;  %v4103_v22 = vmul.f32 0.5, %v4083_v3  ;;  %v9845_v8 = vld [vmem:[#allocation10 + $0x80] ss:$16 sps:$4 sm:$0xff]  }
 0x6f6   :  { %4351 = vmatpush1.bf16.msra.mxu0 %v9503_v63  ;;  %4394 = vmatpush1.bf16.msra.mxu1 %v9506_v2  ;;  %6637 = vtanh.f32 %v4082_v59  ;;  %v9795_v63 = vld [vmem:[#allocation10 + $0xec] ss:$16 sps:$4 sm:$0xff]   ;;  %v9836_v59 = vld [vmem:[#allocation10 + $0x84] ss:$16 sps:$4 sm:$0xff]   ;;  %v9858_v3 = vld [vmem:[#allocation10 + $0x60] ss:$16 sps:$4 sm:$0xff]  }
 0x6f7   :  { %4352 = vmatprep.subr.bf16.mxu0 %v9510_v51  ;;  %4395 = vmatprep.subr.bf16.mxu1 %v9513_v52  ;;  %6639 = vtanh.f32 %v4102_v34  ;;  %v9867_v34 = vld [vmem:[#allocation10 + $0x4c] ss:$16 sps:$4 sm:$0xff]  }
 0x6f8   :  { %6641 = vtanh.f32 %v4103_v22  ;;  %v9872_v22 = vld [vmem:[#allocation10 + $0x40] ss:$16 sps:$4 sm:$0xff]  }
 0x6f9   :  { %11874 = vst [vmem:[#allocation38_spill] sm:$0xff] %v9872_v22 }
 0x6fa   :  { %4353 = vmatpush1.bf16.msra.mxu0 %v11872_v27  ;;  %4396 = vmatpush1.bf16.msra.mxu1 %v11873_v39  ;;  %v9848_v27 = vld [vmem:[#allocation10 + $0x88] ss:$16 sps:$4 sm:$0xff]   ;;  %v9855_v39 = vld [vmem:[#allocation10 + $0x6c] ss:$16 sps:$4 sm:$0xff]  }
 0x6fb   :  { %4469 = vmatprep.subr.bf16.mxu0 %v9792_v5  ;;  %4512 = vmatprep.subr.bf16.mxu1 %v9795_v63 }
 0x6fc   :  { %v6628_v2 = vpop.eup %6627 }
 0x6fd   :  { %v4088_v51 = vmul.f32 0.5, %v6628_v2  ;;  %4371 = vmatmul.mubr.bf16.vlgmr.msra.gmra.mxu0 %v9692_v47  ;;  %4414 = vmatmul.mubr.bf16.vlgmr.msra.gmra.mxu1 %v9692_v47  ;;  %v9861_v2 = vld [vmem:[#allocation10 + $0x68] ss:$16 sps:$4 sm:$0xff]  }
 0x6fe   :  { %v6630_v52 = vpop.eup %6629  ;;  %4470 = vmatpush1.bf16.msra.mxu0 %v9800_v32  ;;  %4513 = vmatpush1.bf16.msra.mxu1 %v9803_v53 }
 0x6ff   :  { %v4090_v28 = vadd.f32 0.5, %v4088_v51  ;;  %v4096_v49 = vmul.f32 0.5, %v6630_v52  ;;  %4471 = vmatprep.subr.bf16.mxu0 %v9806_v56  ;;  %4514 = vmatprep.subr.bf16.mxu1 %v9809_v31  ;;  %v6632_v47 = vpop.eup %6631  ;;  %v9864_v52 = vld [vmem:[#allocation10 + $0x44] ss:$16 sps:$4 sm:$0xff]  }
 0x700   :  { %4501 = vmatprep.mubr.bf16.mxu0 %v11301_v44  ;;  %4544 = vmatprep.mubr.bf16.mxu1 %v11301_v44  ;;  %v6634_v20 = vpop.eup %6633 }
 0x701   :  { %v4098_v41 = vadd.f32 0.5, %v4096_v49  ;;  %v4089_v35 = vmul.f32 0.5, %v6634_v20  ;;  %v4112_v46 = vmul.f32 %v6632_v47, %v4090_v28  ;;  %v9875_v47 = vld [vmem:[#allocation10 + $0x48] ss:$16 sps:$4 sm:$0xff]  }
 0x702   :  { %v6636_v37 = vpop.eup %6635  ;;  %4472 = vmatpush1.bf16.msra.mxu0 %v9814_v1  ;;  %4515 = vmatpush1.bf16.msra.mxu1 %v9817_v9  ;;  %11875 = vst [vmem:[#allocation39_spill] sm:$0xff] %v9875_v47 }
 0x703   :  { %v4110_v62 = vmul.f32 %v4098_v41, %v9539_v55  ;;  %v4097_v60 = vmul.f32 0.5, %v6636_v37  ;;  %4473 = vmatprep.subr.bf16.mxu0 %v9821_v10  ;;  %4516 = vmatprep.subr.bf16.mxu1 %v9824_v48  ;;  %v4091_v16 = vadd.f32 0.5, %v4089_v35  ;;  %v6638_v30 = vpop.eup %6637  ;;  %v9832_v55 = vld [vmem:[#allocation10 + $0xa8] ss:$16 sps:$4 sm:$0xff]   ;;  %v9878_v37 = vld [vmem:[#allocation10 + $0x24] ss:$16 sps:$4 sm:$0xff]  }
 0x704   :  { %v6640_v51 = vpop.eup %6639  ;;  %11876 = vst [vmem:[#allocation40_spill] sm:$0xff] %v9878_v37  ;;  %v9881_v35 = vld [vmem:[#allocation10 + $0x2c] ss:$16 sps:$4 sm:$0xff]  }
 0x705   :  { %v9827_v42 = vadd.f32 %v4112_v46, %v4110_v62  ;;  %v4099_v24 = vadd.f32 0.5, %v4097_v60  ;;  %v4113_v29 = vmul.f32 %v6638_v30, %v4091_v16  ;;  %v6642_v28 = vpop.eup %6641  ;;  %v4106_v20 = vmul.f32 0.5, %v6640_v51  ;;  %11877 = vst [vmem:[#allocation41_spill] sm:$0xff] %v9881_v35  ;;  %v9884_v60 = vld [vmem:[#allocation10 + $0x20] ss:$16 sps:$4 sm:$0xff]  }
 0x706   :  { %4474 = vmatpush1.bf16.msra.mxu0 %v9829_v45  ;;  %4517 = vmatpush1.bf16.msra.mxu1 %v9832_v55  ;;  %v4107_v41 = vmul.f32 0.5, %v6642_v28  ;;  %11878 = vst [vmem:[#allocation42_spill] sm:$0xff] %v9884_v60  ;;  %v9887_v16 = vld [vmem:[#allocation10 + $0x28] ss:$16 sps:$4 sm:$0xff]   ;;  %v9896_v28 = vpop.permute.xlu1 %335 }
 0x707   :  { %v4111_v13 = vmul.f32 %v4099_v24, %v9547_v40  ;;  %4475 = vmatprep.subr.bf16.mxu0 %v9836_v59  ;;  %4518 = vmatprep.subr.bf16.mxu1 %v9839_v11  ;;  %6643 = vtanh.f32 %v9827_v42  ;;  %v9852_v40 = vld [vmem:[#allocation10 + $0x64] ss:$16 sps:$4 sm:$0xff]   ;;  %11879 = vst [vmem:[#allocation43_spill] sm:$0xff] %v9887_v16  ;;  %v4108_v24 = vadd.f32 0.5, %v4106_v20 }
 0x708   :  { %v9870_v49 = vpop.f32.mrf.mxu0  ;;  %v4109_v30 = vadd.f32 0.5, %v4107_v41 }
 0x709   :  { %v9843_v18 = vadd.f32 %v4113_v29, %v4111_v13  ;;  %v9890_v13 = vld [vmem:[#allocation10 + $0x4] ss:$16 sps:$4 sm:$0xff]   ;;  %v9893_v29 = vld [vmem:[#allocation10 + $0xc] ss:$16 sps:$4 sm:$0xff]  }
 0x70a   :  { %4476 = vmatpush1.bf16.msra.mxu0 %v9845_v8  ;;  %4519 = vmatpush1.bf16.msra.mxu1 %v9848_v27  ;;  %v4157_v62 = vpop.f32.mrf.mxu0  ;;  %11880 = vst [vmem:[#allocation44_spill] sm:$0xff] %v9890_v13  ;;  %11881 = vst [vmem:[#allocation45_spill] sm:$0xff] %v9893_v29 }
 0x70b   :  { %6645 = vtanh.f32 %v9843_v18  ;;  %4477 = vmatprep.subr.bf16.mxu0 %v9852_v40  ;;  %4520 = vmatprep.subr.bf16.mxu1 %v9855_v39 }
 0x70e   :  { %4478 = vmatpush1.bf16.msra.mxu0 %v9858_v3  ;;  %4521 = vmatpush1.bf16.msra.mxu1 %v9861_v2 }
 0x70f   :  { %4479 = vmatprep.subr.bf16.mxu0 %v9864_v52  ;;  %4522 = vmatprep.subr.bf16.mxu1 %v9867_v34 }
 0x712   :  { %4480 = vmatpush1.bf16.msra.mxu0 %v9872_v22  ;;  %4523 = vmatpush1.bf16.msra.mxu1 %v9875_v47  ;;  %v9904_v47 = vld [vmem:[#allocation10] ss:$16 sps:$4 sm:$0xff]   ;;  %v9912_v22 = vld [vmem:[#allocation8 + $0xe4] ss:$16 sps:$4 sm:$0xff]  }
 0x713   :  { %4481 = vmatprep.subr.bf16.mxu0 %v9878_v37  ;;  %4524 = vmatprep.subr.bf16.mxu1 %v9881_v35  ;;  %v4159_v35 = vpop.f32.mrf.mxu0  ;;  %v9898_v37 = vpop.permute.xlu0 %330  ;;  %11882 = vst [vmem:[#allocation46_spill] sm:$0xff] %v9904_v47  ;;  %11884 = vst [vmem:[#allocation48_spill] sm:$0xff] %v9912_v22 }
 0x714   :  { %v6644_v46 = vpop.eup %6643  ;;  %v339_v41 = vmul.f32 %v9898_v37, %v11752_v38 }
 0x716   :  { %4482 = vmatpush1.bf16.msra.mxu0 %v9884_v60  ;;  %4525 = vmatpush1.bf16.msra.mxu1 %v9887_v16  ;;  %v343_v60 = vmul.f32 %v9896_v28, %v11752_v38  ;;  %v4118_v16 = vmul.f32 %v6644_v46, %v4108_v24  ;;  %v9915_v46 = vld [vmem:[#allocation8 + $0xec] ss:$16 sps:$4 sm:$0xff]  }
 0x717   :  { %4483 = vmatprep.subr.bf16.mxu0 %v9890_v13  ;;  %4526 = vmatprep.subr.bf16.mxu1 %v9893_v29  ;;  %v9907_v13 = vld [vmem:[#allocation10 + $0x8] ss:$16 sps:$4 sm:$0xff]   ;;  %v342_v29 = vmul.f32 %v9896_v28, %v11527_v50  ;;  %11885 = vst [vmem:[#allocation49_spill] sm:$0xff] %v9915_v46 }
 0x718   :  { %v6646_v51 = vpop.eup %6645  ;;  %11883 = vst [vmem:[#allocation47_spill] sm:$0xff] %v9907_v13  ;;  %v351_v38 = vadd.f32 %v343_v60, %v7721_v61  ;;  %v9932_v60 = vld [vmem:[#allocation8 + $0xcc] ss:$16 sps:$4 sm:$0xff]  }
 0x719   :  { %v4119_v20 = vmul.f32 %v6646_v51, %v4109_v30  ;;  %v4161_v30 = vpop.f32.mrf.mxu0  ;;  %v338_v51 = vmul.f32 %v9898_v37, %v11527_v50  ;;  %11886 = vst [vmem:[#allocation50_spill] sm:$0xff] %v9932_v60  ;;  %v9938_v50 = vld [vmem:[#allocation8 + $0xc0] ss:$16 sps:$4 sm:$0xff]  }
 0x71a   :  { %4484 = vmatpush1.bf16.msra.mxu0 %v9904_v47  ;;  %4527 = vmatpush1.bf16.msra.mxu1 %v9907_v13  ;;  %v347_v13 = vadd.f32 %v339_v41, %v7721_v61  ;;  %v9922_v47 = vld [vmem:[#allocation8 + $0xe0] ss:$16 sps:$4 sm:$0xff]   ;;  %11887 = vst [vmem:[#allocation51_spill] sm:$0xff] %v9938_v50 }
 0x71b   :  { %4555 = vmatprep.subr.bf16.mxu0 %v9912_v22  ;;  %4598 = vmatprep.subr.bf16.mxu1 %v9915_v46  ;;  %v4468_v24 = vpack.c.bf16 %v4119_v20, %v4118_v16  ;;  %v9925_v22 = vld [vmem:[#allocation8 + $0xe8] ss:$16 sps:$4 sm:$0xff]   ;;  %v350_v16 = vadd.f32 %v342_v29, %v7711_v57  ;;  %v4212_v20 = vadd.f32 %v4161_v30, %v351_v38  ;;  %v9929_v46 = vld [vmem:[#allocation8 + $0xc4] ss:$16 sps:$4 sm:$0xff]  }
 0x71c   :  { %v4208_v41 = vadd.f32 %v4157_v62, %v347_v13  ;;  %v9941_v38 = vld [vmem:[#allocation8 + $0xc8] ss:$16 sps:$4 sm:$0xff]   ;;  %v9948_v62 = vld [vmem:[#allocation8 + $0xac] ss:$16 sps:$4 sm:$0xff]  }
 0x71d   :  { %4502 = vmatmul.mubr.bf16.vlgmr.msra.gmra.mxu0 %v4468_v24  ;;  %4545 = vmatmul.mubr.bf16.vlgmr.msra.gmra.mxu1 %v4468_v24  ;;  %v346_v24 = vadd.f32 %v338_v51, %v7711_v57  ;;  %v4211_v61 = vadd.f32 %v4159_v35, %v350_v16  ;;  %11888 = vst [vmem:[#allocation52_spill] sm:$0xff] %v9941_v38  ;;  %v4224_v30 = vmul.f32 0.5, %v4212_v20  ;;  %11890 = vst [vmem:[#allocation54_spill] sm:$0xff] %v9948_v62  ;;  %v4198_v35 = vpop.f32.mrf.mxu1  ;;  %v9951_v16 = vld [vmem:[#allocation8 + $0xa0] ss:$16 sps:$4 sm:$0xff]  }
 0x71e   :  { %4556 = vmatpush1.bf16.msra.mxu0 %v9922_v47  ;;  %4599 = vmatpush1.bf16.msra.mxu1 %v9925_v22  ;;  %v4223_v13 = vmul.f32 0.5, %v4208_v41  ;;  %11891 = vst [vmem:[#allocation55_spill] sm:$0xff] %v9951_v16  ;;  %v9954_v57 = vld [vmem:[#allocation8 + $0xa8] ss:$16 sps:$4 sm:$0xff]   ;;  %v9957_v20 = vld [vmem:[#allocation8 + $0x84] ss:$16 sps:$4 sm:$0xff]   ;;  %v344_v41 = vmul.f32 %v9896_v28, %v11769_v14 }
 0x71f   :  { %4557 = vmatprep.subr.bf16.mxu0 %v9929_v46  ;;  %4600 = vmatprep.subr.bf16.mxu1 %v9932_v60  ;;  %v4207_v29 = vadd.f32 %v9870_v49, %v346_v24  ;;  %v9945_v60 = vld [vmem:[#allocation8 + $0xa4] ss:$16 sps:$4 sm:$0xff]   ;;  %v4216_v51 = vmul.f32 0.5, %v4211_v61  ;;  %11892 = vst [vmem:[#allocation56_spill] sm:$0xff] %v9954_v57  ;;  %6647 = vtanh.f32 %v4224_v30  ;;  %11893 = vst [vmem:[#allocation57_spill] sm:$0xff] %v9957_v20  ;;  %v4200_v61 = vpop.f32.mrf.mxu1 }
 0x720   :  { %4587 = vmatprep.mubr.bf16.mxu0 %v11301_v44  ;;  %4630 = vmatprep.mubr.bf16.mxu1 %v11301_v44  ;;  %11889 = vst [vmem:[#allocation53_spill] sm:$0xff] %v9945_v60  ;;  %v9960_v24 = vld [vmem:[#allocation8 + $0x8c] ss:$16 sps:$4 sm:$0xff]   ;;  %6649 = vtanh.f32 %v4223_v13  ;;  %v340_v30 = vmul.f32 %v9898_v37, %v11769_v14 }
 0x721   :  { %v4215_v49 = vmul.f32 0.5, %v4207_v29  ;;  %11894 = vst [vmem:[#allocation58_spill] sm:$0xff] %v9960_v24  ;;  %6651 = vtanh.f32 %v4216_v51  ;;  %v9968_v29 = vld [vmem:[#allocation8 + $0x88] ss:$16 sps:$4 sm:$0xff]   ;;  %v9976_v13 = vld [vmem:[#allocation8 + $0x6c] ss:$16 sps:$4 sm:$0xff]   ;;  %v4202_v51 = vpop.f32.mrf.mxu1 }
 0x722   :  { %4558 = vmatpush1.bf16.msra.mxu0 %v9938_v50  ;;  %4601 = vmatpush1.bf16.msra.mxu1 %v9941_v38  ;;  %11896 = vst [vmem:[#allocation60_spill] sm:$0xff] %v9968_v29  ;;  %11898 = vst [vmem:[#allocation62_spill] sm:$0xff] %v9976_v13 }
 0x723   :  { %4559 = vmatprep.subr.bf16.mxu0 %v9945_v60  ;;  %4602 = vmatprep.subr.bf16.mxu1 %v9948_v62  ;;  %6653 = vtanh.f32 %v4215_v49  ;;  %v348_v49 = vadd.f32 %v340_v30, %v11774_v43  ;;  %v10001_v30 = vld [vmem:[#allocation8 + $0x24] ss:$16 sps:$4 sm:$0xff]   ;;  %v10023_v62 = vld [vmem:[#allocation8] ss:$16 sps:$4 sm:$0xff]  }
 0x724   :  { %11905 = vst [vmem:[#allocation69_spill] sm:$0xff] %v10001_v30  ;;  %11911 = vst [vmem:[#allocation75_spill] sm:$0xff] %v10023_v62 }
 0x726   :  { %4560 = vmatpush1.bf16.msra.mxu0 %v9951_v16  ;;  %4603 = vmatpush1.bf16.msra.mxu1 %v9954_v57  ;;  %v9965_v16 = vld [vmem:[#allocation8 + $0x80] ss:$16 sps:$4 sm:$0xff]   ;;  %v9987_v57 = vld [vmem:[#allocation8 + $0x44] ss:$16 sps:$4 sm:$0xff]  }
 0x727   :  { %4561 = vmatprep.subr.bf16.mxu0 %v9957_v20  ;;  %4604 = vmatprep.subr.bf16.mxu1 %v9960_v24  ;;  %11895 = vst [vmem:[#allocation59_spill] sm:$0xff] %v9965_v16  ;;  %v9973_v20 = vld [vmem:[#allocation8 + $0x64] ss:$16 sps:$4 sm:$0xff]   ;;  %v352_v24 = vadd.f32 %v344_v41, %v11774_v43  ;;  %11901 = vst [vmem:[#allocation65_spill] sm:$0xff] %v9987_v57  ;;  %v4209_v41 = vadd.f32 %v4198_v35, %v348_v49 }
 0x728   :  { %11897 = vst [vmem:[#allocation61_spill] sm:$0xff] %v9973_v20  ;;  %v341_v43 = vmul.f32 %v9898_v37, %v11781_v17 }
 0x729   :  { %v4213_v14 = vadd.f32 %v4202_v51, %v352_v24  ;;  %v345_v24 = vmul.f32 %v9896_v28, %v11781_v17  ;;  %v10004_v51 = vld [vmem:[#allocation8 + $0x2c] ss:$16 sps:$4 sm:$0xff]   ;;  %v10012_v28 = vld [vmem:[#allocation8 + $0x28] ss:$16 sps:$4 sm:$0xff]  }
 0x72a   :  { %4562 = vmatpush1.bf16.msra.mxu0 %v9965_v16  ;;  %4605 = vmatpush1.bf16.msra.mxu1 %v9968_v29  ;;  %v9980_v16 = vld [vmem:[#allocation8 + $0x60] ss:$16 sps:$4 sm:$0xff]   ;;  %v9983_v29 = vld [vmem:[#allocation8 + $0x68] ss:$16 sps:$4 sm:$0xff]   ;;  %11906 = vst [vmem:[#allocation70_spill] sm:$0xff] %v10004_v51  ;;  %11908 = vst [vmem:[#allocation72_spill] sm:$0xff] %v10012_v28 }
 0x72b   :  { %4563 = vmatprep.subr.bf16.mxu0 %v9973_v20  ;;  %4606 = vmatprep.subr.bf16.mxu1 %v9976_v13  ;;  %11899 = vst [vmem:[#allocation63_spill] sm:$0xff] %v9980_v16  ;;  %11900 = vst [vmem:[#allocation64_spill] sm:$0xff] %v9983_v29  ;;  %v9990_v20 = vld [vmem:[#allocation8 + $0x4c] ss:$16 sps:$4 sm:$0xff]   ;;  %v9993_v13 = vld [vmem:[#allocation8 + $0x40] ss:$16 sps:$4 sm:$0xff]   ;;  %6655 = vtanh.f32 %v4213_v14 }
 0x72c   :  { %11902 = vst [vmem:[#allocation66_spill] sm:$0xff] %v9990_v20  ;;  %11903 = vst [vmem:[#allocation67_spill] sm:$0xff] %v9993_v13  ;;  %v6648_v35 = vpop.eup %6647  ;;  %6657 = vtanh.f32 %v4209_v41  ;;  %v10009_v14 = vld [vmem:[#allocation8 + $0x20] ss:$16 sps:$4 sm:$0xff]   ;;  %v10019_v41 = vld [vmem:[#allocation8 + $0xc] ss:$16 sps:$4 sm:$0xff]  }
 0x72d   :  { %v6650_v49 = vpop.eup %6649  ;;  %11907 = vst [vmem:[#allocation71_spill] sm:$0xff] %v10009_v14  ;;  %11910 = vst [vmem:[#allocation73_spill] sm:$0xff] %v10019_v41 }
 0x72e   :  { %4564 = vmatpush1.bf16.msra.mxu0 %v9980_v16  ;;  %4607 = vmatpush1.bf16.msra.mxu1 %v9983_v29  ;;  %v9996_v16 = vld [vmem:[#allocation8 + $0x48] ss:$16 sps:$4 sm:$0xff]   ;;  %v4227_v17 = vmul.f32 0.5, %v6650_v49 }
 0x72f   :  { %4565 = vmatprep.subr.bf16.mxu0 %v9987_v57  ;;  %4608 = vmatprep.subr.bf16.mxu1 %v9990_v20  ;;  %11904 = vst [vmem:[#allocation68_spill] sm:$0xff] %v9996_v16  ;;  %v353_v20 = vadd.f32 %v345_v24, %v11786_v6  ;;  %v349_v57 = vadd.f32 %v341_v43, %v11786_v6  ;;  %v10113_v6 = vld [vmem:[#allocation7 + $0x68] ss:$16 sps:$4 sm:$0xff]  }
 0x730   :  { %v4229_v49 = vadd.f32 0.5, %v4227_v17  ;;  %v11917_v17 = vld [vmem:[#allocation37_spill] sm:$0xff]  ;;  %11942 = vst [vmem:[#allocation98_spill] sm:$0xff] %v10113_v6 }
 0x732   :  { %4566 = vmatpush1.bf16.msra.mxu0 %v9993_v13  ;;  %4609 = vmatpush1.bf16.msra.mxu1 %v9996_v16  ;;  %v6652_v13 = vpop.eup %6651  ;;  %v4204_v16 = vpop.f32.mrf.mxu1 }
 0x733   :  { %4567 = vmatprep.subr.bf16.mxu0 %v10001_v30  ;;  %4610 = vmatprep.subr.bf16.mxu1 %v10004_v51  ;;  %v4228_v30 = vmul.f32 0.5, %v6648_v35  ;;  %v10016_v51 = vld [vmem:[#allocation8 + $0x4] ss:$16 sps:$4 sm:$0xff]   ;;  %v6654_v37 = vpop.eup %6653  ;;  %v4214_v29 = vadd.f32 %v4204_v16, %v353_v20  ;;  %v10026_v35 = vld [vmem:[#allocation8 + $0x8] ss:$16 sps:$4 sm:$0xff]  }
 0x734   :  { %11909 = vst [vmem:[#allocation74_spill] sm:$0xff] %v10016_v51  ;;  %11912 = vst [vmem:[#allocation76_spill] sm:$0xff] %v10026_v35  ;;  %v4219_v24 = vmul.f32 0.5, %v6654_v37  ;;  %v11913_v16 = vld [vmem:[#allocation31_spill] sm:$0xff]  ;;  %v11914_v37 = vld [vmem:[#allocation21_spill] sm:$0xff] }
 0x735   :  { %v4234_v43 = vmul.f32 0.5, %v4214_v29  ;;  %v4241_v29 = vmul.f32 %v4229_v49, %v11917_v17  ;;  %v7158_v49 = vld [vmem:[#allocation3 + $0xa8] ss:$16 sps:$4 sm:$0xff]   ;;  %v7165_v17 = vld [vmem:[#allocation3 + $0x60] ss:$16 sps:$4 sm:$0xff]  }
 0x736   :  { %4568 = vmatpush1.bf16.msra.mxu0 %v10009_v14  ;;  %4611 = vmatpush1.bf16.msra.mxu1 %v10012_v28  ;;  %v4220_v14 = vmul.f32 0.5, %v6652_v13  ;;  %v4230_v28 = vadd.f32 0.5, %v4228_v30  ;;  %v4221_v20 = vadd.f32 0.5, %v4219_v24  ;;  %v11918_v30 = vld [vmem:[#allocation34_spill] sm:$0xff]  ;;  %v11921_v24 = vld [vmem:[#allocation36_spill] sm:$0xff] }
 0x737   :  { %4569 = vmatprep.subr.bf16.mxu0 %v10016_v51  ;;  %4612 = vmatprep.subr.bf16.mxu1 %v10019_v41  ;;  %v4210_v51 = vadd.f32 %v4200_v61, %v349_v57  ;;  %v11915_v61 = vld [vmem:[#allocation32_spill] sm:$0xff]  ;;  %6659 = vtanh.f32 %v4234_v43  ;;  %v7160_v43 = vld [vmem:[#allocation3 + $0x8c] ss:$16 sps:$4 sm:$0xff]  }
 0x738   :  { %v4222_v41 = vadd.f32 0.5, %v4220_v14  ;;  %v4242_v57 = vmul.f32 %v4230_v28, %v11914_v37  ;;  %v11919_v14 = vld [vmem:[#allocation35_spill] sm:$0xff] }
 0x739   :  { %v4233_v13 = vmul.f32 0.5, %v4210_v51 }
 0x73a   :  { %4570 = vmatpush1.bf16.msra.mxu0 %v10023_v62  ;;  %4613 = vmatpush1.bf16.msra.mxu1 %v10026_v35 }
 0x73b   :  { %4686 = vmatprep.subr.bf16.mxu0 %v9630_v54  ;;  %4729 = vmatprep.subr.bf16.mxu1 %v9633_v19  ;;  %v11916_v54 = vld [vmem:[#allocation33_spill] sm:$0xff]  ;;  %v6656_v19 = vpop.eup %6655  ;;  %6661 = vtanh.f32 %v4233_v13 }
 0x73c   :  { %v7162_v13 = vld [vmem:[#allocation3 + $0x88] ss:$16 sps:$4 sm:$0xff]  }
 0x73d   :  { %4588 = vmatmul.mubr.bf16.vlgmr.msra.gmra.mxu0 %v9748_v23  ;;  %4631 = vmatmul.mubr.bf16.vlgmr.msra.gmra.mxu1 %v9748_v23  ;;  %v4244_v23 = vmul.f32 %v6656_v19, %v4222_v41  ;;  %v7159_v41 = vld [vmem:[#allocation3 + $0x84] ss:$16 sps:$4 sm:$0xff]  }
 0x73e   :  { %4687 = vmatpush1.bf16.msra.mxu0 %v9638_v33  ;;  %4730 = vmatpush1.bf16.msra.mxu1 %v11913_v16  ;;  %v6658_v33 = vpop.eup %6657  ;;  %v7156_v16 = vld [vmem:[#allocation3 + $0xac] ss:$16 sps:$4 sm:$0xff]  }
 0x73f   :  { %4688 = vmatprep.subr.bf16.mxu0 %v11915_v61  ;;  %4731 = vmatprep.subr.bf16.mxu1 %v11916_v54  ;;  %v4243_v51 = vmul.f32 %v6658_v33, %v4221_v20  ;;  %v10043_v28 = vadd.f32 %v4244_v23, %v4242_v57  ;;  %v7157_v61 = vld [vmem:[#allocation3 + $0xa0] ss:$16 sps:$4 sm:$0xff]   ;;  %v7163_v57 = vld [vmem:[#allocation3 + $0x64] ss:$16 sps:$4 sm:$0xff]   ;;  %v7164_v54 = vld [vmem:[#allocation3 + $0x6c] ss:$16 sps:$4 sm:$0xff]  }
 0x740   :  { %4718 = vmatprep.mubr.bf16.mxu0 %v11301_v44  ;;  %4761 = vmatprep.mubr.bf16.mxu1 %v11301_v44  ;;  %v7161_v20 = vld [vmem:[#allocation3 + $0x80] ss:$16 sps:$4 sm:$0xff]   ;;  %v7167_v23 = vld [vmem:[#allocation3 + $0x44] ss:$16 sps:$4 sm:$0xff]   ;;  %v7168_v33 = vld [vmem:[#allocation3 + $0x4c] ss:$16 sps:$4 sm:$0xff]  }
 0x741   :  { %11920 = vst [vmem:[#allocation89_spill] sm:$0xff] %v10043_v28  ;;  %v10046_v37 = vadd.f32 %v4243_v51, %v4241_v29  ;;  %6663 = vtanh.f32 %v10043_v28  ;;  %v7166_v29 = vld [vmem:[#allocation3 + $0x68] ss:$16 sps:$4 sm:$0xff]   ;;  %v7169_v51 = vld [vmem:[#allocation3 + $0x40] ss:$16 sps:$4 sm:$0xff]  }
 0x742   :  { %4689 = vmatpush1.bf16.msra.mxu0 %v11918_v30  ;;  %4732 = vmatpush1.bf16.msra.mxu1 %v11919_v14  ;;  %v10110_v28 = vld [vmem:[#allocation7 + $0x60] ss:$16 sps:$4 sm:$0xff]  }
 0x743   :  { %4690 = vmatprep.subr.bf16.mxu0 %v11921_v24  ;;  %4733 = vmatprep.subr.bf16.mxu1 %v7156_v16  ;;  %11922 = vst [vmem:[#allocation77_spill] sm:$0xff] %v10046_v37  ;;  %6665 = vtanh.f32 %v10046_v37  ;;  %v7170_v24 = vld [vmem:[#allocation3 + $0x48] ss:$16 sps:$4 sm:$0xff]   ;;  %v10107_v37 = vld [vmem:[#allocation7 + $0x6c] ss:$16 sps:$4 sm:$0xff]   ;;  %11941 = vst [vmem:[#allocation97_spill] sm:$0xff] %v10110_v28 }
 0x744   :  { %v6660_v19 = vpop.eup %6659  ;;  %11940 = vst [vmem:[#allocation96_spill] sm:$0xff] %v10107_v37 }
 0x745   :  { %v4238_v14 = vmul.f32 0.5, %v6660_v19  ;;  %v7176_v19 = vld [vmem:[#allocation3 + $0xc] ss:$16 sps:$4 sm:$0xff]  }
 0x746   :  { %4691 = vmatpush1.bf16.msra.mxu0 %v7157_v61  ;;  %4734 = vmatpush1.bf16.msra.mxu1 %v7158_v49  ;;  %v7171_v61 = vld [vmem:[#allocation3 + $0x24] ss:$16 sps:$4 sm:$0xff]   ;;  %v7172_v49 = vld [vmem:[#allocation3 + $0x2c] ss:$16 sps:$4 sm:$0xff]  }
 0x747   :  { %4692 = vmatprep.subr.bf16.mxu0 %v7159_v41  ;;  %4735 = vmatprep.subr.bf16.mxu1 %v7160_v43  ;;  %v4240_v43 = vadd.f32 0.5, %v4238_v14  ;;  %v10055_v14 = vld [vmem:[#allocation7 + $0xec] ss:$16 sps:$4 sm:$0xff]  }
 0x748   :  { %v6662_v30 = vpop.eup %6661  ;;  %11924 = vst [vmem:[#allocation79_spill] sm:$0xff] %v10055_v14 }
 0x749   :  { %v4237_v16 = vmul.f32 0.5, %v6662_v30  ;;  %v7178_v30 = vld [vmem:[#allocation3 + $0x8] ss:$16 sps:$4 sm:$0xff]  }
 0x74a   :  { %4693 = vmatpush1.bf16.msra.mxu0 %v7161_v20  ;;  %4736 = vmatpush1.bf16.msra.mxu1 %v7162_v13  ;;  %v7173_v13 = vld [vmem:[#allocation3 + $0x20] ss:$16 sps:$4 sm:$0xff]  }
 0x74b   :  { %4694 = vmatprep.subr.bf16.mxu0 %v7163_v57  ;;  %4737 = vmatprep.subr.bf16.mxu1 %v7164_v54  ;;  %v7174_v57 = vld [vmem:[#allocation3 + $0x28] ss:$16 sps:$4 sm:$0xff]   ;;  %v4239_v54 = vadd.f32 0.5, %v4237_v16  ;;  %v10060_v16 = vld [vmem:[#allocation7 + $0xe0] ss:$16 sps:$4 sm:$0xff]  }
 0x74c   :  { %11925 = vst [vmem:[#allocation80_spill] sm:$0xff] %v10060_v16 }
 0x74e   :  { %4695 = vmatpush1.bf16.msra.mxu0 %v7165_v17  ;;  %4738 = vmatpush1.bf16.msra.mxu1 %v7166_v29  ;;  %v6664_v41 = vpop.eup %6663  ;;  %v7175_v29 = vld [vmem:[#allocation3 + $0x4] ss:$16 sps:$4 sm:$0xff]  }
 0x74f   :  { %4696 = vmatprep.subr.bf16.mxu0 %v7167_v23  ;;  %4739 = vmatprep.subr.bf16.mxu1 %v7168_v33  ;;  %v4250_v17 = vmul.f32 %v6664_v41, %v4240_v43  ;;  %v7177_v33 = vld [vmem:[#allocation3] ss:$16 sps:$4 sm:$0xff]   ;;  %v10069_v41 = vld [vmem:[#allocation7 + $0xcc] ss:$16 sps:$4 sm:$0xff]  }
 0x750   :  { %v6666_v20 = vpop.eup %6665  ;;  %11928 = vst [vmem:[#allocation82_spill] sm:$0xff] %v10069_v41  ;;  %v10074_v43 = vld [vmem:[#allocation7 + $0xc0] ss:$16 sps:$4 sm:$0xff]  }
 0x751   :  { %v4249_v23 = vmul.f32 %v6666_v20, %v4239_v54  ;;  %11929 = vst [vmem:[#allocation83_spill] sm:$0xff] %v10074_v43  ;;  %v10077_v20 = vld [vmem:[#allocation7 + $0xc8] ss:$16 sps:$4 sm:$0xff]   ;;  %v10086_v54 = vld [vmem:[#allocation7 + $0xa0] ss:$16 sps:$4 sm:$0xff]  }
 0x752   :  { %4697 = vmatpush1.bf16.msra.mxu0 %v7169_v51  ;;  %4740 = vmatpush1.bf16.msra.mxu1 %v7170_v24  ;;  %v10052_v24 = vld [vmem:[#allocation7 + $0xe4] ss:$16 sps:$4 sm:$0xff]   ;;  %11930 = vst [vmem:[#allocation84_spill] sm:$0xff] %v10077_v20  ;;  %11933 = vst [vmem:[#allocation87_spill] sm:$0xff] %v10086_v54 }
 0x753   :  { %4698 = vmatprep.subr.bf16.mxu0 %v7171_v61  ;;  %4741 = vmatprep.subr.bf16.mxu1 %v7172_v49  ;;  %v10050_v51 = vpack.c.bf16 %v4250_v17, %v4249_v23  ;;  %11923 = vst [vmem:[#allocation78_spill] sm:$0xff] %v10052_v24  ;;  %v10063_v61 = vld [vmem:[#allocation7 + $0xe8] ss:$16 sps:$4 sm:$0xff]   ;;  %v10066_v49 = vld [vmem:[#allocation7 + $0xc4] ss:$16 sps:$4 sm:$0xff]  }
 0x754   :  { %11926 = vst [vmem:[#allocation90_spill] sm:$0xff] %v10063_v61  ;;  %11927 = vst [vmem:[#allocation81_spill] sm:$0xff] %v10066_v49  ;;  %v10089_v17 = vld [vmem:[#allocation7 + $0xa8] ss:$16 sps:$4 sm:$0xff]   ;;  %v10098_v23 = vld [vmem:[#allocation7 + $0x80] ss:$16 sps:$4 sm:$0xff]  }
 0x755   :  { %11934 = vst [vmem:[#allocation88_spill] sm:$0xff] %v10089_v17  ;;  %11937 = vst [vmem:[#allocation93_spill] sm:$0xff] %v10098_v23 }
 0x756   :  { %4699 = vmatpush1.bf16.msra.mxu0 %v7173_v13  ;;  %4742 = vmatpush1.bf16.msra.mxu1 %v7174_v57  ;;  %v10080_v13 = vld [vmem:[#allocation7 + $0xa4] ss:$16 sps:$4 sm:$0xff]   ;;  %v10083_v57 = vld [vmem:[#allocation7 + $0xac] ss:$16 sps:$4 sm:$0xff]  }
 0x757   :  { %4700 = vmatprep.subr.bf16.mxu0 %v7175_v29  ;;  %4743 = vmatprep.subr.bf16.mxu1 %v7176_v19  ;;  %11931 = vst [vmem:[#allocation85_spill] sm:$0xff] %v10080_v13  ;;  %11932 = vst [vmem:[#allocation86_spill] sm:$0xff] %v10083_v57  ;;  %v10092_v29 = vld [vmem:[#allocation7 + $0x84] ss:$16 sps:$4 sm:$0xff]   ;;  %v10095_v19 = vld [vmem:[#allocation7 + $0x8c] ss:$16 sps:$4 sm:$0xff]  }
 0x758   :  { %11935 = vst [vmem:[#allocation91_spill] sm:$0xff] %v10092_v29  ;;  %11936 = vst [vmem:[#allocation92_spill] sm:$0xff] %v10095_v19 }
 0x75a   :  { %4701 = vmatpush1.bf16.msra.mxu0 %v7177_v33  ;;  %4744 = vmatpush1.bf16.msra.mxu1 %v7178_v30  ;;  %v10101_v33 = vld [vmem:[#allocation7 + $0x88] ss:$16 sps:$4 sm:$0xff]   ;;  %v10104_v30 = vld [vmem:[#allocation7 + $0x64] ss:$16 sps:$4 sm:$0xff]  }
 0x75b   :  { %4817 = vmatprep.subr.bf16.mxu0 %v10052_v24  ;;  %4860 = vmatprep.subr.bf16.mxu1 %v10055_v14  ;;  %11938 = vst [vmem:[#allocation94_spill] sm:$0xff] %v10101_v33  ;;  %11939 = vst [vmem:[#allocation95_spill] sm:$0xff] %v10104_v30 }
 0x75d   :  { %4719 = vmatmul.mubr.bf16.vlgmr.msra.gmra.mxu0 %v10050_v51  ;;  %4762 = vmatmul.mubr.bf16.vlgmr.msra.gmra.mxu1 %v10050_v51 }
 0x75e   :  { %4818 = vmatpush1.bf16.msra.mxu0 %v10060_v16  ;;  %4861 = vmatpush1.bf16.msra.mxu1 %v10063_v61 }
 0x75f   :  { %4819 = vmatprep.subr.bf16.mxu0 %v10066_v49  ;;  %4862 = vmatprep.subr.bf16.mxu1 %v10069_v41 }
 0x760   :  { %4849 = vmatprep.mubr.bf16.mxu0 %v11301_v44  ;;  %4892 = vmatprep.mubr.bf16.mxu1 %v11301_v44 }
 0x762   :  { %4820 = vmatpush1.bf16.msra.mxu0 %v10074_v43  ;;  %4863 = vmatpush1.bf16.msra.mxu1 %v10077_v20 }
 0x763   :  { %4821 = vmatprep.subr.bf16.mxu0 %v10080_v13  ;;  %4864 = vmatprep.subr.bf16.mxu1 %v10083_v57 }
 0x766   :  { %4822 = vmatpush1.bf16.msra.mxu0 %v10086_v54  ;;  %4865 = vmatpush1.bf16.msra.mxu1 %v10089_v17 }
 0x767   :  { %4823 = vmatprep.subr.bf16.mxu0 %v10092_v29  ;;  %4866 = vmatprep.subr.bf16.mxu1 %v10095_v19 }
 0x76a   :  { %4824 = vmatpush1.bf16.msra.mxu0 %v10098_v23  ;;  %4867 = vmatpush1.bf16.msra.mxu1 %v10101_v33  ;;  %v10116_v23 = vld [vmem:[#allocation7 + $0x44] ss:$16 sps:$4 sm:$0xff]   ;;  %v10119_v33 = vld [vmem:[#allocation7 + $0x4c] ss:$16 sps:$4 sm:$0xff]  }
 0x76b   :  { %4825 = vmatprep.subr.bf16.mxu0 %v10104_v30  ;;  %4868 = vmatprep.subr.bf16.mxu1 %v10107_v37  ;;  %11943 = vst [vmem:[#allocation99_spill] sm:$0xff] %v10116_v23  ;;  %11944 = vst [vmem:[#allocation100_spill] sm:$0xff] %v10119_v33  ;;  %v10122_v30 = vld [vmem:[#allocation7 + $0x40] ss:$16 sps:$4 sm:$0xff]   ;;  %v10125_v37 = vld [vmem:[#allocation7 + $0x48] ss:$16 sps:$4 sm:$0xff]  }
 0x76c   :  { %11945 = vst [vmem:[#allocation101_spill] sm:$0xff] %v10122_v30  ;;  %11946 = vst [vmem:[#allocation102_spill] sm:$0xff] %v10125_v37 }
 0x76e   :  { %4826 = vmatpush1.bf16.msra.mxu0 %v10110_v28  ;;  %4869 = vmatpush1.bf16.msra.mxu1 %v10113_v6  ;;  %v10128_v28 = vld [vmem:[#allocation7 + $0x24] ss:$16 sps:$4 sm:$0xff]   ;;  %v10131_v6 = vld [vmem:[#allocation7 + $0x2c] ss:$16 sps:$4 sm:$0xff]  }
 0x76f   :  { %4827 = vmatprep.subr.bf16.mxu0 %v10116_v23  ;;  %4870 = vmatprep.subr.bf16.mxu1 %v10119_v33  ;;  %11947 = vst [vmem:[#allocation103_spill] sm:$0xff] %v10128_v28  ;;  %11948 = vst [vmem:[#allocation104_spill] sm:$0xff] %v10131_v6  ;;  %v10134_v23 = vld [vmem:[#allocation7 + $0x20] ss:$16 sps:$4 sm:$0xff]   ;;  %v10137_v33 = vld [vmem:[#allocation7 + $0x28] ss:$16 sps:$4 sm:$0xff]  }
 0x770   :  { %11949 = vst [vmem:[#allocation105_spill] sm:$0xff] %v10134_v23  ;;  %11950 = vst [vmem:[#allocation106_spill] sm:$0xff] %v10137_v33 }
 0x772   :  { %4828 = vmatpush1.bf16.msra.mxu0 %v10122_v30  ;;  %4871 = vmatpush1.bf16.msra.mxu1 %v10125_v37  ;;  %v10140_v30 = vld [vmem:[#allocation7 + $0x4] ss:$16 sps:$4 sm:$0xff]   ;;  %v10143_v37 = vld [vmem:[#allocation7 + $0xc] ss:$16 sps:$4 sm:$0xff]  }
 0x773   :  { %4829 = vmatprep.subr.bf16.mxu0 %v10128_v28  ;;  %4872 = vmatprep.subr.bf16.mxu1 %v10131_v6  ;;  %11951 = vst [vmem:[#allocation107_spill] sm:$0xff] %v10140_v30  ;;  %11952 = vst [vmem:[#allocation108_spill] sm:$0xff] %v10143_v37  ;;  %v10146_v28 = vld [vmem:[#allocation7] ss:$16 sps:$4 sm:$0xff]   ;;  %v10149_v6 = vld [vmem:[#allocation7 + $0x8] ss:$16 sps:$4 sm:$0xff]  }
 0x774   :  { %11953 = vst [vmem:[#allocation109_spill] sm:$0xff] %v10146_v28  ;;  %11954 = vst [vmem:[#allocation110_spill] sm:$0xff] %v10149_v6 }
 0x776   :  { %4830 = vmatpush1.bf16.msra.mxu0 %v10134_v23  ;;  %4873 = vmatpush1.bf16.msra.mxu1 %v10137_v33  ;;  %v10152_v23 = vld [vmem:[#allocation5 + $0xe4] ss:$16 sps:$4 sm:$0xff]   ;;  %v10155_v33 = vld [vmem:[#allocation5 + $0xec] ss:$16 sps:$4 sm:$0xff]  }
 0x777   :  { %4831 = vmatprep.subr.bf16.mxu0 %v10140_v30  ;;  %4874 = vmatprep.subr.bf16.mxu1 %v10143_v37  ;;  %11955 = vst [vmem:[#allocation111_spill] sm:$0xff] %v10152_v23  ;;  %11956 = vst [vmem:[#allocation112_spill] sm:$0xff] %v10155_v33 }
 0x77a   :  { %4832 = vmatpush1.bf16.msra.mxu0 %v10146_v28  ;;  %4875 = vmatpush1.bf16.msra.mxu1 %v10149_v6 }
 0x77b   :  { %4903 = vmatprep.subr.bf16.mxu0 %v10152_v23  ;;  %4946 = vmatprep.subr.bf16.mxu1 %v10155_v33 }
 0x79d   :  { %v4286_v30 = vpop.f32.mrf.mxu0  ;;  %v4329_v19 = vpop.f32.mrf.mxu1 }
 0x79f   :  { %v4288_v29 = vpop.f32.mrf.mxu0  ;;  %v4331_v37 = vpop.f32.mrf.mxu1 }
 0x7a1   :  { %v4290_v17 = vpop.f32.mrf.mxu0  ;;  %v4333_v54 = vpop.f32.mrf.mxu1 }
 0x7a3   :  { %v4292_v57 = vpop.f32.mrf.mxu0  ;;  %v4335_v28 = vpop.f32.mrf.mxu1 }
 0x7bd   :  { %v4372_v13 = vpop.f32.mrf.mxu0  ;;  %v4415_v20 = vpop.f32.mrf.mxu1 }
 0x7be   :  { %v4373_v43 = vadd.f32 %v4372_v13, %v4286_v30  ;;  %v4416_v23 = vadd.f32 %v4415_v20, %v4329_v19 }
 0x7bf   :  { %v4374_v6 = vpop.f32.mrf.mxu0  ;;  %v4417_v41 = vpop.f32.mrf.mxu1 }
 0x7c0   :  { %v4424_v49 = vadd.f32 %v4373_v43, %v8069_v4  ;;  %v4375_v61 = vadd.f32 %v4374_v6, %v4288_v29  ;;  %v4426_v60 = vadd.f32 %v4416_v23, %v8080_v15 }
 0x7c1   :  { %v4376_v16 = vpop.f32.mrf.mxu0  ;;  %v4419_v35 = vpop.f32.mrf.mxu1 }
 0x7c2   :  { %v4432_v14 = vmul.f32 0.5, %v4424_v49  ;;  %v4425_v33 = vadd.f32 %v4375_v61, %v8074_v7  ;;  %v4377_v24 = vadd.f32 %v4376_v16, %v4290_v17  ;;  %v4420_v30 = vadd.f32 %v4419_v35, %v4333_v54 }
 0x7c3   :  { %v4378_v62 = vpop.f32.mrf.mxu0  ;;  %v4421_v49 = vpop.f32.mrf.mxu1  ;;  %v4418_v61 = vadd.f32 %v4417_v41, %v4331_v37 }
 0x7c4   :  { %6667 = vtanh.f32 %v4432_v14  ;;  %v4440_v38 = vmul.f32 0.5, %v4425_v33  ;;  %v4379_v50 = vadd.f32 %v4378_v62, %v4292_v57  ;;  %v4428_v13 = vadd.f32 %v4377_v24, %v8069_v4 }
 0x7c5   :  { %v4430_v16 = vadd.f32 %v4420_v30, %v8080_v15  ;;  %v4422_v14 = vadd.f32 %v4421_v49, %v4335_v28  ;;  %v4427_v17 = vadd.f32 %v4418_v61, %v8101_v12 }
 0x7c6   :  { %6669 = vtanh.f32 %v4440_v38  ;;  %v4429_v43 = vadd.f32 %v4379_v50, %v8074_v7  ;;  %v4433_v20 = vmul.f32 0.5, %v4428_v13 }
 0x7c7   :  { %6671 = vtanh.f32 %v4426_v60  ;;  %v4431_v62 = vadd.f32 %v4422_v14, %v8101_v12  ;;  %v4450_v57 = vmul.f32 0.5, %v4427_v17 }
 0x7c8   :  { %v4441_v6 = vmul.f32 0.5, %v4429_v43  ;;  %6673 = vtanh.f32 %v4433_v20 }
 0x7c9   :  { %v4451_v60 = vmul.f32 0.5, %v4431_v62 }
 0x7ca   :  { %6675 = vtanh.f32 %v4441_v6 }
 0x7cb   :  { %6677 = vtanh.f32 %v4430_v16 }
 0x7cc   :  { %6679 = vtanh.f32 %v4450_v57 }
 0x7cd   :  { %6681 = vtanh.f32 %v4451_v60 }
 0x7d1   :  { %v6668_v24 = vpop.eup %6667 }
 0x7d2   :  { %v4436_v38 = vmul.f32 0.5, %v6668_v24 }
 0x7d3   :  { %v6670_v35 = vpop.eup %6669 }
 0x7d4   :  { %v4438_v50 = vadd.f32 0.5, %v4436_v38  ;;  %v4444_v54 = vmul.f32 0.5, %v6670_v35  ;;  %v6672_v29 = vpop.eup %6671 }
 0x7d5   :  { %v6674_v19 = vpop.eup %6673 }
 0x7d6   :  { %v4446_v23 = vadd.f32 0.5, %v4444_v54  ;;  %v4437_v13 = vmul.f32 0.5, %v6674_v19  ;;  %v4460_v37 = vmul.f32 %v6672_v29, %v4438_v50 }
 0x7d7   :  { %v6676_v33 = vpop.eup %6675 }
 0x7d8   :  { %v4458_v28 = vmul.f32 %v4446_v23, %v9741_v36  ;;  %v4445_v41 = vmul.f32 0.5, %v6676_v33  ;;  %v4439_v30 = vadd.f32 0.5, %v4437_v13  ;;  %v6678_v6 = vpop.eup %6677  ;;  %v10180_v33 = vld [vmem:[#allocation5 + $0xe0] ss:$16 sps:$4 sm:$0xff]   ;;  %v10183_v13 = vld [vmem:[#allocation5 + $0xe8] ss:$16 sps:$4 sm:$0xff]  }
 0x7d9   :  { %v6680_v14 = vpop.eup %6679 }
 0x7da   :  { %v10167_v43 = vadd.f32 %v4460_v37, %v4458_v28  ;;  %v4447_v20 = vadd.f32 0.5, %v4445_v41  ;;  %v4461_v16 = vmul.f32 %v6678_v6, %v4439_v30  ;;  %v6682_v17 = vpop.eup %6681  ;;  %v4454_v36 = vmul.f32 0.5, %v6680_v14  ;;  %v10186_v28 = vld [vmem:[#allocation5 + $0xc4] ss:$16 sps:$4 sm:$0xff]   ;;  %v10189_v37 = vld [vmem:[#allocation5 + $0xcc] ss:$16 sps:$4 sm:$0xff]  }
 0x7db   :  { %v4455_v62 = vmul.f32 0.5, %v6682_v17  ;;  %11957 = vst [vmem:[#allocation113_spill] sm:$0xff] %v10186_v28  ;;  %11958 = vst [vmem:[#allocation114_spill] sm:$0xff] %v10189_v37  ;;  %v10197_v6 = vld [vmem:[#allocation5 + $0xc8] ss:$16 sps:$4 sm:$0xff]  }
 0x7dc   :  { %v4459_v49 = vmul.f32 %v4447_v20, %v9745_v25  ;;  %6683 = vtanh.f32 %v10167_v43  ;;  %v4456_v38 = vadd.f32 0.5, %v4454_v36  ;;  %v10194_v20 = vld [vmem:[#allocation5 + $0xc0] ss:$16 sps:$4 sm:$0xff]   ;;  %11960 = vst [vmem:[#allocation116_spill] sm:$0xff] %v10197_v6 }
 0x7dd   :  { %v4457_v35 = vadd.f32 0.5, %v4455_v62  ;;  %v4503_v60 = vpop.f32.mrf.mxu0  ;;  %v4546_v29 = vpop.f32.mrf.mxu1  ;;  %11959 = vst [vmem:[#allocation115_spill] sm:$0xff] %v10194_v20  ;;  %v10208_v36 = vld [vmem:[#allocation5 + $0xa0] ss:$16 sps:$4 sm:$0xff]   ;;  %v10211_v62 = vld [vmem:[#allocation5 + $0xa8] ss:$16 sps:$4 sm:$0xff]  }
 0x7de   :  { %v10171_v61 = vadd.f32 %v4461_v16, %v4459_v49  ;;  %v10200_v49 = vld [vmem:[#allocation5 + $0xa4] ss:$16 sps:$4 sm:$0xff]   ;;  %v10203_v16 = vld [vmem:[#allocation5 + $0xac] ss:$16 sps:$4 sm:$0xff]   ;;  %11963 = vst [vmem:[#allocation119_spill] sm:$0xff] %v10208_v36  ;;  %11964 = vst [vmem:[#allocation120_spill] sm:$0xff] %v10211_v62 }
 0x7df   :  { %v4505_v19 = vpop.f32.mrf.mxu0  ;;  %v10178_v23 = vpop.f32.mrf.mxu1  ;;  %11961 = vst [vmem:[#allocation117_spill] sm:$0xff] %v10200_v49  ;;  %11962 = vst [vmem:[#allocation118_spill] sm:$0xff] %v10203_v16 }
 0x7e0   :  { %6685 = vtanh.f32 %v10171_v61 }
 0x7e1   :  { %v4507_v41 = vpop.f32.mrf.mxu0  ;;  %v4550_v30 = vpop.f32.mrf.mxu1 }
 0x7e3   :  { %v4509_v14 = vpop.f32.mrf.mxu0  ;;  %v10206_v17 = vpop.f32.mrf.mxu1 }
 0x7e9   :  { %v6684_v24 = vpop.eup %6683 }
 0x7ea   :  { %v4466_v50 = vmul.f32 %v6684_v24, %v4456_v38  ;;  %v10214_v24 = vld [vmem:[#allocation5 + $0x84] ss:$16 sps:$4 sm:$0xff]   ;;  %v10217_v38 = vld [vmem:[#allocation5 + $0x8c] ss:$16 sps:$4 sm:$0xff]  }
 0x7eb   :  { %11965 = vst [vmem:[#allocation121_spill] sm:$0xff] %v10214_v24  ;;  %11966 = vst [vmem:[#allocation122_spill] sm:$0xff] %v10217_v38 }
 0x7ed   :  { %v6686_v57 = vpop.eup %6685 }
 0x7ee   :  { %v4467_v54 = vmul.f32 %v6686_v57, %v4457_v35 }
 0x7f0   :  { %v10174_v25 = vpack.c.bf16 %v4467_v54, %v4466_v50  ;;  %v10220_v54 = vld [vmem:[#allocation5 + $0x80] ss:$16 sps:$4 sm:$0xff]  }
 0x7f1   :  { %11967 = vst [vmem:[#allocation123_spill] sm:$0xff] %v10220_v54 }
 0x7f2   :  { %4850 = vmatmul.mubr.bf16.vlgmr.msra.gmra.mxu0 %v10174_v25  ;;  %4893 = vmatmul.mubr.bf16.vlgmr.msra.gmra.mxu1 %v10174_v25 }
 0x7f3   :  { %4904 = vmatpush1.bf16.msra.mxu0 %v10180_v33  ;;  %4947 = vmatpush1.bf16.msra.mxu1 %v10183_v13 }
 0x7f4   :  { %4905 = vmatprep.subr.bf16.mxu0 %v10186_v28  ;;  %4948 = vmatprep.subr.bf16.mxu1 %v10189_v37  ;;  %v10234_v28 = vld [vmem:[#allocation5 + $0x60] ss:$16 sps:$4 sm:$0xff]  }
 0x7f5   :  { %4935 = vmatprep.mubr.bf16.mxu0 %v11301_v44  ;;  %4978 = vmatprep.mubr.bf16.mxu1 %v11301_v44 }
 0x7f7   :  { %4906 = vmatpush1.bf16.msra.mxu0 %v10194_v20  ;;  %4949 = vmatpush1.bf16.msra.mxu1 %v10197_v6  ;;  %v10227_v20 = vld [vmem:[#allocation5 + $0x64] ss:$16 sps:$4 sm:$0xff]  }
 0x7f8   :  { %4907 = vmatprep.subr.bf16.mxu0 %v10200_v49  ;;  %4950 = vmatprep.subr.bf16.mxu1 %v10203_v16 }
 0x7fb   :  { %4908 = vmatpush1.bf16.msra.mxu0 %v10208_v36  ;;  %4951 = vmatpush1.bf16.msra.mxu1 %v10211_v62  ;;  %v10223_v36 = vld [vmem:[#allocation5 + $0x88] ss:$16 sps:$4 sm:$0xff]  }
 0x7fc   :  { %4909 = vmatprep.subr.bf16.mxu0 %v10214_v24  ;;  %4952 = vmatprep.subr.bf16.mxu1 %v10217_v38  ;;  %11968 = vst [vmem:[#allocation124_spill] sm:$0xff] %v10223_v36 }
 0x7fd   :  { %v4589_v35 = vpop.f32.mrf.mxu0  ;;  %v4632_v57 = vpop.f32.mrf.mxu1 }
 0x7fe   :  { %v4590_v50 = vadd.f32 %v4589_v35, %v4503_v60  ;;  %v4633_v24 = vadd.f32 %v4632_v57, %v4546_v29  ;;  %v10230_v60 = vld [vmem:[#allocation5 + $0x6c] ss:$16 sps:$4 sm:$0xff]   ;;  %v10237_v29 = vld [vmem:[#allocation5 + $0x68] ss:$16 sps:$4 sm:$0xff]  }
 0x7ff   :  { %4910 = vmatpush1.bf16.msra.mxu0 %v10220_v54  ;;  %4953 = vmatpush1.bf16.msra.mxu1 %v10223_v36  ;;  %v4591_v62 = vpop.f32.mrf.mxu0  ;;  %v4634_v16 = vpop.f32.mrf.mxu1  ;;  %11969 = vst [vmem:[#allocation125_spill] sm:$0xff] %v10230_v60  ;;  %11970 = vst [vmem:[#allocation126_spill] sm:$0xff] %v10237_v29 }
 0x800   :  { %v4641_v49 = vadd.f32 %v4590_v50, %v8628_v0  ;;  %v4592_v6 = vadd.f32 %v4591_v62, %v4505_v19  ;;  %4911 = vmatprep.subr.bf16.mxu0 %v10227_v20  ;;  %4954 = vmatprep.subr.bf16.mxu1 %v10230_v60  ;;  %v4643_v62 = vadd.f32 %v4633_v24, %v8649_v26  ;;  %v10241_v60 = vld [vmem:[#allocation5 + $0x44] ss:$16 sps:$4 sm:$0xff]  }
 0x801   :  { %v4593_v38 = vpop.f32.mrf.mxu0  ;;  %v4636_v36 = vpop.f32.mrf.mxu1 }
 0x802   :  { %v4649_v35 = vmul.f32 0.5, %v4641_v49  ;;  %v4642_v54 = vadd.f32 %v4592_v6, %v8638_v21  ;;  %v4594_v37 = vadd.f32 %v4593_v38, %v4507_v41  ;;  %v10244_v41 = vld [vmem:[#allocation5 + $0x4c] ss:$16 sps:$4 sm:$0xff]   ;;  %v4637_v49 = vadd.f32 %v4636_v36, %v4550_v30 }
 0x803   :  { %4912 = vmatpush1.bf16.msra.mxu0 %v10234_v28  ;;  %4955 = vmatpush1.bf16.msra.mxu1 %v10237_v29  ;;  %v4595_v19 = vpop.f32.mrf.mxu0  ;;  %v4638_v30 = vpop.f32.mrf.mxu1 }
 0x804   :  { %6687 = vtanh.f32 %v4649_v35  ;;  %v4657_v57 = vmul.f32 0.5, %v4642_v54  ;;  %v4596_v50 = vadd.f32 %v4595_v19, %v4509_v14  ;;  %4913 = vmatprep.subr.bf16.mxu0 %v10241_v60  ;;  %4956 = vmatprep.subr.bf16.mxu1 %v10244_v41  ;;  %v4645_v6 = vadd.f32 %v4594_v37, %v8628_v0  ;;  %v10249_v35 = vld [vmem:[#allocation5 + $0x40] ss:$16 sps:$4 sm:$0xff]   ;;  %v10252_v14 = vld [vmem:[#allocation5 + $0x48] ss:$16 sps:$4 sm:$0xff]  }
 0x805   :  { %v10255_v54 = vld [vmem:[#allocation5 + $0x24] ss:$16 sps:$4 sm:$0xff]   ;;  %v10258_v37 = vld [vmem:[#allocation5 + $0x2c] ss:$16 sps:$4 sm:$0xff]   ;;  %v4647_v36 = vadd.f32 %v4637_v49, %v8649_v26  ;;  %v4635_v19 = vadd.f32 %v4634_v16, %v10178_v23  ;;  %v10277_v16 = vld [vmem:[#allocation5] ss:$16 sps:$4 sm:$0xff]  }
 0x806   :  { %6689 = vtanh.f32 %v4657_v57  ;;  %v4646_v38 = vadd.f32 %v4596_v50, %v8638_v21  ;;  %v4650_v29 = vmul.f32 0.5, %v4645_v6  ;;  %v10263_v57 = vld [vmem:[#allocation5 + $0x20] ss:$16 sps:$4 sm:$0xff]   ;;  %v4639_v50 = vadd.f32 %v4638_v30, %v10206_v17  ;;  %v10270_v6 = vld [vmem:[#allocation5 + $0x4] ss:$16 sps:$4 sm:$0xff]   ;;  %11971 = vst [vmem:[#allocation127_spill] sm:$0xff] %v10277_v16 }
 0x807   :  { %4914 = vmatpush1.bf16.msra.mxu0 %v10249_v35  ;;  %4957 = vmatpush1.bf16.msra.mxu1 %v10252_v14  ;;  %6691 = vtanh.f32 %v4643_v62  ;;  %v10266_v62 = vld [vmem:[#allocation5 + $0x28] ss:$16 sps:$4 sm:$0xff]   ;;  %v4644_v23 = vadd.f32 %v4635_v19, %v8689_v58 }
 0x808   :  { %v4658_v24 = vmul.f32 0.5, %v4646_v38  ;;  %4915 = vmatprep.subr.bf16.mxu0 %v10255_v54  ;;  %4958 = vmatprep.subr.bf16.mxu1 %v10258_v37  ;;  %6693 = vtanh.f32 %v4650_v29  ;;  %v10273_v29 = vld [vmem:[#allocation5 + $0xc] ss:$16 sps:$4 sm:$0xff]   ;;  %v10280_v49 = vld [vmem:[#allocation5 + $0x8] ss:$16 sps:$4 sm:$0xff]   ;;  %v4648_v17 = vadd.f32 %v4639_v50, %v8689_v58 }
 0x809   :  { %11972 = vst [vmem:[#allocation128_spill] sm:$0xff] %v10280_v49 }
 0x80a   :  { %6695 = vtanh.f32 %v4658_v24 }
 0x80b   :  { %4916 = vmatpush1.bf16.msra.mxu0 %v10263_v57  ;;  %4959 = vmatpush1.bf16.msra.mxu1 %v10266_v62  ;;  %6697 = vtanh.f32 %v4647_v36  ;;  %v4667_v36 = vmul.f32 0.5, %v4644_v23 }
 0x80c   :  { %4917 = vmatprep.subr.bf16.mxu0 %v10270_v6  ;;  %4960 = vmatprep.subr.bf16.mxu1 %v10273_v29 }
 0x80d   :  { %6699 = vtanh.f32 %v4667_v36  ;;  %v11981_v36 = vld [vmem:[#allocation46_spill] sm:$0xff] }
 0x80f   :  { %4918 = vmatpush1.bf16.msra.mxu0 %v10277_v16  ;;  %4961 = vmatpush1.bf16.msra.mxu1 %v10280_v49  ;;  %v4668_v16 = vmul.f32 0.5, %v4648_v17 }
 0x810   :  { %5034 = vmatprep.subr.bf16.mxu0 %v9792_v5  ;;  %5077 = vmatprep.subr.bf16.mxu1 %v9795_v63 }
 0x811   :  { %v6688_v38 = vpop.eup %6687  ;;  %6701 = vtanh.f32 %v4668_v16 }
 0x812   :  { %v4653_v24 = vmul.f32 0.5, %v6688_v38  ;;  %4936 = vmatmul.mubr.bf16.vlgmr.msra.gmra.mxu0 %v10050_v51  ;;  %4979 = vmatmul.mubr.bf16.vlgmr.msra.gmra.mxu1 %v10050_v51 }
 0x813   :  { %v6690_v30 = vpop.eup %6689  ;;  %5035 = vmatpush1.bf16.msra.mxu0 %v9800_v32  ;;  %5078 = vmatpush1.bf16.msra.mxu1 %v9803_v53 }
 0x814   :  { %v4655_v19 = vadd.f32 0.5, %v4653_v24  ;;  %v4661_v49 = vmul.f32 0.5, %v6690_v30  ;;  %5036 = vmatprep.subr.bf16.mxu0 %v9806_v56  ;;  %5079 = vmatprep.subr.bf16.mxu1 %v9809_v31  ;;  %v6692_v5 = vpop.eup %6691 }
 0x815   :  { %5066 = vmatprep.mubr.bf16.mxu0 %v11301_v44  ;;  %5109 = vmatprep.mubr.bf16.mxu1 %v11301_v44  ;;  %v6694_v63 = vpop.eup %6693 }
 0x816   :  { %v4663_v51 = vadd.f32 0.5, %v4661_v49  ;;  %v4654_v23 = vmul.f32 0.5, %v6694_v63  ;;  %v4677_v53 = vmul.f32 %v6692_v5, %v4655_v19  ;;  %v11982_v19 = vld [vmem:[#allocation47_spill] sm:$0xff]  ;;  %v11983_v63 = vld [vmem:[#allocation48_spill] sm:$0xff] }
 0x817   :  { %v6696_v50 = vpop.eup %6695  ;;  %5037 = vmatpush1.bf16.msra.mxu0 %v9814_v1  ;;  %5080 = vmatpush1.bf16.msra.mxu1 %v9817_v9 }
 0x818   :  { %v4675_v32 = vmul.f32 %v4663_v51, %v9827_v42  ;;  %v4662_v56 = vmul.f32 0.5, %v6696_v50  ;;  %5038 = vmatprep.subr.bf16.mxu0 %v9821_v10  ;;  %5081 = vmatprep.subr.bf16.mxu1 %v9824_v48  ;;  %v4656_v31 = vadd.f32 0.5, %v4654_v23  ;;  %v6698_v38 = vpop.eup %6697  ;;  %v11984_v51 = vld [vmem:[#allocation49_spill] sm:$0xff]  ;;  %v11985_v50 = vld [vmem:[#allocation50_spill] sm:$0xff]  ;;  %v11986_v23 = vld [vmem:[#allocation51_spill] sm:$0xff] }
 0x81a   :  { %v10299_v17 = vadd.f32 %v4677_v53, %v4675_v32  ;;  %v4664_v49 = vadd.f32 0.5, %v4662_v56  ;;  %v4678_v9 = vmul.f32 %v6698_v38, %v4656_v31  ;;  %v6700_v48 = vpop.eup %6699  ;;  %v11987_v32 = vld [vmem:[#allocation52_spill] sm:$0xff]  ;;  %v11988_v53 = vld [vmem:[#allocation53_spill] sm:$0xff]  ;;  %v11989_v56 = vld [vmem:[#allocation54_spill] sm:$0xff] }
 0x81b   :  { %5039 = vmatpush1.bf16.msra.mxu0 %v9829_v45  ;;  %5082 = vmatpush1.bf16.msra.mxu1 %v9832_v55  ;;  %v11973_v45 = vld [vmem:[#allocation38_spill] sm:$0xff]  ;;  %v11974_v55 = vld [vmem:[#allocation39_spill] sm:$0xff]  ;;  %v11995_v38 = vld [vmem:[#allocation60_spill] sm:$0xff] }
 0x81c   :  { %v4676_v1 = vmul.f32 %v4664_v49, %v9843_v18  ;;  %5040 = vmatprep.subr.bf16.mxu0 %v9836_v59  ;;  %5083 = vmatprep.subr.bf16.mxu1 %v9839_v11  ;;  %6703 = vtanh.f32 %v10299_v17  ;;  %v4671_v59 = vmul.f32 0.5, %v6700_v48  ;;  %v11975_v18 = vld [vmem:[#allocation40_spill] sm:$0xff]  ;;  %v11990_v31 = vld [vmem:[#allocation55_spill] sm:$0xff] }
 0x81d   :  { %v11994_v49 = vld [vmem:[#allocation59_spill] sm:$0xff] }
 0x81e   :  { %v10307_v10 = vadd.f32 %v4678_v9, %v4676_v1  ;;  %v6702_v42 = vpop.eup %6701  ;;  %v11996_v1 = vld [vmem:[#allocation61_spill] sm:$0xff]  ;;  %v11997_v9 = vld [vmem:[#allocation62_spill] sm:$0xff]  ;;  %v11998_v48 = vld [vmem:[#allocation63_spill] sm:$0xff] }
 0x81f   :  { %5041 = vmatpush1.bf16.msra.mxu0 %v9845_v8  ;;  %5084 = vmatpush1.bf16.msra.mxu1 %v9848_v27  ;;  %v4672_v11 = vmul.f32 0.5, %v6702_v42  ;;  %v11976_v8 = vld [vmem:[#allocation41_spill] sm:$0xff]  ;;  %v11999_v42 = vld [vmem:[#allocation64_spill] sm:$0xff] }
 0x820   :  { %6705 = vtanh.f32 %v10307_v10  ;;  %5042 = vmatprep.subr.bf16.mxu0 %v9852_v40  ;;  %5085 = vmatprep.subr.bf16.mxu1 %v9855_v39  ;;  %v11977_v40 = vld [vmem:[#allocation42_spill] sm:$0xff]  ;;  %v11978_v39 = vld [vmem:[#allocation43_spill] sm:$0xff] }
 0x823   :  { %5043 = vmatpush1.bf16.msra.mxu0 %v9858_v3  ;;  %5086 = vmatpush1.bf16.msra.mxu1 %v9861_v2  ;;  %v4673_v3 = vadd.f32 0.5, %v4671_v59  ;;  %v4674_v2 = vadd.f32 0.5, %v4672_v11  ;;  %v12002_v59 = vld [vmem:[#allocation67_spill] sm:$0xff]  ;;  %v12003_v11 = vld [vmem:[#allocation68_spill] sm:$0xff] }
 0x824   :  { %5044 = vmatprep.subr.bf16.mxu0 %v9864_v52  ;;  %5087 = vmatprep.subr.bf16.mxu1 %v9867_v34  ;;  %v11979_v52 = vld [vmem:[#allocation44_spill] sm:$0xff]  ;;  %v11980_v34 = vld [vmem:[#allocation45_spill] sm:$0xff] }
 0x827   :  { %5045 = vmatpush1.bf16.msra.mxu0 %v11973_v45  ;;  %5088 = vmatpush1.bf16.msra.mxu1 %v11974_v55  ;;  %v12000_v45 = vld [vmem:[#allocation65_spill] sm:$0xff]  ;;  %v12001_v55 = vld [vmem:[#allocation66_spill] sm:$0xff] }
 0x828   :  { %5046 = vmatprep.subr.bf16.mxu0 %v11975_v18  ;;  %5089 = vmatprep.subr.bf16.mxu1 %v11976_v8  ;;  %v12004_v18 = vld [vmem:[#allocation69_spill] sm:$0xff]  ;;  %v12005_v8 = vld [vmem:[#allocation70_spill] sm:$0xff] }
 0x829   :  { %v6704_v27 = vpop.eup %6703 }
 0x82a   :  { %v4683_v24 = vmul.f32 %v6704_v27, %v4673_v3  ;;  %v12006_v27 = vld [vmem:[#allocation71_spill] sm:$0xff]  ;;  %v12009_v3 = vld [vmem:[#allocation73_spill] sm:$0xff] }
 0x82b   :  { %5047 = vmatpush1.bf16.msra.mxu0 %v11977_v40  ;;  %5090 = vmatpush1.bf16.msra.mxu1 %v11978_v39  ;;  %v12007_v40 = vld [vmem:[#allocation72_spill] sm:$0xff]  ;;  %v12008_v39 = vld [vmem:[#allocation74_spill] sm:$0xff] }
 0x82c   :  { %5048 = vmatprep.subr.bf16.mxu0 %v11979_v52  ;;  %5091 = vmatprep.subr.bf16.mxu1 %v11980_v34  ;;  %v12011_v52 = vld [vmem:[#allocation76_spill] sm:$0xff]  ;;  %v12012_v34 = vld [vmem:[#allocation78_spill] sm:$0xff] }
 0x82d   :  { %v6706_v16 = vpop.eup %6705 }
 0x82e   :  { %v4684_v30 = vmul.f32 %v6706_v16, %v4674_v2  ;;  %v12010_v2 = vld [vmem:[#allocation75_spill] sm:$0xff] }
 0x82f   :  { %5049 = vmatpush1.bf16.msra.mxu0 %v11981_v36  ;;  %5092 = vmatpush1.bf16.msra.mxu1 %v11982_v19  ;;  %v12013_v16 = vld [vmem:[#allocation79_spill] sm:$0xff]  ;;  %v12016_v36 = vld [vmem:[#allocation81_spill] sm:$0xff]  ;;  %v12017_v19 = vld [vmem:[#allocation82_spill] sm:$0xff] }
 0x830   :  { %v5033_v5 = vpack.c.bf16 %v4684_v30, %v4683_v24  ;;  %5120 = vmatprep.subr.bf16.mxu0 %v11983_v63  ;;  %5163 = vmatprep.subr.bf16.mxu1 %v11984_v51  ;;  %v12014_v24 = vld [vmem:[#allocation80_spill] sm:$0xff]  ;;  %v12015_v30 = vld [vmem:[#allocation90_spill] sm:$0xff]  ;;  %v12020_v51 = vld [vmem:[#allocation85_spill] sm:$0xff] }
 0x831   :  { %v12019_v63 = vld [vmem:[#allocation84_spill] sm:$0xff] }
 0x832   :  { %5067 = vmatmul.mubr.bf16.vlgmr.msra.gmra.mxu0 %v5033_v5  ;;  %5110 = vmatmul.mubr.bf16.vlgmr.msra.gmra.mxu1 %v5033_v5  ;;  %v12018_v5 = vld [vmem:[#allocation83_spill] sm:$0xff] }
 0x833   :  { %5121 = vmatpush1.bf16.msra.mxu0 %v9922_v47  ;;  %5164 = vmatpush1.bf16.msra.mxu1 %v9925_v22  ;;  %v11991_v47 = vld [vmem:[#allocation56_spill] sm:$0xff]  ;;  %v11992_v22 = vld [vmem:[#allocation57_spill] sm:$0xff] }
 0x834   :  { %5122 = vmatprep.subr.bf16.mxu0 %v9929_v46  ;;  %5165 = vmatprep.subr.bf16.mxu1 %v11985_v50  ;;  %v11993_v46 = vld [vmem:[#allocation58_spill] sm:$0xff] }
 0x835   :  { %5152 = vmatprep.mubr.bf16.mxu0 %v11301_v44  ;;  %5195 = vmatprep.mubr.bf16.mxu1 %v11301_v44  ;;  %v12021_v50 = vld [vmem:[#allocation86_spill] sm:$0xff] }
 0x837   :  { %5123 = vmatpush1.bf16.msra.mxu0 %v11986_v23  ;;  %5166 = vmatpush1.bf16.msra.mxu1 %v11987_v32  ;;  %v12023_v23 = vld [vmem:[#allocation88_spill] sm:$0xff]  ;;  %v12024_v32 = vld [vmem:[#allocation91_spill] sm:$0xff] }
 0x838   :  { %5124 = vmatprep.subr.bf16.mxu0 %v11988_v53  ;;  %5167 = vmatprep.subr.bf16.mxu1 %v11989_v56  ;;  %v12025_v53 = vld [vmem:[#allocation92_spill] sm:$0xff]  ;;  %v12026_v56 = vld [vmem:[#allocation93_spill] sm:$0xff] }
 0x83b   :  { %5125 = vmatpush1.bf16.msra.mxu0 %v11990_v31  ;;  %5168 = vmatpush1.bf16.msra.mxu1 %v11991_v47  ;;  %v12027_v31 = vld [vmem:[#allocation94_spill] sm:$0xff]  ;;  %v12028_v47 = vld [vmem:[#allocation95_spill] sm:$0xff] }
 0x83c   :  { %5126 = vmatprep.subr.bf16.mxu0 %v11992_v22  ;;  %5169 = vmatprep.subr.bf16.mxu1 %v11993_v46  ;;  %v12029_v22 = vld [vmem:[#allocation96_spill] sm:$0xff]  ;;  %v12030_v46 = vld [vmem:[#allocation97_spill] sm:$0xff] }
 0x83f   :  { %5127 = vmatpush1.bf16.msra.mxu0 %v11994_v49  ;;  %5170 = vmatpush1.bf16.msra.mxu1 %v11995_v38  ;;  %v12031_v49 = vld [vmem:[#allocation98_spill] sm:$0xff]  ;;  %v12032_v38 = vld [vmem:[#allocation99_spill] sm:$0xff] }
 0x840   :  { %5128 = vmatprep.subr.bf16.mxu0 %v11996_v1  ;;  %5171 = vmatprep.subr.bf16.mxu1 %v11997_v9  ;;  %v12033_v1 = vld [vmem:[#allocation100_spill] sm:$0xff]  ;;  %v12034_v9 = vld [vmem:[#allocation101_spill] sm:$0xff] }
 0x843   :  { %5129 = vmatpush1.bf16.msra.mxu0 %v11998_v48  ;;  %5172 = vmatpush1.bf16.msra.mxu1 %v11999_v42  ;;  %v12035_v48 = vld [vmem:[#allocation102_spill] sm:$0xff]  ;;  %v12036_v42 = vld [vmem:[#allocation103_spill] sm:$0xff] }
 0x844   :  { %5130 = vmatprep.subr.bf16.mxu0 %v12000_v45  ;;  %5173 = vmatprep.subr.bf16.mxu1 %v12001_v55  ;;  %v12037_v45 = vld [vmem:[#allocation104_spill] sm:$0xff]  ;;  %v12038_v55 = vld [vmem:[#allocation105_spill] sm:$0xff] }
 0x847   :  { %5131 = vmatpush1.bf16.msra.mxu0 %v12002_v59  ;;  %5174 = vmatpush1.bf16.msra.mxu1 %v12003_v11  ;;  %v12039_v59 = vld [vmem:[#allocation106_spill] sm:$0xff]  ;;  %v12040_v11 = vld [vmem:[#allocation107_spill] sm:$0xff] }
 0x848   :  { %5132 = vmatprep.subr.bf16.mxu0 %v12004_v18  ;;  %5175 = vmatprep.subr.bf16.mxu1 %v12005_v8  ;;  %v12041_v18 = vld [vmem:[#allocation108_spill] sm:$0xff]  ;;  %v12042_v8 = vld [vmem:[#allocation109_spill] sm:$0xff] }
 0x84b   :  { %5133 = vmatpush1.bf16.msra.mxu0 %v12006_v27  ;;  %5176 = vmatpush1.bf16.msra.mxu1 %v12007_v40  ;;  %v12043_v27 = vld [vmem:[#allocation110_spill] sm:$0xff]  ;;  %v12044_v40 = vld [vmem:[#allocation111_spill] sm:$0xff] }
 0x84c   :  { %5134 = vmatprep.subr.bf16.mxu0 %v12008_v39  ;;  %5177 = vmatprep.subr.bf16.mxu1 %v12009_v3  ;;  %v12045_v39 = vld [vmem:[#allocation112_spill] sm:$0xff]  ;;  %v10400_v3 = vpop.f32.mrf.mxu0 }
 0x84f   :  { %5135 = vmatpush1.bf16.msra.mxu0 %v12010_v2  ;;  %5178 = vmatpush1.bf16.msra.mxu1 %v12011_v52  ;;  %v10402_v2 = vpop.f32.mrf.mxu1  ;;  %v4722_v52 = vpop.f32.mrf.mxu0 }
 0x850   :  { %5252 = vmatprep.subr.bf16.mxu0 %v12012_v34  ;;  %5295 = vmatprep.subr.bf16.mxu1 %v12013_v16 }
 0x851   :  { %v10404_v34 = vpop.f32.mrf.mxu1  ;;  %v10406_v16 = vpop.f32.mrf.mxu0 }
 0x852   :  { %5153 = vmatmul.mubr.bf16.vlgmr.msra.gmra.mxu0 %v10174_v25  ;;  %5196 = vmatmul.mubr.bf16.vlgmr.msra.gmra.mxu1 %v10174_v25  ;;  %v12022_v25 = vld [vmem:[#allocation87_spill] sm:$0xff] }
 0x853   :  { %5253 = vmatpush1.bf16.msra.mxu0 %v12014_v24  ;;  %5296 = vmatpush1.bf16.msra.mxu1 %v12015_v30  ;;  %v10408_v24 = vpop.f32.mrf.mxu1  ;;  %v4726_v30 = vpop.f32.mrf.mxu0 }
 0x854   :  { %5254 = vmatprep.subr.bf16.mxu0 %v12016_v36  ;;  %5297 = vmatprep.subr.bf16.mxu1 %v12017_v19 }
 0x855   :  { %5284 = vmatprep.mubr.bf16.mxu0 %v11301_v44  ;;  %5327 = vmatprep.mubr.bf16.mxu1 %v11301_v44  ;;  %v10410_v36 = vpop.f32.mrf.mxu1 }
 0x857   :  { %5255 = vmatpush1.bf16.msra.mxu0 %v12018_v5  ;;  %5298 = vmatpush1.bf16.msra.mxu1 %v12019_v63 }
 0x858   :  { %5256 = vmatprep.subr.bf16.mxu0 %v12020_v51  ;;  %5299 = vmatprep.subr.bf16.mxu1 %v12021_v50 }
 0x85b   :  { %5257 = vmatpush1.bf16.msra.mxu0 %v12022_v25  ;;  %5300 = vmatpush1.bf16.msra.mxu1 %v12023_v23 }
 0x85c   :  { %5258 = vmatprep.subr.bf16.mxu0 %v12024_v32  ;;  %5301 = vmatprep.subr.bf16.mxu1 %v12025_v53 }
 0x85f   :  { %5259 = vmatpush1.bf16.msra.mxu0 %v12026_v56  ;;  %5302 = vmatpush1.bf16.msra.mxu1 %v12027_v31 }
 0x860   :  { %5260 = vmatprep.subr.bf16.mxu0 %v12028_v47  ;;  %5303 = vmatprep.subr.bf16.mxu1 %v12029_v22 }
 0x863   :  { %5261 = vmatpush1.bf16.msra.mxu0 %v12030_v46  ;;  %5304 = vmatpush1.bf16.msra.mxu1 %v12031_v49 }
 0x864   :  { %5262 = vmatprep.subr.bf16.mxu0 %v12032_v38  ;;  %5305 = vmatprep.subr.bf16.mxu1 %v12033_v1 }
 0x867   :  { %5263 = vmatpush1.bf16.msra.mxu0 %v12034_v9  ;;  %5306 = vmatpush1.bf16.msra.mxu1 %v12035_v48 }
 0x868   :  { %5264 = vmatprep.subr.bf16.mxu0 %v12036_v42  ;;  %5307 = vmatprep.subr.bf16.mxu1 %v12037_v45 }
 0x86b   :  { %5265 = vmatpush1.bf16.msra.mxu0 %v12038_v55  ;;  %5308 = vmatpush1.bf16.msra.mxu1 %v12039_v59 }
 0x86c   :  { %5266 = vmatprep.subr.bf16.mxu0 %v12040_v11  ;;  %5309 = vmatprep.subr.bf16.mxu1 %v12041_v18 }
 0x86f   :  { %5267 = vmatpush1.bf16.msra.mxu0 %v12042_v8  ;;  %5310 = vmatpush1.bf16.msra.mxu1 %v12043_v27 }
 0x870   :  { %5338 = vmatprep.subr.bf16.mxu0 %v12044_v40  ;;  %5381 = vmatprep.subr.bf16.mxu1 %v12045_v39 }
 0x8b2   :  { %v4851_v19 = vpop.f32.mrf.mxu0  ;;  %v4894_v5 = vpop.f32.mrf.mxu1 }
 0x8b4   :  { %v4853_v63 = vpop.f32.mrf.mxu0  ;;  %v4896_v51 = vpop.f32.mrf.mxu1 }
 0x8b6   :  { %v4855_v50 = vpop.f32.mrf.mxu0  ;;  %v4898_v25 = vpop.f32.mrf.mxu1 }
 0x8b8   :  { %v4857_v23 = vpop.f32.mrf.mxu0  ;;  %v4900_v32 = vpop.f32.mrf.mxu1 }
 0x8d2   :  { %v4937_v53 = vpop.f32.mrf.mxu0  ;;  %v4980_v56 = vpop.f32.mrf.mxu1 }
 0x8d3   :  { %v4938_v31 = vadd.f32 %v4937_v53, %v4851_v19  ;;  %v4981_v49 = vadd.f32 %v4980_v56, %v4894_v5 }
 0x8d4   :  { %v4939_v47 = vpop.f32.mrf.mxu0  ;;  %v4982_v22 = vpop.f32.mrf.mxu1 }
 0x8d5   :  { %v4989_v46 = vadd.f32 %v4938_v31, %v8069_v4  ;;  %v4940_v38 = vadd.f32 %v4939_v47, %v4853_v63  ;;  %v4991_v59 = vadd.f32 %v4981_v49, %v8080_v15  ;;  %v10417_v63 = vpop.permute.xlu0 %356  ;;  %v4983_v56 = vadd.f32 %v4982_v22, %v4896_v51 }
 0x8d6   :  { %v4941_v1 = vpop.f32.mrf.mxu0  ;;  %v4984_v45 = vpop.f32.mrf.mxu1 }
 0x8d7   :  { %v4997_v9 = vmul.f32 0.5, %v4989_v46  ;;  %v4990_v48 = vadd.f32 %v4940_v38, %v8074_v7  ;;  %v4942_v42 = vadd.f32 %v4941_v1, %v4855_v50  ;;  %v4985_v27 = vadd.f32 %v4984_v45, %v4898_v25  ;;  %v362_v50 = vpop.permute.xlu1 %361  ;;  %v12047_v46 = vld [vmem:[#allocation14_spill] sm:$0xff] }
 0x8d8   :  { %v4943_v55 = vpop.f32.mrf.mxu0  ;;  %v4986_v5 = vpop.f32.mrf.mxu1  ;;  %v368_v49 = vmul.f32 %v362_v50, %v12047_v46  ;;  %v4992_v38 = vadd.f32 %v4983_v56, %v8101_v12  ;;  %v364_v1 = vmul.f32 %v10417_v63, %v12047_v46 }
 0x8d9   :  { %6707 = vtanh.f32 %v4997_v9  ;;  %v5005_v11 = vmul.f32 0.5, %v4990_v48  ;;  %v4944_v18 = vadd.f32 %v4943_v55, %v4857_v23  ;;  %v4993_v8 = vadd.f32 %v4942_v42, %v8069_v4  ;;  %v12046_v23 = vld [vmem:[#allocation16_spill] sm:$0xff]  ;;  %v12048_v42 = vld [vmem:[#allocation19_spill] sm:$0xff] }
 0x8da   :  { %v4995_v53 = vadd.f32 %v4985_v27, %v8080_v15  ;;  %v4987_v31 = vadd.f32 %v4986_v5, %v4900_v32  ;;  %v365_v47 = vmul.f32 %v10417_v63, %v12046_v23  ;;  %v369_v25 = vmul.f32 %v362_v50, %v12046_v23 }
 0x8db   :  { %6709 = vtanh.f32 %v5005_v11  ;;  %v4994_v40 = vadd.f32 %v4944_v18, %v8074_v7  ;;  %v4998_v39 = vmul.f32 0.5, %v4993_v8  ;;  %v5015_v8 = vmul.f32 0.5, %v4992_v38 }
 0x8dc   :  { %6711 = vtanh.f32 %v4991_v59  ;;  %v4996_v9 = vadd.f32 %v4987_v31, %v8101_v12  ;;  %v373_v45 = vadd.f32 %v365_v47, %v12048_v42  ;;  %v377_v51 = vadd.f32 %v369_v25, %v12048_v42  ;;  %v12049_v59 = vld [vmem:[#allocation17_spill] sm:$0xff] }
 0x8dd   :  { %v5006_v19 = vmul.f32 0.5, %v4994_v40  ;;  %6713 = vtanh.f32 %v4998_v39  ;;  %v376_v11 = vadd.f32 %v368_v49, %v12049_v59  ;;  %v372_v27 = vadd.f32 %v364_v1, %v12049_v59  ;;  %v12051_v59 = vld [vmem:[#allocation20_spill] sm:$0xff] }
 0x8de   :  { %v4773_v55 = vadd.f32 %v4722_v52, %v373_v45  ;;  %v4777_v18 = vadd.f32 %v4726_v30, %v377_v51 }
 0x8df   :  { %6715 = vtanh.f32 %v5006_v19  ;;  %v5016_v19 = vmul.f32 0.5, %v4996_v9  ;;  %v4772_v31 = vadd.f32 %v10400_v3, %v372_v27 }
 0x8e0   :  { %6717 = vtanh.f32 %v4995_v53  ;;  %v4776_v53 = vadd.f32 %v10406_v16, %v376_v11  ;;  %v4788_v25 = vmul.f32 0.5, %v4773_v55  ;;  %v4789_v46 = vmul.f32 0.5, %v4777_v18 }
 0x8e1   :  { %6719 = vtanh.f32 %v5015_v8  ;;  %v4780_v45 = vmul.f32 0.5, %v4772_v31 }
 0x8e2   :  { %6721 = vtanh.f32 %v5016_v19  ;;  %v4781_v1 = vmul.f32 0.5, %v4776_v53 }
 0x8e3   :  { %6723 = vtanh.f32 %v4788_v25 }
 0x8e4   :  { %6725 = vtanh.f32 %v4789_v46  ;;  %v12053_v46 = vld [vmem:[#allocation23_spill] sm:$0xff] }
 0x8e5   :  { %6727 = vtanh.f32 %v4781_v1 }
 0x8e6   :  { %v6708_v48 = vpop.eup %6707 }
 0x8e7   :  { %v5001_v32 = vmul.f32 0.5, %v6708_v48 }
 0x8e8   :  { %v6710_v22 = vpop.eup %6709 }
 0x8e9   :  { %v5003_v40 = vadd.f32 0.5, %v5001_v32  ;;  %v5009_v39 = vmul.f32 0.5, %v6710_v22  ;;  %v6712_v5 = vpop.eup %6711  ;;  %v12050_v32 = vld [vmem:[#allocation18_spill] sm:$0xff] }
 0x8ea   :  { %v6714_v56 = vpop.eup %6713  ;;  %v370_v22 = vmul.f32 %v362_v50, %v12050_v32  ;;  %v366_v55 = vmul.f32 %v10417_v63, %v12050_v32 }
 0x8eb   :  { %v5011_v23 = vadd.f32 0.5, %v5009_v39  ;;  %v5002_v52 = vmul.f32 0.5, %v6714_v56  ;;  %v5025_v49 = vmul.f32 %v6712_v5, %v5003_v40  ;;  %v12052_v39 = vld [vmem:[#allocation22_spill] sm:$0xff] }
 0x8ec   :  { %v6716_v47 = vpop.eup %6715  ;;  %v378_v11 = vadd.f32 %v370_v22, %v12051_v59  ;;  %v374_v8 = vadd.f32 %v366_v55, %v12051_v59  ;;  %v371_v19 = vmul.f32 %v362_v50, %v12052_v39 }
 0x8ed   :  { %v5023_v30 = vmul.f32 %v5011_v23, %v10167_v43  ;;  %v5010_v38 = vmul.f32 0.5, %v6716_v47  ;;  %v5004_v48 = vadd.f32 0.5, %v5002_v52  ;;  %v6718_v16 = vpop.eup %6717  ;;  %v367_v23 = vmul.f32 %v10417_v63, %v12052_v39  ;;  %v12055_v39 = vld [vmem:[#allocation113_spill] sm:$0xff] }
 0x8ee   :  { %v6720_v18 = vpop.eup %6719  ;;  %v4774_v40 = vadd.f32 %v10402_v2, %v374_v8  ;;  %v379_v52 = vadd.f32 %v371_v19, %v12053_v46  ;;  %v12056_v19 = vld [vmem:[#allocation114_spill] sm:$0xff] }
 0x8ef   :  { %v10435_v9 = vadd.f32 %v5025_v49, %v5023_v30  ;;  %v5012_v42 = vadd.f32 0.5, %v5010_v38  ;;  %v5026_v51 = vmul.f32 %v6718_v16, %v5004_v48  ;;  %v6722_v27 = vpop.eup %6721  ;;  %v5019_v53 = vmul.f32 0.5, %v6720_v18 }
 0x8f0   :  { %v6724_v5 = vpop.eup %6723  ;;  %v5020_v56 = vmul.f32 0.5, %v6722_v27  ;;  %v375_v50 = vadd.f32 %v367_v23, %v12053_v46  ;;  %v4779_v1 = vadd.f32 %v10410_v36, %v379_v52 }
 0x8f1   :  { %v5024_v3 = vmul.f32 %v5012_v42, %v10171_v61  ;;  %6729 = vtanh.f32 %v10435_v9  ;;  %v4778_v61 = vadd.f32 %v10408_v24, %v378_v11  ;;  %v6726_v31 = vpop.eup %6725  ;;  %v5021_v49 = vadd.f32 0.5, %v5019_v53  ;;  %v12057_v53 = vld [vmem:[#allocation77_spill] sm:$0xff] }
 0x8f2   :  { %6731 = vtanh.f32 %v4780_v45  ;;  %v6728_v47 = vpop.eup %6727  ;;  %v4793_v24 = vmul.f32 0.5, %v6726_v31  ;;  %v5022_v38 = vadd.f32 0.5, %v5020_v56  ;;  %v4792_v48 = vmul.f32 0.5, %v6724_v5  ;;  %v5111_v63 = vpop.f32.mrf.mxu1 }
 0x8f3   :  { %v10440_v43 = vadd.f32 %v5026_v51, %v5024_v3  ;;  %v4785_v42 = vmul.f32 0.5, %v6728_v47  ;;  %v5068_v3 = vpop.f32.mrf.mxu0  ;;  %v4775_v32 = vadd.f32 %v10404_v34, %v375_v50  ;;  %v4799_v18 = vmul.f32 0.5, %v4779_v1  ;;  %v12054_v34 = vld [vmem:[#allocation89_spill] sm:$0xff]  ;;  %v12058_v47 = vld [vmem:[#allocation115_spill] sm:$0xff]  ;;  %v12063_v1 = vld [vmem:[#allocation120_spill] sm:$0xff] }
 0x8f4   :  { %v4795_v22 = vadd.f32 0.5, %v4793_v24  ;;  %v4794_v59 = vadd.f32 0.5, %v4792_v48  ;;  %v10460_v8 = vpop.f32.mrf.mxu1  ;;  %v12061_v24 = vld [vmem:[#allocation118_spill] sm:$0xff]  ;;  %v12062_v50 = vld [vmem:[#allocation119_spill] sm:$0xff]  ;;  %v12064_v48 = vld [vmem:[#allocation121_spill] sm:$0xff] }
 0x8f5   :  { %6733 = vtanh.f32 %v10440_v43  ;;  %v4787_v11 = vadd.f32 0.5, %v4785_v42  ;;  %v5070_v36 = vpop.f32.mrf.mxu0  ;;  %v4798_v27 = vmul.f32 0.5, %v4775_v32  ;;  %v12065_v42 = vld [vmem:[#allocation122_spill] sm:$0xff]  ;;  %v12066_v32 = vld [vmem:[#allocation123_spill] sm:$0xff] }
 0x8f6   :  { %6735 = vtanh.f32 %v4778_v61  ;;  %v4806_v56 = vmul.f32 %v4794_v59, %v12057_v53 }
 0x8f7   :  { %6737 = vtanh.f32 %v4774_v40  ;;  %v4807_v40 = vmul.f32 %v4795_v22, %v12054_v34  ;;  %v5072_v23 = vpop.f32.mrf.mxu0  ;;  %v12067_v22 = vld [vmem:[#allocation124_spill] sm:$0xff] }
 0x8f8   :  { %6739 = vtanh.f32 %v4799_v18 }
 0x8f9   :  { %6741 = vtanh.f32 %v4798_v27 }
 0x8fe   :  { %v6730_v25 = vpop.eup %6729 }
 0x8ff   :  { %v6732_v30 = vpop.eup %6731  ;;  %v5031_v16 = vmul.f32 %v6730_v25, %v5021_v49  ;;  %v12059_v25 = vld [vmem:[#allocation116_spill] sm:$0xff] }
 0x900   :  { %v4784_v51 = vmul.f32 0.5, %v6732_v30  ;;  %v12060_v30 = vld [vmem:[#allocation117_spill] sm:$0xff] }
 0x902   :  { %v6734_v2 = vpop.eup %6733  ;;  %v4786_v61 = vadd.f32 0.5, %v4784_v51 }
 0x903   :  { %v5032_v45 = vmul.f32 %v6734_v2, %v5022_v38  ;;  %v6736_v5 = vpop.eup %6735  ;;  %v5074_v38 = vpop.f32.mrf.mxu0 }
 0x904   :  { %v4809_v31 = vmul.f32 %v6736_v5, %v4787_v11 }
 0x905   :  { %v10456_v55 = vpack.c.bf16 %v5032_v45, %v5031_v16 }
 0x906   :  { %v4811_v52 = vadd.f32 %v4809_v31, %v4807_v40  ;;  %v12068_v40 = vld [vmem:[#allocation125_spill] sm:$0xff] }
 0x907   :  { %5285 = vmatmul.mubr.bf16.vlgmr.msra.gmra.mxu0 %v10456_v55  ;;  %5328 = vmatmul.mubr.bf16.vlgmr.msra.gmra.mxu1 %v10456_v55 }
 0x908   :  { %5339 = vmatpush1.bf16.msra.mxu0 %v10180_v33  ;;  %5382 = vmatpush1.bf16.msra.mxu1 %v10183_v13  ;;  %v6738_v33 = vpop.eup %6737  ;;  %v5115_v13 = vpop.f32.mrf.mxu1  ;;  %6743 = vtanh.f32 %v4811_v52 }
 0x909   :  { %5340 = vmatprep.subr.bf16.mxu0 %v12055_v39  ;;  %5383 = vmatprep.subr.bf16.mxu1 %v12056_v19  ;;  %v4808_v46 = vmul.f32 %v6738_v33, %v4786_v61  ;;  %v6740_v5 = vpop.eup %6739 }
 0x90a   :  { %5370 = vmatprep.mubr.bf16.mxu0 %v11301_v44  ;;  %5413 = vmatprep.mubr.bf16.mxu1 %v11301_v44  ;;  %v5117_v2 = vpop.f32.mrf.mxu1 }
 0x90b   :  { %v4810_v49 = vadd.f32 %v4808_v46, %v4806_v56  ;;  %v12069_v56 = vld [vmem:[#allocation126_spill] sm:$0xff] }
 0x90c   :  { %5341 = vmatpush1.bf16.msra.mxu0 %v12058_v47  ;;  %5384 = vmatpush1.bf16.msra.mxu1 %v12059_v25  ;;  %v4803_v25 = vmul.f32 0.5, %v6740_v5  ;;  %v10528_v5 = vld [vmem:[#allocation10 + $0xc8] ss:$16 sps:$4 sm:$0xff]  }
 0x90d   :  { %5342 = vmatprep.subr.bf16.mxu0 %v12060_v30  ;;  %5385 = vmatprep.subr.bf16.mxu1 %v12061_v24  ;;  %6745 = vtanh.f32 %v4810_v49 }
 0x90e   :  { %v4805_v24 = vadd.f32 0.5, %v4803_v25  ;;  %v10540_v25 = vld [vmem:[#allocation10 + $0xa0] ss:$16 sps:$4 sm:$0xff]  }
 0x910   :  { %5343 = vmatpush1.bf16.msra.mxu0 %v12062_v50  ;;  %5386 = vmatpush1.bf16.msra.mxu1 %v12063_v1  ;;  %v12070_v1 = vld [vmem:[#allocation127_spill] sm:$0xff] }
 0x911   :  { %5344 = vmatprep.subr.bf16.mxu0 %v12064_v48  ;;  %5387 = vmatprep.subr.bf16.mxu1 %v12065_v42  ;;  %v12071_v48 = vld [vmem:[#allocation128_spill] sm:$0xff] }
 0x912   :  { %v5154_v16 = vpop.f32.mrf.mxu0  ;;  %v5197_v45 = vpop.f32.mrf.mxu1  ;;  %v10505_v42 = vld [vmem:[#allocation10 + $0xe4] ss:$16 sps:$4 sm:$0xff]  }
 0x913   :  { %v5155_v51 = vadd.f32 %v5154_v16, %v5068_v3  ;;  %v5198_v61 = vadd.f32 %v5197_v45, %v5111_v63  ;;  %v10511_v45 = vld [vmem:[#allocation10 + $0xe0] ss:$16 sps:$4 sm:$0xff]  }
 0x914   :  { %5345 = vmatpush1.bf16.msra.mxu0 %v12066_v32  ;;  %5388 = vmatpush1.bf16.msra.mxu1 %v12067_v22  ;;  %v5156_v59 = vpop.f32.mrf.mxu0  ;;  %v5199_v11 = vpop.f32.mrf.mxu1 }
 0x915   :  { %v5206_v18 = vadd.f32 %v5155_v51, %v8628_v0  ;;  %v5157_v27 = vadd.f32 %v5156_v59, %v5070_v36  ;;  %5346 = vmatprep.subr.bf16.mxu0 %v10227_v20  ;;  %5389 = vmatprep.subr.bf16.mxu1 %v12068_v40  ;;  %v5208_v63 = vadd.f32 %v5198_v61, %v8649_v26  ;;  %v6742_v20 = vpop.eup %6741  ;;  %v10514_v51 = vld [vmem:[#allocation10 + $0xe8] ss:$16 sps:$4 sm:$0xff]  }
 0x916   :  { %v5158_v34 = vpop.f32.mrf.mxu0  ;;  %v5201_v53 = vpop.f32.mrf.mxu1  ;;  %v4802_v52 = vmul.f32 0.5, %v6742_v20 }
 0x917   :  { %v5214_v39 = vmul.f32 0.5, %v5206_v18  ;;  %v5207_v19 = vadd.f32 %v5157_v27, %v8638_v21  ;;  %v5159_v3 = vadd.f32 %v5158_v34, %v5072_v23  ;;  %v5202_v23 = vadd.f32 %v5201_v53, %v5115_v13  ;;  %v10520_v18 = vld [vmem:[#allocation10 + $0xcc] ss:$16 sps:$4 sm:$0xff]  }
 0x918   :  { %5347 = vmatpush1.bf16.msra.mxu0 %v10234_v28  ;;  %5390 = vmatpush1.bf16.msra.mxu1 %v12069_v56  ;;  %v5160_v31 = vpop.f32.mrf.mxu0 }
 0x919   :  { %6747 = vtanh.f32 %v5214_v39  ;;  %v5222_v36 = vmul.f32 0.5, %v5207_v19  ;;  %v5161_v33 = vadd.f32 %v5160_v31, %v5074_v38  ;;  %5348 = vmatprep.subr.bf16.mxu0 %v10241_v60  ;;  %5391 = vmatprep.subr.bf16.mxu1 %v10244_v41  ;;  %v5210_v47 = vadd.f32 %v5159_v3, %v8628_v0  ;;  %v6744_v60 = vpop.eup %6743  ;;  %v5203_v41 = vpop.f32.mrf.mxu1  ;;  %v10525_v19 = vld [vmem:[#allocation10 + $0xc0] ss:$16 sps:$4 sm:$0xff]   ;;  %v10532_v31 = vld [vmem:[#allocation10 + $0xa4] ss:$16 sps:$4 sm:$0xff]  }
 0x91a   :  { %v5212_v13 = vadd.f32 %v5202_v23, %v8649_v26  ;;  %v6746_v49 = vpop.eup %6745  ;;  %v5200_v38 = vadd.f32 %v5199_v11, %v10460_v8  ;;  %v5204_v50 = vadd.f32 %v5203_v41, %v5117_v2  ;;  %v10517_v11 = vld [vmem:[#allocation10 + $0xc4] ss:$16 sps:$4 sm:$0xff]   ;;  %v10559_v41 = vld [vmem:[#allocation10 + $0x88] ss:$16 sps:$4 sm:$0xff]  }
 0x91b   :  { %6749 = vtanh.f32 %v5222_v36  ;;  %v5211_v28 = vadd.f32 %v5161_v33, %v8638_v21  ;;  %v5215_v46 = vmul.f32 0.5, %v5210_v47 }
 0x91c   :  { %5349 = vmatpush1.bf16.msra.mxu0 %v10249_v35  ;;  %5392 = vmatpush1.bf16.msra.mxu1 %v10252_v14  ;;  %6751 = vtanh.f32 %v5208_v63  ;;  %v4804_v35 = vadd.f32 0.5, %v4802_v52  ;;  %v4815_v14 = vmul.f32 %v6744_v60, %v4805_v24  ;;  %v10535_v63 = vld [vmem:[#allocation10 + $0xac] ss:$16 sps:$4 sm:$0xff]   ;;  %v10556_v60 = vld [vmem:[#allocation10 + $0x80] ss:$16 sps:$4 sm:$0xff]  }
 0x91d   :  { %v5223_v30 = vmul.f32 0.5, %v5211_v28  ;;  %5350 = vmatprep.subr.bf16.mxu0 %v10255_v54  ;;  %5393 = vmatprep.subr.bf16.mxu1 %v10258_v37  ;;  %6753 = vtanh.f32 %v5215_v46  ;;  %v5209_v37 = vadd.f32 %v5200_v38, %v8689_v58  ;;  %v10547_v46 = vld [vmem:[#allocation10 + $0x84] ss:$16 sps:$4 sm:$0xff]   ;;  %v10550_v52 = vld [vmem:[#allocation10 + $0x8c] ss:$16 sps:$4 sm:$0xff]  }
 0x91e   :  { %v4814_v54 = vmul.f32 %v6746_v49, %v4804_v35  ;;  %v10566_v24 = vld [vmem:[#allocation10 + $0x6c] ss:$16 sps:$4 sm:$0xff]   ;;  %v10572_v49 = vld [vmem:[#allocation10 + $0x68] ss:$16 sps:$4 sm:$0xff]   ;;  %v10575_v35 = vld [vmem:[#allocation10 + $0x44] ss:$16 sps:$4 sm:$0xff]  }
 0x91f   :  { %6755 = vtanh.f32 %v5223_v30  ;;  %v5232_v16 = vmul.f32 0.5, %v5209_v37  ;;  %v10584_v37 = vld [vmem:[#allocation10 + $0x48] ss:$16 sps:$4 sm:$0xff]  }
 0x920   :  { %5351 = vmatpush1.bf16.msra.mxu0 %v10263_v57  ;;  %5394 = vmatpush1.bf16.msra.mxu1 %v10266_v62  ;;  %6757 = vtanh.f32 %v5212_v13  ;;  %v5250_v8 = vpack.c.bf16 %v4815_v14, %v4814_v54  ;;  %v5213_v57 = vadd.f32 %v5204_v50, %v8689_v58  ;;  %v10508_v62 = vld [vmem:[#allocation10 + $0xec] ss:$16 sps:$4 sm:$0xff]   ;;  %v10569_v13 = vld [vmem:[#allocation10 + $0x60] ss:$16 sps:$4 sm:$0xff]  }
 0x921   :  { %5352 = vmatprep.subr.bf16.mxu0 %v10270_v6  ;;  %5395 = vmatprep.subr.bf16.mxu1 %v10273_v29  ;;  %6759 = vtanh.f32 %v5232_v16  ;;  %v10578_v14 = vld [vmem:[#allocation10 + $0x4c] ss:$16 sps:$4 sm:$0xff]   ;;  %v10581_v54 = vld [vmem:[#allocation10 + $0x40] ss:$16 sps:$4 sm:$0xff]  }
 0x922   :  { %v5233_v59 = vmul.f32 0.5, %v5213_v57  ;;  %v10590_v57 = vld [vmem:[#allocation10 + $0x2c] ss:$16 sps:$4 sm:$0xff]  }
 0x924   :  { %5353 = vmatpush1.bf16.msra.mxu0 %v12070_v1  ;;  %5396 = vmatpush1.bf16.msra.mxu1 %v12071_v48  ;;  %6761 = vtanh.f32 %v5233_v59  ;;  %v10602_v59 = vld [vmem:[#allocation10 + $0xc] ss:$16 sps:$4 sm:$0xff]  }
 0x925   :  { %5469 = vmatprep.subr.bf16.mxu0 %v10505_v42  ;;  %5512 = vmatprep.subr.bf16.mxu1 %v10508_v62 }
 0x926   :  { %v6748_v6 = vpop.eup %6747 }
 0x927   :  { %v5218_v29 = vmul.f32 0.5, %v6748_v6  ;;  %5371 = vmatmul.mubr.bf16.vlgmr.msra.gmra.mxu0 %v5250_v8  ;;  %5414 = vmatmul.mubr.bf16.vlgmr.msra.gmra.mxu1 %v5250_v8  ;;  %v10587_v8 = vld [vmem:[#allocation10 + $0x24] ss:$16 sps:$4 sm:$0xff]  }
 0x928   :  { %v6750_v2 = vpop.eup %6749  ;;  %5470 = vmatpush1.bf16.msra.mxu0 %v10511_v45  ;;  %5513 = vmatpush1.bf16.msra.mxu1 %v10514_v51 }
 0x929   :  { %v5220_v32 = vadd.f32 0.5, %v5218_v29  ;;  %v5226_v22 = vmul.f32 0.5, %v6750_v2  ;;  %5471 = vmatprep.subr.bf16.mxu0 %v10517_v11  ;;  %5514 = vmatprep.subr.bf16.mxu1 %v10520_v18  ;;  %v6752_v61 = vpop.eup %6751  ;;  %v10593_v29 = vld [vmem:[#allocation10 + $0x20] ss:$16 sps:$4 sm:$0xff]   ;;  %v10596_v2 = vld [vmem:[#allocation10 + $0x28] ss:$16 sps:$4 sm:$0xff]  }
 0x92a   :  { %5501 = vmatprep.mubr.bf16.mxu0 %v11301_v44  ;;  %5544 = vmatprep.mubr.bf16.mxu1 %v11301_v44  ;;  %v6754_v27 = vpop.eup %6753 }
 0x92b   :  { %v5228_v34 = vadd.f32 0.5, %v5226_v22  ;;  %v5219_v39 = vmul.f32 0.5, %v6754_v27  ;;  %v5242_v53 = vmul.f32 %v6752_v61, %v5220_v32  ;;  %v10599_v22 = vld [vmem:[#allocation10 + $0x4] ss:$16 sps:$4 sm:$0xff]  }
 0x92c   :  { %v6756_v40 = vpop.eup %6755  ;;  %5472 = vmatpush1.bf16.msra.mxu0 %v10525_v19  ;;  %5515 = vmatpush1.bf16.msra.mxu1 %v10528_v5 }
 0x92d   :  { %v5240_v3 = vmul.f32 %v5228_v34, %v10299_v17  ;;  %v5227_v56 = vmul.f32 0.5, %v6756_v40  ;;  %5473 = vmatprep.subr.bf16.mxu0 %v10532_v31  ;;  %5516 = vmatprep.subr.bf16.mxu1 %v10535_v63  ;;  %v5221_v36 = vadd.f32 0.5, %v5219_v39  ;;  %v6758_v47 = vpop.eup %6757  ;;  %v10543_v17 = vld [vmem:[#allocation10 + $0xa8] ss:$16 sps:$4 sm:$0xff]   ;;  %v10605_v40 = vld [vmem:[#allocation10] ss:$16 sps:$4 sm:$0xff]  }
 0x92e   :  { %v6760_v38 = vpop.eup %6759  ;;  %v10608_v39 = vld [vmem:[#allocation10 + $0x8] ss:$16 sps:$4 sm:$0xff]  }
 0x92f   :  { %v10538_v33 = vadd.f32 %v5242_v53, %v5240_v3  ;;  %v5229_v20 = vadd.f32 0.5, %v5227_v56  ;;  %v5243_v28 = vmul.f32 %v6758_v47, %v5221_v36  ;;  %v5236_v1 = vmul.f32 0.5, %v6760_v38  ;;  %v10611_v53 = vld [vmem:[#allocation8 + $0xe4] ss:$16 sps:$4 sm:$0xff]   ;;  %v10614_v56 = vld [vmem:[#allocation8 + $0xec] ss:$16 sps:$4 sm:$0xff]  }
 0x930   :  { %5474 = vmatpush1.bf16.msra.mxu0 %v10540_v25  ;;  %5517 = vmatpush1.bf16.msra.mxu1 %v10543_v17  ;;  %v10617_v36 = vld [vmem:[#allocation8 + $0xe0] ss:$16 sps:$4 sm:$0xff]   ;;  %v10623_v47 = vld [vmem:[#allocation8 + $0xc4] ss:$16 sps:$4 sm:$0xff]   ;;  %v10634_v38 = vld [vmem:[#allocation8 + $0xc8] ss:$16 sps:$4 sm:$0xff]  }
 0x931   :  { %v5241_v23 = vmul.f32 %v5229_v20, %v10307_v10  ;;  %5475 = vmatprep.subr.bf16.mxu0 %v10547_v46  ;;  %5518 = vmatprep.subr.bf16.mxu1 %v10550_v52  ;;  %6763 = vtanh.f32 %v10538_v33  ;;  %v10563_v10 = vld [vmem:[#allocation10 + $0x64] ss:$16 sps:$4 sm:$0xff]   ;;  %v6762_v50 = vpop.eup %6761  ;;  %v5238_v16 = vadd.f32 0.5, %v5236_v1  ;;  %v10620_v20 = vld [vmem:[#allocation8 + $0xe8] ss:$16 sps:$4 sm:$0xff]  }
 0x932   :  { %v5237_v48 = vmul.f32 0.5, %v6762_v50  ;;  %v10637_v50 = vld [vmem:[#allocation8 + $0xa4] ss:$16 sps:$4 sm:$0xff]   ;;  %v10640_v1 = vld [vmem:[#allocation8 + $0xac] ss:$16 sps:$4 sm:$0xff]  }
 0x933   :  { %v10554_v30 = vadd.f32 %v5243_v28, %v5241_v23  ;;  %v10626_v23 = vld [vmem:[#allocation8 + $0xcc] ss:$16 sps:$4 sm:$0xff]   ;;  %v10631_v28 = vld [vmem:[#allocation8 + $0xc0] ss:$16 sps:$4 sm:$0xff]  }
 0x934   :  { %5476 = vmatpush1.bf16.msra.mxu0 %v10556_v60  ;;  %5519 = vmatpush1.bf16.msra.mxu1 %v10559_v41  ;;  %v5239_v32 = vadd.f32 0.5, %v5237_v48  ;;  %v10643_v48 = vld [vmem:[#allocation8 + $0xa0] ss:$16 sps:$4 sm:$0xff]  }
 0x935   :  { %6765 = vtanh.f32 %v10554_v30  ;;  %5477 = vmatprep.subr.bf16.mxu0 %v10563_v10  ;;  %5520 = vmatprep.subr.bf16.mxu1 %v10566_v24 }
 0x938   :  { %5478 = vmatpush1.bf16.msra.mxu0 %v10569_v13  ;;  %5521 = vmatpush1.bf16.msra.mxu1 %v10572_v49 }
 0x939   :  { %5479 = vmatprep.subr.bf16.mxu0 %v10575_v35  ;;  %5522 = vmatprep.subr.bf16.mxu1 %v10578_v14 }
 0x93c   :  { %5480 = vmatpush1.bf16.msra.mxu0 %v10581_v54  ;;  %5523 = vmatpush1.bf16.msra.mxu1 %v10584_v37 }
 0x93d   :  { %5481 = vmatprep.subr.bf16.mxu0 %v10587_v8  ;;  %5524 = vmatprep.subr.bf16.mxu1 %v10590_v57 }
 0x93e   :  { %v6764_v6 = vpop.eup %6763 }
 0x93f   :  { %v5248_v27 = vmul.f32 %v6764_v6, %v5238_v16  ;;  %v10646_v6 = vld [vmem:[#allocation8 + $0xa8] ss:$16 sps:$4 sm:$0xff]   ;;  %v10649_v16 = vld [vmem:[#allocation8 + $0x84] ss:$16 sps:$4 sm:$0xff]  }
 0x940   :  { %5482 = vmatpush1.bf16.msra.mxu0 %v10593_v29  ;;  %5525 = vmatpush1.bf16.msra.mxu1 %v10596_v2  ;;  %12072 = vst [vmem:[#allocation129_spill] sm:$0xff] %v10649_v16 }
 0x941   :  { %5483 = vmatprep.subr.bf16.mxu0 %v10599_v22  ;;  %5526 = vmatprep.subr.bf16.mxu1 %v10602_v59 }
 0x942   :  { %v6766_v61 = vpop.eup %6765 }
 0x943   :  { %v5249_v34 = vmul.f32 %v6766_v61, %v5239_v32  ;;  %v10652_v32 = vld [vmem:[#allocation8 + $0x8c] ss:$16 sps:$4 sm:$0xff]   ;;  %v10655_v61 = vld [vmem:[#allocation8 + $0x80] ss:$16 sps:$4 sm:$0xff]  }
 0x944   :  { %5484 = vmatpush1.bf16.msra.mxu0 %v10605_v40  ;;  %5527 = vmatpush1.bf16.msra.mxu1 %v10608_v39  ;;  %12073 = vst [vmem:[#allocation130_spill] sm:$0xff] %v10652_v32  ;;  %12074 = vst [vmem:[#allocation131_spill] sm:$0xff] %v10655_v61 }
 0x945   :  { %v5468_v3 = vpack.c.bf16 %v5249_v34, %v5248_v27  ;;  %5555 = vmatprep.subr.bf16.mxu0 %v10611_v53  ;;  %5598 = vmatprep.subr.bf16.mxu1 %v10614_v56  ;;  %v10658_v27 = vld [vmem:[#allocation8 + $0x88] ss:$16 sps:$4 sm:$0xff]   ;;  %v10661_v34 = vld [vmem:[#allocation8 + $0x64] ss:$16 sps:$4 sm:$0xff]  }
 0x946   :  { %12075 = vst [vmem:[#allocation132_spill] sm:$0xff] %v10658_v27  ;;  %12076 = vst [vmem:[#allocation133_spill] sm:$0xff] %v10661_v34 }
 0x947   :  { %5502 = vmatmul.mubr.bf16.vlgmr.msra.gmra.mxu0 %v5468_v3  ;;  %5545 = vmatmul.mubr.bf16.vlgmr.msra.gmra.mxu1 %v5468_v3  ;;  %v10664_v3 = vld [vmem:[#allocation8 + $0x6c] ss:$16 sps:$4 sm:$0xff]  }
 0x948   :  { %5556 = vmatpush1.bf16.msra.mxu0 %v10617_v36  ;;  %5599 = vmatpush1.bf16.msra.mxu1 %v10620_v20  ;;  %12077 = vst [vmem:[#allocation134_spill] sm:$0xff] %v10664_v3 }
 0x949   :  { %5557 = vmatprep.subr.bf16.mxu0 %v10623_v47  ;;  %5600 = vmatprep.subr.bf16.mxu1 %v10626_v23 }
 0x94a   :  { %5587 = vmatprep.mubr.bf16.mxu0 %v11301_v44  ;;  %5630 = vmatprep.mubr.bf16.mxu1 %v11301_v44 }
 0x94c   :  { %5558 = vmatpush1.bf16.msra.mxu0 %v10631_v28  ;;  %5601 = vmatpush1.bf16.msra.mxu1 %v10634_v38 }
 0x94d   :  { %5559 = vmatprep.subr.bf16.mxu0 %v10637_v50  ;;  %5602 = vmatprep.subr.bf16.mxu1 %v10640_v1 }
 0x950   :  { %5560 = vmatpush1.bf16.msra.mxu0 %v10643_v48  ;;  %5603 = vmatpush1.bf16.msra.mxu1 %v10646_v6 }
 0x951   :  { %5561 = vmatprep.subr.bf16.mxu0 %v10649_v16  ;;  %5604 = vmatprep.subr.bf16.mxu1 %v10652_v32  ;;  %v10667_v16 = vld [vmem:[#allocation8 + $0x60] ss:$16 sps:$4 sm:$0xff]   ;;  %v10670_v32 = vld [vmem:[#allocation8 + $0x68] ss:$16 sps:$4 sm:$0xff]  }
 0x952   :  { %12078 = vst [vmem:[#allocation135_spill] sm:$0xff] %v10667_v16  ;;  %12079 = vst [vmem:[#allocation136_spill] sm:$0xff] %v10670_v32 }
 0x954   :  { %5562 = vmatpush1.bf16.msra.mxu0 %v10655_v61  ;;  %5605 = vmatpush1.bf16.msra.mxu1 %v10658_v27  ;;  %v10673_v61 = vld [vmem:[#allocation8 + $0x44] ss:$16 sps:$4 sm:$0xff]   ;;  %v10676_v27 = vld [vmem:[#allocation8 + $0x4c] ss:$16 sps:$4 sm:$0xff]  }
 0x955   :  { %5563 = vmatprep.subr.bf16.mxu0 %v10661_v34  ;;  %5606 = vmatprep.subr.bf16.mxu1 %v10664_v3  ;;  %12080 = vst [vmem:[#allocation137_spill] sm:$0xff] %v10673_v61  ;;  %12081 = vst [vmem:[#allocation138_spill] sm:$0xff] %v10676_v27  ;;  %v10679_v34 = vld [vmem:[#allocation8 + $0x40] ss:$16 sps:$4 sm:$0xff]   ;;  %v10682_v3 = vld [vmem:[#allocation8 + $0x48] ss:$16 sps:$4 sm:$0xff]  }
 0x956   :  { %12082 = vst [vmem:[#allocation15_spill] sm:$0xff] %v10679_v34  ;;  %12083 = vst [vmem:[#allocation30_spill] sm:$0xff] %v10682_v3 }
 0x958   :  { %5564 = vmatpush1.bf16.msra.mxu0 %v10667_v16  ;;  %5607 = vmatpush1.bf16.msra.mxu1 %v10670_v32  ;;  %v10685_v16 = vld [vmem:[#allocation8 + $0x24] ss:$16 sps:$4 sm:$0xff]   ;;  %v10688_v32 = vld [vmem:[#allocation8 + $0x2c] ss:$16 sps:$4 sm:$0xff]  }
 0x959   :  { %5565 = vmatprep.subr.bf16.mxu0 %v10673_v61  ;;  %5608 = vmatprep.subr.bf16.mxu1 %v10676_v27  ;;  %12084 = vst [vmem:[#allocation24_spill] sm:$0xff] %v10685_v16  ;;  %12085 = vst [vmem:[#allocation25_spill] sm:$0xff] %v10688_v32  ;;  %v10691_v61 = vld [vmem:[#allocation8 + $0x20] ss:$16 sps:$4 sm:$0xff]   ;;  %v10694_v27 = vld [vmem:[#allocation8 + $0x28] ss:$16 sps:$4 sm:$0xff]  }
 0x95c   :  { %5566 = vmatpush1.bf16.msra.mxu0 %v10679_v34  ;;  %5609 = vmatpush1.bf16.msra.mxu1 %v10682_v3  ;;  %v10697_v34 = vld [vmem:[#allocation8 + $0x4] ss:$16 sps:$4 sm:$0xff]   ;;  %v10700_v3 = vld [vmem:[#allocation8 + $0xc] ss:$16 sps:$4 sm:$0xff]  }
 0x95d   :  { %5567 = vmatprep.subr.bf16.mxu0 %v10685_v16  ;;  %5610 = vmatprep.subr.bf16.mxu1 %v10688_v32  ;;  %v10703_v16 = vld [vmem:[#allocation8] ss:$16 sps:$4 sm:$0xff]   ;;  %v10706_v32 = vld [vmem:[#allocation8 + $0x8] ss:$16 sps:$4 sm:$0xff]  }
 0x960   :  { %5568 = vmatpush1.bf16.msra.mxu0 %v10691_v61  ;;  %5611 = vmatpush1.bf16.msra.mxu1 %v10694_v27 }
 0x961   :  { %5569 = vmatprep.subr.bf16.mxu0 %v10697_v34  ;;  %5612 = vmatprep.subr.bf16.mxu1 %v10700_v3 }
 0x964   :  { %5570 = vmatpush1.bf16.msra.mxu0 %v10703_v16  ;;  %5613 = vmatpush1.bf16.msra.mxu1 %v10706_v32 }
 0x965   :  { %5687 = vmatprep.subr.bf16.mxu0 %v10505_v42  ;;  %5730 = vmatprep.subr.bf16.mxu1 %v10508_v62 }
 0x967   :  { %5588 = vmatmul.mubr.bf16.vlgmr.msra.gmra.mxu0 %v10456_v55  ;;  %5631 = vmatmul.mubr.bf16.vlgmr.msra.gmra.mxu1 %v10456_v55 }
 0x968   :  { %5688 = vmatpush1.bf16.msra.mxu0 %v10511_v45  ;;  %5731 = vmatpush1.bf16.msra.mxu1 %v10514_v51 }
 0x969   :  { %5689 = vmatprep.subr.bf16.mxu0 %v10517_v11  ;;  %5732 = vmatprep.subr.bf16.mxu1 %v10520_v18 }
 0x96a   :  { %5719 = vmatprep.mubr.bf16.mxu0 %v11301_v44  ;;  %5762 = vmatprep.mubr.bf16.mxu1 %v11301_v44 }
 0x96c   :  { %5690 = vmatpush1.bf16.msra.mxu0 %v10525_v19  ;;  %5733 = vmatpush1.bf16.msra.mxu1 %v10528_v5 }
 0x96d   :  { %5691 = vmatprep.subr.bf16.mxu0 %v10532_v31  ;;  %5734 = vmatprep.subr.bf16.mxu1 %v10535_v63 }
 0x970   :  { %5692 = vmatpush1.bf16.msra.mxu0 %v10540_v25  ;;  %5735 = vmatpush1.bf16.msra.mxu1 %v10543_v17 }
 0x971   :  { %5693 = vmatprep.subr.bf16.mxu0 %v10547_v46  ;;  %5736 = vmatprep.subr.bf16.mxu1 %v10550_v52 }
 0x974   :  { %5694 = vmatpush1.bf16.msra.mxu0 %v10556_v60  ;;  %5737 = vmatpush1.bf16.msra.mxu1 %v10559_v41 }
 0x975   :  { %5695 = vmatprep.subr.bf16.mxu0 %v10563_v10  ;;  %5738 = vmatprep.subr.bf16.mxu1 %v10566_v24 }
 0x978   :  { %5696 = vmatpush1.bf16.msra.mxu0 %v10569_v13  ;;  %5739 = vmatpush1.bf16.msra.mxu1 %v10572_v49 }
 0x979   :  { %5697 = vmatprep.subr.bf16.mxu0 %v10575_v35  ;;  %5740 = vmatprep.subr.bf16.mxu1 %v10578_v14 }
 0x97c   :  { %5698 = vmatpush1.bf16.msra.mxu0 %v10581_v54  ;;  %5741 = vmatpush1.bf16.msra.mxu1 %v10584_v37 }
 0x97d   :  { %5699 = vmatprep.subr.bf16.mxu0 %v10587_v8  ;;  %5742 = vmatprep.subr.bf16.mxu1 %v10590_v57 }
 0x980   :  { %5700 = vmatpush1.bf16.msra.mxu0 %v10593_v29  ;;  %5743 = vmatpush1.bf16.msra.mxu1 %v10596_v2 }
 0x981   :  { %5701 = vmatprep.subr.bf16.mxu0 %v10599_v22  ;;  %5744 = vmatprep.subr.bf16.mxu1 %v10602_v59 }
 0x984   :  { %5702 = vmatpush1.bf16.msra.mxu0 %v10605_v40  ;;  %5745 = vmatpush1.bf16.msra.mxu1 %v10608_v39 }
 0x985   :  { %5773 = vmatprep.subr.bf16.mxu0 %v10611_v53  ;;  %5816 = vmatprep.subr.bf16.mxu1 %v10614_v56 }
 0x9c7   :  { %v5286_v55 = vpop.f32.mrf.mxu0  ;;  %v5329_v42 = vpop.f32.mrf.mxu1 }
 0x9c9   :  { %v5288_v62 = vpop.f32.mrf.mxu0  ;;  %v5331_v45 = vpop.f32.mrf.mxu1 }
 0x9cb   :  { %v5290_v51 = vpop.f32.mrf.mxu0  ;;  %v5333_v11 = vpop.f32.mrf.mxu1 }
 0x9cd   :  { %v5292_v18 = vpop.f32.mrf.mxu0  ;;  %v5335_v19 = vpop.f32.mrf.mxu1 }
 0x9e7   :  { %v5372_v5 = vpop.f32.mrf.mxu0  ;;  %v5415_v31 = vpop.f32.mrf.mxu1 }
 0x9e8   :  { %v5373_v63 = vadd.f32 %v5372_v5, %v5286_v55  ;;  %v5416_v52 = vadd.f32 %v5415_v31, %v5329_v42 }
 0x9e9   :  { %v5374_v25 = vpop.f32.mrf.mxu0  ;;  %v5417_v17 = vpop.f32.mrf.mxu1 }
 0x9ea   :  { %v5424_v46 = vadd.f32 %v5373_v63, %v8069_v4  ;;  %v5375_v60 = vadd.f32 %v5374_v25, %v5288_v62  ;;  %v5426_v14 = vadd.f32 %v5416_v52, %v8080_v15  ;;  %v5418_v39 = vadd.f32 %v5417_v17, %v5331_v45 }
 0x9eb   :  { %v5376_v41 = vpop.f32.mrf.mxu0  ;;  %v5419_v49 = vpop.f32.mrf.mxu1 }
 0x9ec   :  { %v5432_v10 = vmul.f32 0.5, %v5424_v46  ;;  %v5425_v24 = vadd.f32 %v5375_v60, %v8074_v7  ;;  %v5377_v13 = vadd.f32 %v5376_v41, %v5290_v51  ;;  %v5420_v57 = vadd.f32 %v5419_v49, %v5333_v11 }
 0x9ed   :  { %v5378_v35 = vpop.f32.mrf.mxu0  ;;  %v5421_v59 = vpop.f32.mrf.mxu1  ;;  %v5427_v56 = vadd.f32 %v5418_v39, %v8101_v12 }
 0x9ee   :  { %6767 = vtanh.f32 %v5432_v10  ;;  %v5440_v54 = vmul.f32 0.5, %v5425_v24  ;;  %v5379_v37 = vadd.f32 %v5378_v35, %v5292_v18  ;;  %v5428_v8 = vadd.f32 %v5377_v13, %v8069_v4 }
 0x9ef   :  { %v5430_v40 = vadd.f32 %v5420_v57, %v8080_v15  ;;  %v5422_v53 = vadd.f32 %v5421_v59, %v5335_v19  ;;  %v5450_v51 = vmul.f32 0.5, %v5427_v56 }
 0x9f0   :  { %6769 = vtanh.f32 %v5440_v54  ;;  %v5429_v29 = vadd.f32 %v5379_v37, %v8074_v7  ;;  %v5433_v2 = vmul.f32 0.5, %v5428_v8 }
 0x9f1   :  { %6771 = vtanh.f32 %v5426_v14  ;;  %v5431_v55 = vadd.f32 %v5422_v53, %v8101_v12 }
 0x9f2   :  { %v5441_v22 = vmul.f32 0.5, %v5429_v29  ;;  %6773 = vtanh.f32 %v5433_v2 }
 0x9f3   :  { %v5451_v18 = vmul.f32 0.5, %v5431_v55 }
 0x9f4   :  { %6775 = vtanh.f32 %v5441_v22 }
 0x9f5   :  { %6777 = vtanh.f32 %v5430_v40 }
 0x9f6   :  { %6779 = vtanh.f32 %v5450_v51 }
 0x9f7   :  { %6781 = vtanh.f32 %v5451_v18 }
 0x9fb   :  { %v6768_v4 = vpop.eup %6767 }
 0x9fc   :  { %v5436_v42 = vmul.f32 0.5, %v6768_v4 }
 0x9fd   :  { %v6770_v62 = vpop.eup %6769 }
 0x9fe   :  { %v5438_v7 = vadd.f32 0.5, %v5436_v42  ;;  %v5444_v11 = vmul.f32 0.5, %v6770_v62  ;;  %v6772_v5 = vpop.eup %6771 }
 0x9ff   :  { %v6774_v31 = vpop.eup %6773 }
 0xa00   :  { %v5446_v63 = vadd.f32 0.5, %v5444_v11  ;;  %v5437_v15 = vmul.f32 0.5, %v6774_v31  ;;  %v5460_v19 = vmul.f32 %v6772_v5, %v5438_v7 }
 0xa01   :  { %v6776_v25 = vpop.eup %6775 }
 0xa02   :  { %v5458_v45 = vmul.f32 %v5446_v63, %v10435_v9  ;;  %v5445_v17 = vmul.f32 0.5, %v6776_v25  ;;  %v5439_v46 = vadd.f32 0.5, %v5437_v15  ;;  %v6778_v60 = vpop.eup %6777 }
 0xa03   :  { %v6780_v13 = vpop.eup %6779 }
 0xa04   :  { %v5462_v12 = vadd.f32 %v5460_v19, %v5458_v45  ;;  %v5447_v52 = vadd.f32 0.5, %v5445_v17  ;;  %v5461_v10 = vmul.f32 %v6778_v60, %v5439_v46  ;;  %v6782_v49 = vpop.eup %6781  ;;  %v5454_v35 = vmul.f32 0.5, %v6780_v13 }
 0xa05   :  { %v5455_v14 = vmul.f32 0.5, %v6782_v49 }
 0xa06   :  { %v5459_v41 = vmul.f32 %v5447_v52, %v10440_v43  ;;  %6783 = vtanh.f32 %v5462_v12  ;;  %v5456_v37 = vadd.f32 0.5, %v5454_v35 }
 0xa07   :  { %v5457_v9 = vadd.f32 0.5, %v5455_v14  ;;  %v5503_v2 = vpop.f32.mrf.mxu0  ;;  %v5546_v22 = vpop.f32.mrf.mxu1 }
 0xa08   :  { %v5463_v24 = vadd.f32 %v5461_v10, %v5459_v41 }
 0xa09   :  { %v5505_v40 = vpop.f32.mrf.mxu0  ;;  %v5548_v43 = vpop.f32.mrf.mxu1 }
 0xa0a   :  { %6785 = vtanh.f32 %v5463_v24 }
 0xa0b   :  { %v5507_v39 = vpop.f32.mrf.mxu0  ;;  %v5550_v53 = vpop.f32.mrf.mxu1 }
 0xa0d   :  { %v5509_v56 = vpop.f32.mrf.mxu0  ;;  %v5552_v55 = vpop.f32.mrf.mxu1 }
 0xa13   :  { %v6784_v54 = vpop.eup %6783 }
 0xa14   :  { %v5466_v57 = vmul.f32 %v6784_v54, %v5456_v37 }
 0xa17   :  { %v6786_v8 = vpop.eup %6785 }
 0xa18   :  { %v5467_v29 = vmul.f32 %v6786_v8, %v5457_v9 }
 0xa1a   :  { %v10757_v59 = vpack.c.bf16 %v5467_v29, %v5466_v57 }
 0xa27   :  { %v5589_v4 = vpop.f32.mrf.mxu0  ;;  %v5632_v42 = vpop.f32.mrf.mxu1 }
 0xa28   :  { %v5590_v62 = vadd.f32 %v5589_v4, %v5503_v2  ;;  %v5633_v18 = vadd.f32 %v5632_v42, %v5546_v22 }
 0xa29   :  { %v5591_v51 = vpop.f32.mrf.mxu0  ;;  %v5634_v7 = vpop.f32.mrf.mxu1 }
 0xa2a   :  { %v5641_v11 = vadd.f32 %v5590_v62, %v8628_v0  ;;  %v5592_v5 = vadd.f32 %v5591_v51, %v5505_v40  ;;  %v5643_v17 = vadd.f32 %v5633_v18, %v8649_v26  ;;  %v5635_v35 = vadd.f32 %v5634_v7, %v5548_v43 }
 0xa2b   :  { %v5593_v31 = vpop.f32.mrf.mxu0  ;;  %v5636_v45 = vpop.f32.mrf.mxu1 }
 0xa2c   :  { %v5649_v63 = vmul.f32 0.5, %v5641_v11  ;;  %v5642_v25 = vadd.f32 %v5592_v5, %v8638_v21  ;;  %v5594_v15 = vadd.f32 %v5593_v31, %v5507_v39  ;;  %v5637_v60 = vadd.f32 %v5636_v45, %v5550_v53 }
 0xa2d   :  { %v5595_v19 = vpop.f32.mrf.mxu0  ;;  %v5638_v13 = vpop.f32.mrf.mxu1  ;;  %v5644_v54 = vadd.f32 %v5635_v35, %v8689_v58 }
 0xa2e   :  { %6787 = vtanh.f32 %v5649_v63  ;;  %v5657_v46 = vmul.f32 0.5, %v5642_v25  ;;  %v5596_v12 = vadd.f32 %v5595_v19, %v5509_v56  ;;  %v5645_v52 = vadd.f32 %v5594_v15, %v8628_v0 }
 0xa2f   :  { %v5647_v49 = vadd.f32 %v5637_v60, %v8649_v26  ;;  %v5639_v14 = vadd.f32 %v5638_v13, %v5552_v55  ;;  %v5667_v29 = vmul.f32 0.5, %v5644_v54 }
 0xa30   :  { %6789 = vtanh.f32 %v5657_v46  ;;  %v5646_v41 = vadd.f32 %v5596_v12, %v8638_v21  ;;  %v5650_v10 = vmul.f32 0.5, %v5645_v52 }
 0xa31   :  { %6791 = vtanh.f32 %v5643_v17  ;;  %v5648_v37 = vadd.f32 %v5639_v14, %v8689_v58 }
 0xa32   :  { %v5658_v24 = vmul.f32 0.5, %v5646_v41  ;;  %6793 = vtanh.f32 %v5650_v10  ;;  %v12098_v10 = vld [vmem:[#allocation24_spill] sm:$0xff] }
 0xa33   :  { %v5668_v40 = vmul.f32 0.5, %v5648_v37 }
 0xa34   :  { %6795 = vtanh.f32 %v5658_v24  ;;  %v12099_v24 = vld [vmem:[#allocation25_spill] sm:$0xff] }
 0xa35   :  { %6797 = vtanh.f32 %v5647_v49 }
 0xa36   :  { %6799 = vtanh.f32 %v5667_v29 }
 0xa37   :  { %6801 = vtanh.f32 %v5668_v40 }
 0xa3b   :  { %v6788_v9 = vpop.eup %6787 }
 0xa3c   :  { %v5653_v8 = vmul.f32 0.5, %v6788_v9 }
 0xa3d   :  { %v6790_v57 = vpop.eup %6789 }
 0xa3e   :  { %v5655_v2 = vadd.f32 0.5, %v5653_v8  ;;  %v5661_v22 = vmul.f32 0.5, %v6790_v57  ;;  %v6792_v39 = vpop.eup %6791 }
 0xa3f   :  { %v6794_v53 = vpop.eup %6793 }
 0xa40   :  { %v5663_v56 = vadd.f32 0.5, %v5661_v22  ;;  %v5654_v42 = vmul.f32 0.5, %v6794_v53  ;;  %v5677_v55 = vmul.f32 %v6792_v39, %v5655_v2 }
 0xa41   :  { %v6796_v4 = vpop.eup %6795 }
 0xa42   :  { %v5675_v43 = vmul.f32 %v5663_v56, %v10538_v33  ;;  %v5662_v62 = vmul.f32 0.5, %v6796_v4  ;;  %v5656_v51 = vadd.f32 0.5, %v5654_v42  ;;  %v6798_v18 = vpop.eup %6797 }
 0xa43   :  { %v6800_v25 = vpop.eup %6799 }
 0xa44   :  { %v10768_v7 = vadd.f32 %v5677_v55, %v5675_v43  ;;  %v5664_v11 = vadd.f32 0.5, %v5662_v62  ;;  %v5678_v31 = vmul.f32 %v6798_v18, %v5656_v51  ;;  %v6802_v15 = vpop.eup %6801  ;;  %v5671_v33 = vmul.f32 0.5, %v6800_v25 }
 0xa45   :  { %v5672_v45 = vmul.f32 0.5, %v6802_v15 }
 0xa46   :  { %v5676_v5 = vmul.f32 %v5664_v11, %v10554_v30  ;;  %6803 = vtanh.f32 %v10768_v7  ;;  %v5673_v17 = vadd.f32 0.5, %v5671_v33  ;;  %v12086_v30 = vld [vmem:[#allocation129_spill] sm:$0xff] }
 0xa47   :  { %v5674_v46 = vadd.f32 0.5, %v5672_v45 }
 0xa48   :  { %v10772_v63 = vadd.f32 %v5678_v31, %v5676_v5 }
 0xa4a   :  { %6805 = vtanh.f32 %v10772_v63 }
 0xa53   :  { %v6804_v19 = vpop.eup %6803 }
 0xa54   :  { %v5683_v52 = vmul.f32 %v6804_v19, %v5673_v17 }
 0xa57   :  { %v6806_v12 = vpop.eup %6805 }
 0xa58   :  { %v5684_v60 = vmul.f32 %v6806_v12, %v5674_v46 }
 0xa5a   :  { %v5686_v41 = vpack.c.bf16 %v5684_v60, %v5683_v52 }
 0xa5c   :  { %5720 = vmatmul.mubr.bf16.vlgmr.msra.gmra.mxu0 %v5686_v41  ;;  %5763 = vmatmul.mubr.bf16.vlgmr.msra.gmra.mxu1 %v5686_v41 }
 0xa5d   :  { %5774 = vmatpush1.bf16.msra.mxu0 %v10617_v36  ;;  %5817 = vmatpush1.bf16.msra.mxu1 %v10620_v20  ;;  %v12087_v36 = vld [vmem:[#allocation130_spill] sm:$0xff]  ;;  %v12088_v20 = vld [vmem:[#allocation131_spill] sm:$0xff] }
 0xa5e   :  { %5775 = vmatprep.subr.bf16.mxu0 %v10623_v47  ;;  %5818 = vmatprep.subr.bf16.mxu1 %v10626_v23  ;;  %v12089_v47 = vld [vmem:[#allocation132_spill] sm:$0xff]  ;;  %v12091_v23 = vld [vmem:[#allocation134_spill] sm:$0xff] }
 0xa5f   :  { %5805 = vmatprep.mubr.bf16.mxu0 %v11301_v44  ;;  %5848 = vmatprep.mubr.bf16.mxu1 %v11301_v44  ;;  %v12090_v44 = vld [vmem:[#allocation133_spill] sm:$0xff] }
 0xa61   :  { %5776 = vmatpush1.bf16.msra.mxu0 %v10631_v28  ;;  %5819 = vmatpush1.bf16.msra.mxu1 %v10634_v38  ;;  %v12092_v28 = vld [vmem:[#allocation135_spill] sm:$0xff]  ;;  %v12093_v38 = vld [vmem:[#allocation136_spill] sm:$0xff] }
 0xa62   :  { %5777 = vmatprep.subr.bf16.mxu0 %v10637_v50  ;;  %5820 = vmatprep.subr.bf16.mxu1 %v10640_v1  ;;  %v12094_v50 = vld [vmem:[#allocation137_spill] sm:$0xff]  ;;  %v12095_v1 = vld [vmem:[#allocation138_spill] sm:$0xff] }
 0xa65   :  { %5778 = vmatpush1.bf16.msra.mxu0 %v10643_v48  ;;  %5821 = vmatpush1.bf16.msra.mxu1 %v10646_v6  ;;  %v12096_v48 = vld [vmem:[#allocation15_spill] sm:$0xff]  ;;  %v12097_v6 = vld [vmem:[#allocation30_spill] sm:$0xff] }
 0xa66   :  { %5779 = vmatprep.subr.bf16.mxu0 %v12086_v30  ;;  %5822 = vmatprep.subr.bf16.mxu1 %v12087_v36 }
 0xa69   :  { %5780 = vmatpush1.bf16.msra.mxu0 %v12088_v20  ;;  %5823 = vmatpush1.bf16.msra.mxu1 %v12089_v47 }
 0xa6a   :  { %5781 = vmatprep.subr.bf16.mxu0 %v12090_v44  ;;  %5824 = vmatprep.subr.bf16.mxu1 %v12091_v23 }
 0xa6d   :  { %5782 = vmatpush1.bf16.msra.mxu0 %v12092_v28  ;;  %5825 = vmatpush1.bf16.msra.mxu1 %v12093_v38 }
 0xa6e   :  { %5783 = vmatprep.subr.bf16.mxu0 %v12094_v50  ;;  %5826 = vmatprep.subr.bf16.mxu1 %v12095_v1 }
 0xa71   :  { %5784 = vmatpush1.bf16.msra.mxu0 %v12096_v48  ;;  %5827 = vmatpush1.bf16.msra.mxu1 %v12097_v6 }
 0xa72   :  { %5785 = vmatprep.subr.bf16.mxu0 %v12098_v10  ;;  %5828 = vmatprep.subr.bf16.mxu1 %v12099_v24 }
 0xa75   :  { %5786 = vmatpush1.bf16.msra.mxu0 %v10691_v61  ;;  %5829 = vmatpush1.bf16.msra.mxu1 %v10694_v27 }
 0xa76   :  { %5787 = vmatprep.subr.bf16.mxu0 %v10697_v34  ;;  %5830 = vmatprep.subr.bf16.mxu1 %v10700_v3 }
 0xa79   :  { %5788 = vmatpush1.bf16.msra.mxu0 %v10703_v16  ;;  %5831 = vmatpush1.bf16.msra.mxu1 %v10706_v32 }
 0xa7c   :  { %5806 = vmatmul.mubr.bf16.vlgmr.msra.gmra.mxu0 %v10757_v59  ;;  %5849 = vmatmul.mubr.bf16.vlgmr.msra.gmra.mxu1 %v10757_v59 }
 0xb1c   :  { %v5721_v13 = vpop.f32.mrf.mxu0  ;;  %v5764_v49 = vpop.f32.mrf.mxu1 }
 0xb1e   :  { %v5723_v35 = vpop.f32.mrf.mxu0  ;;  %v5766_v14 = vpop.f32.mrf.mxu1 }
 0xb20   :  { %v5725_v54 = vpop.f32.mrf.mxu0  ;;  %v5768_v61 = vpop.f32.mrf.mxu1 }
 0xb22   :  { %v5727_v37 = vpop.f32.mrf.mxu0  ;;  %v5770_v27 = vpop.f32.mrf.mxu1 }
 0xb3c   :  { %v5807_v9 = vpop.f32.mrf.mxu0  ;;  %v5850_v34 = vpop.f32.mrf.mxu1 }
 0xb3d   :  { %v5808_v8 = vadd.f32 %v5807_v9, %v5721_v13  ;;  %v5851_v32 = vadd.f32 %v5850_v34, %v5764_v49 }
 0xb3e   :  { %v5809_v3 = vpop.f32.mrf.mxu0  ;;  %v5852_v57 = vpop.f32.mrf.mxu1 }
 0xb3f   :  { %v5859_v16 = vadd.f32 %v5808_v8, %v8628_v0  ;;  %v5810_v29 = vadd.f32 %v5809_v3, %v5723_v35  ;;  %v5861_v56 = vadd.f32 %v5851_v32, %v8649_v26  ;;  %v5853_v11 = vadd.f32 %v5852_v57, %v5766_v14 }
 0xb40   :  { %v5811_v2 = vpop.f32.mrf.mxu0  ;;  %v5854_v39 = vpop.f32.mrf.mxu1 }
 0xb41   :  { %v5867_v22 = vmul.f32 0.5, %v5859_v16  ;;  %v5860_v59 = vadd.f32 %v5810_v29, %v8638_v21  ;;  %v5812_v40 = vadd.f32 %v5811_v2, %v5725_v54  ;;  %v5855_v55 = vadd.f32 %v5854_v39, %v5768_v61 }
 0xb42   :  { %v5813_v53 = vpop.f32.mrf.mxu0  ;;  %v5856_v5 = vpop.f32.mrf.mxu1  ;;  %v5862_v25 = vadd.f32 %v5853_v11, %v8689_v58 }
 0xb43   :  { %6807 = vtanh.f32 %v5867_v22  ;;  %v5875_v4 = vmul.f32 0.5, %v5860_v59  ;;  %v5814_v42 = vadd.f32 %v5813_v53, %v5727_v37  ;;  %v5863_v43 = vadd.f32 %v5812_v40, %v8628_v0 }
 0xb44   :  { %v5865_v31 = vadd.f32 %v5855_v55, %v8649_v26  ;;  %v5857_v15 = vadd.f32 %v5856_v5, %v5770_v27  ;;  %v5885_v33 = vmul.f32 0.5, %v5862_v25  ;;  %v6096_v27 = vld [vmem:[#allocation2] ss:$0 sm:$0xff] }
 0xb45   :  { %6809 = vtanh.f32 %v5875_v4  ;;  %v5864_v62 = vadd.f32 %v5814_v42, %v8638_v21  ;;  %v5868_v51 = vmul.f32 0.5, %v5863_v43 }
 0xb46   :  { %6811 = vtanh.f32 %v5861_v56  ;;  %v5866_v0 = vadd.f32 %v5857_v15, %v8689_v58 }
 0xb47   :  { %v5876_v18 = vmul.f32 0.5, %v5864_v62  ;;  %6813 = vtanh.f32 %v5868_v51 }
 0xb48   :  { %v5886_v12 = vmul.f32 0.5, %v5866_v0 }
 0xb49   :  { %6815 = vtanh.f32 %v5876_v18 }
 0xb4a   :  { %6817 = vtanh.f32 %v5865_v31 }
 0xb4b   :  { %6819 = vtanh.f32 %v5885_v33 }
 0xb4c   :  { %6821 = vtanh.f32 %v5886_v12 }
 0xb50   :  { %v6808_v45 = vpop.eup %6807 }
 0xb51   :  { %v5871_v19 = vmul.f32 0.5, %v6808_v45 }
 0xb52   :  { %v6810_v17 = vpop.eup %6809 }
 0xb53   :  { %v5873_v21 = vadd.f32 0.5, %v5871_v19  ;;  %v5879_v46 = vmul.f32 0.5, %v6810_v17  ;;  %v6812_v52 = vpop.eup %6811 }
 0xb54   :  { %v6814_v60 = vpop.eup %6813 }
 0xb55   :  { %v5881_v41 = vadd.f32 0.5, %v5879_v46  ;;  %v5872_v26 = vmul.f32 0.5, %v6814_v60  ;;  %v5895_v20 = vmul.f32 %v6812_v52, %v5873_v21 }
 0xb56   :  { %v6816_v30 = vpop.eup %6815 }
 0xb57   :  { %v5893_v36 = vmul.f32 %v5881_v41, %v10768_v7  ;;  %v5880_v47 = vmul.f32 0.5, %v6816_v30  ;;  %v5874_v44 = vadd.f32 0.5, %v5872_v26  ;;  %v6818_v28 = vpop.eup %6817  ;;  %v6095_v7 = vld [vmem:[%s10838_s10] ss:$0 sm:$0xff] }
 0xb58   :  { %v6820_v48 = vpop.eup %6819 }
 0xb59   :  { %v5897_v23 = vadd.f32 %v5895_v20, %v5893_v36  ;;  %v5882_v58 = vadd.f32 0.5, %v5880_v47  ;;  %v5896_v50 = vmul.f32 %v6818_v28, %v5874_v44  ;;  %v5889_v6 = vmul.f32 0.5, %v6820_v48  ;;  %v6822_v10 = vpop.eup %6821 }
 0xb5a   :  { %v5890_v13 = vmul.f32 0.5, %v6822_v10 }
 0xb5b   :  { %6823 = vtanh.f32 %v5897_v23  ;;  %v5894_v38 = vmul.f32 %v5882_v58, %v10772_v63  ;;  %v5891_v24 = vadd.f32 0.5, %v5889_v6 }
 0xb5c   :  { %v5892_v54 = vadd.f32 0.5, %v5890_v13 }
 0xb5d   :  { %v5898_v1 = vadd.f32 %v5896_v50, %v5894_v38 }
 0xb5f   :  { %6825 = vtanh.f32 %v5898_v1 }
 0xb68   :  { %v6824_v49 = vpop.eup %6823 }
 0xb69   :  { %v5901_v35 = vmul.f32 %v6824_v49, %v5891_v24 }
 0xb6b   :  { %v5910_v14 = vmul.f32 %v6095_v7, %v5901_v35 }
 0xb6c   :  { %v6826_v61 = vpop.eup %6825 }
 0xb6d   :  { %5912 = vadd.xlane.f32.xlu0 %v5910_v14  ;;  %v5902_v37 = vmul.f32 %v6826_v61, %v5892_v54 }
 0xb6f   :  { %v5911_v63 = vmul.f32 %v6095_v7, %v5902_v37 }
 0xb71   :  { %5914 = vadd.xlane.f32.xlu1 %v5911_v63 }
 0xbf6   :  { %v5913_v9 = vpop.xlane.xlu0 %5912 }
 0xbf7   :  { %v5923_v34 = vadd.f32 %v6096_v27, %v5913_v9 }
 0xbf9   :  { %5926 = vst.msk [vmem:[%s10840_s12] sm:$0xff] %vm5925_vm0, %v5923_v34 }
 0xbfa   :  { %v5915_v8 = vpop.xlane.xlu1 %5914 }
 0xbfb   :  { %v5924_v3 = vadd.f32 %v6096_v27, %v5915_v8 }
 0xbfd   :  { %5927 = vst.msk [vmem:[%s10840_s12 + $0x8] sm:$0xff] %vm5925_vm0, %v5924_v3 }
 0xbfe   :  { %5932 = vsyncpa [#allocation4], 1 }
 0xbff   :  { %5933 = vsyncpa [#allocation6], 1 }
 0xc00   :  { %5934 = vsyncpa [#allocation9], 1 }

</bundles_post_ra>
